<compile_context>
chip_gen: v5e
topology: v5e:2x2
jax: 0.10.0
libtpu: 0.0.40
codegen_flags: <defaults>
</compile_context>

<pallas_src>
import math
import functools

import jax
import jax.numpy as jnp
from jax.experimental import pallas as pl
from jax.experimental.pallas import tpu as pltpu

# ----------------------------- model config (small) -------------------------
D_MODEL = 128
N_HEADS = 4
D_FF = 256
N_LAYERS = 2
SRC_VOCAB = 256
TGT_VOCAB = 256
SRC_MAX_LEN = 16
TGT_MAX_LEN = 16

# Canonical ordering of the weight arrays passed to the fused kernel.
WEIGHT_KEYS = (
    # encoder stack (per-layer weights stacked on a leading N_LAYERS axis)
    "e_wqkv", "e_bqkv", "e_wo", "e_bo", "e_ln1g", "e_ln1b",
    "e_w1", "e_b1", "e_w2", "e_b2", "e_ln2g", "e_ln2b",
    "enc_ng", "enc_nb",
    # decoder stack
    "d_wqkv", "d_bqkv", "d_wo", "d_bo", "d_ln1g", "d_ln1b",
    "d_cwq", "d_cbq", "d_cwkv", "d_cbkv", "d_cwo", "d_cbo", "d_ln2g", "d_ln2b",
    "d_w1", "d_b1", "d_w2", "d_b2", "d_ln3g", "d_ln3b",
    "dec_ng", "dec_nb",
    # output head
    "out_w", "out_b",
)


# ----------------------------- fused Pallas kernel ---------------------------
def _t2t_kernel(src_ref, tgt_ref, mask_ref,
                e_wqkv, e_bqkv, e_wo, e_bo, e_ln1g, e_ln1b,
                e_w1, e_b1, e_w2, e_b2, e_ln2g, e_ln2b,
                enc_ng, enc_nb,
                d_wqkv, d_bqkv, d_wo, d_bo, d_ln1g, d_ln1b,
                d_cwq, d_cbq, d_cwkv, d_cbkv, d_cwo, d_cbo, d_ln2g, d_ln2b,
                d_w1, d_b1, d_w2, d_b2, d_ln3g, d_ln3b,
                dec_ng, dec_nb, out_w, out_b,
                o_ref, attn_sc, *, n_heads):
    Ls = src_ref.shape[1]
    Lt = tgt_ref.shape[1]
    D = src_ref.shape[2]
    NL = e_wqkv.shape[0]
    Dh = D // n_heads
    scale = 1.0 / math.sqrt(Dh)

    def mm(x, w_ref, l=None, b_ref=None):
        # bf16 MXU operands, f32 accumulation; bias added in f32.
        w = w_ref[l] if l is not None else w_ref[...]
        o = jnp.dot(x.astype(jnp.bfloat16), w, preferred_element_type=jnp.float32)
        if b_ref is not None:
            b = b_ref[l] if l is not None else b_ref[...]
            o = o + b
        return o

    def layer_norm(x, g_ref, b_ref, l=None):
        g = g_ref[l] if l is not None else g_ref[...]
        b = b_ref[l] if l is not None else b_ref[...]
        mu = jnp.mean(x, axis=-1, keepdims=True)
        xc = x - mu
        var = jnp.mean(xc * xc, axis=-1, keepdims=True)
        return xc * jax.lax.rsqrt(var + 1e-5) * g + b

    def attention(q, k, v, mask, Lq):
        # q: (Lq, D), k/v: (Lk, D); heads are 32-lane column slices.
        # Head outputs are written into a lane-dense (Lq, 128) VMEM slab.
        for h in range(n_heads):
            sl = slice(h * Dh, (h + 1) * Dh)
            qh = q[:, sl].astype(jnp.bfloat16)
            kh = k[:, sl].astype(jnp.bfloat16)
            vh = v[:, sl].astype(jnp.bfloat16)
            s = jax.lax.dot_general(
                qh, kh, (((1,), (1,)), ((), ())),
                preferred_element_type=jnp.float32) * scale
            if mask is not None:
                s = s + mask
            s = s - jnp.max(s, axis=-1, keepdims=True)
            p = jnp.exp(s)
            denom = jnp.sum(p, axis=-1, keepdims=True)
            oh = jnp.dot(p.astype(jnp.bfloat16), vh,
                         preferred_element_type=jnp.float32)
            attn_sc[0:Lq, sl] = oh * pl.reciprocal(denom, approx=True)
        return attn_sc[0:Lq, :]

    # ---------------- encoder (post-LN) ----------------
    x = src_ref[0].astype(jnp.float32)                       # (Ls, D)
    for l in range(NL):
        qkv = mm(x, e_wqkv, l, e_bqkv)                       # (Ls, 3D)
        a = attention(qkv[:, 0:D], qkv[:, D:2 * D], qkv[:, 2 * D:3 * D],
                      None, Ls)
        a = mm(a, e_wo, l, e_bo)
        x = layer_norm(x + a, e_ln1g, e_ln1b, l)             # residual fused
        h1 = jnp.maximum(mm(x, e_w1, l, e_b1), 0.0)          # ReLU FFN
        f = mm(h1, e_w2, l, e_b2)
        x = layer_norm(x + f, e_ln2g, e_ln2b, l)
    memory = layer_norm(x, enc_ng, enc_nb)                   # (Ls, D)

    # ---------------- decoder (post-LN) ----------------
    mask = mask_ref[...]                                     # causal (Lt, Lt)
    y = tgt_ref[0].astype(jnp.float32)                       # (Lt, D)
    for l in range(NL):
        qkv = mm(y, d_wqkv, l, d_bqkv)                       # (Lt, 3D)
        a = attention(qkv[:, 0:D], qkv[:, D:2 * D], qkv[:, 2 * D:3 * D],
                      mask, Lt)
        a = mm(a, d_wo, l, d_bo)
        y = layer_norm(y + a, d_ln1g, d_ln1b, l)
        cq = mm(y, d_cwq, l, d_cbq)                          # (Lt, D)
        ckv = mm(memory, d_cwkv, l, d_cbkv)                  # (Ls, 2D)
        c = attention(cq, ckv[:, 0:D], ckv[:, D:2 * D], None, Lt)
        c = mm(c, d_cwo, l, d_cbo)
        y = layer_norm(y + c, d_ln2g, d_ln2b, l)
        h1 = jnp.maximum(mm(y, d_w1, l, d_b1), 0.0)
        f = mm(h1, d_w2, l, d_b2)
        y = layer_norm(y + f, d_ln3g, d_ln3b, l)
    y = layer_norm(y, dec_ng, dec_nb)

    # ---------------- output head (lane-dense 256-wide) ----------------
    o_ref[0] = mm(y, out_w, None, out_b).astype(o_ref.dtype)


# ----------------------------- wrapper ---------------------------------------
def token2token_forward(params, src_token, tgt_token, tgt_is_causal=True):
    B, Ls = src_token.shape
    _, Lt = tgt_token.shape
    D = D_MODEL

    # embeddings (+ positional encoding; dropout is identity in eval).
    # Token gather stays in XLA (tiny); everything else runs inside one kernel.
    src_x = (params["src_emb"][src_token] * math.sqrt(D)
             + params["pe_src"][:Ls]).astype(jnp.float32)
    tgt_x = (params["tgt_emb"][tgt_token] * math.sqrt(D)
             + params["pe_tgt"][:Lt]).astype(jnp.float32)

    if tgt_is_causal:
        r = jnp.arange(Lt)
        mask = jnp.where(r[None, :] > r[:, None], -1e9, 0.0).astype(jnp.float32)
    else:
        mask = jnp.zeros((Lt, Lt), jnp.float32)

    weights = [params[k] for k in WEIGHT_KEYS]

    def full_spec(a):
        nd = a.ndim
        return pl.BlockSpec(a.shape, lambda b, _n=nd: (0,) * _n)

    kern = functools.partial(_t2t_kernel, n_heads=N_HEADS)
    logits = pl.pallas_call(
        kern,
        out_shape=jax.ShapeDtypeStruct((B, Lt, TGT_VOCAB), jnp.float32),
        grid=(B,),
        in_specs=[
            pl.BlockSpec((1, Ls, D), lambda b: (b, 0, 0)),
            pl.BlockSpec((1, Lt, D), lambda b: (b, 0, 0)),
            full_spec(mask),
        ] + [full_spec(w) for w in weights],
        out_specs=pl.BlockSpec((1, Lt, TGT_VOCAB), lambda b: (b, 0, 0)),
        scratch_shapes=[pltpu.VMEM((max(Ls, Lt), D), jnp.float32)],
        compiler_params=pltpu.CompilerParams(
            dimension_semantics=("parallel",)),
    )(src_x, tgt_x, mask, *weights)
    return logits


# ----------------------------- positional encoding ---------------------------
def sinusoidal_pe(max_len, d_model):
    pos = jnp.arange(max_len)[:, None].astype(jnp.float32)
    i = jnp.arange(0, d_model, 2).astype(jnp.float32)
    div = jnp.exp(-math.log(10000.0) * i / d_model)
    pe = jnp.zeros((max_len, d_model), jnp.float32)
    pe = pe.at[:, 0::2].set(jnp.sin(pos * div))
    pe = pe.at[:, 1::2].set(jnp.cos(pos * div))
    return pe


# ----------------------------- deterministic init ---------------------------
def init_params(key):
    keys = iter(jax.random.split(key, 512))

    def nk():
        return next(keys)

    def w(shape):
        return jax.random.normal(nk(), shape, jnp.float32) * 0.02

    def stack_w(shape):
        # per-layer matmul weights, stacked and stored as bf16 (MXU operands)
        return jnp.stack([w(shape) for _ in range(N_LAYERS)]).astype(jnp.bfloat16)

    def stack_b(n):
        return jnp.zeros((N_LAYERS, 1, n), jnp.float32)

    def stack_ln_g():
        return jnp.ones((N_LAYERS, 1, D_MODEL), jnp.float32)

    def stack_ln_b():
        return jnp.zeros((N_LAYERS, 1, D_MODEL), jnp.float32)

    D, F = D_MODEL, D_FF
    return dict(
        src_emb=w((SRC_VOCAB, D)),
        tgt_emb=w((TGT_VOCAB, D)),
        pe_src=sinusoidal_pe(SRC_MAX_LEN, D),
        pe_tgt=sinusoidal_pe(TGT_MAX_LEN, D),
        # encoder
        e_wqkv=stack_w((D, 3 * D)), e_bqkv=stack_b(3 * D),
        e_wo=stack_w((D, D)), e_bo=stack_b(D),
        e_ln1g=stack_ln_g(), e_ln1b=stack_ln_b(),
        e_w1=stack_w((D, F)), e_b1=stack_b(F),
        e_w2=stack_w((F, D)), e_b2=stack_b(D),
        e_ln2g=stack_ln_g(), e_ln2b=stack_ln_b(),
        enc_ng=jnp.ones((1, D), jnp.float32),
        enc_nb=jnp.zeros((1, D), jnp.float32),
        # decoder
        d_wqkv=stack_w((D, 3 * D)), d_bqkv=stack_b(3 * D),
        d_wo=stack_w((D, D)), d_bo=stack_b(D),
        d_ln1g=stack_ln_g(), d_ln1b=stack_ln_b(),
        d_cwq=stack_w((D, D)), d_cbq=stack_b(D),
        d_cwkv=stack_w((D, 2 * D)), d_cbkv=stack_b(2 * D),
        d_cwo=stack_w((D, D)), d_cbo=stack_b(D),
        d_ln2g=stack_ln_g(), d_ln2b=stack_ln_b(),
        d_w1=stack_w((D, F)), d_b1=stack_b(F),
        d_w2=stack_w((F, D)), d_b2=stack_b(D),
        d_ln3g=stack_ln_g(), d_ln3b=stack_ln_b(),
        dec_ng=jnp.ones((1, D), jnp.float32),
        dec_nb=jnp.zeros((1, D), jnp.float32),
        # head
        out_w=w((D, TGT_VOCAB)).astype(jnp.bfloat16),
        out_b=jnp.zeros((1, TGT_VOCAB), jnp.float32),
    )


# ----------------------------- driver ---------------------------------------
if __name__ == "__main__":
    params = init_params(jax.random.PRNGKey(42))

    key = jax.random.PRNGKey(0)
    k1, k2 = jax.random.split(key)
    src_token = jax.random.randint(k1, (2, 8), 0, SRC_VOCAB, dtype=jnp.int32)
    tgt_token = jax.random.randint(k2, (2, 8), 0, TGT_VOCAB, dtype=jnp.int32)

    # forward() assertion (token ids within vocab) — checked eagerly here.
    assert bool((src_token < SRC_VOCAB).all()) and bool((tgt_token < TGT_VOCAB).all())

    fwd = jax.jit(functools.partial(token2token_forward, tgt_is_causal=True))
    out = jax.block_until_ready(fwd(params, src_token, tgt_token))

    assert out.shape == (2, 8, TGT_VOCAB) and out.dtype == jnp.float32
    assert bool(jnp.isfinite(out).all())
    print("KERNEL_OK")
</pallas_src>

<mosaic_0001>
module attributes {stable_mosaic.version = 11 : i64} {
  func.func @_t2t_kernel(%arg0: i32, %arg1: memref<1x8x128xf32, #tpu.memory_space<vmem>>, %arg2: memref<1x8x128xf32, #tpu.memory_space<vmem>>, %arg3: memref<8x8xf32, #tpu.memory_space<vmem>>, %arg4: memref<2x128x384xbf16, #tpu.memory_space<vmem>>, %arg5: memref<2x1x384xf32, #tpu.memory_space<vmem>>, %arg6: memref<2x128x128xbf16, #tpu.memory_space<vmem>>, %arg7: memref<2x1x128xf32, #tpu.memory_space<vmem>>, %arg8: memref<2x1x128xf32, #tpu.memory_space<vmem>>, %arg9: memref<2x1x128xf32, #tpu.memory_space<vmem>>, %arg10: memref<2x128x256xbf16, #tpu.memory_space<vmem>>, %arg11: memref<2x1x256xf32, #tpu.memory_space<vmem>>, %arg12: memref<2x256x128xbf16, #tpu.memory_space<vmem>>, %arg13: memref<2x1x128xf32, #tpu.memory_space<vmem>>, %arg14: memref<2x1x128xf32, #tpu.memory_space<vmem>>, %arg15: memref<2x1x128xf32, #tpu.memory_space<vmem>>, %arg16: memref<1x128xf32, #tpu.memory_space<vmem>>, %arg17: memref<1x128xf32, #tpu.memory_space<vmem>>, %arg18: memref<2x128x384xbf16, #tpu.memory_space<vmem>>, %arg19: memref<2x1x384xf32, #tpu.memory_space<vmem>>, %arg20: memref<2x128x128xbf16, #tpu.memory_space<vmem>>, %arg21: memref<2x1x128xf32, #tpu.memory_space<vmem>>, %arg22: memref<2x1x128xf32, #tpu.memory_space<vmem>>, %arg23: memref<2x1x128xf32, #tpu.memory_space<vmem>>, %arg24: memref<2x128x128xbf16, #tpu.memory_space<vmem>>, %arg25: memref<2x1x128xf32, #tpu.memory_space<vmem>>, %arg26: memref<2x128x256xbf16, #tpu.memory_space<vmem>>, %arg27: memref<2x1x256xf32, #tpu.memory_space<vmem>>, %arg28: memref<2x128x128xbf16, #tpu.memory_space<vmem>>, %arg29: memref<2x1x128xf32, #tpu.memory_space<vmem>>, %arg30: memref<2x1x128xf32, #tpu.memory_space<vmem>>, %arg31: memref<2x1x128xf32, #tpu.memory_space<vmem>>, %arg32: memref<2x128x256xbf16, #tpu.memory_space<vmem>>, %arg33: memref<2x1x256xf32, #tpu.memory_space<vmem>>, %arg34: memref<2x256x128xbf16, #tpu.memory_space<vmem>>, %arg35: memref<2x1x128xf32, #tpu.memory_space<vmem>>, %arg36: memref<2x1x128xf32, #tpu.memory_space<vmem>>, %arg37: memref<2x1x128xf32, #tpu.memory_space<vmem>>, %arg38: memref<1x128xf32, #tpu.memory_space<vmem>>, %arg39: memref<1x128xf32, #tpu.memory_space<vmem>>, %arg40: memref<128x256xbf16, #tpu.memory_space<vmem>>, %arg41: memref<1x256xf32, #tpu.memory_space<vmem>>, %arg42: memref<1x8x256xf32, #tpu.memory_space<vmem>>, %arg43: memref<8x128xf32, #tpu.memory_space<vmem>>) attributes {dimension_semantics = [#tpu.dimension_semantics<parallel>], iteration_bounds = array<i64: 2>, scalar_prefetch = 0 : i64, scratch_operands = 1 : i64, tpu.core_type = #tpu.core_type<tc>, window_params = [{transform_indices = @transform_0, window_bounds = array<i64: 1, 8, 128>}, {transform_indices = @transform_1, window_bounds = array<i64: 1, 8, 128>}, {pipeline_mode = #tpu.pipeline_mode<synchronous>, transform_indices = @transform_2, window_bounds = array<i64: 8, 8>}, {pipeline_mode = #tpu.pipeline_mode<synchronous>, transform_indices = @transform_3, window_bounds = array<i64: 2, 128, 384>}, {pipeline_mode = #tpu.pipeline_mode<synchronous>, transform_indices = @transform_4, window_bounds = array<i64: 2, 1, 384>}, {pipeline_mode = #tpu.pipeline_mode<synchronous>, transform_indices = @transform_5, window_bounds = array<i64: 2, 128, 128>}, {pipeline_mode = #tpu.pipeline_mode<synchronous>, transform_indices = @transform_6, window_bounds = array<i64: 2, 1, 128>}, {pipeline_mode = #tpu.pipeline_mode<synchronous>, transform_indices = @transform_7, window_bounds = array<i64: 2, 1, 128>}, {pipeline_mode = #tpu.pipeline_mode<synchronous>, transform_indices = @transform_8, window_bounds = array<i64: 2, 1, 128>}, {pipeline_mode = #tpu.pipeline_mode<synchronous>, transform_indices = @transform_9, window_bounds = array<i64: 2, 128, 256>}, {pipeline_mode = #tpu.pipeline_mode<synchronous>, transform_indices = @transform_10, window_bounds = array<i64: 2, 1, 256>}, {pipeline_mode = #tpu.pipeline_mode<synchronous>, transform_indices = @transform_11, window_bounds = array<i64: 2, 256, 128>}, {pipeline_mode = #tpu.pipeline_mode<synchronous>, transform_indices = @transform_12, window_bounds = array<i64: 2, 1, 128>}, {pipeline_mode = #tpu.pipeline_mode<synchronous>, transform_indices = @transform_13, window_bounds = array<i64: 2, 1, 128>}, {pipeline_mode = #tpu.pipeline_mode<synchronous>, transform_indices = @transform_14, window_bounds = array<i64: 2, 1, 128>}, {pipeline_mode = #tpu.pipeline_mode<synchronous>, transform_indices = @transform_15, window_bounds = array<i64: 1, 128>}, {pipeline_mode = #tpu.pipeline_mode<synchronous>, transform_indices = @transform_16, window_bounds = array<i64: 1, 128>}, {pipeline_mode = #tpu.pipeline_mode<synchronous>, transform_indices = @transform_17, window_bounds = array<i64: 2, 128, 384>}, {pipeline_mode = #tpu.pipeline_mode<synchronous>, transform_indices = @transform_18, window_bounds = array<i64: 2, 1, 384>}, {pipeline_mode = #tpu.pipeline_mode<synchronous>, transform_indices = @transform_19, window_bounds = array<i64: 2, 128, 128>}, {pipeline_mode = #tpu.pipeline_mode<synchronous>, transform_indices = @transform_20, window_bounds = array<i64: 2, 1, 128>}, {pipeline_mode = #tpu.pipeline_mode<synchronous>, transform_indices = @transform_21, window_bounds = array<i64: 2, 1, 128>}, {pipeline_mode = #tpu.pipeline_mode<synchronous>, transform_indices = @transform_22, window_bounds = array<i64: 2, 1, 128>}, {pipeline_mode = #tpu.pipeline_mode<synchronous>, transform_indices = @transform_23, window_bounds = array<i64: 2, 128, 128>}, {pipeline_mode = #tpu.pipeline_mode<synchronous>, transform_indices = @transform_24, window_bounds = array<i64: 2, 1, 128>}, {pipeline_mode = #tpu.pipeline_mode<synchronous>, transform_indices = @transform_25, window_bounds = array<i64: 2, 128, 256>}, {pipeline_mode = #tpu.pipeline_mode<synchronous>, transform_indices = @transform_26, window_bounds = array<i64: 2, 1, 256>}, {pipeline_mode = #tpu.pipeline_mode<synchronous>, transform_indices = @transform_27, window_bounds = array<i64: 2, 128, 128>}, {pipeline_mode = #tpu.pipeline_mode<synchronous>, transform_indices = @transform_28, window_bounds = array<i64: 2, 1, 128>}, {pipeline_mode = #tpu.pipeline_mode<synchronous>, transform_indices = @transform_29, window_bounds = array<i64: 2, 1, 128>}, {pipeline_mode = #tpu.pipeline_mode<synchronous>, transform_indices = @transform_30, window_bounds = array<i64: 2, 1, 128>}, {pipeline_mode = #tpu.pipeline_mode<synchronous>, transform_indices = @transform_31, window_bounds = array<i64: 2, 128, 256>}, {pipeline_mode = #tpu.pipeline_mode<synchronous>, transform_indices = @transform_32, window_bounds = array<i64: 2, 1, 256>}, {pipeline_mode = #tpu.pipeline_mode<synchronous>, transform_indices = @transform_33, window_bounds = array<i64: 2, 256, 128>}, {pipeline_mode = #tpu.pipeline_mode<synchronous>, transform_indices = @transform_34, window_bounds = array<i64: 2, 1, 128>}, {pipeline_mode = #tpu.pipeline_mode<synchronous>, transform_indices = @transform_35, window_bounds = array<i64: 2, 1, 128>}, {pipeline_mode = #tpu.pipeline_mode<synchronous>, transform_indices = @transform_36, window_bounds = array<i64: 2, 1, 128>}, {pipeline_mode = #tpu.pipeline_mode<synchronous>, transform_indices = @transform_37, window_bounds = array<i64: 1, 128>}, {pipeline_mode = #tpu.pipeline_mode<synchronous>, transform_indices = @transform_38, window_bounds = array<i64: 1, 128>}, {pipeline_mode = #tpu.pipeline_mode<synchronous>, transform_indices = @transform_39, window_bounds = array<i64: 128, 256>}, {pipeline_mode = #tpu.pipeline_mode<synchronous>, transform_indices = @transform_40, window_bounds = array<i64: 1, 256>}, {transform_indices = @transform_41, window_bounds = array<i64: 1, 8, 256>}]} {
    %c0 = arith.constant 0 : index
    %c0_0 = arith.constant 0 : index
    %c0_1 = arith.constant 0 : index
    %0 = vector.load %arg1[%c0, %c0_0, %c0_1] : memref<1x8x128xf32, #tpu.memory_space<vmem>>, vector<1x8x128xf32>
    %1 = vector.shape_cast %0 : vector<1x8x128xf32> to vector<8x128xf32>
    %c0_2 = arith.constant 0 : index
    %c0_3 = arith.constant 0 : index
    %c0_4 = arith.constant 0 : index
    %2 = vector.load %arg4[%c0_2, %c0_3, %c0_4] : memref<2x128x384xbf16, #tpu.memory_space<vmem>>, vector<1x128x384xbf16>
    %3 = vector.shape_cast %2 : vector<1x128x384xbf16> to vector<128x384xbf16>
    %4 = arith.truncf %1 : vector<8x128xf32> to vector<8x128xbf16>
    %cst = arith.constant dense<0.000000e+00> : vector<8x384xf32>
    %5 = tpu.matmul %4, %3, %cst {dimension_numbers = #tpu.dot_dimension_numbers<[1], [0], [0], [1], [0, 0, 1, 1], [], []>} : vector<8x128xbf16>, vector<128x384xbf16>, vector<8x384xf32> -> vector<8x384xf32>
    %c0_5 = arith.constant 0 : index
    %c0_6 = arith.constant 0 : index
    %c0_7 = arith.constant 0 : index
    %6 = vector.load %arg5[%c0_5, %c0_6, %c0_7] : memref<2x1x384xf32, #tpu.memory_space<vmem>>, vector<1x1x384xf32>
    %7 = vector.shape_cast %6 : vector<1x1x384xf32> to vector<1x384xf32>
    %8 = vector.broadcast %7 : vector<1x384xf32> to vector<8x384xf32>
    %9 = arith.addf %5, %8 : vector<8x384xf32>
    %10 = vector.extract_strided_slice %9 {offsets = [0, 0], sizes = [8, 128], strides = [1, 1]} : vector<8x384xf32> to vector<8x128xf32>
    %11 = vector.extract_strided_slice %9 {offsets = [0, 128], sizes = [8, 128], strides = [1, 1]} : vector<8x384xf32> to vector<8x128xf32>
    %12 = vector.extract_strided_slice %9 {offsets = [0, 256], sizes = [8, 128], strides = [1, 1]} : vector<8x384xf32> to vector<8x128xf32>
    %13 = vector.extract_strided_slice %10 {offsets = [0, 0], sizes = [8, 32], strides = [1, 1]} : vector<8x128xf32> to vector<8x32xf32>
    %14 = arith.truncf %13 : vector<8x32xf32> to vector<8x32xbf16>
    %15 = vector.extract_strided_slice %11 {offsets = [0, 0], sizes = [8, 32], strides = [1, 1]} : vector<8x128xf32> to vector<8x32xf32>
    %16 = arith.truncf %15 : vector<8x32xf32> to vector<8x32xbf16>
    %17 = vector.extract_strided_slice %12 {offsets = [0, 0], sizes = [8, 32], strides = [1, 1]} : vector<8x128xf32> to vector<8x32xf32>
    %18 = arith.truncf %17 : vector<8x32xf32> to vector<8x32xbf16>
    %cst_8 = arith.constant dense<0.000000e+00> : vector<8x8xf32>
    %19 = tpu.matmul %14, %16, %cst_8 {dimension_numbers = #tpu.dot_dimension_numbers<[1], [1], [0], [0], [0, 0, 1, 0], [], []>} : vector<8x32xbf16>, vector<8x32xbf16>, vector<8x8xf32> -> vector<8x8xf32>
    %cst_9 = arith.constant 0.176776692 : f32
    %20 = vector.broadcast %cst_9 : f32 to vector<8x8xf32>
    %21 = arith.mulf %19, %20 : vector<8x8xf32>
    %cst_10 = arith.constant dense<0xFF800000> : vector<8xf32>
    %22 = vector.multi_reduction <maximumf>, %21, %cst_10 [1] : vector<8x8xf32> to vector<8xf32>
    %23 = vector.shape_cast %22 : vector<8xf32> to vector<8x1xf32>
    %24 = vector.broadcast %23 : vector<8x1xf32> to vector<8x8xf32>
    %25 = arith.subf %21, %24 : vector<8x8xf32>
    %26 = math.exp %25 : vector<8x8xf32>
    %cst_11 = arith.constant dense<0.000000e+00> : vector<8xf32>
    %27 = vector.multi_reduction <add>, %26, %cst_11 [1] : vector<8x8xf32> to vector<8xf32>
    %28 = vector.shape_cast %27 : vector<8xf32> to vector<8x1xf32>
    %29 = arith.truncf %26 : vector<8x8xf32> to vector<8x8xbf16>
    %cst_12 = arith.constant dense<0.000000e+00> : vector<8x32xf32>
    %30 = tpu.matmul %29, %18, %cst_12 {dimension_numbers = #tpu.dot_dimension_numbers<[1], [0], [0], [1], [0, 0, 1, 1], [], []>} : vector<8x8xbf16>, vector<8x32xbf16>, vector<8x32xf32> -> vector<8x32xf32>
    %31 = tpu.reciprocal %28 {approx = true} : vector<8x1xf32> -> vector<8x1xf32>
    %32 = vector.broadcast %31 : vector<8x1xf32> to vector<8x32xf32>
    %33 = arith.mulf %30, %32 : vector<8x32xf32>
    %c0_13 = arith.constant 0 : index
    %c0_14 = arith.constant 0 : index
    %34 = vector.load %arg43[%c0_13, %c0_14] : memref<8x128xf32, #tpu.memory_space<vmem>>, vector<8x32xf32>
    tpu.vector_store %arg43[%c0_13, %c0_14], %33 {strides = array<i32>} : memref<8x128xf32, #tpu.memory_space<vmem>>, vector<8x32xf32>,
    %35 = vector.extract_strided_slice %10 {offsets = [0, 32], sizes = [8, 32], strides = [1, 1]} : vector<8x128xf32> to vector<8x32xf32>
    %36 = arith.truncf %35 : vector<8x32xf32> to vector<8x32xbf16>
    %37 = vector.extract_strided_slice %11 {offsets = [0, 32], sizes = [8, 32], strides = [1, 1]} : vector<8x128xf32> to vector<8x32xf32>
    %38 = arith.truncf %37 : vector<8x32xf32> to vector<8x32xbf16>
    %39 = vector.extract_strided_slice %12 {offsets = [0, 32], sizes = [8, 32], strides = [1, 1]} : vector<8x128xf32> to vector<8x32xf32>
    %40 = arith.truncf %39 : vector<8x32xf32> to vector<8x32xbf16>
    %cst_15 = arith.constant dense<0.000000e+00> : vector<8x8xf32>
    %41 = tpu.matmul %36, %38, %cst_15 {dimension_numbers = #tpu.dot_dimension_numbers<[1], [1], [0], [0], [0, 0, 1, 0], [], []>} : vector<8x32xbf16>, vector<8x32xbf16>, vector<8x8xf32> -> vector<8x8xf32>
    %cst_16 = arith.constant 0.176776692 : f32
    %42 = vector.broadcast %cst_16 : f32 to vector<8x8xf32>
    %43 = arith.mulf %41, %42 : vector<8x8xf32>
    %cst_17 = arith.constant dense<0xFF800000> : vector<8xf32>
    %44 = vector.multi_reduction <maximumf>, %43, %cst_17 [1] : vector<8x8xf32> to vector<8xf32>
    %45 = vector.shape_cast %44 : vector<8xf32> to vector<8x1xf32>
    %46 = vector.broadcast %45 : vector<8x1xf32> to vector<8x8xf32>
    %47 = arith.subf %43, %46 : vector<8x8xf32>
    %48 = math.exp %47 : vector<8x8xf32>
    %cst_18 = arith.constant dense<0.000000e+00> : vector<8xf32>
    %49 = vector.multi_reduction <add>, %48, %cst_18 [1] : vector<8x8xf32> to vector<8xf32>
    %50 = vector.shape_cast %49 : vector<8xf32> to vector<8x1xf32>
    %51 = arith.truncf %48 : vector<8x8xf32> to vector<8x8xbf16>
    %cst_19 = arith.constant dense<0.000000e+00> : vector<8x32xf32>
    %52 = tpu.matmul %51, %40, %cst_19 {dimension_numbers = #tpu.dot_dimension_numbers<[1], [0], [0], [1], [0, 0, 1, 1], [], []>} : vector<8x8xbf16>, vector<8x32xbf16>, vector<8x32xf32> -> vector<8x32xf32>
    %53 = tpu.reciprocal %50 {approx = true} : vector<8x1xf32> -> vector<8x1xf32>
    %54 = vector.broadcast %53 : vector<8x1xf32> to vector<8x32xf32>
    %55 = arith.mulf %52, %54 : vector<8x32xf32>
    %c0_20 = arith.constant 0 : index
    %c32 = arith.constant 32 : index
    %56 = vector.load %arg43[%c0_20, %c32] : memref<8x128xf32, #tpu.memory_space<vmem>>, vector<8x32xf32>
    tpu.vector_store %arg43[%c0_20, %c32], %55 {strides = array<i32>} : memref<8x128xf32, #tpu.memory_space<vmem>>, vector<8x32xf32>,
    %57 = vector.extract_strided_slice %10 {offsets = [0, 64], sizes = [8, 32], strides = [1, 1]} : vector<8x128xf32> to vector<8x32xf32>
    %58 = arith.truncf %57 : vector<8x32xf32> to vector<8x32xbf16>
    %59 = vector.extract_strided_slice %11 {offsets = [0, 64], sizes = [8, 32], strides = [1, 1]} : vector<8x128xf32> to vector<8x32xf32>
    %60 = arith.truncf %59 : vector<8x32xf32> to vector<8x32xbf16>
    %61 = vector.extract_strided_slice %12 {offsets = [0, 64], sizes = [8, 32], strides = [1, 1]} : vector<8x128xf32> to vector<8x32xf32>
    %62 = arith.truncf %61 : vector<8x32xf32> to vector<8x32xbf16>
    %cst_21 = arith.constant dense<0.000000e+00> : vector<8x8xf32>
    %63 = tpu.matmul %58, %60, %cst_21 {dimension_numbers = #tpu.dot_dimension_numbers<[1], [1], [0], [0], [0, 0, 1, 0], [], []>} : vector<8x32xbf16>, vector<8x32xbf16>, vector<8x8xf32> -> vector<8x8xf32>
    %cst_22 = arith.constant 0.176776692 : f32
    %64 = vector.broadcast %cst_22 : f32 to vector<8x8xf32>
    %65 = arith.mulf %63, %64 : vector<8x8xf32>
    %cst_23 = arith.constant dense<0xFF800000> : vector<8xf32>
    %66 = vector.multi_reduction <maximumf>, %65, %cst_23 [1] : vector<8x8xf32> to vector<8xf32>
    %67 = vector.shape_cast %66 : vector<8xf32> to vector<8x1xf32>
    %68 = vector.broadcast %67 : vector<8x1xf32> to vector<8x8xf32>
    %69 = arith.subf %65, %68 : vector<8x8xf32>
    %70 = math.exp %69 : vector<8x8xf32>
    %cst_24 = arith.constant dense<0.000000e+00> : vector<8xf32>
    %71 = vector.multi_reduction <add>, %70, %cst_24 [1] : vector<8x8xf32> to vector<8xf32>
    %72 = vector.shape_cast %71 : vector<8xf32> to vector<8x1xf32>
    %73 = arith.truncf %70 : vector<8x8xf32> to vector<8x8xbf16>
    %cst_25 = arith.constant dense<0.000000e+00> : vector<8x32xf32>
    %74 = tpu.matmul %73, %62, %cst_25 {dimension_numbers = #tpu.dot_dimension_numbers<[1], [0], [0], [1], [0, 0, 1, 1], [], []>} : vector<8x8xbf16>, vector<8x32xbf16>, vector<8x32xf32> -> vector<8x32xf32>
    %75 = tpu.reciprocal %72 {approx = true} : vector<8x1xf32> -> vector<8x1xf32>
    %76 = vector.broadcast %75 : vector<8x1xf32> to vector<8x32xf32>
    %77 = arith.mulf %74, %76 : vector<8x32xf32>
    %c0_26 = arith.constant 0 : index
    %c64 = arith.constant 64 : index
    %78 = vector.load %arg43[%c0_26, %c64] : memref<8x128xf32, #tpu.memory_space<vmem>>, vector<8x32xf32>
    tpu.vector_store %arg43[%c0_26, %c64], %77 {strides = array<i32>} : memref<8x128xf32, #tpu.memory_space<vmem>>, vector<8x32xf32>,
    %79 = vector.extract_strided_slice %10 {offsets = [0, 96], sizes = [8, 32], strides = [1, 1]} : vector<8x128xf32> to vector<8x32xf32>
    %80 = arith.truncf %79 : vector<8x32xf32> to vector<8x32xbf16>
    %81 = vector.extract_strided_slice %11 {offsets = [0, 96], sizes = [8, 32], strides = [1, 1]} : vector<8x128xf32> to vector<8x32xf32>
    %82 = arith.truncf %81 : vector<8x32xf32> to vector<8x32xbf16>
    %83 = vector.extract_strided_slice %12 {offsets = [0, 96], sizes = [8, 32], strides = [1, 1]} : vector<8x128xf32> to vector<8x32xf32>
    %84 = arith.truncf %83 : vector<8x32xf32> to vector<8x32xbf16>
    %cst_27 = arith.constant dense<0.000000e+00> : vector<8x8xf32>
    %85 = tpu.matmul %80, %82, %cst_27 {dimension_numbers = #tpu.dot_dimension_numbers<[1], [1], [0], [0], [0, 0, 1, 0], [], []>} : vector<8x32xbf16>, vector<8x32xbf16>, vector<8x8xf32> -> vector<8x8xf32>
    %cst_28 = arith.constant 0.176776692 : f32
    %86 = vector.broadcast %cst_28 : f32 to vector<8x8xf32>
    %87 = arith.mulf %85, %86 : vector<8x8xf32>
    %cst_29 = arith.constant dense<0xFF800000> : vector<8xf32>
    %88 = vector.multi_reduction <maximumf>, %87, %cst_29 [1] : vector<8x8xf32> to vector<8xf32>
    %89 = vector.shape_cast %88 : vector<8xf32> to vector<8x1xf32>
    %90 = vector.broadcast %89 : vector<8x1xf32> to vector<8x8xf32>
    %91 = arith.subf %87, %90 : vector<8x8xf32>
    %92 = math.exp %91 : vector<8x8xf32>
    %cst_30 = arith.constant dense<0.000000e+00> : vector<8xf32>
    %93 = vector.multi_reduction <add>, %92, %cst_30 [1] : vector<8x8xf32> to vector<8xf32>
    %94 = vector.shape_cast %93 : vector<8xf32> to vector<8x1xf32>
    %95 = arith.truncf %92 : vector<8x8xf32> to vector<8x8xbf16>
    %cst_31 = arith.constant dense<0.000000e+00> : vector<8x32xf32>
    %96 = tpu.matmul %95, %84, %cst_31 {dimension_numbers = #tpu.dot_dimension_numbers<[1], [0], [0], [1], [0, 0, 1, 1], [], []>} : vector<8x8xbf16>, vector<8x32xbf16>, vector<8x32xf32> -> vector<8x32xf32>
    %97 = tpu.reciprocal %94 {approx = true} : vector<8x1xf32> -> vector<8x1xf32>
    %98 = vector.broadcast %97 : vector<8x1xf32> to vector<8x32xf32>
    %99 = arith.mulf %96, %98 : vector<8x32xf32>
    %c0_32 = arith.constant 0 : index
    %c96 = arith.constant 96 : index
    %100 = vector.load %arg43[%c0_32, %c96] : memref<8x128xf32, #tpu.memory_space<vmem>>, vector<8x32xf32>
    tpu.vector_store %arg43[%c0_32, %c96], %99 {strides = array<i32>} : memref<8x128xf32, #tpu.memory_space<vmem>>, vector<8x32xf32>,
    %c0_33 = arith.constant 0 : index
    %c0_34 = arith.constant 0 : index
    %101 = vector.load %arg43[%c0_33, %c0_34] : memref<8x128xf32, #tpu.memory_space<vmem>>, vector<8x128xf32>
    %c0_35 = arith.constant 0 : index
    %c0_36 = arith.constant 0 : index
    %c0_37 = arith.constant 0 : index
    %102 = vector.load %arg6[%c0_35, %c0_36, %c0_37] : memref<2x128x128xbf16, #tpu.memory_space<vmem>>, vector<1x128x128xbf16>
    %103 = vector.shape_cast %102 : vector<1x128x128xbf16> to vector<128x128xbf16>
    %104 = arith.truncf %101 : vector<8x128xf32> to vector<8x128xbf16>
    %cst_38 = arith.constant dense<0.000000e+00> : vector<8x128xf32>
    %105 = tpu.matmul %104, %103, %cst_38 {dimension_numbers = #tpu.dot_dimension_numbers<[1], [0], [0], [1], [0, 0, 1, 1], [], []>} : vector<8x128xbf16>, vector<128x128xbf16>, vector<8x128xf32> -> vector<8x128xf32>
    %c0_39 = arith.constant 0 : index
    %c0_40 = arith.constant 0 : index
    %c0_41 = arith.constant 0 : index
    %106 = vector.load %arg7[%c0_39, %c0_40, %c0_41] : memref<2x1x128xf32, #tpu.memory_space<vmem>>, vector<1x1x128xf32>
    %107 = vector.shape_cast %106 : vector<1x1x128xf32> to vector<1x128xf32>
    %108 = vector.broadcast %107 : vector<1x128xf32> to vector<8x128xf32>
    %109 = arith.addf %105, %108 : vector<8x128xf32>
    %110 = arith.addf %1, %109 : vector<8x128xf32>
    %c0_42 = arith.constant 0 : index
    %c0_43 = arith.constant 0 : index
    %c0_44 = arith.constant 0 : index
    %111 = vector.load %arg8[%c0_42, %c0_43, %c0_44] : memref<2x1x128xf32, #tpu.memory_space<vmem>>, vector<1x1x128xf32>
    %112 = vector.shape_cast %111 : vector<1x1x128xf32> to vector<1x128xf32>
    %c0_45 = arith.constant 0 : index
    %c0_46 = arith.constant 0 : index
    %c0_47 = arith.constant 0 : index
    %113 = vector.load %arg9[%c0_45, %c0_46, %c0_47] : memref<2x1x128xf32, #tpu.memory_space<vmem>>, vector<1x1x128xf32>
    %114 = vector.shape_cast %113 : vector<1x1x128xf32> to vector<1x128xf32>
    %cst_48 = arith.constant dense<0.000000e+00> : vector<8xf32>
    %115 = vector.multi_reduction <add>, %110, %cst_48 [1] : vector<8x128xf32> to vector<8xf32>
    %116 = vector.shape_cast %115 : vector<8xf32> to vector<8x1xf32>
    %cst_49 = arith.constant 1.280000e+02 : f32
    %117 = vector.broadcast %cst_49 : f32 to vector<8x1xf32>
    %118 = arith.divf %116, %117 : vector<8x1xf32>
    %119 = vector.broadcast %118 : vector<8x1xf32> to vector<8x128xf32>
    %120 = arith.subf %110, %119 : vector<8x128xf32>
    %121 = arith.mulf %120, %120 : vector<8x128xf32>
    %cst_50 = arith.constant dense<0.000000e+00> : vector<8xf32>
    %122 = vector.multi_reduction <add>, %121, %cst_50 [1] : vector<8x128xf32> to vector<8xf32>
    %123 = vector.shape_cast %122 : vector<8xf32> to vector<8x1xf32>
    %cst_51 = arith.constant 1.280000e+02 : f32
    %124 = vector.broadcast %cst_51 : f32 to vector<8x1xf32>
    %125 = arith.divf %123, %124 : vector<8x1xf32>
    %cst_52 = arith.constant 9.99999974E-6 : f32
    %126 = vector.broadcast %cst_52 : f32 to vector<8x1xf32>
    %127 = arith.addf %125, %126 : vector<8x1xf32>
    %128 = math.rsqrt %127 : vector<8x1xf32>
    %129 = vector.broadcast %128 : vector<8x1xf32> to vector<8x128xf32>
    %130 = arith.mulf %120, %129 : vector<8x128xf32>
    %131 = vector.broadcast %112 : vector<1x128xf32> to vector<8x128xf32>
    %132 = arith.mulf %130, %131 : vector<8x128xf32>
    %133 = vector.broadcast %114 : vector<1x128xf32> to vector<8x128xf32>
    %134 = arith.addf %132, %133 : vector<8x128xf32>
    %c0_53 = arith.constant 0 : index
    %c0_54 = arith.constant 0 : index
    %c0_55 = arith.constant 0 : index
    %135 = vector.load %arg10[%c0_53, %c0_54, %c0_55] : memref<2x128x256xbf16, #tpu.memory_space<vmem>>, vector<1x128x256xbf16>
    %136 = vector.shape_cast %135 : vector<1x128x256xbf16> to vector<128x256xbf16>
    %137 = arith.truncf %134 : vector<8x128xf32> to vector<8x128xbf16>
    %cst_56 = arith.constant dense<0.000000e+00> : vector<8x256xf32>
    %138 = tpu.matmul %137, %136, %cst_56 {dimension_numbers = #tpu.dot_dimension_numbers<[1], [0], [0], [1], [0, 0, 1, 1], [], []>} : vector<8x128xbf16>, vector<128x256xbf16>, vector<8x256xf32> -> vector<8x256xf32>
    %c0_57 = arith.constant 0 : index
    %c0_58 = arith.constant 0 : index
    %c0_59 = arith.constant 0 : index
    %139 = vector.load %arg11[%c0_57, %c0_58, %c0_59] : memref<2x1x256xf32, #tpu.memory_space<vmem>>, vector<1x1x256xf32>
    %140 = vector.shape_cast %139 : vector<1x1x256xf32> to vector<1x256xf32>
    %141 = vector.broadcast %140 : vector<1x256xf32> to vector<8x256xf32>
    %142 = arith.addf %138, %141 : vector<8x256xf32>
    %cst_60 = arith.constant 0.000000e+00 : f32
    %143 = vector.broadcast %cst_60 : f32 to vector<8x256xf32>
    %144 = arith.maximumf %142, %143 : vector<8x256xf32>
    %c0_61 = arith.constant 0 : index
    %c0_62 = arith.constant 0 : index
    %c0_63 = arith.constant 0 : index
    %145 = vector.load %arg12[%c0_61, %c0_62, %c0_63] : memref<2x256x128xbf16, #tpu.memory_space<vmem>>, vector<1x256x128xbf16>
    %146 = vector.shape_cast %145 : vector<1x256x128xbf16> to vector<256x128xbf16>
    %147 = arith.truncf %144 : vector<8x256xf32> to vector<8x256xbf16>
    %cst_64 = arith.constant dense<0.000000e+00> : vector<8x128xf32>
    %148 = tpu.matmul %147, %146, %cst_64 {dimension_numbers = #tpu.dot_dimension_numbers<[1], [0], [0], [1], [0, 0, 1, 1], [], []>} : vector<8x256xbf16>, vector<256x128xbf16>, vector<8x128xf32> -> vector<8x128xf32>
    %c0_65 = arith.constant 0 : index
    %c0_66 = arith.constant 0 : index
    %c0_67 = arith.constant 0 : index
    %149 = vector.load %arg13[%c0_65, %c0_66, %c0_67] : memref<2x1x128xf32, #tpu.memory_space<vmem>>, vector<1x1x128xf32>
    %150 = vector.shape_cast %149 : vector<1x1x128xf32> to vector<1x128xf32>
    %151 = vector.broadcast %150 : vector<1x128xf32> to vector<8x128xf32>
    %152 = arith.addf %148, %151 : vector<8x128xf32>
    %153 = arith.addf %134, %152 : vector<8x128xf32>
    %c0_68 = arith.constant 0 : index
    %c0_69 = arith.constant 0 : index
    %c0_70 = arith.constant 0 : index
    %154 = vector.load %arg14[%c0_68, %c0_69, %c0_70] : memref<2x1x128xf32, #tpu.memory_space<vmem>>, vector<1x1x128xf32>
    %155 = vector.shape_cast %154 : vector<1x1x128xf32> to vector<1x128xf32>
    %c0_71 = arith.constant 0 : index
    %c0_72 = arith.constant 0 : index
    %c0_73 = arith.constant 0 : index
    %156 = vector.load %arg15[%c0_71, %c0_72, %c0_73] : memref<2x1x128xf32, #tpu.memory_space<vmem>>, vector<1x1x128xf32>
    %157 = vector.shape_cast %156 : vector<1x1x128xf32> to vector<1x128xf32>
    %cst_74 = arith.constant dense<0.000000e+00> : vector<8xf32>
    %158 = vector.multi_reduction <add>, %153, %cst_74 [1] : vector<8x128xf32> to vector<8xf32>
    %159 = vector.shape_cast %158 : vector<8xf32> to vector<8x1xf32>
    %cst_75 = arith.constant 1.280000e+02 : f32
    %160 = vector.broadcast %cst_75 : f32 to vector<8x1xf32>
    %161 = arith.divf %159, %160 : vector<8x1xf32>
    %162 = vector.broadcast %161 : vector<8x1xf32> to vector<8x128xf32>
    %163 = arith.subf %153, %162 : vector<8x128xf32>
    %164 = arith.mulf %163, %163 : vector<8x128xf32>
    %cst_76 = arith.constant dense<0.000000e+00> : vector<8xf32>
    %165 = vector.multi_reduction <add>, %164, %cst_76 [1] : vector<8x128xf32> to vector<8xf32>
    %166 = vector.shape_cast %165 : vector<8xf32> to vector<8x1xf32>
    %cst_77 = arith.constant 1.280000e+02 : f32
    %167 = vector.broadcast %cst_77 : f32 to vector<8x1xf32>
    %168 = arith.divf %166, %167 : vector<8x1xf32>
    %cst_78 = arith.constant 9.99999974E-6 : f32
    %169 = vector.broadcast %cst_78 : f32 to vector<8x1xf32>
    %170 = arith.addf %168, %169 : vector<8x1xf32>
    %171 = math.rsqrt %170 : vector<8x1xf32>
    %172 = vector.broadcast %171 : vector<8x1xf32> to vector<8x128xf32>
    %173 = arith.mulf %163, %172 : vector<8x128xf32>
    %174 = vector.broadcast %155 : vector<1x128xf32> to vector<8x128xf32>
    %175 = arith.mulf %173, %174 : vector<8x128xf32>
    %176 = vector.broadcast %157 : vector<1x128xf32> to vector<8x128xf32>
    %177 = arith.addf %175, %176 : vector<8x128xf32>
    %c1 = arith.constant 1 : index
    %c0_79 = arith.constant 0 : index
    %c0_80 = arith.constant 0 : index
    %178 = vector.load %arg4[%c1, %c0_79, %c0_80] : memref<2x128x384xbf16, #tpu.memory_space<vmem>>, vector<1x128x384xbf16>
    %179 = vector.shape_cast %178 : vector<1x128x384xbf16> to vector<128x384xbf16>
    %180 = arith.truncf %177 : vector<8x128xf32> to vector<8x128xbf16>
    %cst_81 = arith.constant dense<0.000000e+00> : vector<8x384xf32>
    %181 = tpu.matmul %180, %179, %cst_81 {dimension_numbers = #tpu.dot_dimension_numbers<[1], [0], [0], [1], [0, 0, 1, 1], [], []>} : vector<8x128xbf16>, vector<128x384xbf16>, vector<8x384xf32> -> vector<8x384xf32>
    %c1_82 = arith.constant 1 : index
    %c0_83 = arith.constant 0 : index
    %c0_84 = arith.constant 0 : index
    %182 = vector.load %arg5[%c1_82, %c0_83, %c0_84] : memref<2x1x384xf32, #tpu.memory_space<vmem>>, vector<1x1x384xf32>
    %183 = vector.shape_cast %182 : vector<1x1x384xf32> to vector<1x384xf32>
    %184 = vector.broadcast %183 : vector<1x384xf32> to vector<8x384xf32>
    %185 = arith.addf %181, %184 : vector<8x384xf32>
    %186 = vector.extract_strided_slice %185 {offsets = [0, 0], sizes = [8, 128], strides = [1, 1]} : vector<8x384xf32> to vector<8x128xf32>
    %187 = vector.extract_strided_slice %185 {offsets = [0, 128], sizes = [8, 128], strides = [1, 1]} : vector<8x384xf32> to vector<8x128xf32>
    %188 = vector.extract_strided_slice %185 {offsets = [0, 256], sizes = [8, 128], strides = [1, 1]} : vector<8x384xf32> to vector<8x128xf32>
    %189 = vector.extract_strided_slice %186 {offsets = [0, 0], sizes = [8, 32], strides = [1, 1]} : vector<8x128xf32> to vector<8x32xf32>
    %190 = arith.truncf %189 : vector<8x32xf32> to vector<8x32xbf16>
    %191 = vector.extract_strided_slice %187 {offsets = [0, 0], sizes = [8, 32], strides = [1, 1]} : vector<8x128xf32> to vector<8x32xf32>
    %192 = arith.truncf %191 : vector<8x32xf32> to vector<8x32xbf16>
    %193 = vector.extract_strided_slice %188 {offsets = [0, 0], sizes = [8, 32], strides = [1, 1]} : vector<8x128xf32> to vector<8x32xf32>
    %194 = arith.truncf %193 : vector<8x32xf32> to vector<8x32xbf16>
    %cst_85 = arith.constant dense<0.000000e+00> : vector<8x8xf32>
    %195 = tpu.matmul %190, %192, %cst_85 {dimension_numbers = #tpu.dot_dimension_numbers<[1], [1], [0], [0], [0, 0, 1, 0], [], []>} : vector<8x32xbf16>, vector<8x32xbf16>, vector<8x8xf32> -> vector<8x8xf32>
    %cst_86 = arith.constant 0.176776692 : f32
    %196 = vector.broadcast %cst_86 : f32 to vector<8x8xf32>
    %197 = arith.mulf %195, %196 : vector<8x8xf32>
    %cst_87 = arith.constant dense<0xFF800000> : vector<8xf32>
    %198 = vector.multi_reduction <maximumf>, %197, %cst_87 [1] : vector<8x8xf32> to vector<8xf32>
    %199 = vector.shape_cast %198 : vector<8xf32> to vector<8x1xf32>
    %200 = vector.broadcast %199 : vector<8x1xf32> to vector<8x8xf32>
    %201 = arith.subf %197, %200 : vector<8x8xf32>
    %202 = math.exp %201 : vector<8x8xf32>
    %cst_88 = arith.constant dense<0.000000e+00> : vector<8xf32>
    %203 = vector.multi_reduction <add>, %202, %cst_88 [1] : vector<8x8xf32> to vector<8xf32>
    %204 = vector.shape_cast %203 : vector<8xf32> to vector<8x1xf32>
    %205 = arith.truncf %202 : vector<8x8xf32> to vector<8x8xbf16>
    %cst_89 = arith.constant dense<0.000000e+00> : vector<8x32xf32>
    %206 = tpu.matmul %205, %194, %cst_89 {dimension_numbers = #tpu.dot_dimension_numbers<[1], [0], [0], [1], [0, 0, 1, 1], [], []>} : vector<8x8xbf16>, vector<8x32xbf16>, vector<8x32xf32> -> vector<8x32xf32>
    %207 = tpu.reciprocal %204 {approx = true} : vector<8x1xf32> -> vector<8x1xf32>
    %208 = vector.broadcast %207 : vector<8x1xf32> to vector<8x32xf32>
    %209 = arith.mulf %206, %208 : vector<8x32xf32>
    %c0_90 = arith.constant 0 : index
    %c0_91 = arith.constant 0 : index
    %210 = vector.load %arg43[%c0_90, %c0_91] : memref<8x128xf32, #tpu.memory_space<vmem>>, vector<8x32xf32>
    tpu.vector_store %arg43[%c0_90, %c0_91], %209 {strides = array<i32>} : memref<8x128xf32, #tpu.memory_space<vmem>>, vector<8x32xf32>,
    %211 = vector.extract_strided_slice %186 {offsets = [0, 32], sizes = [8, 32], strides = [1, 1]} : vector<8x128xf32> to vector<8x32xf32>
    %212 = arith.truncf %211 : vector<8x32xf32> to vector<8x32xbf16>
    %213 = vector.extract_strided_slice %187 {offsets = [0, 32], sizes = [8, 32], strides = [1, 1]} : vector<8x128xf32> to vector<8x32xf32>
    %214 = arith.truncf %213 : vector<8x32xf32> to vector<8x32xbf16>
    %215 = vector.extract_strided_slice %188 {offsets = [0, 32], sizes = [8, 32], strides = [1, 1]} : vector<8x128xf32> to vector<8x32xf32>
    %216 = arith.truncf %215 : vector<8x32xf32> to vector<8x32xbf16>
    %cst_92 = arith.constant dense<0.000000e+00> : vector<8x8xf32>
    %217 = tpu.matmul %212, %214, %cst_92 {dimension_numbers = #tpu.dot_dimension_numbers<[1], [1], [0], [0], [0, 0, 1, 0], [], []>} : vector<8x32xbf16>, vector<8x32xbf16>, vector<8x8xf32> -> vector<8x8xf32>
    %cst_93 = arith.constant 0.176776692 : f32
    %218 = vector.broadcast %cst_93 : f32 to vector<8x8xf32>
    %219 = arith.mulf %217, %218 : vector<8x8xf32>
    %cst_94 = arith.constant dense<0xFF800000> : vector<8xf32>
    %220 = vector.multi_reduction <maximumf>, %219, %cst_94 [1] : vector<8x8xf32> to vector<8xf32>
    %221 = vector.shape_cast %220 : vector<8xf32> to vector<8x1xf32>
    %222 = vector.broadcast %221 : vector<8x1xf32> to vector<8x8xf32>
    %223 = arith.subf %219, %222 : vector<8x8xf32>
    %224 = math.exp %223 : vector<8x8xf32>
    %cst_95 = arith.constant dense<0.000000e+00> : vector<8xf32>
    %225 = vector.multi_reduction <add>, %224, %cst_95 [1] : vector<8x8xf32> to vector<8xf32>
    %226 = vector.shape_cast %225 : vector<8xf32> to vector<8x1xf32>
    %227 = arith.truncf %224 : vector<8x8xf32> to vector<8x8xbf16>
    %cst_96 = arith.constant dense<0.000000e+00> : vector<8x32xf32>
    %228 = tpu.matmul %227, %216, %cst_96 {dimension_numbers = #tpu.dot_dimension_numbers<[1], [0], [0], [1], [0, 0, 1, 1], [], []>} : vector<8x8xbf16>, vector<8x32xbf16>, vector<8x32xf32> -> vector<8x32xf32>
    %229 = tpu.reciprocal %226 {approx = true} : vector<8x1xf32> -> vector<8x1xf32>
    %230 = vector.broadcast %229 : vector<8x1xf32> to vector<8x32xf32>
    %231 = arith.mulf %228, %230 : vector<8x32xf32>
    %c0_97 = arith.constant 0 : index
    %c32_98 = arith.constant 32 : index
    %232 = vector.load %arg43[%c0_97, %c32_98] : memref<8x128xf32, #tpu.memory_space<vmem>>, vector<8x32xf32>
    tpu.vector_store %arg43[%c0_97, %c32_98], %231 {strides = array<i32>} : memref<8x128xf32, #tpu.memory_space<vmem>>, vector<8x32xf32>,
    %233 = vector.extract_strided_slice %186 {offsets = [0, 64], sizes = [8, 32], strides = [1, 1]} : vector<8x128xf32> to vector<8x32xf32>
    %234 = arith.truncf %233 : vector<8x32xf32> to vector<8x32xbf16>
    %235 = vector.extract_strided_slice %187 {offsets = [0, 64], sizes = [8, 32], strides = [1, 1]} : vector<8x128xf32> to vector<8x32xf32>
    %236 = arith.truncf %235 : vector<8x32xf32> to vector<8x32xbf16>
    %237 = vector.extract_strided_slice %188 {offsets = [0, 64], sizes = [8, 32], strides = [1, 1]} : vector<8x128xf32> to vector<8x32xf32>
    %238 = arith.truncf %237 : vector<8x32xf32> to vector<8x32xbf16>
    %cst_99 = arith.constant dense<0.000000e+00> : vector<8x8xf32>
    %239 = tpu.matmul %234, %236, %cst_99 {dimension_numbers = #tpu.dot_dimension_numbers<[1], [1], [0], [0], [0, 0, 1, 0], [], []>} : vector<8x32xbf16>, vector<8x32xbf16>, vector<8x8xf32> -> vector<8x8xf32>
    %cst_100 = arith.constant 0.176776692 : f32
    %240 = vector.broadcast %cst_100 : f32 to vector<8x8xf32>
    %241 = arith.mulf %239, %240 : vector<8x8xf32>
    %cst_101 = arith.constant dense<0xFF800000> : vector<8xf32>
    %242 = vector.multi_reduction <maximumf>, %241, %cst_101 [1] : vector<8x8xf32> to vector<8xf32>
    %243 = vector.shape_cast %242 : vector<8xf32> to vector<8x1xf32>
    %244 = vector.broadcast %243 : vector<8x1xf32> to vector<8x8xf32>
    %245 = arith.subf %241, %244 : vector<8x8xf32>
    %246 = math.exp %245 : vector<8x8xf32>
    %cst_102 = arith.constant dense<0.000000e+00> : vector<8xf32>
    %247 = vector.multi_reduction <add>, %246, %cst_102 [1] : vector<8x8xf32> to vector<8xf32>
    %248 = vector.shape_cast %247 : vector<8xf32> to vector<8x1xf32>
    %249 = arith.truncf %246 : vector<8x8xf32> to vector<8x8xbf16>
    %cst_103 = arith.constant dense<0.000000e+00> : vector<8x32xf32>
    %250 = tpu.matmul %249, %238, %cst_103 {dimension_numbers = #tpu.dot_dimension_numbers<[1], [0], [0], [1], [0, 0, 1, 1], [], []>} : vector<8x8xbf16>, vector<8x32xbf16>, vector<8x32xf32> -> vector<8x32xf32>
    %251 = tpu.reciprocal %248 {approx = true} : vector<8x1xf32> -> vector<8x1xf32>
    %252 = vector.broadcast %251 : vector<8x1xf32> to vector<8x32xf32>
    %253 = arith.mulf %250, %252 : vector<8x32xf32>
    %c0_104 = arith.constant 0 : index
    %c64_105 = arith.constant 64 : index
    %254 = vector.load %arg43[%c0_104, %c64_105] : memref<8x128xf32, #tpu.memory_space<vmem>>, vector<8x32xf32>
    tpu.vector_store %arg43[%c0_104, %c64_105], %253 {strides = array<i32>} : memref<8x128xf32, #tpu.memory_space<vmem>>, vector<8x32xf32>,
    %255 = vector.extract_strided_slice %186 {offsets = [0, 96], sizes = [8, 32], strides = [1, 1]} : vector<8x128xf32> to vector<8x32xf32>
    %256 = arith.truncf %255 : vector<8x32xf32> to vector<8x32xbf16>
    %257 = vector.extract_strided_slice %187 {offsets = [0, 96], sizes = [8, 32], strides = [1, 1]} : vector<8x128xf32> to vector<8x32xf32>
    %258 = arith.truncf %257 : vector<8x32xf32> to vector<8x32xbf16>
    %259 = vector.extract_strided_slice %188 {offsets = [0, 96], sizes = [8, 32], strides = [1, 1]} : vector<8x128xf32> to vector<8x32xf32>
    %260 = arith.truncf %259 : vector<8x32xf32> to vector<8x32xbf16>
    %cst_106 = arith.constant dense<0.000000e+00> : vector<8x8xf32>
    %261 = tpu.matmul %256, %258, %cst_106 {dimension_numbers = #tpu.dot_dimension_numbers<[1], [1], [0], [0], [0, 0, 1, 0], [], []>} : vector<8x32xbf16>, vector<8x32xbf16>, vector<8x8xf32> -> vector<8x8xf32>
    %cst_107 = arith.constant 0.176776692 : f32
    %262 = vector.broadcast %cst_107 : f32 to vector<8x8xf32>
    %263 = arith.mulf %261, %262 : vector<8x8xf32>
    %cst_108 = arith.constant dense<0xFF800000> : vector<8xf32>
    %264 = vector.multi_reduction <maximumf>, %263, %cst_108 [1] : vector<8x8xf32> to vector<8xf32>
    %265 = vector.shape_cast %264 : vector<8xf32> to vector<8x1xf32>
    %266 = vector.broadcast %265 : vector<8x1xf32> to vector<8x8xf32>
    %267 = arith.subf %263, %266 : vector<8x8xf32>
    %268 = math.exp %267 : vector<8x8xf32>
    %cst_109 = arith.constant dense<0.000000e+00> : vector<8xf32>
    %269 = vector.multi_reduction <add>, %268, %cst_109 [1] : vector<8x8xf32> to vector<8xf32>
    %270 = vector.shape_cast %269 : vector<8xf32> to vector<8x1xf32>
    %271 = arith.truncf %268 : vector<8x8xf32> to vector<8x8xbf16>
    %cst_110 = arith.constant dense<0.000000e+00> : vector<8x32xf32>
    %272 = tpu.matmul %271, %260, %cst_110 {dimension_numbers = #tpu.dot_dimension_numbers<[1], [0], [0], [1], [0, 0, 1, 1], [], []>} : vector<8x8xbf16>, vector<8x32xbf16>, vector<8x32xf32> -> vector<8x32xf32>
    %273 = tpu.reciprocal %270 {approx = true} : vector<8x1xf32> -> vector<8x1xf32>
    %274 = vector.broadcast %273 : vector<8x1xf32> to vector<8x32xf32>
    %275 = arith.mulf %272, %274 : vector<8x32xf32>
    %c0_111 = arith.constant 0 : index
    %c96_112 = arith.constant 96 : index
    %276 = vector.load %arg43[%c0_111, %c96_112] : memref<8x128xf32, #tpu.memory_space<vmem>>, vector<8x32xf32>
    tpu.vector_store %arg43[%c0_111, %c96_112], %275 {strides = array<i32>} : memref<8x128xf32, #tpu.memory_space<vmem>>, vector<8x32xf32>,
    %c0_113 = arith.constant 0 : index
    %c0_114 = arith.constant 0 : index
    %277 = vector.load %arg43[%c0_113, %c0_114] : memref<8x128xf32, #tpu.memory_space<vmem>>, vector<8x128xf32>
    %c1_115 = arith.constant 1 : index
    %c0_116 = arith.constant 0 : index
    %c0_117 = arith.constant 0 : index
    %278 = vector.load %arg6[%c1_115, %c0_116, %c0_117] : memref<2x128x128xbf16, #tpu.memory_space<vmem>>, vector<1x128x128xbf16>
    %279 = vector.shape_cast %278 : vector<1x128x128xbf16> to vector<128x128xbf16>
    %280 = arith.truncf %277 : vector<8x128xf32> to vector<8x128xbf16>
    %cst_118 = arith.constant dense<0.000000e+00> : vector<8x128xf32>
    %281 = tpu.matmul %280, %279, %cst_118 {dimension_numbers = #tpu.dot_dimension_numbers<[1], [0], [0], [1], [0, 0, 1, 1], [], []>} : vector<8x128xbf16>, vector<128x128xbf16>, vector<8x128xf32> -> vector<8x128xf32>
    %c1_119 = arith.constant 1 : index
    %c0_120 = arith.constant 0 : index
    %c0_121 = arith.constant 0 : index
    %282 = vector.load %arg7[%c1_119, %c0_120, %c0_121] : memref<2x1x128xf32, #tpu.memory_space<vmem>>, vector<1x1x128xf32>
    %283 = vector.shape_cast %282 : vector<1x1x128xf32> to vector<1x128xf32>
    %284 = vector.broadcast %283 : vector<1x128xf32> to vector<8x128xf32>
    %285 = arith.addf %281, %284 : vector<8x128xf32>
    %286 = arith.addf %177, %285 : vector<8x128xf32>
    %c1_122 = arith.constant 1 : index
    %c0_123 = arith.constant 0 : index
    %c0_124 = arith.constant 0 : index
    %287 = vector.load %arg8[%c1_122, %c0_123, %c0_124] : memref<2x1x128xf32, #tpu.memory_space<vmem>>, vector<1x1x128xf32>
    %288 = vector.shape_cast %287 : vector<1x1x128xf32> to vector<1x128xf32>
    %c1_125 = arith.constant 1 : index
    %c0_126 = arith.constant 0 : index
    %c0_127 = arith.constant 0 : index
    %289 = vector.load %arg9[%c1_125, %c0_126, %c0_127] : memref<2x1x128xf32, #tpu.memory_space<vmem>>, vector<1x1x128xf32>
    %290 = vector.shape_cast %289 : vector<1x1x128xf32> to vector<1x128xf32>
    %cst_128 = arith.constant dense<0.000000e+00> : vector<8xf32>
    %291 = vector.multi_reduction <add>, %286, %cst_128 [1] : vector<8x128xf32> to vector<8xf32>
    %292 = vector.shape_cast %291 : vector<8xf32> to vector<8x1xf32>
    %cst_129 = arith.constant 1.280000e+02 : f32
    %293 = vector.broadcast %cst_129 : f32 to vector<8x1xf32>
    %294 = arith.divf %292, %293 : vector<8x1xf32>
    %295 = vector.broadcast %294 : vector<8x1xf32> to vector<8x128xf32>
    %296 = arith.subf %286, %295 : vector<8x128xf32>
    %297 = arith.mulf %296, %296 : vector<8x128xf32>
    %cst_130 = arith.constant dense<0.000000e+00> : vector<8xf32>
    %298 = vector.multi_reduction <add>, %297, %cst_130 [1] : vector<8x128xf32> to vector<8xf32>
    %299 = vector.shape_cast %298 : vector<8xf32> to vector<8x1xf32>
    %cst_131 = arith.constant 1.280000e+02 : f32
    %300 = vector.broadcast %cst_131 : f32 to vector<8x1xf32>
    %301 = arith.divf %299, %300 : vector<8x1xf32>
    %cst_132 = arith.constant 9.99999974E-6 : f32
    %302 = vector.broadcast %cst_132 : f32 to vector<8x1xf32>
    %303 = arith.addf %301, %302 : vector<8x1xf32>
    %304 = math.rsqrt %303 : vector<8x1xf32>
    %305 = vector.broadcast %304 : vector<8x1xf32> to vector<8x128xf32>
    %306 = arith.mulf %296, %305 : vector<8x128xf32>
    %307 = vector.broadcast %288 : vector<1x128xf32> to vector<8x128xf32>
    %308 = arith.mulf %306, %307 : vector<8x128xf32>
    %309 = vector.broadcast %290 : vector<1x128xf32> to vector<8x128xf32>
    %310 = arith.addf %308, %309 : vector<8x128xf32>
    %c1_133 = arith.constant 1 : index
    %c0_134 = arith.constant 0 : index
    %c0_135 = arith.constant 0 : index
    %311 = vector.load %arg10[%c1_133, %c0_134, %c0_135] : memref<2x128x256xbf16, #tpu.memory_space<vmem>>, vector<1x128x256xbf16>
    %312 = vector.shape_cast %311 : vector<1x128x256xbf16> to vector<128x256xbf16>
    %313 = arith.truncf %310 : vector<8x128xf32> to vector<8x128xbf16>
    %cst_136 = arith.constant dense<0.000000e+00> : vector<8x256xf32>
    %314 = tpu.matmul %313, %312, %cst_136 {dimension_numbers = #tpu.dot_dimension_numbers<[1], [0], [0], [1], [0, 0, 1, 1], [], []>} : vector<8x128xbf16>, vector<128x256xbf16>, vector<8x256xf32> -> vector<8x256xf32>
    %c1_137 = arith.constant 1 : index
    %c0_138 = arith.constant 0 : index
    %c0_139 = arith.constant 0 : index
    %315 = vector.load %arg11[%c1_137, %c0_138, %c0_139] : memref<2x1x256xf32, #tpu.memory_space<vmem>>, vector<1x1x256xf32>
    %316 = vector.shape_cast %315 : vector<1x1x256xf32> to vector<1x256xf32>
    %317 = vector.broadcast %316 : vector<1x256xf32> to vector<8x256xf32>
    %318 = arith.addf %314, %317 : vector<8x256xf32>
    %cst_140 = arith.constant 0.000000e+00 : f32
    %319 = vector.broadcast %cst_140 : f32 to vector<8x256xf32>
    %320 = arith.maximumf %318, %319 : vector<8x256xf32>
    %c1_141 = arith.constant 1 : index
    %c0_142 = arith.constant 0 : index
    %c0_143 = arith.constant 0 : index
    %321 = vector.load %arg12[%c1_141, %c0_142, %c0_143] : memref<2x256x128xbf16, #tpu.memory_space<vmem>>, vector<1x256x128xbf16>
    %322 = vector.shape_cast %321 : vector<1x256x128xbf16> to vector<256x128xbf16>
    %323 = arith.truncf %320 : vector<8x256xf32> to vector<8x256xbf16>
    %cst_144 = arith.constant dense<0.000000e+00> : vector<8x128xf32>
    %324 = tpu.matmul %323, %322, %cst_144 {dimension_numbers = #tpu.dot_dimension_numbers<[1], [0], [0], [1], [0, 0, 1, 1], [], []>} : vector<8x256xbf16>, vector<256x128xbf16>, vector<8x128xf32> -> vector<8x128xf32>
    %c1_145 = arith.constant 1 : index
    %c0_146 = arith.constant 0 : index
    %c0_147 = arith.constant 0 : index
    %325 = vector.load %arg13[%c1_145, %c0_146, %c0_147] : memref<2x1x128xf32, #tpu.memory_space<vmem>>, vector<1x1x128xf32>
    %326 = vector.shape_cast %325 : vector<1x1x128xf32> to vector<1x128xf32>
    %327 = vector.broadcast %326 : vector<1x128xf32> to vector<8x128xf32>
    %328 = arith.addf %324, %327 : vector<8x128xf32>
    %329 = arith.addf %310, %328 : vector<8x128xf32>
    %c1_148 = arith.constant 1 : index
    %c0_149 = arith.constant 0 : index
    %c0_150 = arith.constant 0 : index
    %330 = vector.load %arg14[%c1_148, %c0_149, %c0_150] : memref<2x1x128xf32, #tpu.memory_space<vmem>>, vector<1x1x128xf32>
    %331 = vector.shape_cast %330 : vector<1x1x128xf32> to vector<1x128xf32>
    %c1_151 = arith.constant 1 : index
    %c0_152 = arith.constant 0 : index
    %c0_153 = arith.constant 0 : index
    %332 = vector.load %arg15[%c1_151, %c0_152, %c0_153] : memref<2x1x128xf32, #tpu.memory_space<vmem>>, vector<1x1x128xf32>
    %333 = vector.shape_cast %332 : vector<1x1x128xf32> to vector<1x128xf32>
    %cst_154 = arith.constant dense<0.000000e+00> : vector<8xf32>
    %334 = vector.multi_reduction <add>, %329, %cst_154 [1] : vector<8x128xf32> to vector<8xf32>
    %335 = vector.shape_cast %334 : vector<8xf32> to vector<8x1xf32>
    %cst_155 = arith.constant 1.280000e+02 : f32
    %336 = vector.broadcast %cst_155 : f32 to vector<8x1xf32>
    %337 = arith.divf %335, %336 : vector<8x1xf32>
    %338 = vector.broadcast %337 : vector<8x1xf32> to vector<8x128xf32>
    %339 = arith.subf %329, %338 : vector<8x128xf32>
    %340 = arith.mulf %339, %339 : vector<8x128xf32>
    %cst_156 = arith.constant dense<0.000000e+00> : vector<8xf32>
    %341 = vector.multi_reduction <add>, %340, %cst_156 [1] : vector<8x128xf32> to vector<8xf32>
    %342 = vector.shape_cast %341 : vector<8xf32> to vector<8x1xf32>
    %cst_157 = arith.constant 1.280000e+02 : f32
    %343 = vector.broadcast %cst_157 : f32 to vector<8x1xf32>
    %344 = arith.divf %342, %343 : vector<8x1xf32>
    %cst_158 = arith.constant 9.99999974E-6 : f32
    %345 = vector.broadcast %cst_158 : f32 to vector<8x1xf32>
    %346 = arith.addf %344, %345 : vector<8x1xf32>
    %347 = math.rsqrt %346 : vector<8x1xf32>
    %348 = vector.broadcast %347 : vector<8x1xf32> to vector<8x128xf32>
    %349 = arith.mulf %339, %348 : vector<8x128xf32>
    %350 = vector.broadcast %331 : vector<1x128xf32> to vector<8x128xf32>
    %351 = arith.mulf %349, %350 : vector<8x128xf32>
    %352 = vector.broadcast %333 : vector<1x128xf32> to vector<8x128xf32>
    %353 = arith.addf %351, %352 : vector<8x128xf32>
    %c0_159 = arith.constant 0 : index
    %c0_160 = arith.constant 0 : index
    %354 = vector.load %arg16[%c0_159, %c0_160] : memref<1x128xf32, #tpu.memory_space<vmem>>, vector<1x128xf32>
    %c0_161 = arith.constant 0 : index
    %c0_162 = arith.constant 0 : index
    %355 = vector.load %arg17[%c0_161, %c0_162] : memref<1x128xf32, #tpu.memory_space<vmem>>, vector<1x128xf32>
    %cst_163 = arith.constant dense<0.000000e+00> : vector<8xf32>
    %356 = vector.multi_reduction <add>, %353, %cst_163 [1] : vector<8x128xf32> to vector<8xf32>
    %357 = vector.shape_cast %356 : vector<8xf32> to vector<8x1xf32>
    %cst_164 = arith.constant 1.280000e+02 : f32
    %358 = vector.broadcast %cst_164 : f32 to vector<8x1xf32>
    %359 = arith.divf %357, %358 : vector<8x1xf32>
    %360 = vector.broadcast %359 : vector<8x1xf32> to vector<8x128xf32>
    %361 = arith.subf %353, %360 : vector<8x128xf32>
    %362 = arith.mulf %361, %361 : vector<8x128xf32>
    %cst_165 = arith.constant dense<0.000000e+00> : vector<8xf32>
    %363 = vector.multi_reduction <add>, %362, %cst_165 [1] : vector<8x128xf32> to vector<8xf32>
    %364 = vector.shape_cast %363 : vector<8xf32> to vector<8x1xf32>
    %cst_166 = arith.constant 1.280000e+02 : f32
    %365 = vector.broadcast %cst_166 : f32 to vector<8x1xf32>
    %366 = arith.divf %364, %365 : vector<8x1xf32>
    %cst_167 = arith.constant 9.99999974E-6 : f32
    %367 = vector.broadcast %cst_167 : f32 to vector<8x1xf32>
    %368 = arith.addf %366, %367 : vector<8x1xf32>
    %369 = math.rsqrt %368 : vector<8x1xf32>
    %370 = vector.broadcast %369 : vector<8x1xf32> to vector<8x128xf32>
    %371 = arith.mulf %361, %370 : vector<8x128xf32>
    %372 = vector.broadcast %354 : vector<1x128xf32> to vector<8x128xf32>
    %373 = arith.mulf %371, %372 : vector<8x128xf32>
    %374 = vector.broadcast %355 : vector<1x128xf32> to vector<8x128xf32>
    %375 = arith.addf %373, %374 : vector<8x128xf32>
    %c0_168 = arith.constant 0 : index
    %c0_169 = arith.constant 0 : index
    %376 = vector.load %arg3[%c0_168, %c0_169] : memref<8x8xf32, #tpu.memory_space<vmem>>, vector<8x8xf32>
    %c0_170 = arith.constant 0 : index
    %c0_171 = arith.constant 0 : index
    %c0_172 = arith.constant 0 : index
    %377 = vector.load %arg2[%c0_170, %c0_171, %c0_172] : memref<1x8x128xf32, #tpu.memory_space<vmem>>, vector<1x8x128xf32>
    %378 = vector.shape_cast %377 : vector<1x8x128xf32> to vector<8x128xf32>
    %c0_173 = arith.constant 0 : index
    %c0_174 = arith.constant 0 : index
    %c0_175 = arith.constant 0 : index
    %379 = vector.load %arg18[%c0_173, %c0_174, %c0_175] : memref<2x128x384xbf16, #tpu.memory_space<vmem>>, vector<1x128x384xbf16>
    %380 = vector.shape_cast %379 : vector<1x128x384xbf16> to vector<128x384xbf16>
    %381 = arith.truncf %378 : vector<8x128xf32> to vector<8x128xbf16>
    %cst_176 = arith.constant dense<0.000000e+00> : vector<8x384xf32>
    %382 = tpu.matmul %381, %380, %cst_176 {dimension_numbers = #tpu.dot_dimension_numbers<[1], [0], [0], [1], [0, 0, 1, 1], [], []>} : vector<8x128xbf16>, vector<128x384xbf16>, vector<8x384xf32> -> vector<8x384xf32>
    %c0_177 = arith.constant 0 : index
    %c0_178 = arith.constant 0 : index
    %c0_179 = arith.constant 0 : index
    %383 = vector.load %arg19[%c0_177, %c0_178, %c0_179] : memref<2x1x384xf32, #tpu.memory_space<vmem>>, vector<1x1x384xf32>
    %384 = vector.shape_cast %383 : vector<1x1x384xf32> to vector<1x384xf32>
    %385 = vector.broadcast %384 : vector<1x384xf32> to vector<8x384xf32>
    %386 = arith.addf %382, %385 : vector<8x384xf32>
    %387 = vector.extract_strided_slice %386 {offsets = [0, 0], sizes = [8, 128], strides = [1, 1]} : vector<8x384xf32> to vector<8x128xf32>
    %388 = vector.extract_strided_slice %386 {offsets = [0, 128], sizes = [8, 128], strides = [1, 1]} : vector<8x384xf32> to vector<8x128xf32>
    %389 = vector.extract_strided_slice %386 {offsets = [0, 256], sizes = [8, 128], strides = [1, 1]} : vector<8x384xf32> to vector<8x128xf32>
    %390 = vector.extract_strided_slice %387 {offsets = [0, 0], sizes = [8, 32], strides = [1, 1]} : vector<8x128xf32> to vector<8x32xf32>
    %391 = arith.truncf %390 : vector<8x32xf32> to vector<8x32xbf16>
    %392 = vector.extract_strided_slice %388 {offsets = [0, 0], sizes = [8, 32], strides = [1, 1]} : vector<8x128xf32> to vector<8x32xf32>
    %393 = arith.truncf %392 : vector<8x32xf32> to vector<8x32xbf16>
    %394 = vector.extract_strided_slice %389 {offsets = [0, 0], sizes = [8, 32], strides = [1, 1]} : vector<8x128xf32> to vector<8x32xf32>
    %395 = arith.truncf %394 : vector<8x32xf32> to vector<8x32xbf16>
    %cst_180 = arith.constant dense<0.000000e+00> : vector<8x8xf32>
    %396 = tpu.matmul %391, %393, %cst_180 {dimension_numbers = #tpu.dot_dimension_numbers<[1], [1], [0], [0], [0, 0, 1, 0], [], []>} : vector<8x32xbf16>, vector<8x32xbf16>, vector<8x8xf32> -> vector<8x8xf32>
    %cst_181 = arith.constant 0.176776692 : f32
    %397 = vector.broadcast %cst_181 : f32 to vector<8x8xf32>
    %398 = arith.mulf %396, %397 : vector<8x8xf32>
    %399 = arith.addf %398, %376 : vector<8x8xf32>
    %cst_182 = arith.constant dense<0xFF800000> : vector<8xf32>
    %400 = vector.multi_reduction <maximumf>, %399, %cst_182 [1] : vector<8x8xf32> to vector<8xf32>
    %401 = vector.shape_cast %400 : vector<8xf32> to vector<8x1xf32>
    %402 = vector.broadcast %401 : vector<8x1xf32> to vector<8x8xf32>
    %403 = arith.subf %399, %402 : vector<8x8xf32>
    %404 = math.exp %403 : vector<8x8xf32>
    %cst_183 = arith.constant dense<0.000000e+00> : vector<8xf32>
    %405 = vector.multi_reduction <add>, %404, %cst_183 [1] : vector<8x8xf32> to vector<8xf32>
    %406 = vector.shape_cast %405 : vector<8xf32> to vector<8x1xf32>
    %407 = arith.truncf %404 : vector<8x8xf32> to vector<8x8xbf16>
    %cst_184 = arith.constant dense<0.000000e+00> : vector<8x32xf32>
    %408 = tpu.matmul %407, %395, %cst_184 {dimension_numbers = #tpu.dot_dimension_numbers<[1], [0], [0], [1], [0, 0, 1, 1], [], []>} : vector<8x8xbf16>, vector<8x32xbf16>, vector<8x32xf32> -> vector<8x32xf32>
    %409 = tpu.reciprocal %406 {approx = true} : vector<8x1xf32> -> vector<8x1xf32>
    %410 = vector.broadcast %409 : vector<8x1xf32> to vector<8x32xf32>
    %411 = arith.mulf %408, %410 : vector<8x32xf32>
    %c0_185 = arith.constant 0 : index
    %c0_186 = arith.constant 0 : index
    %412 = vector.load %arg43[%c0_185, %c0_186] : memref<8x128xf32, #tpu.memory_space<vmem>>, vector<8x32xf32>
    tpu.vector_store %arg43[%c0_185, %c0_186], %411 {strides = array<i32>} : memref<8x128xf32, #tpu.memory_space<vmem>>, vector<8x32xf32>,
    %413 = vector.extract_strided_slice %387 {offsets = [0, 32], sizes = [8, 32], strides = [1, 1]} : vector<8x128xf32> to vector<8x32xf32>
    %414 = arith.truncf %413 : vector<8x32xf32> to vector<8x32xbf16>
    %415 = vector.extract_strided_slice %388 {offsets = [0, 32], sizes = [8, 32], strides = [1, 1]} : vector<8x128xf32> to vector<8x32xf32>
    %416 = arith.truncf %415 : vector<8x32xf32> to vector<8x32xbf16>
    %417 = vector.extract_strided_slice %389 {offsets = [0, 32], sizes = [8, 32], strides = [1, 1]} : vector<8x128xf32> to vector<8x32xf32>
    %418 = arith.truncf %417 : vector<8x32xf32> to vector<8x32xbf16>
    %cst_187 = arith.constant dense<0.000000e+00> : vector<8x8xf32>
    %419 = tpu.matmul %414, %416, %cst_187 {dimension_numbers = #tpu.dot_dimension_numbers<[1], [1], [0], [0], [0, 0, 1, 0], [], []>} : vector<8x32xbf16>, vector<8x32xbf16>, vector<8x8xf32> -> vector<8x8xf32>
    %cst_188 = arith.constant 0.176776692 : f32
    %420 = vector.broadcast %cst_188 : f32 to vector<8x8xf32>
    %421 = arith.mulf %419, %420 : vector<8x8xf32>
    %422 = arith.addf %421, %376 : vector<8x8xf32>
    %cst_189 = arith.constant dense<0xFF800000> : vector<8xf32>
    %423 = vector.multi_reduction <maximumf>, %422, %cst_189 [1] : vector<8x8xf32> to vector<8xf32>
    %424 = vector.shape_cast %423 : vector<8xf32> to vector<8x1xf32>
    %425 = vector.broadcast %424 : vector<8x1xf32> to vector<8x8xf32>
    %426 = arith.subf %422, %425 : vector<8x8xf32>
    %427 = math.exp %426 : vector<8x8xf32>
    %cst_190 = arith.constant dense<0.000000e+00> : vector<8xf32>
    %428 = vector.multi_reduction <add>, %427, %cst_190 [1] : vector<8x8xf32> to vector<8xf32>
    %429 = vector.shape_cast %428 : vector<8xf32> to vector<8x1xf32>
    %430 = arith.truncf %427 : vector<8x8xf32> to vector<8x8xbf16>
    %cst_191 = arith.constant dense<0.000000e+00> : vector<8x32xf32>
    %431 = tpu.matmul %430, %418, %cst_191 {dimension_numbers = #tpu.dot_dimension_numbers<[1], [0], [0], [1], [0, 0, 1, 1], [], []>} : vector<8x8xbf16>, vector<8x32xbf16>, vector<8x32xf32> -> vector<8x32xf32>
    %432 = tpu.reciprocal %429 {approx = true} : vector<8x1xf32> -> vector<8x1xf32>
    %433 = vector.broadcast %432 : vector<8x1xf32> to vector<8x32xf32>
    %434 = arith.mulf %431, %433 : vector<8x32xf32>
    %c0_192 = arith.constant 0 : index
    %c32_193 = arith.constant 32 : index
    %435 = vector.load %arg43[%c0_192, %c32_193] : memref<8x128xf32, #tpu.memory_space<vmem>>, vector<8x32xf32>
    tpu.vector_store %arg43[%c0_192, %c32_193], %434 {strides = array<i32>} : memref<8x128xf32, #tpu.memory_space<vmem>>, vector<8x32xf32>,
    %436 = vector.extract_strided_slice %387 {offsets = [0, 64], sizes = [8, 32], strides = [1, 1]} : vector<8x128xf32> to vector<8x32xf32>
    %437 = arith.truncf %436 : vector<8x32xf32> to vector<8x32xbf16>
    %438 = vector.extract_strided_slice %388 {offsets = [0, 64], sizes = [8, 32], strides = [1, 1]} : vector<8x128xf32> to vector<8x32xf32>
    %439 = arith.truncf %438 : vector<8x32xf32> to vector<8x32xbf16>
    %440 = vector.extract_strided_slice %389 {offsets = [0, 64], sizes = [8, 32], strides = [1, 1]} : vector<8x128xf32> to vector<8x32xf32>
    %441 = arith.truncf %440 : vector<8x32xf32> to vector<8x32xbf16>
    %cst_194 = arith.constant dense<0.000000e+00> : vector<8x8xf32>
    %442 = tpu.matmul %437, %439, %cst_194 {dimension_numbers = #tpu.dot_dimension_numbers<[1], [1], [0], [0], [0, 0, 1, 0], [], []>} : vector<8x32xbf16>, vector<8x32xbf16>, vector<8x8xf32> -> vector<8x8xf32>
    %cst_195 = arith.constant 0.176776692 : f32
    %443 = vector.broadcast %cst_195 : f32 to vector<8x8xf32>
    %444 = arith.mulf %442, %443 : vector<8x8xf32>
    %445 = arith.addf %444, %376 : vector<8x8xf32>
    %cst_196 = arith.constant dense<0xFF800000> : vector<8xf32>
    %446 = vector.multi_reduction <maximumf>, %445, %cst_196 [1] : vector<8x8xf32> to vector<8xf32>
    %447 = vector.shape_cast %446 : vector<8xf32> to vector<8x1xf32>
    %448 = vector.broadcast %447 : vector<8x1xf32> to vector<8x8xf32>
    %449 = arith.subf %445, %448 : vector<8x8xf32>
    %450 = math.exp %449 : vector<8x8xf32>
    %cst_197 = arith.constant dense<0.000000e+00> : vector<8xf32>
    %451 = vector.multi_reduction <add>, %450, %cst_197 [1] : vector<8x8xf32> to vector<8xf32>
    %452 = vector.shape_cast %451 : vector<8xf32> to vector<8x1xf32>
    %453 = arith.truncf %450 : vector<8x8xf32> to vector<8x8xbf16>
    %cst_198 = arith.constant dense<0.000000e+00> : vector<8x32xf32>
    %454 = tpu.matmul %453, %441, %cst_198 {dimension_numbers = #tpu.dot_dimension_numbers<[1], [0], [0], [1], [0, 0, 1, 1], [], []>} : vector<8x8xbf16>, vector<8x32xbf16>, vector<8x32xf32> -> vector<8x32xf32>
    %455 = tpu.reciprocal %452 {approx = true} : vector<8x1xf32> -> vector<8x1xf32>
    %456 = vector.broadcast %455 : vector<8x1xf32> to vector<8x32xf32>
    %457 = arith.mulf %454, %456 : vector<8x32xf32>
    %c0_199 = arith.constant 0 : index
    %c64_200 = arith.constant 64 : index
    %458 = vector.load %arg43[%c0_199, %c64_200] : memref<8x128xf32, #tpu.memory_space<vmem>>, vector<8x32xf32>
    tpu.vector_store %arg43[%c0_199, %c64_200], %457 {strides = array<i32>} : memref<8x128xf32, #tpu.memory_space<vmem>>, vector<8x32xf32>,
    %459 = vector.extract_strided_slice %387 {offsets = [0, 96], sizes = [8, 32], strides = [1, 1]} : vector<8x128xf32> to vector<8x32xf32>
    %460 = arith.truncf %459 : vector<8x32xf32> to vector<8x32xbf16>
    %461 = vector.extract_strided_slice %388 {offsets = [0, 96], sizes = [8, 32], strides = [1, 1]} : vector<8x128xf32> to vector<8x32xf32>
    %462 = arith.truncf %461 : vector<8x32xf32> to vector<8x32xbf16>
    %463 = vector.extract_strided_slice %389 {offsets = [0, 96], sizes = [8, 32], strides = [1, 1]} : vector<8x128xf32> to vector<8x32xf32>
    %464 = arith.truncf %463 : vector<8x32xf32> to vector<8x32xbf16>
    %cst_201 = arith.constant dense<0.000000e+00> : vector<8x8xf32>
    %465 = tpu.matmul %460, %462, %cst_201 {dimension_numbers = #tpu.dot_dimension_numbers<[1], [1], [0], [0], [0, 0, 1, 0], [], []>} : vector<8x32xbf16>, vector<8x32xbf16>, vector<8x8xf32> -> vector<8x8xf32>
    %cst_202 = arith.constant 0.176776692 : f32
    %466 = vector.broadcast %cst_202 : f32 to vector<8x8xf32>
    %467 = arith.mulf %465, %466 : vector<8x8xf32>
    %468 = arith.addf %467, %376 : vector<8x8xf32>
    %cst_203 = arith.constant dense<0xFF800000> : vector<8xf32>
    %469 = vector.multi_reduction <maximumf>, %468, %cst_203 [1] : vector<8x8xf32> to vector<8xf32>
    %470 = vector.shape_cast %469 : vector<8xf32> to vector<8x1xf32>
    %471 = vector.broadcast %470 : vector<8x1xf32> to vector<8x8xf32>
    %472 = arith.subf %468, %471 : vector<8x8xf32>
    %473 = math.exp %472 : vector<8x8xf32>
    %cst_204 = arith.constant dense<0.000000e+00> : vector<8xf32>
    %474 = vector.multi_reduction <add>, %473, %cst_204 [1] : vector<8x8xf32> to vector<8xf32>
    %475 = vector.shape_cast %474 : vector<8xf32> to vector<8x1xf32>
    %476 = arith.truncf %473 : vector<8x8xf32> to vector<8x8xbf16>
    %cst_205 = arith.constant dense<0.000000e+00> : vector<8x32xf32>
    %477 = tpu.matmul %476, %464, %cst_205 {dimension_numbers = #tpu.dot_dimension_numbers<[1], [0], [0], [1], [0, 0, 1, 1], [], []>} : vector<8x8xbf16>, vector<8x32xbf16>, vector<8x32xf32> -> vector<8x32xf32>
    %478 = tpu.reciprocal %475 {approx = true} : vector<8x1xf32> -> vector<8x1xf32>
    %479 = vector.broadcast %478 : vector<8x1xf32> to vector<8x32xf32>
    %480 = arith.mulf %477, %479 : vector<8x32xf32>
    %c0_206 = arith.constant 0 : index
    %c96_207 = arith.constant 96 : index
    %481 = vector.load %arg43[%c0_206, %c96_207] : memref<8x128xf32, #tpu.memory_space<vmem>>, vector<8x32xf32>
    tpu.vector_store %arg43[%c0_206, %c96_207], %480 {strides = array<i32>} : memref<8x128xf32, #tpu.memory_space<vmem>>, vector<8x32xf32>,
    %c0_208 = arith.constant 0 : index
    %c0_209 = arith.constant 0 : index
    %482 = vector.load %arg43[%c0_208, %c0_209] : memref<8x128xf32, #tpu.memory_space<vmem>>, vector<8x128xf32>
    %c0_210 = arith.constant 0 : index
    %c0_211 = arith.constant 0 : index
    %c0_212 = arith.constant 0 : index
    %483 = vector.load %arg20[%c0_210, %c0_211, %c0_212] : memref<2x128x128xbf16, #tpu.memory_space<vmem>>, vector<1x128x128xbf16>
    %484 = vector.shape_cast %483 : vector<1x128x128xbf16> to vector<128x128xbf16>
    %485 = arith.truncf %482 : vector<8x128xf32> to vector<8x128xbf16>
    %cst_213 = arith.constant dense<0.000000e+00> : vector<8x128xf32>
    %486 = tpu.matmul %485, %484, %cst_213 {dimension_numbers = #tpu.dot_dimension_numbers<[1], [0], [0], [1], [0, 0, 1, 1], [], []>} : vector<8x128xbf16>, vector<128x128xbf16>, vector<8x128xf32> -> vector<8x128xf32>
    %c0_214 = arith.constant 0 : index
    %c0_215 = arith.constant 0 : index
    %c0_216 = arith.constant 0 : index
    %487 = vector.load %arg21[%c0_214, %c0_215, %c0_216] : memref<2x1x128xf32, #tpu.memory_space<vmem>>, vector<1x1x128xf32>
    %488 = vector.shape_cast %487 : vector<1x1x128xf32> to vector<1x128xf32>
    %489 = vector.broadcast %488 : vector<1x128xf32> to vector<8x128xf32>
    %490 = arith.addf %486, %489 : vector<8x128xf32>
    %491 = arith.addf %378, %490 : vector<8x128xf32>
    %c0_217 = arith.constant 0 : index
    %c0_218 = arith.constant 0 : index
    %c0_219 = arith.constant 0 : index
    %492 = vector.load %arg22[%c0_217, %c0_218, %c0_219] : memref<2x1x128xf32, #tpu.memory_space<vmem>>, vector<1x1x128xf32>
    %493 = vector.shape_cast %492 : vector<1x1x128xf32> to vector<1x128xf32>
    %c0_220 = arith.constant 0 : index
    %c0_221 = arith.constant 0 : index
    %c0_222 = arith.constant 0 : index
    %494 = vector.load %arg23[%c0_220, %c0_221, %c0_222] : memref<2x1x128xf32, #tpu.memory_space<vmem>>, vector<1x1x128xf32>
    %495 = vector.shape_cast %494 : vector<1x1x128xf32> to vector<1x128xf32>
    %cst_223 = arith.constant dense<0.000000e+00> : vector<8xf32>
    %496 = vector.multi_reduction <add>, %491, %cst_223 [1] : vector<8x128xf32> to vector<8xf32>
    %497 = vector.shape_cast %496 : vector<8xf32> to vector<8x1xf32>
    %cst_224 = arith.constant 1.280000e+02 : f32
    %498 = vector.broadcast %cst_224 : f32 to vector<8x1xf32>
    %499 = arith.divf %497, %498 : vector<8x1xf32>
    %500 = vector.broadcast %499 : vector<8x1xf32> to vector<8x128xf32>
    %501 = arith.subf %491, %500 : vector<8x128xf32>
    %502 = arith.mulf %501, %501 : vector<8x128xf32>
    %cst_225 = arith.constant dense<0.000000e+00> : vector<8xf32>
    %503 = vector.multi_reduction <add>, %502, %cst_225 [1] : vector<8x128xf32> to vector<8xf32>
    %504 = vector.shape_cast %503 : vector<8xf32> to vector<8x1xf32>
    %cst_226 = arith.constant 1.280000e+02 : f32
    %505 = vector.broadcast %cst_226 : f32 to vector<8x1xf32>
    %506 = arith.divf %504, %505 : vector<8x1xf32>
    %cst_227 = arith.constant 9.99999974E-6 : f32
    %507 = vector.broadcast %cst_227 : f32 to vector<8x1xf32>
    %508 = arith.addf %506, %507 : vector<8x1xf32>
    %509 = math.rsqrt %508 : vector<8x1xf32>
    %510 = vector.broadcast %509 : vector<8x1xf32> to vector<8x128xf32>
    %511 = arith.mulf %501, %510 : vector<8x128xf32>
    %512 = vector.broadcast %493 : vector<1x128xf32> to vector<8x128xf32>
    %513 = arith.mulf %511, %512 : vector<8x128xf32>
    %514 = vector.broadcast %495 : vector<1x128xf32> to vector<8x128xf32>
    %515 = arith.addf %513, %514 : vector<8x128xf32>
    %c0_228 = arith.constant 0 : index
    %c0_229 = arith.constant 0 : index
    %c0_230 = arith.constant 0 : index
    %516 = vector.load %arg24[%c0_228, %c0_229, %c0_230] : memref<2x128x128xbf16, #tpu.memory_space<vmem>>, vector<1x128x128xbf16>
    %517 = vector.shape_cast %516 : vector<1x128x128xbf16> to vector<128x128xbf16>
    %518 = arith.truncf %515 : vector<8x128xf32> to vector<8x128xbf16>
    %cst_231 = arith.constant dense<0.000000e+00> : vector<8x128xf32>
    %519 = tpu.matmul %518, %517, %cst_231 {dimension_numbers = #tpu.dot_dimension_numbers<[1], [0], [0], [1], [0, 0, 1, 1], [], []>} : vector<8x128xbf16>, vector<128x128xbf16>, vector<8x128xf32> -> vector<8x128xf32>
    %c0_232 = arith.constant 0 : index
    %c0_233 = arith.constant 0 : index
    %c0_234 = arith.constant 0 : index
    %520 = vector.load %arg25[%c0_232, %c0_233, %c0_234] : memref<2x1x128xf32, #tpu.memory_space<vmem>>, vector<1x1x128xf32>
    %521 = vector.shape_cast %520 : vector<1x1x128xf32> to vector<1x128xf32>
    %522 = vector.broadcast %521 : vector<1x128xf32> to vector<8x128xf32>
    %523 = arith.addf %519, %522 : vector<8x128xf32>
    %c0_235 = arith.constant 0 : index
    %c0_236 = arith.constant 0 : index
    %c0_237 = arith.constant 0 : index
    %524 = vector.load %arg26[%c0_235, %c0_236, %c0_237] : memref<2x128x256xbf16, #tpu.memory_space<vmem>>, vector<1x128x256xbf16>
    %525 = vector.shape_cast %524 : vector<1x128x256xbf16> to vector<128x256xbf16>
    %526 = arith.truncf %375 : vector<8x128xf32> to vector<8x128xbf16>
    %cst_238 = arith.constant dense<0.000000e+00> : vector<8x256xf32>
    %527 = tpu.matmul %526, %525, %cst_238 {dimension_numbers = #tpu.dot_dimension_numbers<[1], [0], [0], [1], [0, 0, 1, 1], [], []>} : vector<8x128xbf16>, vector<128x256xbf16>, vector<8x256xf32> -> vector<8x256xf32>
    %c0_239 = arith.constant 0 : index
    %c0_240 = arith.constant 0 : index
    %c0_241 = arith.constant 0 : index
    %528 = vector.load %arg27[%c0_239, %c0_240, %c0_241] : memref<2x1x256xf32, #tpu.memory_space<vmem>>, vector<1x1x256xf32>
    %529 = vector.shape_cast %528 : vector<1x1x256xf32> to vector<1x256xf32>
    %530 = vector.broadcast %529 : vector<1x256xf32> to vector<8x256xf32>
    %531 = arith.addf %527, %530 : vector<8x256xf32>
    %532 = vector.extract_strided_slice %531 {offsets = [0, 0], sizes = [8, 128], strides = [1, 1]} : vector<8x256xf32> to vector<8x128xf32>
    %533 = vector.extract_strided_slice %531 {offsets = [0, 128], sizes = [8, 128], strides = [1, 1]} : vector<8x256xf32> to vector<8x128xf32>
    %534 = vector.extract_strided_slice %523 {offsets = [0, 0], sizes = [8, 32], strides = [1, 1]} : vector<8x128xf32> to vector<8x32xf32>
    %535 = arith.truncf %534 : vector<8x32xf32> to vector<8x32xbf16>
    %536 = vector.extract_strided_slice %532 {offsets = [0, 0], sizes = [8, 32], strides = [1, 1]} : vector<8x128xf32> to vector<8x32xf32>
    %537 = arith.truncf %536 : vector<8x32xf32> to vector<8x32xbf16>
    %538 = vector.extract_strided_slice %533 {offsets = [0, 0], sizes = [8, 32], strides = [1, 1]} : vector<8x128xf32> to vector<8x32xf32>
    %539 = arith.truncf %538 : vector<8x32xf32> to vector<8x32xbf16>
    %cst_242 = arith.constant dense<0.000000e+00> : vector<8x8xf32>
    %540 = tpu.matmul %535, %537, %cst_242 {dimension_numbers = #tpu.dot_dimension_numbers<[1], [1], [0], [0], [0, 0, 1, 0], [], []>} : vector<8x32xbf16>, vector<8x32xbf16>, vector<8x8xf32> -> vector<8x8xf32>
    %cst_243 = arith.constant 0.176776692 : f32
    %541 = vector.broadcast %cst_243 : f32 to vector<8x8xf32>
    %542 = arith.mulf %540, %541 : vector<8x8xf32>
    %cst_244 = arith.constant dense<0xFF800000> : vector<8xf32>
    %543 = vector.multi_reduction <maximumf>, %542, %cst_244 [1] : vector<8x8xf32> to vector<8xf32>
    %544 = vector.shape_cast %543 : vector<8xf32> to vector<8x1xf32>
    %545 = vector.broadcast %544 : vector<8x1xf32> to vector<8x8xf32>
    %546 = arith.subf %542, %545 : vector<8x8xf32>
    %547 = math.exp %546 : vector<8x8xf32>
    %cst_245 = arith.constant dense<0.000000e+00> : vector<8xf32>
    %548 = vector.multi_reduction <add>, %547, %cst_245 [1] : vector<8x8xf32> to vector<8xf32>
    %549 = vector.shape_cast %548 : vector<8xf32> to vector<8x1xf32>
    %550 = arith.truncf %547 : vector<8x8xf32> to vector<8x8xbf16>
    %cst_246 = arith.constant dense<0.000000e+00> : vector<8x32xf32>
    %551 = tpu.matmul %550, %539, %cst_246 {dimension_numbers = #tpu.dot_dimension_numbers<[1], [0], [0], [1], [0, 0, 1, 1], [], []>} : vector<8x8xbf16>, vector<8x32xbf16>, vector<8x32xf32> -> vector<8x32xf32>
    %552 = tpu.reciprocal %549 {approx = true} : vector<8x1xf32> -> vector<8x1xf32>
    %553 = vector.broadcast %552 : vector<8x1xf32> to vector<8x32xf32>
    %554 = arith.mulf %551, %553 : vector<8x32xf32>
    %c0_247 = arith.constant 0 : index
    %c0_248 = arith.constant 0 : index
    %555 = vector.load %arg43[%c0_247, %c0_248] : memref<8x128xf32, #tpu.memory_space<vmem>>, vector<8x32xf32>
    tpu.vector_store %arg43[%c0_247, %c0_248], %554 {strides = array<i32>} : memref<8x128xf32, #tpu.memory_space<vmem>>, vector<8x32xf32>,
    %556 = vector.extract_strided_slice %523 {offsets = [0, 32], sizes = [8, 32], strides = [1, 1]} : vector<8x128xf32> to vector<8x32xf32>
    %557 = arith.truncf %556 : vector<8x32xf32> to vector<8x32xbf16>
    %558 = vector.extract_strided_slice %532 {offsets = [0, 32], sizes = [8, 32], strides = [1, 1]} : vector<8x128xf32> to vector<8x32xf32>
    %559 = arith.truncf %558 : vector<8x32xf32> to vector<8x32xbf16>
    %560 = vector.extract_strided_slice %533 {offsets = [0, 32], sizes = [8, 32], strides = [1, 1]} : vector<8x128xf32> to vector<8x32xf32>
    %561 = arith.truncf %560 : vector<8x32xf32> to vector<8x32xbf16>
    %cst_249 = arith.constant dense<0.000000e+00> : vector<8x8xf32>
    %562 = tpu.matmul %557, %559, %cst_249 {dimension_numbers = #tpu.dot_dimension_numbers<[1], [1], [0], [0], [0, 0, 1, 0], [], []>} : vector<8x32xbf16>, vector<8x32xbf16>, vector<8x8xf32> -> vector<8x8xf32>
    %cst_250 = arith.constant 0.176776692 : f32
    %563 = vector.broadcast %cst_250 : f32 to vector<8x8xf32>
    %564 = arith.mulf %562, %563 : vector<8x8xf32>
    %cst_251 = arith.constant dense<0xFF800000> : vector<8xf32>
    %565 = vector.multi_reduction <maximumf>, %564, %cst_251 [1] : vector<8x8xf32> to vector<8xf32>
    %566 = vector.shape_cast %565 : vector<8xf32> to vector<8x1xf32>
    %567 = vector.broadcast %566 : vector<8x1xf32> to vector<8x8xf32>
    %568 = arith.subf %564, %567 : vector<8x8xf32>
    %569 = math.exp %568 : vector<8x8xf32>
    %cst_252 = arith.constant dense<0.000000e+00> : vector<8xf32>
    %570 = vector.multi_reduction <add>, %569, %cst_252 [1] : vector<8x8xf32> to vector<8xf32>
    %571 = vector.shape_cast %570 : vector<8xf32> to vector<8x1xf32>
    %572 = arith.truncf %569 : vector<8x8xf32> to vector<8x8xbf16>
    %cst_253 = arith.constant dense<0.000000e+00> : vector<8x32xf32>
    %573 = tpu.matmul %572, %561, %cst_253 {dimension_numbers = #tpu.dot_dimension_numbers<[1], [0], [0], [1], [0, 0, 1, 1], [], []>} : vector<8x8xbf16>, vector<8x32xbf16>, vector<8x32xf32> -> vector<8x32xf32>
    %574 = tpu.reciprocal %571 {approx = true} : vector<8x1xf32> -> vector<8x1xf32>
    %575 = vector.broadcast %574 : vector<8x1xf32> to vector<8x32xf32>
    %576 = arith.mulf %573, %575 : vector<8x32xf32>
    %c0_254 = arith.constant 0 : index
    %c32_255 = arith.constant 32 : index
    %577 = vector.load %arg43[%c0_254, %c32_255] : memref<8x128xf32, #tpu.memory_space<vmem>>, vector<8x32xf32>
    tpu.vector_store %arg43[%c0_254, %c32_255], %576 {strides = array<i32>} : memref<8x128xf32, #tpu.memory_space<vmem>>, vector<8x32xf32>,
    %578 = vector.extract_strided_slice %523 {offsets = [0, 64], sizes = [8, 32], strides = [1, 1]} : vector<8x128xf32> to vector<8x32xf32>
    %579 = arith.truncf %578 : vector<8x32xf32> to vector<8x32xbf16>
    %580 = vector.extract_strided_slice %532 {offsets = [0, 64], sizes = [8, 32], strides = [1, 1]} : vector<8x128xf32> to vector<8x32xf32>
    %581 = arith.truncf %580 : vector<8x32xf32> to vector<8x32xbf16>
    %582 = vector.extract_strided_slice %533 {offsets = [0, 64], sizes = [8, 32], strides = [1, 1]} : vector<8x128xf32> to vector<8x32xf32>
    %583 = arith.truncf %582 : vector<8x32xf32> to vector<8x32xbf16>
    %cst_256 = arith.constant dense<0.000000e+00> : vector<8x8xf32>
    %584 = tpu.matmul %579, %581, %cst_256 {dimension_numbers = #tpu.dot_dimension_numbers<[1], [1], [0], [0], [0, 0, 1, 0], [], []>} : vector<8x32xbf16>, vector<8x32xbf16>, vector<8x8xf32> -> vector<8x8xf32>
    %cst_257 = arith.constant 0.176776692 : f32
    %585 = vector.broadcast %cst_257 : f32 to vector<8x8xf32>
    %586 = arith.mulf %584, %585 : vector<8x8xf32>
    %cst_258 = arith.constant dense<0xFF800000> : vector<8xf32>
    %587 = vector.multi_reduction <maximumf>, %586, %cst_258 [1] : vector<8x8xf32> to vector<8xf32>
    %588 = vector.shape_cast %587 : vector<8xf32> to vector<8x1xf32>
    %589 = vector.broadcast %588 : vector<8x1xf32> to vector<8x8xf32>
    %590 = arith.subf %586, %589 : vector<8x8xf32>
    %591 = math.exp %590 : vector<8x8xf32>
    %cst_259 = arith.constant dense<0.000000e+00> : vector<8xf32>
    %592 = vector.multi_reduction <add>, %591, %cst_259 [1] : vector<8x8xf32> to vector<8xf32>
    %593 = vector.shape_cast %592 : vector<8xf32> to vector<8x1xf32>
    %594 = arith.truncf %591 : vector<8x8xf32> to vector<8x8xbf16>
    %cst_260 = arith.constant dense<0.000000e+00> : vector<8x32xf32>
    %595 = tpu.matmul %594, %583, %cst_260 {dimension_numbers = #tpu.dot_dimension_numbers<[1], [0], [0], [1], [0, 0, 1, 1], [], []>} : vector<8x8xbf16>, vector<8x32xbf16>, vector<8x32xf32> -> vector<8x32xf32>
    %596 = tpu.reciprocal %593 {approx = true} : vector<8x1xf32> -> vector<8x1xf32>
    %597 = vector.broadcast %596 : vector<8x1xf32> to vector<8x32xf32>
    %598 = arith.mulf %595, %597 : vector<8x32xf32>
    %c0_261 = arith.constant 0 : index
    %c64_262 = arith.constant 64 : index
    %599 = vector.load %arg43[%c0_261, %c64_262] : memref<8x128xf32, #tpu.memory_space<vmem>>, vector<8x32xf32>
    tpu.vector_store %arg43[%c0_261, %c64_262], %598 {strides = array<i32>} : memref<8x128xf32, #tpu.memory_space<vmem>>, vector<8x32xf32>,
    %600 = vector.extract_strided_slice %523 {offsets = [0, 96], sizes = [8, 32], strides = [1, 1]} : vector<8x128xf32> to vector<8x32xf32>
    %601 = arith.truncf %600 : vector<8x32xf32> to vector<8x32xbf16>
    %602 = vector.extract_strided_slice %532 {offsets = [0, 96], sizes = [8, 32], strides = [1, 1]} : vector<8x128xf32> to vector<8x32xf32>
    %603 = arith.truncf %602 : vector<8x32xf32> to vector<8x32xbf16>
    %604 = vector.extract_strided_slice %533 {offsets = [0, 96], sizes = [8, 32], strides = [1, 1]} : vector<8x128xf32> to vector<8x32xf32>
    %605 = arith.truncf %604 : vector<8x32xf32> to vector<8x32xbf16>
    %cst_263 = arith.constant dense<0.000000e+00> : vector<8x8xf32>
    %606 = tpu.matmul %601, %603, %cst_263 {dimension_numbers = #tpu.dot_dimension_numbers<[1], [1], [0], [0], [0, 0, 1, 0], [], []>} : vector<8x32xbf16>, vector<8x32xbf16>, vector<8x8xf32> -> vector<8x8xf32>
    %cst_264 = arith.constant 0.176776692 : f32
    %607 = vector.broadcast %cst_264 : f32 to vector<8x8xf32>
    %608 = arith.mulf %606, %607 : vector<8x8xf32>
    %cst_265 = arith.constant dense<0xFF800000> : vector<8xf32>
    %609 = vector.multi_reduction <maximumf>, %608, %cst_265 [1] : vector<8x8xf32> to vector<8xf32>
    %610 = vector.shape_cast %609 : vector<8xf32> to vector<8x1xf32>
    %611 = vector.broadcast %610 : vector<8x1xf32> to vector<8x8xf32>
    %612 = arith.subf %608, %611 : vector<8x8xf32>
    %613 = math.exp %612 : vector<8x8xf32>
    %cst_266 = arith.constant dense<0.000000e+00> : vector<8xf32>
    %614 = vector.multi_reduction <add>, %613, %cst_266 [1] : vector<8x8xf32> to vector<8xf32>
    %615 = vector.shape_cast %614 : vector<8xf32> to vector<8x1xf32>
    %616 = arith.truncf %613 : vector<8x8xf32> to vector<8x8xbf16>
    %cst_267 = arith.constant dense<0.000000e+00> : vector<8x32xf32>
    %617 = tpu.matmul %616, %605, %cst_267 {dimension_numbers = #tpu.dot_dimension_numbers<[1], [0], [0], [1], [0, 0, 1, 1], [], []>} : vector<8x8xbf16>, vector<8x32xbf16>, vector<8x32xf32> -> vector<8x32xf32>
    %618 = tpu.reciprocal %615 {approx = true} : vector<8x1xf32> -> vector<8x1xf32>
    %619 = vector.broadcast %618 : vector<8x1xf32> to vector<8x32xf32>
    %620 = arith.mulf %617, %619 : vector<8x32xf32>
    %c0_268 = arith.constant 0 : index
    %c96_269 = arith.constant 96 : index
    %621 = vector.load %arg43[%c0_268, %c96_269] : memref<8x128xf32, #tpu.memory_space<vmem>>, vector<8x32xf32>
    tpu.vector_store %arg43[%c0_268, %c96_269], %620 {strides = array<i32>} : memref<8x128xf32, #tpu.memory_space<vmem>>, vector<8x32xf32>,
    %c0_270 = arith.constant 0 : index
    %c0_271 = arith.constant 0 : index
    %622 = vector.load %arg43[%c0_270, %c0_271] : memref<8x128xf32, #tpu.memory_space<vmem>>, vector<8x128xf32>
    %c0_272 = arith.constant 0 : index
    %c0_273 = arith.constant 0 : index
    %c0_274 = arith.constant 0 : index
    %623 = vector.load %arg28[%c0_272, %c0_273, %c0_274] : memref<2x128x128xbf16, #tpu.memory_space<vmem>>, vector<1x128x128xbf16>
    %624 = vector.shape_cast %623 : vector<1x128x128xbf16> to vector<128x128xbf16>
    %625 = arith.truncf %622 : vector<8x128xf32> to vector<8x128xbf16>
    %cst_275 = arith.constant dense<0.000000e+00> : vector<8x128xf32>
    %626 = tpu.matmul %625, %624, %cst_275 {dimension_numbers = #tpu.dot_dimension_numbers<[1], [0], [0], [1], [0, 0, 1, 1], [], []>} : vector<8x128xbf16>, vector<128x128xbf16>, vector<8x128xf32> -> vector<8x128xf32>
    %c0_276 = arith.constant 0 : index
    %c0_277 = arith.constant 0 : index
    %c0_278 = arith.constant 0 : index
    %627 = vector.load %arg29[%c0_276, %c0_277, %c0_278] : memref<2x1x128xf32, #tpu.memory_space<vmem>>, vector<1x1x128xf32>
    %628 = vector.shape_cast %627 : vector<1x1x128xf32> to vector<1x128xf32>
    %629 = vector.broadcast %628 : vector<1x128xf32> to vector<8x128xf32>
    %630 = arith.addf %626, %629 : vector<8x128xf32>
    %631 = arith.addf %515, %630 : vector<8x128xf32>
    %c0_279 = arith.constant 0 : index
    %c0_280 = arith.constant 0 : index
    %c0_281 = arith.constant 0 : index
    %632 = vector.load %arg30[%c0_279, %c0_280, %c0_281] : memref<2x1x128xf32, #tpu.memory_space<vmem>>, vector<1x1x128xf32>
    %633 = vector.shape_cast %632 : vector<1x1x128xf32> to vector<1x128xf32>
    %c0_282 = arith.constant 0 : index
    %c0_283 = arith.constant 0 : index
    %c0_284 = arith.constant 0 : index
    %634 = vector.load %arg31[%c0_282, %c0_283, %c0_284] : memref<2x1x128xf32, #tpu.memory_space<vmem>>, vector<1x1x128xf32>
    %635 = vector.shape_cast %634 : vector<1x1x128xf32> to vector<1x128xf32>
    %cst_285 = arith.constant dense<0.000000e+00> : vector<8xf32>
    %636 = vector.multi_reduction <add>, %631, %cst_285 [1] : vector<8x128xf32> to vector<8xf32>
    %637 = vector.shape_cast %636 : vector<8xf32> to vector<8x1xf32>
    %cst_286 = arith.constant 1.280000e+02 : f32
    %638 = vector.broadcast %cst_286 : f32 to vector<8x1xf32>
    %639 = arith.divf %637, %638 : vector<8x1xf32>
    %640 = vector.broadcast %639 : vector<8x1xf32> to vector<8x128xf32>
    %641 = arith.subf %631, %640 : vector<8x128xf32>
    %642 = arith.mulf %641, %641 : vector<8x128xf32>
    %cst_287 = arith.constant dense<0.000000e+00> : vector<8xf32>
    %643 = vector.multi_reduction <add>, %642, %cst_287 [1] : vector<8x128xf32> to vector<8xf32>
    %644 = vector.shape_cast %643 : vector<8xf32> to vector<8x1xf32>
    %cst_288 = arith.constant 1.280000e+02 : f32
    %645 = vector.broadcast %cst_288 : f32 to vector<8x1xf32>
    %646 = arith.divf %644, %645 : vector<8x1xf32>
    %cst_289 = arith.constant 9.99999974E-6 : f32
    %647 = vector.broadcast %cst_289 : f32 to vector<8x1xf32>
    %648 = arith.addf %646, %647 : vector<8x1xf32>
    %649 = math.rsqrt %648 : vector<8x1xf32>
    %650 = vector.broadcast %649 : vector<8x1xf32> to vector<8x128xf32>
    %651 = arith.mulf %641, %650 : vector<8x128xf32>
    %652 = vector.broadcast %633 : vector<1x128xf32> to vector<8x128xf32>
    %653 = arith.mulf %651, %652 : vector<8x128xf32>
    %654 = vector.broadcast %635 : vector<1x128xf32> to vector<8x128xf32>
    %655 = arith.addf %653, %654 : vector<8x128xf32>
    %c0_290 = arith.constant 0 : index
    %c0_291 = arith.constant 0 : index
    %c0_292 = arith.constant 0 : index
    %656 = vector.load %arg32[%c0_290, %c0_291, %c0_292] : memref<2x128x256xbf16, #tpu.memory_space<vmem>>, vector<1x128x256xbf16>
    %657 = vector.shape_cast %656 : vector<1x128x256xbf16> to vector<128x256xbf16>
    %658 = arith.truncf %655 : vector<8x128xf32> to vector<8x128xbf16>
    %cst_293 = arith.constant dense<0.000000e+00> : vector<8x256xf32>
    %659 = tpu.matmul %658, %657, %cst_293 {dimension_numbers = #tpu.dot_dimension_numbers<[1], [0], [0], [1], [0, 0, 1, 1], [], []>} : vector<8x128xbf16>, vector<128x256xbf16>, vector<8x256xf32> -> vector<8x256xf32>
    %c0_294 = arith.constant 0 : index
    %c0_295 = arith.constant 0 : index
    %c0_296 = arith.constant 0 : index
    %660 = vector.load %arg33[%c0_294, %c0_295, %c0_296] : memref<2x1x256xf32, #tpu.memory_space<vmem>>, vector<1x1x256xf32>
    %661 = vector.shape_cast %660 : vector<1x1x256xf32> to vector<1x256xf32>
    %662 = vector.broadcast %661 : vector<1x256xf32> to vector<8x256xf32>
    %663 = arith.addf %659, %662 : vector<8x256xf32>
    %cst_297 = arith.constant 0.000000e+00 : f32
    %664 = vector.broadcast %cst_297 : f32 to vector<8x256xf32>
    %665 = arith.maximumf %663, %664 : vector<8x256xf32>
    %c0_298 = arith.constant 0 : index
    %c0_299 = arith.constant 0 : index
    %c0_300 = arith.constant 0 : index
    %666 = vector.load %arg34[%c0_298, %c0_299, %c0_300] : memref<2x256x128xbf16, #tpu.memory_space<vmem>>, vector<1x256x128xbf16>
    %667 = vector.shape_cast %666 : vector<1x256x128xbf16> to vector<256x128xbf16>
    %668 = arith.truncf %665 : vector<8x256xf32> to vector<8x256xbf16>
    %cst_301 = arith.constant dense<0.000000e+00> : vector<8x128xf32>
    %669 = tpu.matmul %668, %667, %cst_301 {dimension_numbers = #tpu.dot_dimension_numbers<[1], [0], [0], [1], [0, 0, 1, 1], [], []>} : vector<8x256xbf16>, vector<256x128xbf16>, vector<8x128xf32> -> vector<8x128xf32>
    %c0_302 = arith.constant 0 : index
    %c0_303 = arith.constant 0 : index
    %c0_304 = arith.constant 0 : index
    %670 = vector.load %arg35[%c0_302, %c0_303, %c0_304] : memref<2x1x128xf32, #tpu.memory_space<vmem>>, vector<1x1x128xf32>
    %671 = vector.shape_cast %670 : vector<1x1x128xf32> to vector<1x128xf32>
    %672 = vector.broadcast %671 : vector<1x128xf32> to vector<8x128xf32>
    %673 = arith.addf %669, %672 : vector<8x128xf32>
    %674 = arith.addf %655, %673 : vector<8x128xf32>
    %c0_305 = arith.constant 0 : index
    %c0_306 = arith.constant 0 : index
    %c0_307 = arith.constant 0 : index
    %675 = vector.load %arg36[%c0_305, %c0_306, %c0_307] : memref<2x1x128xf32, #tpu.memory_space<vmem>>, vector<1x1x128xf32>
    %676 = vector.shape_cast %675 : vector<1x1x128xf32> to vector<1x128xf32>
    %c0_308 = arith.constant 0 : index
    %c0_309 = arith.constant 0 : index
    %c0_310 = arith.constant 0 : index
    %677 = vector.load %arg37[%c0_308, %c0_309, %c0_310] : memref<2x1x128xf32, #tpu.memory_space<vmem>>, vector<1x1x128xf32>
    %678 = vector.shape_cast %677 : vector<1x1x128xf32> to vector<1x128xf32>
    %cst_311 = arith.constant dense<0.000000e+00> : vector<8xf32>
    %679 = vector.multi_reduction <add>, %674, %cst_311 [1] : vector<8x128xf32> to vector<8xf32>
    %680 = vector.shape_cast %679 : vector<8xf32> to vector<8x1xf32>
    %cst_312 = arith.constant 1.280000e+02 : f32
    %681 = vector.broadcast %cst_312 : f32 to vector<8x1xf32>
    %682 = arith.divf %680, %681 : vector<8x1xf32>
    %683 = vector.broadcast %682 : vector<8x1xf32> to vector<8x128xf32>
    %684 = arith.subf %674, %683 : vector<8x128xf32>
    %685 = arith.mulf %684, %684 : vector<8x128xf32>
    %cst_313 = arith.constant dense<0.000000e+00> : vector<8xf32>
    %686 = vector.multi_reduction <add>, %685, %cst_313 [1] : vector<8x128xf32> to vector<8xf32>
    %687 = vector.shape_cast %686 : vector<8xf32> to vector<8x1xf32>
    %cst_314 = arith.constant 1.280000e+02 : f32
    %688 = vector.broadcast %cst_314 : f32 to vector<8x1xf32>
    %689 = arith.divf %687, %688 : vector<8x1xf32>
    %cst_315 = arith.constant 9.99999974E-6 : f32
    %690 = vector.broadcast %cst_315 : f32 to vector<8x1xf32>
    %691 = arith.addf %689, %690 : vector<8x1xf32>
    %692 = math.rsqrt %691 : vector<8x1xf32>
    %693 = vector.broadcast %692 : vector<8x1xf32> to vector<8x128xf32>
    %694 = arith.mulf %684, %693 : vector<8x128xf32>
    %695 = vector.broadcast %676 : vector<1x128xf32> to vector<8x128xf32>
    %696 = arith.mulf %694, %695 : vector<8x128xf32>
    %697 = vector.broadcast %678 : vector<1x128xf32> to vector<8x128xf32>
    %698 = arith.addf %696, %697 : vector<8x128xf32>
    %c1_316 = arith.constant 1 : index
    %c0_317 = arith.constant 0 : index
    %c0_318 = arith.constant 0 : index
    %699 = vector.load %arg18[%c1_316, %c0_317, %c0_318] : memref<2x128x384xbf16, #tpu.memory_space<vmem>>, vector<1x128x384xbf16>
    %700 = vector.shape_cast %699 : vector<1x128x384xbf16> to vector<128x384xbf16>
    %701 = arith.truncf %698 : vector<8x128xf32> to vector<8x128xbf16>
    %cst_319 = arith.constant dense<0.000000e+00> : vector<8x384xf32>
    %702 = tpu.matmul %701, %700, %cst_319 {dimension_numbers = #tpu.dot_dimension_numbers<[1], [0], [0], [1], [0, 0, 1, 1], [], []>} : vector<8x128xbf16>, vector<128x384xbf16>, vector<8x384xf32> -> vector<8x384xf32>
    %c1_320 = arith.constant 1 : index
    %c0_321 = arith.constant 0 : index
    %c0_322 = arith.constant 0 : index
    %703 = vector.load %arg19[%c1_320, %c0_321, %c0_322] : memref<2x1x384xf32, #tpu.memory_space<vmem>>, vector<1x1x384xf32>
    %704 = vector.shape_cast %703 : vector<1x1x384xf32> to vector<1x384xf32>
    %705 = vector.broadcast %704 : vector<1x384xf32> to vector<8x384xf32>
    %706 = arith.addf %702, %705 : vector<8x384xf32>
    %707 = vector.extract_strided_slice %706 {offsets = [0, 0], sizes = [8, 128], strides = [1, 1]} : vector<8x384xf32> to vector<8x128xf32>
    %708 = vector.extract_strided_slice %706 {offsets = [0, 128], sizes = [8, 128], strides = [1, 1]} : vector<8x384xf32> to vector<8x128xf32>
    %709 = vector.extract_strided_slice %706 {offsets = [0, 256], sizes = [8, 128], strides = [1, 1]} : vector<8x384xf32> to vector<8x128xf32>
    %710 = vector.extract_strided_slice %707 {offsets = [0, 0], sizes = [8, 32], strides = [1, 1]} : vector<8x128xf32> to vector<8x32xf32>
    %711 = arith.truncf %710 : vector<8x32xf32> to vector<8x32xbf16>
    %712 = vector.extract_strided_slice %708 {offsets = [0, 0], sizes = [8, 32], strides = [1, 1]} : vector<8x128xf32> to vector<8x32xf32>
    %713 = arith.truncf %712 : vector<8x32xf32> to vector<8x32xbf16>
    %714 = vector.extract_strided_slice %709 {offsets = [0, 0], sizes = [8, 32], strides = [1, 1]} : vector<8x128xf32> to vector<8x32xf32>
    %715 = arith.truncf %714 : vector<8x32xf32> to vector<8x32xbf16>
    %cst_323 = arith.constant dense<0.000000e+00> : vector<8x8xf32>
    %716 = tpu.matmul %711, %713, %cst_323 {dimension_numbers = #tpu.dot_dimension_numbers<[1], [1], [0], [0], [0, 0, 1, 0], [], []>} : vector<8x32xbf16>, vector<8x32xbf16>, vector<8x8xf32> -> vector<8x8xf32>
    %cst_324 = arith.constant 0.176776692 : f32
    %717 = vector.broadcast %cst_324 : f32 to vector<8x8xf32>
    %718 = arith.mulf %716, %717 : vector<8x8xf32>
    %719 = arith.addf %718, %376 : vector<8x8xf32>
    %cst_325 = arith.constant dense<0xFF800000> : vector<8xf32>
    %720 = vector.multi_reduction <maximumf>, %719, %cst_325 [1] : vector<8x8xf32> to vector<8xf32>
    %721 = vector.shape_cast %720 : vector<8xf32> to vector<8x1xf32>
    %722 = vector.broadcast %721 : vector<8x1xf32> to vector<8x8xf32>
    %723 = arith.subf %719, %722 : vector<8x8xf32>
    %724 = math.exp %723 : vector<8x8xf32>
    %cst_326 = arith.constant dense<0.000000e+00> : vector<8xf32>
    %725 = vector.multi_reduction <add>, %724, %cst_326 [1] : vector<8x8xf32> to vector<8xf32>
    %726 = vector.shape_cast %725 : vector<8xf32> to vector<8x1xf32>
    %727 = arith.truncf %724 : vector<8x8xf32> to vector<8x8xbf16>
    %cst_327 = arith.constant dense<0.000000e+00> : vector<8x32xf32>
    %728 = tpu.matmul %727, %715, %cst_327 {dimension_numbers = #tpu.dot_dimension_numbers<[1], [0], [0], [1], [0, 0, 1, 1], [], []>} : vector<8x8xbf16>, vector<8x32xbf16>, vector<8x32xf32> -> vector<8x32xf32>
    %729 = tpu.reciprocal %726 {approx = true} : vector<8x1xf32> -> vector<8x1xf32>
    %730 = vector.broadcast %729 : vector<8x1xf32> to vector<8x32xf32>
    %731 = arith.mulf %728, %730 : vector<8x32xf32>
    %c0_328 = arith.constant 0 : index
    %c0_329 = arith.constant 0 : index
    %732 = vector.load %arg43[%c0_328, %c0_329] : memref<8x128xf32, #tpu.memory_space<vmem>>, vector<8x32xf32>
    tpu.vector_store %arg43[%c0_328, %c0_329], %731 {strides = array<i32>} : memref<8x128xf32, #tpu.memory_space<vmem>>, vector<8x32xf32>,
    %733 = vector.extract_strided_slice %707 {offsets = [0, 32], sizes = [8, 32], strides = [1, 1]} : vector<8x128xf32> to vector<8x32xf32>
    %734 = arith.truncf %733 : vector<8x32xf32> to vector<8x32xbf16>
    %735 = vector.extract_strided_slice %708 {offsets = [0, 32], sizes = [8, 32], strides = [1, 1]} : vector<8x128xf32> to vector<8x32xf32>
    %736 = arith.truncf %735 : vector<8x32xf32> to vector<8x32xbf16>
    %737 = vector.extract_strided_slice %709 {offsets = [0, 32], sizes = [8, 32], strides = [1, 1]} : vector<8x128xf32> to vector<8x32xf32>
    %738 = arith.truncf %737 : vector<8x32xf32> to vector<8x32xbf16>
    %cst_330 = arith.constant dense<0.000000e+00> : vector<8x8xf32>
    %739 = tpu.matmul %734, %736, %cst_330 {dimension_numbers = #tpu.dot_dimension_numbers<[1], [1], [0], [0], [0, 0, 1, 0], [], []>} : vector<8x32xbf16>, vector<8x32xbf16>, vector<8x8xf32> -> vector<8x8xf32>
    %cst_331 = arith.constant 0.176776692 : f32
    %740 = vector.broadcast %cst_331 : f32 to vector<8x8xf32>
    %741 = arith.mulf %739, %740 : vector<8x8xf32>
    %742 = arith.addf %741, %376 : vector<8x8xf32>
    %cst_332 = arith.constant dense<0xFF800000> : vector<8xf32>
    %743 = vector.multi_reduction <maximumf>, %742, %cst_332 [1] : vector<8x8xf32> to vector<8xf32>
    %744 = vector.shape_cast %743 : vector<8xf32> to vector<8x1xf32>
    %745 = vector.broadcast %744 : vector<8x1xf32> to vector<8x8xf32>
    %746 = arith.subf %742, %745 : vector<8x8xf32>
    %747 = math.exp %746 : vector<8x8xf32>
    %cst_333 = arith.constant dense<0.000000e+00> : vector<8xf32>
    %748 = vector.multi_reduction <add>, %747, %cst_333 [1] : vector<8x8xf32> to vector<8xf32>
    %749 = vector.shape_cast %748 : vector<8xf32> to vector<8x1xf32>
    %750 = arith.truncf %747 : vector<8x8xf32> to vector<8x8xbf16>
    %cst_334 = arith.constant dense<0.000000e+00> : vector<8x32xf32>
    %751 = tpu.matmul %750, %738, %cst_334 {dimension_numbers = #tpu.dot_dimension_numbers<[1], [0], [0], [1], [0, 0, 1, 1], [], []>} : vector<8x8xbf16>, vector<8x32xbf16>, vector<8x32xf32> -> vector<8x32xf32>
    %752 = tpu.reciprocal %749 {approx = true} : vector<8x1xf32> -> vector<8x1xf32>
    %753 = vector.broadcast %752 : vector<8x1xf32> to vector<8x32xf32>
    %754 = arith.mulf %751, %753 : vector<8x32xf32>
    %c0_335 = arith.constant 0 : index
    %c32_336 = arith.constant 32 : index
    %755 = vector.load %arg43[%c0_335, %c32_336] : memref<8x128xf32, #tpu.memory_space<vmem>>, vector<8x32xf32>
    tpu.vector_store %arg43[%c0_335, %c32_336], %754 {strides = array<i32>} : memref<8x128xf32, #tpu.memory_space<vmem>>, vector<8x32xf32>,
    %756 = vector.extract_strided_slice %707 {offsets = [0, 64], sizes = [8, 32], strides = [1, 1]} : vector<8x128xf32> to vector<8x32xf32>
    %757 = arith.truncf %756 : vector<8x32xf32> to vector<8x32xbf16>
    %758 = vector.extract_strided_slice %708 {offsets = [0, 64], sizes = [8, 32], strides = [1, 1]} : vector<8x128xf32> to vector<8x32xf32>
    %759 = arith.truncf %758 : vector<8x32xf32> to vector<8x32xbf16>
    %760 = vector.extract_strided_slice %709 {offsets = [0, 64], sizes = [8, 32], strides = [1, 1]} : vector<8x128xf32> to vector<8x32xf32>
    %761 = arith.truncf %760 : vector<8x32xf32> to vector<8x32xbf16>
    %cst_337 = arith.constant dense<0.000000e+00> : vector<8x8xf32>
    %762 = tpu.matmul %757, %759, %cst_337 {dimension_numbers = #tpu.dot_dimension_numbers<[1], [1], [0], [0], [0, 0, 1, 0], [], []>} : vector<8x32xbf16>, vector<8x32xbf16>, vector<8x8xf32> -> vector<8x8xf32>
    %cst_338 = arith.constant 0.176776692 : f32
    %763 = vector.broadcast %cst_338 : f32 to vector<8x8xf32>
    %764 = arith.mulf %762, %763 : vector<8x8xf32>
    %765 = arith.addf %764, %376 : vector<8x8xf32>
    %cst_339 = arith.constant dense<0xFF800000> : vector<8xf32>
    %766 = vector.multi_reduction <maximumf>, %765, %cst_339 [1] : vector<8x8xf32> to vector<8xf32>
    %767 = vector.shape_cast %766 : vector<8xf32> to vector<8x1xf32>
    %768 = vector.broadcast %767 : vector<8x1xf32> to vector<8x8xf32>
    %769 = arith.subf %765, %768 : vector<8x8xf32>
    %770 = math.exp %769 : vector<8x8xf32>
    %cst_340 = arith.constant dense<0.000000e+00> : vector<8xf32>
    %771 = vector.multi_reduction <add>, %770, %cst_340 [1] : vector<8x8xf32> to vector<8xf32>
    %772 = vector.shape_cast %771 : vector<8xf32> to vector<8x1xf32>
    %773 = arith.truncf %770 : vector<8x8xf32> to vector<8x8xbf16>
    %cst_341 = arith.constant dense<0.000000e+00> : vector<8x32xf32>
    %774 = tpu.matmul %773, %761, %cst_341 {dimension_numbers = #tpu.dot_dimension_numbers<[1], [0], [0], [1], [0, 0, 1, 1], [], []>} : vector<8x8xbf16>, vector<8x32xbf16>, vector<8x32xf32> -> vector<8x32xf32>
    %775 = tpu.reciprocal %772 {approx = true} : vector<8x1xf32> -> vector<8x1xf32>
    %776 = vector.broadcast %775 : vector<8x1xf32> to vector<8x32xf32>
    %777 = arith.mulf %774, %776 : vector<8x32xf32>
    %c0_342 = arith.constant 0 : index
    %c64_343 = arith.constant 64 : index
    %778 = vector.load %arg43[%c0_342, %c64_343] : memref<8x128xf32, #tpu.memory_space<vmem>>, vector<8x32xf32>
    tpu.vector_store %arg43[%c0_342, %c64_343], %777 {strides = array<i32>} : memref<8x128xf32, #tpu.memory_space<vmem>>, vector<8x32xf32>,
    %779 = vector.extract_strided_slice %707 {offsets = [0, 96], sizes = [8, 32], strides = [1, 1]} : vector<8x128xf32> to vector<8x32xf32>
    %780 = arith.truncf %779 : vector<8x32xf32> to vector<8x32xbf16>
    %781 = vector.extract_strided_slice %708 {offsets = [0, 96], sizes = [8, 32], strides = [1, 1]} : vector<8x128xf32> to vector<8x32xf32>
    %782 = arith.truncf %781 : vector<8x32xf32> to vector<8x32xbf16>
    %783 = vector.extract_strided_slice %709 {offsets = [0, 96], sizes = [8, 32], strides = [1, 1]} : vector<8x128xf32> to vector<8x32xf32>
    %784 = arith.truncf %783 : vector<8x32xf32> to vector<8x32xbf16>
    %cst_344 = arith.constant dense<0.000000e+00> : vector<8x8xf32>
    %785 = tpu.matmul %780, %782, %cst_344 {dimension_numbers = #tpu.dot_dimension_numbers<[1], [1], [0], [0], [0, 0, 1, 0], [], []>} : vector<8x32xbf16>, vector<8x32xbf16>, vector<8x8xf32> -> vector<8x8xf32>
    %cst_345 = arith.constant 0.176776692 : f32
    %786 = vector.broadcast %cst_345 : f32 to vector<8x8xf32>
    %787 = arith.mulf %785, %786 : vector<8x8xf32>
    %788 = arith.addf %787, %376 : vector<8x8xf32>
    %cst_346 = arith.constant dense<0xFF800000> : vector<8xf32>
    %789 = vector.multi_reduction <maximumf>, %788, %cst_346 [1] : vector<8x8xf32> to vector<8xf32>
    %790 = vector.shape_cast %789 : vector<8xf32> to vector<8x1xf32>
    %791 = vector.broadcast %790 : vector<8x1xf32> to vector<8x8xf32>
    %792 = arith.subf %788, %791 : vector<8x8xf32>
    %793 = math.exp %792 : vector<8x8xf32>
    %cst_347 = arith.constant dense<0.000000e+00> : vector<8xf32>
    %794 = vector.multi_reduction <add>, %793, %cst_347 [1] : vector<8x8xf32> to vector<8xf32>
    %795 = vector.shape_cast %794 : vector<8xf32> to vector<8x1xf32>
    %796 = arith.truncf %793 : vector<8x8xf32> to vector<8x8xbf16>
    %cst_348 = arith.constant dense<0.000000e+00> : vector<8x32xf32>
    %797 = tpu.matmul %796, %784, %cst_348 {dimension_numbers = #tpu.dot_dimension_numbers<[1], [0], [0], [1], [0, 0, 1, 1], [], []>} : vector<8x8xbf16>, vector<8x32xbf16>, vector<8x32xf32> -> vector<8x32xf32>
    %798 = tpu.reciprocal %795 {approx = true} : vector<8x1xf32> -> vector<8x1xf32>
    %799 = vector.broadcast %798 : vector<8x1xf32> to vector<8x32xf32>
    %800 = arith.mulf %797, %799 : vector<8x32xf32>
    %c0_349 = arith.constant 0 : index
    %c96_350 = arith.constant 96 : index
    %801 = vector.load %arg43[%c0_349, %c96_350] : memref<8x128xf32, #tpu.memory_space<vmem>>, vector<8x32xf32>
    tpu.vector_store %arg43[%c0_349, %c96_350], %800 {strides = array<i32>} : memref<8x128xf32, #tpu.memory_space<vmem>>, vector<8x32xf32>,
    %c0_351 = arith.constant 0 : index
    %c0_352 = arith.constant 0 : index
    %802 = vector.load %arg43[%c0_351, %c0_352] : memref<8x128xf32, #tpu.memory_space<vmem>>, vector<8x128xf32>
    %c1_353 = arith.constant 1 : index
    %c0_354 = arith.constant 0 : index
    %c0_355 = arith.constant 0 : index
    %803 = vector.load %arg20[%c1_353, %c0_354, %c0_355] : memref<2x128x128xbf16, #tpu.memory_space<vmem>>, vector<1x128x128xbf16>
    %804 = vector.shape_cast %803 : vector<1x128x128xbf16> to vector<128x128xbf16>
    %805 = arith.truncf %802 : vector<8x128xf32> to vector<8x128xbf16>
    %cst_356 = arith.constant dense<0.000000e+00> : vector<8x128xf32>
    %806 = tpu.matmul %805, %804, %cst_356 {dimension_numbers = #tpu.dot_dimension_numbers<[1], [0], [0], [1], [0, 0, 1, 1], [], []>} : vector<8x128xbf16>, vector<128x128xbf16>, vector<8x128xf32> -> vector<8x128xf32>
    %c1_357 = arith.constant 1 : index
    %c0_358 = arith.constant 0 : index
    %c0_359 = arith.constant 0 : index
    %807 = vector.load %arg21[%c1_357, %c0_358, %c0_359] : memref<2x1x128xf32, #tpu.memory_space<vmem>>, vector<1x1x128xf32>
    %808 = vector.shape_cast %807 : vector<1x1x128xf32> to vector<1x128xf32>
    %809 = vector.broadcast %808 : vector<1x128xf32> to vector<8x128xf32>
    %810 = arith.addf %806, %809 : vector<8x128xf32>
    %811 = arith.addf %698, %810 : vector<8x128xf32>
    %c1_360 = arith.constant 1 : index
    %c0_361 = arith.constant 0 : index
    %c0_362 = arith.constant 0 : index
    %812 = vector.load %arg22[%c1_360, %c0_361, %c0_362] : memref<2x1x128xf32, #tpu.memory_space<vmem>>, vector<1x1x128xf32>
    %813 = vector.shape_cast %812 : vector<1x1x128xf32> to vector<1x128xf32>
    %c1_363 = arith.constant 1 : index
    %c0_364 = arith.constant 0 : index
    %c0_365 = arith.constant 0 : index
    %814 = vector.load %arg23[%c1_363, %c0_364, %c0_365] : memref<2x1x128xf32, #tpu.memory_space<vmem>>, vector<1x1x128xf32>
    %815 = vector.shape_cast %814 : vector<1x1x128xf32> to vector<1x128xf32>
    %cst_366 = arith.constant dense<0.000000e+00> : vector<8xf32>
    %816 = vector.multi_reduction <add>, %811, %cst_366 [1] : vector<8x128xf32> to vector<8xf32>
    %817 = vector.shape_cast %816 : vector<8xf32> to vector<8x1xf32>
    %cst_367 = arith.constant 1.280000e+02 : f32
    %818 = vector.broadcast %cst_367 : f32 to vector<8x1xf32>
    %819 = arith.divf %817, %818 : vector<8x1xf32>
    %820 = vector.broadcast %819 : vector<8x1xf32> to vector<8x128xf32>
    %821 = arith.subf %811, %820 : vector<8x128xf32>
    %822 = arith.mulf %821, %821 : vector<8x128xf32>
    %cst_368 = arith.constant dense<0.000000e+00> : vector<8xf32>
    %823 = vector.multi_reduction <add>, %822, %cst_368 [1] : vector<8x128xf32> to vector<8xf32>
    %824 = vector.shape_cast %823 : vector<8xf32> to vector<8x1xf32>
    %cst_369 = arith.constant 1.280000e+02 : f32
    %825 = vector.broadcast %cst_369 : f32 to vector<8x1xf32>
    %826 = arith.divf %824, %825 : vector<8x1xf32>
    %cst_370 = arith.constant 9.99999974E-6 : f32
    %827 = vector.broadcast %cst_370 : f32 to vector<8x1xf32>
    %828 = arith.addf %826, %827 : vector<8x1xf32>
    %829 = math.rsqrt %828 : vector<8x1xf32>
    %830 = vector.broadcast %829 : vector<8x1xf32> to vector<8x128xf32>
    %831 = arith.mulf %821, %830 : vector<8x128xf32>
    %832 = vector.broadcast %813 : vector<1x128xf32> to vector<8x128xf32>
    %833 = arith.mulf %831, %832 : vector<8x128xf32>
    %834 = vector.broadcast %815 : vector<1x128xf32> to vector<8x128xf32>
    %835 = arith.addf %833, %834 : vector<8x128xf32>
    %c1_371 = arith.constant 1 : index
    %c0_372 = arith.constant 0 : index
    %c0_373 = arith.constant 0 : index
    %836 = vector.load %arg24[%c1_371, %c0_372, %c0_373] : memref<2x128x128xbf16, #tpu.memory_space<vmem>>, vector<1x128x128xbf16>
    %837 = vector.shape_cast %836 : vector<1x128x128xbf16> to vector<128x128xbf16>
    %838 = arith.truncf %835 : vector<8x128xf32> to vector<8x128xbf16>
    %cst_374 = arith.constant dense<0.000000e+00> : vector<8x128xf32>
    %839 = tpu.matmul %838, %837, %cst_374 {dimension_numbers = #tpu.dot_dimension_numbers<[1], [0], [0], [1], [0, 0, 1, 1], [], []>} : vector<8x128xbf16>, vector<128x128xbf16>, vector<8x128xf32> -> vector<8x128xf32>
    %c1_375 = arith.constant 1 : index
    %c0_376 = arith.constant 0 : index
    %c0_377 = arith.constant 0 : index
    %840 = vector.load %arg25[%c1_375, %c0_376, %c0_377] : memref<2x1x128xf32, #tpu.memory_space<vmem>>, vector<1x1x128xf32>
    %841 = vector.shape_cast %840 : vector<1x1x128xf32> to vector<1x128xf32>
    %842 = vector.broadcast %841 : vector<1x128xf32> to vector<8x128xf32>
    %843 = arith.addf %839, %842 : vector<8x128xf32>
    %c1_378 = arith.constant 1 : index
    %c0_379 = arith.constant 0 : index
    %c0_380 = arith.constant 0 : index
    %844 = vector.load %arg26[%c1_378, %c0_379, %c0_380] : memref<2x128x256xbf16, #tpu.memory_space<vmem>>, vector<1x128x256xbf16>
    %845 = vector.shape_cast %844 : vector<1x128x256xbf16> to vector<128x256xbf16>
    %846 = arith.truncf %375 : vector<8x128xf32> to vector<8x128xbf16>
    %cst_381 = arith.constant dense<0.000000e+00> : vector<8x256xf32>
    %847 = tpu.matmul %846, %845, %cst_381 {dimension_numbers = #tpu.dot_dimension_numbers<[1], [0], [0], [1], [0, 0, 1, 1], [], []>} : vector<8x128xbf16>, vector<128x256xbf16>, vector<8x256xf32> -> vector<8x256xf32>
    %c1_382 = arith.constant 1 : index
    %c0_383 = arith.constant 0 : index
    %c0_384 = arith.constant 0 : index
    %848 = vector.load %arg27[%c1_382, %c0_383, %c0_384] : memref<2x1x256xf32, #tpu.memory_space<vmem>>, vector<1x1x256xf32>
    %849 = vector.shape_cast %848 : vector<1x1x256xf32> to vector<1x256xf32>
    %850 = vector.broadcast %849 : vector<1x256xf32> to vector<8x256xf32>
    %851 = arith.addf %847, %850 : vector<8x256xf32>
    %852 = vector.extract_strided_slice %851 {offsets = [0, 0], sizes = [8, 128], strides = [1, 1]} : vector<8x256xf32> to vector<8x128xf32>
    %853 = vector.extract_strided_slice %851 {offsets = [0, 128], sizes = [8, 128], strides = [1, 1]} : vector<8x256xf32> to vector<8x128xf32>
    %854 = vector.extract_strided_slice %843 {offsets = [0, 0], sizes = [8, 32], strides = [1, 1]} : vector<8x128xf32> to vector<8x32xf32>
    %855 = arith.truncf %854 : vector<8x32xf32> to vector<8x32xbf16>
    %856 = vector.extract_strided_slice %852 {offsets = [0, 0], sizes = [8, 32], strides = [1, 1]} : vector<8x128xf32> to vector<8x32xf32>
    %857 = arith.truncf %856 : vector<8x32xf32> to vector<8x32xbf16>
    %858 = vector.extract_strided_slice %853 {offsets = [0, 0], sizes = [8, 32], strides = [1, 1]} : vector<8x128xf32> to vector<8x32xf32>
    %859 = arith.truncf %858 : vector<8x32xf32> to vector<8x32xbf16>
    %cst_385 = arith.constant dense<0.000000e+00> : vector<8x8xf32>
    %860 = tpu.matmul %855, %857, %cst_385 {dimension_numbers = #tpu.dot_dimension_numbers<[1], [1], [0], [0], [0, 0, 1, 0], [], []>} : vector<8x32xbf16>, vector<8x32xbf16>, vector<8x8xf32> -> vector<8x8xf32>
    %cst_386 = arith.constant 0.176776692 : f32
    %861 = vector.broadcast %cst_386 : f32 to vector<8x8xf32>
    %862 = arith.mulf %860, %861 : vector<8x8xf32>
    %cst_387 = arith.constant dense<0xFF800000> : vector<8xf32>
    %863 = vector.multi_reduction <maximumf>, %862, %cst_387 [1] : vector<8x8xf32> to vector<8xf32>
    %864 = vector.shape_cast %863 : vector<8xf32> to vector<8x1xf32>
    %865 = vector.broadcast %864 : vector<8x1xf32> to vector<8x8xf32>
    %866 = arith.subf %862, %865 : vector<8x8xf32>
    %867 = math.exp %866 : vector<8x8xf32>
    %cst_388 = arith.constant dense<0.000000e+00> : vector<8xf32>
    %868 = vector.multi_reduction <add>, %867, %cst_388 [1] : vector<8x8xf32> to vector<8xf32>
    %869 = vector.shape_cast %868 : vector<8xf32> to vector<8x1xf32>
    %870 = arith.truncf %867 : vector<8x8xf32> to vector<8x8xbf16>
    %cst_389 = arith.constant dense<0.000000e+00> : vector<8x32xf32>
    %871 = tpu.matmul %870, %859, %cst_389 {dimension_numbers = #tpu.dot_dimension_numbers<[1], [0], [0], [1], [0, 0, 1, 1], [], []>} : vector<8x8xbf16>, vector<8x32xbf16>, vector<8x32xf32> -> vector<8x32xf32>
    %872 = tpu.reciprocal %869 {approx = true} : vector<8x1xf32> -> vector<8x1xf32>
    %873 = vector.broadcast %872 : vector<8x1xf32> to vector<8x32xf32>
    %874 = arith.mulf %871, %873 : vector<8x32xf32>
    %c0_390 = arith.constant 0 : index
    %c0_391 = arith.constant 0 : index
    %875 = vector.load %arg43[%c0_390, %c0_391] : memref<8x128xf32, #tpu.memory_space<vmem>>, vector<8x32xf32>
    tpu.vector_store %arg43[%c0_390, %c0_391], %874 {strides = array<i32>} : memref<8x128xf32, #tpu.memory_space<vmem>>, vector<8x32xf32>,
    %876 = vector.extract_strided_slice %843 {offsets = [0, 32], sizes = [8, 32], strides = [1, 1]} : vector<8x128xf32> to vector<8x32xf32>
    %877 = arith.truncf %876 : vector<8x32xf32> to vector<8x32xbf16>
    %878 = vector.extract_strided_slice %852 {offsets = [0, 32], sizes = [8, 32], strides = [1, 1]} : vector<8x128xf32> to vector<8x32xf32>
    %879 = arith.truncf %878 : vector<8x32xf32> to vector<8x32xbf16>
    %880 = vector.extract_strided_slice %853 {offsets = [0, 32], sizes = [8, 32], strides = [1, 1]} : vector<8x128xf32> to vector<8x32xf32>
    %881 = arith.truncf %880 : vector<8x32xf32> to vector<8x32xbf16>
    %cst_392 = arith.constant dense<0.000000e+00> : vector<8x8xf32>
    %882 = tpu.matmul %877, %879, %cst_392 {dimension_numbers = #tpu.dot_dimension_numbers<[1], [1], [0], [0], [0, 0, 1, 0], [], []>} : vector<8x32xbf16>, vector<8x32xbf16>, vector<8x8xf32> -> vector<8x8xf32>
    %cst_393 = arith.constant 0.176776692 : f32
    %883 = vector.broadcast %cst_393 : f32 to vector<8x8xf32>
    %884 = arith.mulf %882, %883 : vector<8x8xf32>
    %cst_394 = arith.constant dense<0xFF800000> : vector<8xf32>
    %885 = vector.multi_reduction <maximumf>, %884, %cst_394 [1] : vector<8x8xf32> to vector<8xf32>
    %886 = vector.shape_cast %885 : vector<8xf32> to vector<8x1xf32>
    %887 = vector.broadcast %886 : vector<8x1xf32> to vector<8x8xf32>
    %888 = arith.subf %884, %887 : vector<8x8xf32>
    %889 = math.exp %888 : vector<8x8xf32>
    %cst_395 = arith.constant dense<0.000000e+00> : vector<8xf32>
    %890 = vector.multi_reduction <add>, %889, %cst_395 [1] : vector<8x8xf32> to vector<8xf32>
    %891 = vector.shape_cast %890 : vector<8xf32> to vector<8x1xf32>
    %892 = arith.truncf %889 : vector<8x8xf32> to vector<8x8xbf16>
    %cst_396 = arith.constant dense<0.000000e+00> : vector<8x32xf32>
    %893 = tpu.matmul %892, %881, %cst_396 {dimension_numbers = #tpu.dot_dimension_numbers<[1], [0], [0], [1], [0, 0, 1, 1], [], []>} : vector<8x8xbf16>, vector<8x32xbf16>, vector<8x32xf32> -> vector<8x32xf32>
    %894 = tpu.reciprocal %891 {approx = true} : vector<8x1xf32> -> vector<8x1xf32>
    %895 = vector.broadcast %894 : vector<8x1xf32> to vector<8x32xf32>
    %896 = arith.mulf %893, %895 : vector<8x32xf32>
    %c0_397 = arith.constant 0 : index
    %c32_398 = arith.constant 32 : index
    %897 = vector.load %arg43[%c0_397, %c32_398] : memref<8x128xf32, #tpu.memory_space<vmem>>, vector<8x32xf32>
    tpu.vector_store %arg43[%c0_397, %c32_398], %896 {strides = array<i32>} : memref<8x128xf32, #tpu.memory_space<vmem>>, vector<8x32xf32>,
    %898 = vector.extract_strided_slice %843 {offsets = [0, 64], sizes = [8, 32], strides = [1, 1]} : vector<8x128xf32> to vector<8x32xf32>
    %899 = arith.truncf %898 : vector<8x32xf32> to vector<8x32xbf16>
    %900 = vector.extract_strided_slice %852 {offsets = [0, 64], sizes = [8, 32], strides = [1, 1]} : vector<8x128xf32> to vector<8x32xf32>
    %901 = arith.truncf %900 : vector<8x32xf32> to vector<8x32xbf16>
    %902 = vector.extract_strided_slice %853 {offsets = [0, 64], sizes = [8, 32], strides = [1, 1]} : vector<8x128xf32> to vector<8x32xf32>
    %903 = arith.truncf %902 : vector<8x32xf32> to vector<8x32xbf16>
    %cst_399 = arith.constant dense<0.000000e+00> : vector<8x8xf32>
    %904 = tpu.matmul %899, %901, %cst_399 {dimension_numbers = #tpu.dot_dimension_numbers<[1], [1], [0], [0], [0, 0, 1, 0], [], []>} : vector<8x32xbf16>, vector<8x32xbf16>, vector<8x8xf32> -> vector<8x8xf32>
    %cst_400 = arith.constant 0.176776692 : f32
    %905 = vector.broadcast %cst_400 : f32 to vector<8x8xf32>
    %906 = arith.mulf %904, %905 : vector<8x8xf32>
    %cst_401 = arith.constant dense<0xFF800000> : vector<8xf32>
    %907 = vector.multi_reduction <maximumf>, %906, %cst_401 [1] : vector<8x8xf32> to vector<8xf32>
    %908 = vector.shape_cast %907 : vector<8xf32> to vector<8x1xf32>
    %909 = vector.broadcast %908 : vector<8x1xf32> to vector<8x8xf32>
    %910 = arith.subf %906, %909 : vector<8x8xf32>
    %911 = math.exp %910 : vector<8x8xf32>
    %cst_402 = arith.constant dense<0.000000e+00> : vector<8xf32>
    %912 = vector.multi_reduction <add>, %911, %cst_402 [1] : vector<8x8xf32> to vector<8xf32>
    %913 = vector.shape_cast %912 : vector<8xf32> to vector<8x1xf32>
    %914 = arith.truncf %911 : vector<8x8xf32> to vector<8x8xbf16>
    %cst_403 = arith.constant dense<0.000000e+00> : vector<8x32xf32>
    %915 = tpu.matmul %914, %903, %cst_403 {dimension_numbers = #tpu.dot_dimension_numbers<[1], [0], [0], [1], [0, 0, 1, 1], [], []>} : vector<8x8xbf16>, vector<8x32xbf16>, vector<8x32xf32> -> vector<8x32xf32>
    %916 = tpu.reciprocal %913 {approx = true} : vector<8x1xf32> -> vector<8x1xf32>
    %917 = vector.broadcast %916 : vector<8x1xf32> to vector<8x32xf32>
    %918 = arith.mulf %915, %917 : vector<8x32xf32>
    %c0_404 = arith.constant 0 : index
    %c64_405 = arith.constant 64 : index
    %919 = vector.load %arg43[%c0_404, %c64_405] : memref<8x128xf32, #tpu.memory_space<vmem>>, vector<8x32xf32>
    tpu.vector_store %arg43[%c0_404, %c64_405], %918 {strides = array<i32>} : memref<8x128xf32, #tpu.memory_space<vmem>>, vector<8x32xf32>,
    %920 = vector.extract_strided_slice %843 {offsets = [0, 96], sizes = [8, 32], strides = [1, 1]} : vector<8x128xf32> to vector<8x32xf32>
    %921 = arith.truncf %920 : vector<8x32xf32> to vector<8x32xbf16>
    %922 = vector.extract_strided_slice %852 {offsets = [0, 96], sizes = [8, 32], strides = [1, 1]} : vector<8x128xf32> to vector<8x32xf32>
    %923 = arith.truncf %922 : vector<8x32xf32> to vector<8x32xbf16>
    %924 = vector.extract_strided_slice %853 {offsets = [0, 96], sizes = [8, 32], strides = [1, 1]} : vector<8x128xf32> to vector<8x32xf32>
    %925 = arith.truncf %924 : vector<8x32xf32> to vector<8x32xbf16>
    %cst_406 = arith.constant dense<0.000000e+00> : vector<8x8xf32>
    %926 = tpu.matmul %921, %923, %cst_406 {dimension_numbers = #tpu.dot_dimension_numbers<[1], [1], [0], [0], [0, 0, 1, 0], [], []>} : vector<8x32xbf16>, vector<8x32xbf16>, vector<8x8xf32> -> vector<8x8xf32>
    %cst_407 = arith.constant 0.176776692 : f32
    %927 = vector.broadcast %cst_407 : f32 to vector<8x8xf32>
    %928 = arith.mulf %926, %927 : vector<8x8xf32>
    %cst_408 = arith.constant dense<0xFF800000> : vector<8xf32>
    %929 = vector.multi_reduction <maximumf>, %928, %cst_408 [1] : vector<8x8xf32> to vector<8xf32>
    %930 = vector.shape_cast %929 : vector<8xf32> to vector<8x1xf32>
    %931 = vector.broadcast %930 : vector<8x1xf32> to vector<8x8xf32>
    %932 = arith.subf %928, %931 : vector<8x8xf32>
    %933 = math.exp %932 : vector<8x8xf32>
    %cst_409 = arith.constant dense<0.000000e+00> : vector<8xf32>
    %934 = vector.multi_reduction <add>, %933, %cst_409 [1] : vector<8x8xf32> to vector<8xf32>
    %935 = vector.shape_cast %934 : vector<8xf32> to vector<8x1xf32>
    %936 = arith.truncf %933 : vector<8x8xf32> to vector<8x8xbf16>
    %cst_410 = arith.constant dense<0.000000e+00> : vector<8x32xf32>
    %937 = tpu.matmul %936, %925, %cst_410 {dimension_numbers = #tpu.dot_dimension_numbers<[1], [0], [0], [1], [0, 0, 1, 1], [], []>} : vector<8x8xbf16>, vector<8x32xbf16>, vector<8x32xf32> -> vector<8x32xf32>
    %938 = tpu.reciprocal %935 {approx = true} : vector<8x1xf32> -> vector<8x1xf32>
    %939 = vector.broadcast %938 : vector<8x1xf32> to vector<8x32xf32>
    %940 = arith.mulf %937, %939 : vector<8x32xf32>
    %c0_411 = arith.constant 0 : index
    %c96_412 = arith.constant 96 : index
    %941 = vector.load %arg43[%c0_411, %c96_412] : memref<8x128xf32, #tpu.memory_space<vmem>>, vector<8x32xf32>
    tpu.vector_store %arg43[%c0_411, %c96_412], %940 {strides = array<i32>} : memref<8x128xf32, #tpu.memory_space<vmem>>, vector<8x32xf32>,
    %c0_413 = arith.constant 0 : index
    %c0_414 = arith.constant 0 : index
    %942 = vector.load %arg43[%c0_413, %c0_414] : memref<8x128xf32, #tpu.memory_space<vmem>>, vector<8x128xf32>
    %c1_415 = arith.constant 1 : index
    %c0_416 = arith.constant 0 : index
    %c0_417 = arith.constant 0 : index
    %943 = vector.load %arg28[%c1_415, %c0_416, %c0_417] : memref<2x128x128xbf16, #tpu.memory_space<vmem>>, vector<1x128x128xbf16>
    %944 = vector.shape_cast %943 : vector<1x128x128xbf16> to vector<128x128xbf16>
    %945 = arith.truncf %942 : vector<8x128xf32> to vector<8x128xbf16>
    %cst_418 = arith.constant dense<0.000000e+00> : vector<8x128xf32>
    %946 = tpu.matmul %945, %944, %cst_418 {dimension_numbers = #tpu.dot_dimension_numbers<[1], [0], [0], [1], [0, 0, 1, 1], [], []>} : vector<8x128xbf16>, vector<128x128xbf16>, vector<8x128xf32> -> vector<8x128xf32>
    %c1_419 = arith.constant 1 : index
    %c0_420 = arith.constant 0 : index
    %c0_421 = arith.constant 0 : index
    %947 = vector.load %arg29[%c1_419, %c0_420, %c0_421] : memref<2x1x128xf32, #tpu.memory_space<vmem>>, vector<1x1x128xf32>
    %948 = vector.shape_cast %947 : vector<1x1x128xf32> to vector<1x128xf32>
    %949 = vector.broadcast %948 : vector<1x128xf32> to vector<8x128xf32>
    %950 = arith.addf %946, %949 : vector<8x128xf32>
    %951 = arith.addf %835, %950 : vector<8x128xf32>
    %c1_422 = arith.constant 1 : index
    %c0_423 = arith.constant 0 : index
    %c0_424 = arith.constant 0 : index
    %952 = vector.load %arg30[%c1_422, %c0_423, %c0_424] : memref<2x1x128xf32, #tpu.memory_space<vmem>>, vector<1x1x128xf32>
    %953 = vector.shape_cast %952 : vector<1x1x128xf32> to vector<1x128xf32>
    %c1_425 = arith.constant 1 : index
    %c0_426 = arith.constant 0 : index
    %c0_427 = arith.constant 0 : index
    %954 = vector.load %arg31[%c1_425, %c0_426, %c0_427] : memref<2x1x128xf32, #tpu.memory_space<vmem>>, vector<1x1x128xf32>
    %955 = vector.shape_cast %954 : vector<1x1x128xf32> to vector<1x128xf32>
    %cst_428 = arith.constant dense<0.000000e+00> : vector<8xf32>
    %956 = vector.multi_reduction <add>, %951, %cst_428 [1] : vector<8x128xf32> to vector<8xf32>
    %957 = vector.shape_cast %956 : vector<8xf32> to vector<8x1xf32>
    %cst_429 = arith.constant 1.280000e+02 : f32
    %958 = vector.broadcast %cst_429 : f32 to vector<8x1xf32>
    %959 = arith.divf %957, %958 : vector<8x1xf32>
    %960 = vector.broadcast %959 : vector<8x1xf32> to vector<8x128xf32>
    %961 = arith.subf %951, %960 : vector<8x128xf32>
    %962 = arith.mulf %961, %961 : vector<8x128xf32>
    %cst_430 = arith.constant dense<0.000000e+00> : vector<8xf32>
    %963 = vector.multi_reduction <add>, %962, %cst_430 [1] : vector<8x128xf32> to vector<8xf32>
    %964 = vector.shape_cast %963 : vector<8xf32> to vector<8x1xf32>
    %cst_431 = arith.constant 1.280000e+02 : f32
    %965 = vector.broadcast %cst_431 : f32 to vector<8x1xf32>
    %966 = arith.divf %964, %965 : vector<8x1xf32>
    %cst_432 = arith.constant 9.99999974E-6 : f32
    %967 = vector.broadcast %cst_432 : f32 to vector<8x1xf32>
    %968 = arith.addf %966, %967 : vector<8x1xf32>
    %969 = math.rsqrt %968 : vector<8x1xf32>
    %970 = vector.broadcast %969 : vector<8x1xf32> to vector<8x128xf32>
    %971 = arith.mulf %961, %970 : vector<8x128xf32>
    %972 = vector.broadcast %953 : vector<1x128xf32> to vector<8x128xf32>
    %973 = arith.mulf %971, %972 : vector<8x128xf32>
    %974 = vector.broadcast %955 : vector<1x128xf32> to vector<8x128xf32>
    %975 = arith.addf %973, %974 : vector<8x128xf32>
    %c1_433 = arith.constant 1 : index
    %c0_434 = arith.constant 0 : index
    %c0_435 = arith.constant 0 : index
    %976 = vector.load %arg32[%c1_433, %c0_434, %c0_435] : memref<2x128x256xbf16, #tpu.memory_space<vmem>>, vector<1x128x256xbf16>
    %977 = vector.shape_cast %976 : vector<1x128x256xbf16> to vector<128x256xbf16>
    %978 = arith.truncf %975 : vector<8x128xf32> to vector<8x128xbf16>
    %cst_436 = arith.constant dense<0.000000e+00> : vector<8x256xf32>
    %979 = tpu.matmul %978, %977, %cst_436 {dimension_numbers = #tpu.dot_dimension_numbers<[1], [0], [0], [1], [0, 0, 1, 1], [], []>} : vector<8x128xbf16>, vector<128x256xbf16>, vector<8x256xf32> -> vector<8x256xf32>
    %c1_437 = arith.constant 1 : index
    %c0_438 = arith.constant 0 : index
    %c0_439 = arith.constant 0 : index
    %980 = vector.load %arg33[%c1_437, %c0_438, %c0_439] : memref<2x1x256xf32, #tpu.memory_space<vmem>>, vector<1x1x256xf32>
    %981 = vector.shape_cast %980 : vector<1x1x256xf32> to vector<1x256xf32>
    %982 = vector.broadcast %981 : vector<1x256xf32> to vector<8x256xf32>
    %983 = arith.addf %979, %982 : vector<8x256xf32>
    %cst_440 = arith.constant 0.000000e+00 : f32
    %984 = vector.broadcast %cst_440 : f32 to vector<8x256xf32>
    %985 = arith.maximumf %983, %984 : vector<8x256xf32>
    %c1_441 = arith.constant 1 : index
    %c0_442 = arith.constant 0 : index
    %c0_443 = arith.constant 0 : index
    %986 = vector.load %arg34[%c1_441, %c0_442, %c0_443] : memref<2x256x128xbf16, #tpu.memory_space<vmem>>, vector<1x256x128xbf16>
    %987 = vector.shape_cast %986 : vector<1x256x128xbf16> to vector<256x128xbf16>
    %988 = arith.truncf %985 : vector<8x256xf32> to vector<8x256xbf16>
    %cst_444 = arith.constant dense<0.000000e+00> : vector<8x128xf32>
    %989 = tpu.matmul %988, %987, %cst_444 {dimension_numbers = #tpu.dot_dimension_numbers<[1], [0], [0], [1], [0, 0, 1, 1], [], []>} : vector<8x256xbf16>, vector<256x128xbf16>, vector<8x128xf32> -> vector<8x128xf32>
    %c1_445 = arith.constant 1 : index
    %c0_446 = arith.constant 0 : index
    %c0_447 = arith.constant 0 : index
    %990 = vector.load %arg35[%c1_445, %c0_446, %c0_447] : memref<2x1x128xf32, #tpu.memory_space<vmem>>, vector<1x1x128xf32>
    %991 = vector.shape_cast %990 : vector<1x1x128xf32> to vector<1x128xf32>
    %992 = vector.broadcast %991 : vector<1x128xf32> to vector<8x128xf32>
    %993 = arith.addf %989, %992 : vector<8x128xf32>
    %994 = arith.addf %975, %993 : vector<8x128xf32>
    %c1_448 = arith.constant 1 : index
    %c0_449 = arith.constant 0 : index
    %c0_450 = arith.constant 0 : index
    %995 = vector.load %arg36[%c1_448, %c0_449, %c0_450] : memref<2x1x128xf32, #tpu.memory_space<vmem>>, vector<1x1x128xf32>
    %996 = vector.shape_cast %995 : vector<1x1x128xf32> to vector<1x128xf32>
    %c1_451 = arith.constant 1 : index
    %c0_452 = arith.constant 0 : index
    %c0_453 = arith.constant 0 : index
    %997 = vector.load %arg37[%c1_451, %c0_452, %c0_453] : memref<2x1x128xf32, #tpu.memory_space<vmem>>, vector<1x1x128xf32>
    %998 = vector.shape_cast %997 : vector<1x1x128xf32> to vector<1x128xf32>
    %cst_454 = arith.constant dense<0.000000e+00> : vector<8xf32>
    %999 = vector.multi_reduction <add>, %994, %cst_454 [1] : vector<8x128xf32> to vector<8xf32>
    %1000 = vector.shape_cast %999 : vector<8xf32> to vector<8x1xf32>
    %cst_455 = arith.constant 1.280000e+02 : f32
    %1001 = vector.broadcast %cst_455 : f32 to vector<8x1xf32>
    %1002 = arith.divf %1000, %1001 : vector<8x1xf32>
    %1003 = vector.broadcast %1002 : vector<8x1xf32> to vector<8x128xf32>
    %1004 = arith.subf %994, %1003 : vector<8x128xf32>
    %1005 = arith.mulf %1004, %1004 : vector<8x128xf32>
    %cst_456 = arith.constant dense<0.000000e+00> : vector<8xf32>
    %1006 = vector.multi_reduction <add>, %1005, %cst_456 [1] : vector<8x128xf32> to vector<8xf32>
    %1007 = vector.shape_cast %1006 : vector<8xf32> to vector<8x1xf32>
    %cst_457 = arith.constant 1.280000e+02 : f32
    %1008 = vector.broadcast %cst_457 : f32 to vector<8x1xf32>
    %1009 = arith.divf %1007, %1008 : vector<8x1xf32>
    %cst_458 = arith.constant 9.99999974E-6 : f32
    %1010 = vector.broadcast %cst_458 : f32 to vector<8x1xf32>
    %1011 = arith.addf %1009, %1010 : vector<8x1xf32>
    %1012 = math.rsqrt %1011 : vector<8x1xf32>
    %1013 = vector.broadcast %1012 : vector<8x1xf32> to vector<8x128xf32>
    %1014 = arith.mulf %1004, %1013 : vector<8x128xf32>
    %1015 = vector.broadcast %996 : vector<1x128xf32> to vector<8x128xf32>
    %1016 = arith.mulf %1014, %1015 : vector<8x128xf32>
    %1017 = vector.broadcast %998 : vector<1x128xf32> to vector<8x128xf32>
    %1018 = arith.addf %1016, %1017 : vector<8x128xf32>
    %c0_459 = arith.constant 0 : index
    %c0_460 = arith.constant 0 : index
    %1019 = vector.load %arg38[%c0_459, %c0_460] : memref<1x128xf32, #tpu.memory_space<vmem>>, vector<1x128xf32>
    %c0_461 = arith.constant 0 : index
    %c0_462 = arith.constant 0 : index
    %1020 = vector.load %arg39[%c0_461, %c0_462] : memref<1x128xf32, #tpu.memory_space<vmem>>, vector<1x128xf32>
    %cst_463 = arith.constant dense<0.000000e+00> : vector<8xf32>
    %1021 = vector.multi_reduction <add>, %1018, %cst_463 [1] : vector<8x128xf32> to vector<8xf32>
    %1022 = vector.shape_cast %1021 : vector<8xf32> to vector<8x1xf32>
    %cst_464 = arith.constant 1.280000e+02 : f32
    %1023 = vector.broadcast %cst_464 : f32 to vector<8x1xf32>
    %1024 = arith.divf %1022, %1023 : vector<8x1xf32>
    %1025 = vector.broadcast %1024 : vector<8x1xf32> to vector<8x128xf32>
    %1026 = arith.subf %1018, %1025 : vector<8x128xf32>
    %1027 = arith.mulf %1026, %1026 : vector<8x128xf32>
    %cst_465 = arith.constant dense<0.000000e+00> : vector<8xf32>
    %1028 = vector.multi_reduction <add>, %1027, %cst_465 [1] : vector<8x128xf32> to vector<8xf32>
    %1029 = vector.shape_cast %1028 : vector<8xf32> to vector<8x1xf32>
    %cst_466 = arith.constant 1.280000e+02 : f32
    %1030 = vector.broadcast %cst_466 : f32 to vector<8x1xf32>
    %1031 = arith.divf %1029, %1030 : vector<8x1xf32>
    %cst_467 = arith.constant 9.99999974E-6 : f32
    %1032 = vector.broadcast %cst_467 : f32 to vector<8x1xf32>
    %1033 = arith.addf %1031, %1032 : vector<8x1xf32>
    %1034 = math.rsqrt %1033 : vector<8x1xf32>
    %1035 = vector.broadcast %1034 : vector<8x1xf32> to vector<8x128xf32>
    %1036 = arith.mulf %1026, %1035 : vector<8x128xf32>
    %1037 = vector.broadcast %1019 : vector<1x128xf32> to vector<8x128xf32>
    %1038 = arith.mulf %1036, %1037 : vector<8x128xf32>
    %1039 = vector.broadcast %1020 : vector<1x128xf32> to vector<8x128xf32>
    %1040 = arith.addf %1038, %1039 : vector<8x128xf32>
    %c0_468 = arith.constant 0 : index
    %c0_469 = arith.constant 0 : index
    %1041 = vector.load %arg40[%c0_468, %c0_469] : memref<128x256xbf16, #tpu.memory_space<vmem>>, vector<128x256xbf16>
    %1042 = arith.truncf %1040 : vector<8x128xf32> to vector<8x128xbf16>
    %cst_470 = arith.constant dense<0.000000e+00> : vector<8x256xf32>
    %1043 = tpu.matmul %1042, %1041, %cst_470 {dimension_numbers = #tpu.dot_dimension_numbers<[1], [0], [0], [1], [0, 0, 1, 1], [], []>} : vector<8x128xbf16>, vector<128x256xbf16>, vector<8x256xf32> -> vector<8x256xf32>
    %c0_471 = arith.constant 0 : index
    %c0_472 = arith.constant 0 : index
    %1044 = vector.load %arg41[%c0_471, %c0_472] : memref<1x256xf32, #tpu.memory_space<vmem>>, vector<1x256xf32>
    %1045 = vector.broadcast %1044 : vector<1x256xf32> to vector<8x256xf32>
    %1046 = arith.addf %1043, %1045 : vector<8x256xf32>
    %c0_473 = arith.constant 0 : index
    %c0_474 = arith.constant 0 : index
    %c0_475 = arith.constant 0 : index
    %1047 = vector.load %arg42[%c0_473, %c0_474, %c0_475] : memref<1x8x256xf32, #tpu.memory_space<vmem>>, vector<1x8x256xf32>
    %1048 = vector.shape_cast %1047 : vector<1x8x256xf32> to vector<8x256xf32>
    %1049 = vector.shape_cast %1046 : vector<8x256xf32> to vector<1x8x256xf32>
    tpu.vector_store %arg42[%c0_473, %c0_474, %c0_475], %1049 {strides = array<i32>} : memref<1x8x256xf32, #tpu.memory_space<vmem>>, vector<1x8x256xf32>,
    return
  }
  func.func @transform_0(%arg0: i32) -> (i32, i32, i32) {
    %c0_i32 = arith.constant 0 : i32
    %c0_i32_0 = arith.constant 0 : i32
    %c0_i32_1 = arith.constant 0 : i32
    return %arg0, %c0_i32, %c0_i32_0 : i32, i32, i32
  }
  func.func @transform_1(%arg0: i32) -> (i32, i32, i32) {
    %c0_i32 = arith.constant 0 : i32
    %c0_i32_0 = arith.constant 0 : i32
    %c0_i32_1 = arith.constant 0 : i32
    return %arg0, %c0_i32, %c0_i32_0 : i32, i32, i32
  }
  func.func @transform_2(%arg0: i32) -> (i32, i32) {
    %c0_i32 = arith.constant 0 : i32
    %c0_i32_0 = arith.constant 0 : i32
    %c0_i32_1 = arith.constant 0 : i32
    return %c0_i32, %c0_i32_0 : i32, i32
  }
  func.func @transform_3(%arg0: i32) -> (i32, i32, i32) {
    %c0_i32 = arith.constant 0 : i32
    %c0_i32_0 = arith.constant 0 : i32
    %c0_i32_1 = arith.constant 0 : i32
    %c0_i32_2 = arith.constant 0 : i32
    return %c0_i32, %c0_i32_0, %c0_i32_1 : i32, i32, i32
  }
  func.func @transform_4(%arg0: i32) -> (i32, i32, i32) {
    %c0_i32 = arith.constant 0 : i32
    %c0_i32_0 = arith.constant 0 : i32
    %c0_i32_1 = arith.constant 0 : i32
    %c0_i32_2 = arith.constant 0 : i32
    return %c0_i32, %c0_i32_0, %c0_i32_1 : i32, i32, i32
  }
  func.func @transform_5(%arg0: i32) -> (i32, i32, i32) {
    %c0_i32 = arith.constant 0 : i32
    %c0_i32_0 = arith.constant 0 : i32
    %c0_i32_1 = arith.constant 0 : i32
    %c0_i32_2 = arith.constant 0 : i32
    return %c0_i32, %c0_i32_0, %c0_i32_1 : i32, i32, i32
  }
  func.func @transform_6(%arg0: i32) -> (i32, i32, i32) {
    %c0_i32 = arith.constant 0 : i32
    %c0_i32_0 = arith.constant 0 : i32
    %c0_i32_1 = arith.constant 0 : i32
    %c0_i32_2 = arith.constant 0 : i32
    return %c0_i32, %c0_i32_0, %c0_i32_1 : i32, i32, i32
  }
  func.func @transform_7(%arg0: i32) -> (i32, i32, i32) {
    %c0_i32 = arith.constant 0 : i32
    %c0_i32_0 = arith.constant 0 : i32
    %c0_i32_1 = arith.constant 0 : i32
    %c0_i32_2 = arith.constant 0 : i32
    return %c0_i32, %c0_i32_0, %c0_i32_1 : i32, i32, i32
  }
  func.func @transform_8(%arg0: i32) -> (i32, i32, i32) {
    %c0_i32 = arith.constant 0 : i32
    %c0_i32_0 = arith.constant 0 : i32
    %c0_i32_1 = arith.constant 0 : i32
    %c0_i32_2 = arith.constant 0 : i32
    return %c0_i32, %c0_i32_0, %c0_i32_1 : i32, i32, i32
  }
  func.func @transform_9(%arg0: i32) -> (i32, i32, i32) {
    %c0_i32 = arith.constant 0 : i32
    %c0_i32_0 = arith.constant 0 : i32
    %c0_i32_1 = arith.constant 0 : i32
    %c0_i32_2 = arith.constant 0 : i32
    return %c0_i32, %c0_i32_0, %c0_i32_1 : i32, i32, i32
  }
  func.func @transform_10(%arg0: i32) -> (i32, i32, i32) {
    %c0_i32 = arith.constant 0 : i32
    %c0_i32_0 = arith.constant 0 : i32
    %c0_i32_1 = arith.constant 0 : i32
    %c0_i32_2 = arith.constant 0 : i32
    return %c0_i32, %c0_i32_0, %c0_i32_1 : i32, i32, i32
  }
  func.func @transform_11(%arg0: i32) -> (i32, i32, i32) {
    %c0_i32 = arith.constant 0 : i32
    %c0_i32_0 = arith.constant 0 : i32
    %c0_i32_1 = arith.constant 0 : i32
    %c0_i32_2 = arith.constant 0 : i32
    return %c0_i32, %c0_i32_0, %c0_i32_1 : i32, i32, i32
  }
  func.func @transform_12(%arg0: i32) -> (i32, i32, i32) {
    %c0_i32 = arith.constant 0 : i32
    %c0_i32_0 = arith.constant 0 : i32
    %c0_i32_1 = arith.constant 0 : i32
    %c0_i32_2 = arith.constant 0 : i32
    return %c0_i32, %c0_i32_0, %c0_i32_1 : i32, i32, i32
  }
  func.func @transform_13(%arg0: i32) -> (i32, i32, i32) {
    %c0_i32 = arith.constant 0 : i32
    %c0_i32_0 = arith.constant 0 : i32
    %c0_i32_1 = arith.constant 0 : i32
    %c0_i32_2 = arith.constant 0 : i32
    return %c0_i32, %c0_i32_0, %c0_i32_1 : i32, i32, i32
  }
  func.func @transform_14(%arg0: i32) -> (i32, i32, i32) {
    %c0_i32 = arith.constant 0 : i32
    %c0_i32_0 = arith.constant 0 : i32
    %c0_i32_1 = arith.constant 0 : i32
    %c0_i32_2 = arith.constant 0 : i32
    return %c0_i32, %c0_i32_0, %c0_i32_1 : i32, i32, i32
  }
  func.func @transform_15(%arg0: i32) -> (i32, i32) {
    %c0_i32 = arith.constant 0 : i32
    %c0_i32_0 = arith.constant 0 : i32
    %c0_i32_1 = arith.constant 0 : i32
    return %c0_i32, %c0_i32_0 : i32, i32
  }
  func.func @transform_16(%arg0: i32) -> (i32, i32) {
    %c0_i32 = arith.constant 0 : i32
    %c0_i32_0 = arith.constant 0 : i32
    %c0_i32_1 = arith.constant 0 : i32
    return %c0_i32, %c0_i32_0 : i32, i32
  }
  func.func @transform_17(%arg0: i32) -> (i32, i32, i32) {
    %c0_i32 = arith.constant 0 : i32
    %c0_i32_0 = arith.constant 0 : i32
    %c0_i32_1 = arith.constant 0 : i32
    %c0_i32_2 = arith.constant 0 : i32
    return %c0_i32, %c0_i32_0, %c0_i32_1 : i32, i32, i32
  }
  func.func @transform_18(%arg0: i32) -> (i32, i32, i32) {
    %c0_i32 = arith.constant 0 : i32
    %c0_i32_0 = arith.constant 0 : i32
    %c0_i32_1 = arith.constant 0 : i32
    %c0_i32_2 = arith.constant 0 : i32
    return %c0_i32, %c0_i32_0, %c0_i32_1 : i32, i32, i32
  }
  func.func @transform_19(%arg0: i32) -> (i32, i32, i32) {
    %c0_i32 = arith.constant 0 : i32
    %c0_i32_0 = arith.constant 0 : i32
    %c0_i32_1 = arith.constant 0 : i32
    %c0_i32_2 = arith.constant 0 : i32
    return %c0_i32, %c0_i32_0, %c0_i32_1 : i32, i32, i32
  }
  func.func @transform_20(%arg0: i32) -> (i32, i32, i32) {
    %c0_i32 = arith.constant 0 : i32
    %c0_i32_0 = arith.constant 0 : i32
    %c0_i32_1 = arith.constant 0 : i32
    %c0_i32_2 = arith.constant 0 : i32
    return %c0_i32, %c0_i32_0, %c0_i32_1 : i32, i32, i32
  }
  func.func @transform_21(%arg0: i32) -> (i32, i32, i32) {
    %c0_i32 = arith.constant 0 : i32
    %c0_i32_0 = arith.constant 0 : i32
    %c0_i32_1 = arith.constant 0 : i32
    %c0_i32_2 = arith.constant 0 : i32
    return %c0_i32, %c0_i32_0, %c0_i32_1 : i32, i32, i32
  }
  func.func @transform_22(%arg0: i32) -> (i32, i32, i32) {
    %c0_i32 = arith.constant 0 : i32
    %c0_i32_0 = arith.constant 0 : i32
    %c0_i32_1 = arith.constant 0 : i32
    %c0_i32_2 = arith.constant 0 : i32
    return %c0_i32, %c0_i32_0, %c0_i32_1 : i32, i32, i32
  }
  func.func @transform_23(%arg0: i32) -> (i32, i32, i32) {
    %c0_i32 = arith.constant 0 : i32
    %c0_i32_0 = arith.constant 0 : i32
    %c0_i32_1 = arith.constant 0 : i32
    %c0_i32_2 = arith.constant 0 : i32
    return %c0_i32, %c0_i32_0, %c0_i32_1 : i32, i32, i32
  }
  func.func @transform_24(%arg0: i32) -> (i32, i32, i32) {
    %c0_i32 = arith.constant 0 : i32
    %c0_i32_0 = arith.constant 0 : i32
    %c0_i32_1 = arith.constant 0 : i32
    %c0_i32_2 = arith.constant 0 : i32
    return %c0_i32, %c0_i32_0, %c0_i32_1 : i32, i32, i32
  }
  func.func @transform_25(%arg0: i32) -> (i32, i32, i32) {
    %c0_i32 = arith.constant 0 : i32
    %c0_i32_0 = arith.constant 0 : i32
    %c0_i32_1 = arith.constant 0 : i32
    %c0_i32_2 = arith.constant 0 : i32
    return %c0_i32, %c0_i32_0, %c0_i32_1 : i32, i32, i32
  }
  func.func @transform_26(%arg0: i32) -> (i32, i32, i32) {
    %c0_i32 = arith.constant 0 : i32
    %c0_i32_0 = arith.constant 0 : i32
    %c0_i32_1 = arith.constant 0 : i32
    %c0_i32_2 = arith.constant 0 : i32
    return %c0_i32, %c0_i32_0, %c0_i32_1 : i32, i32, i32
  }
  func.func @transform_27(%arg0: i32) -> (i32, i32, i32) {
    %c0_i32 = arith.constant 0 : i32
    %c0_i32_0 = arith.constant 0 : i32
    %c0_i32_1 = arith.constant 0 : i32
    %c0_i32_2 = arith.constant 0 : i32
    return %c0_i32, %c0_i32_0, %c0_i32_1 : i32, i32, i32
  }
  func.func @transform_28(%arg0: i32) -> (i32, i32, i32) {
    %c0_i32 = arith.constant 0 : i32
    %c0_i32_0 = arith.constant 0 : i32
    %c0_i32_1 = arith.constant 0 : i32
    %c0_i32_2 = arith.constant 0 : i32
    return %c0_i32, %c0_i32_0, %c0_i32_1 : i32, i32, i32
  }
  func.func @transform_29(%arg0: i32) -> (i32, i32, i32) {
    %c0_i32 = arith.constant 0 : i32
    %c0_i32_0 = arith.constant 0 : i32
    %c0_i32_1 = arith.constant 0 : i32
    %c0_i32_2 = arith.constant 0 : i32
    return %c0_i32, %c0_i32_0, %c0_i32_1 : i32, i32, i32
  }
  func.func @transform_30(%arg0: i32) -> (i32, i32, i32) {
    %c0_i32 = arith.constant 0 : i32
    %c0_i32_0 = arith.constant 0 : i32
    %c0_i32_1 = arith.constant 0 : i32
    %c0_i32_2 = arith.constant 0 : i32
    return %c0_i32, %c0_i32_0, %c0_i32_1 : i32, i32, i32
  }
  func.func @transform_31(%arg0: i32) -> (i32, i32, i32) {
    %c0_i32 = arith.constant 0 : i32
    %c0_i32_0 = arith.constant 0 : i32
    %c0_i32_1 = arith.constant 0 : i32
    %c0_i32_2 = arith.constant 0 : i32
    return %c0_i32, %c0_i32_0, %c0_i32_1 : i32, i32, i32
  }
  func.func @transform_32(%arg0: i32) -> (i32, i32, i32) {
    %c0_i32 = arith.constant 0 : i32
    %c0_i32_0 = arith.constant 0 : i32
    %c0_i32_1 = arith.constant 0 : i32
    %c0_i32_2 = arith.constant 0 : i32
    return %c0_i32, %c0_i32_0, %c0_i32_1 : i32, i32, i32
  }
  func.func @transform_33(%arg0: i32) -> (i32, i32, i32) {
    %c0_i32 = arith.constant 0 : i32
    %c0_i32_0 = arith.constant 0 : i32
    %c0_i32_1 = arith.constant 0 : i32
    %c0_i32_2 = arith.constant 0 : i32
    return %c0_i32, %c0_i32_0, %c0_i32_1 : i32, i32, i32
  }
  func.func @transform_34(%arg0: i32) -> (i32, i32, i32) {
    %c0_i32 = arith.constant 0 : i32
    %c0_i32_0 = arith.constant 0 : i32
    %c0_i32_1 = arith.constant 0 : i32
    %c0_i32_2 = arith.constant 0 : i32
    return %c0_i32, %c0_i32_0, %c0_i32_1 : i32, i32, i32
  }
  func.func @transform_35(%arg0: i32) -> (i32, i32, i32) {
    %c0_i32 = arith.constant 0 : i32
    %c0_i32_0 = arith.constant 0 : i32
    %c0_i32_1 = arith.constant 0 : i32
    %c0_i32_2 = arith.constant 0 : i32
    return %c0_i32, %c0_i32_0, %c0_i32_1 : i32, i32, i32
  }
  func.func @transform_36(%arg0: i32) -> (i32, i32, i32) {
    %c0_i32 = arith.constant 0 : i32
    %c0_i32_0 = arith.constant 0 : i32
    %c0_i32_1 = arith.constant 0 : i32
    %c0_i32_2 = arith.constant 0 : i32
    return %c0_i32, %c0_i32_0, %c0_i32_1 : i32, i32, i32
  }
  func.func @transform_37(%arg0: i32) -> (i32, i32) {
    %c0_i32 = arith.constant 0 : i32
    %c0_i32_0 = arith.constant 0 : i32
    %c0_i32_1 = arith.constant 0 : i32
    return %c0_i32, %c0_i32_0 : i32, i32
  }
  func.func @transform_38(%arg0: i32) -> (i32, i32) {
    %c0_i32 = arith.constant 0 : i32
    %c0_i32_0 = arith.constant 0 : i32
    %c0_i32_1 = arith.constant 0 : i32
    return %c0_i32, %c0_i32_0 : i32, i32
  }
  func.func @transform_39(%arg0: i32) -> (i32, i32) {
    %c0_i32 = arith.constant 0 : i32
    %c0_i32_0 = arith.constant 0 : i32
    %c0_i32_1 = arith.constant 0 : i32
    return %c0_i32, %c0_i32_0 : i32, i32
  }
  func.func @transform_40(%arg0: i32) -> (i32, i32) {
    %c0_i32 = arith.constant 0 : i32
    %c0_i32_0 = arith.constant 0 : i32
    %c0_i32_1 = arith.constant 0 : i32
    return %c0_i32, %c0_i32_0 : i32, i32
  }
  func.func @transform_41(%arg0: i32) -> (i32, i32, i32) {
    %c0_i32 = arith.constant 0 : i32
    %c0_i32_0 = arith.constant 0 : i32
    %c0_i32_1 = arith.constant 0 : i32
    return %arg0, %c0_i32, %c0_i32_0 : i32, i32, i32
  }
}

</mosaic_0001>

<bundles_post_ra>
// kernel: token2token_forward.1
= control target key start
LH: loop header
LB: loop body
LE: loop exit
PB: predicated region body
PF: predicated region fallthrough
CT: control target
= control target key end

     0   :  { %s9184_s6 = smov 1   ;;  %s9185_s10 = smov 2   ;;  %s10246_s0 = inlined_call_operand.smem [shape: u32[42], index: -1, kind: input, shape index: {}] }
   0x1   :  { %s9254_s5 = sld [smem:[%s10246_s0]]   ;;  %s9186_s14 = smov 3  }
   0x2   :  { %s9259_s9 = sld [smem:[%s10246_s0 + %s9184_s6]]   ;;  %s9187_s18 = smov 4  }
   0x3   :  { %s9264_s13 = sld [smem:[%s10246_s0 + %s9185_s10]]   ;;  %s9188_s22 = smov 5  }
   0x4   :  { %s9269_s17 = sld [smem:[%s10246_s0 + %s9186_s14]]   ;;  %s9189_s26 = smov 6  }
   0x5   :  { %s9274_s21 = sld [smem:[%s10246_s0 + %s9187_s18]]   ;;  %s9190_s30 = smov 7  }
   0x6   :  { %s9279_s25 = sld [smem:[%s10246_s0 + %s9188_s22]]   ;;  %s9191_s4 = smov 8  }
   0x7   :  { %10306 = sst [smem:[#allocation29_spill]] %s9254_s5  ;;  %s9192_s10 = smov 9  }
   0x8   :  { %10307 = sst [smem:[#allocation30_spill]] %s9259_s9  ;;  %s9193_s15 = smov 10  }
   0x9   :  { %10308 = sst [smem:[#allocation31_spill]] %s9264_s13  ;;  %s9194_s20 = smov 11  }
   0xa   :  { %10309 = sst [smem:[#allocation32_spill]] %s9269_s17  ;;  %s9196_s1 = smov 13  }
   0xb   :  { %s9284_s29 = sld [smem:[%s10246_s0 + %s9189_s26]]   ;;  %s9195_s26 = smov 12  }
   0xc   :  { %10310 = sst [smem:[#allocation33_spill]] %s9279_s25  ;;  %s9197_s7 = smov 14  }
   0xd   :  { %s9289_s3 = sld [smem:[%s10246_s0 + %s9190_s30]]   ;;  %s9199_s22 = smov 16  }
   0xe   :  { %s9294_s8 = sld [smem:[%s10246_s0 + %s9191_s4]]   ;;  %s9200_s28 = smov 17  }
   0xf   :  { %s9299_s14 = sld [smem:[%s10246_s0 + %s9192_s10]]  }
  0x10   :  { %s9304_s19 = sld [smem:[%s10246_s0 + %s9193_s15]]   ;;  %s9198_s15 = smov 15  }
  0x11   :  { %s9309_s24 = sld [smem:[%s10246_s0 + %s9194_s20]]  }
  0x12   :  { %s9314_s30 = sld [smem:[%s10246_s0 + %s9195_s26]]  }
  0x13   :  { %10311 = sst [smem:[#allocation34_spill]] %s9289_s3 }
  0x14   :  { %10312 = sst [smem:[#allocation35_spill]] %s9294_s8 }
  0x15   :  { %10313 = sst [smem:[#allocation36_spill]] %s9299_s14 }
  0x16   :  { %10314 = sst [smem:[#allocation37_spill]] %s9304_s19 }
  0x17   :  { %s9319_s6 = sld [smem:[%s10246_s0 + %s9196_s1]]  }
  0x18   :  { %10315 = sst [smem:[#allocation38_spill]] %s9314_s30 }
  0x19   :  { %s9324_s12 = sld [smem:[%s10246_s0 + %s9197_s7]]   ;;  %s9201_s7 = smov 18  }
  0x1a   :  { %s9329_s20 = sld [smem:[%s10246_s0 + %s9198_s15]]   ;;  %s9202_s15 = smov 19  }
  0x1b   :  { %s9334_s27 = sld [smem:[%s10246_s0 + %s9199_s22]]   ;;  %s9203_s22 = smov 20  }
  0x1c   :  { %s9339_s4 = sld [smem:[%s10246_s0 + %s9200_s28]]   ;;  %s9204_s28 = smov 21  }
  0x1d   :  { %10316 = sst [smem:[#allocation39_spill]] %s9319_s6 }
  0x1e   :  { %s9344_s13 = sld [smem:[%s10246_s0 + %s9201_s7]]   ;;  %s9205_s7 = smov 22  }
  0x1f   :  { %10317 = sst [smem:[#allocation40_spill]] %s9324_s12 }
  0x20   :  { %10318 = sst [smem:[#allocation41_spill]] %s9329_s20 }
  0x21   :  { %10319 = sst [smem:[#allocation42_spill]] %s9334_s27 }
  0x22   :  { %10320 = sst [smem:[#allocation43_spill]] %s9339_s4 }
  0x23   :  { %s9349_s20 = sld [smem:[%s10246_s0 + %s9202_s15]]   ;;  %s9206_s15 = smov 23  }
  0x24   :  { %10321 = sst [smem:[#allocation44_spill]] %s9344_s13 }
  0x25   :  { %s9354_s27 = sld [smem:[%s10246_s0 + %s9203_s22]]   ;;  %s9207_s22 = smov 24  }
  0x26   :  { %s9359_s9 = sld [smem:[%s10246_s0 + %s9204_s28]]   ;;  %s9208_s28 = smov 25  }
  0x27   :  { %s9364_s13 = sld [smem:[%s10246_s0 + %s9205_s7]]   ;;  %s9209_s7 = smov 26  }
  0x28   :  { %s9369_s12 = sld [smem:[%s10246_s0 + %s9206_s15]]   ;;  %s9210_s15 = smov 27  }
  0x29   :  { %s9389_s6 = sld [smem:[%s10246_s0 + %s9210_s15]]   ;;  %s9214_s15 = smov 31  }
  0x2a   :  { %s9409_s19 = sld [smem:[%s10246_s0 + %s9214_s15]]   ;;  %s9218_s15 = smov 35  }
  0x2b   :  { %10322 = sst [smem:[#allocation45_spill]] %s9354_s27 }
  0x2c   :  { %10323 = sst [smem:[#allocation46_spill]] %s9359_s9 }
  0x2d   :  { %10324 = sst [smem:[#allocation47_spill]] %s9364_s13 }
  0x2e   :  { %10325 = sst [smem:[#allocation48_spill]] %s9369_s12 }
  0x2f   :  { %s9374_s27 = sld [smem:[%s10246_s0 + %s9207_s22]]   ;;  %s9211_s22 = smov 28  }
  0x30   :  { %s9379_s9 = sld [smem:[%s10246_s0 + %s9208_s28]]   ;;  %s9212_s28 = smov 29  }
  0x31   :  { %s9384_s13 = sld [smem:[%s10246_s0 + %s9209_s7]]   ;;  %s9213_s7 = smov 30  }
  0x32   :  { %10329 = sst [smem:[#allocation52_spill]] %s9389_s6 }
  0x33   :  { %s9399_s30 = sld [smem:[%s10246_s0 + %s9212_s28]]   ;;  %s9216_s28 = smov 33  }
  0x34   :  { %s9429_s8 = sld [smem:[%s10246_s0 + %s9218_s15]]   ;;  %s9222_s15 = smov 39  }
  0x35   :  { %10326 = sst [smem:[#allocation49_spill]] %s9374_s27 }
  0x36   :  { %10327 = sst [smem:[#allocation50_spill]] %s9379_s9 }
  0x37   :  { %10328 = sst [smem:[#allocation51_spill]] %s9384_s13 }
  0x38   :  { %s9394_s27 = sld [smem:[%s10246_s0 + %s9211_s22]]   ;;  %s9215_s22 = smov 32  }
  0x39   :  { %10331 = sst [smem:[#allocation54_spill]] %s9399_s30 }
  0x3a   :  { %s9404_s13 = sld [smem:[%s10246_s0 + %s9213_s7]]   ;;  %s9217_s7 = smov 34  }
  0x3b   :  { %s9419_s30 = sld [smem:[%s10246_s0 + %s9216_s28]]   ;;  %s9220_s28 = smov 37  }
  0x3c   :  { %10335 = sst [smem:[#allocation58_spill]] %s9429_s8 }
  0x3d   :  { %s9439_s3 = sld [smem:[%s10246_s0 + %s9220_s28]]   ;;  %s9224_s28 = smov 41  }
  0x3e   :  { %10330 = sst [smem:[#allocation53_spill]] %s9394_s27 }
  0x3f   :  { %s9414_s27 = sld [smem:[%s10246_s0 + %s9215_s22]]   ;;  %s9219_s22 = smov 36  }
  0x40   :  { %10332 = sst [smem:[#allocation55_spill]] %s9404_s13 }
  0x41   :  { %s9424_s13 = sld [smem:[%s10246_s0 + %s9217_s7]]   ;;  %s9221_s7 = smov 38  }
  0x42   :  { %s9449_s8 = sld [smem:[%s10246_s0 + %s9222_s15]]  }
  0x43   :  { %10337 = sst [smem:[#allocation60_spill]] %s9439_s3 }
  0x44   :  { %s9459_s3 = sld [smem:[%s10246_s0 + %s9224_s28]]  }
  0x45   :  { %10333 = sst [smem:[#allocation56_spill]] %s9414_s27 }
  0x46   :  { %s9434_s27 = sld [smem:[%s10246_s0 + %s9219_s22]]   ;;  %s9223_s22 = smov 40  }
  0x47   :  { %10334 = sst [smem:[#allocation57_spill]] %s9424_s13 }
  0x48   :  { %s9444_s13 = sld [smem:[%s10246_s0 + %s9221_s7]]  }
  0x49   :  { %10338 = sst [smem:[#allocation61_spill]] %s9449_s8 }
  0x4a   :  { %10340 = sst [smem:[#allocation63_spill]] %s9459_s3 }
  0x4c   :  { %10336 = sst [smem:[#allocation59_spill]] %s9434_s27 }
  0x4d   :  { %s9454_s27 = sld [smem:[%s10246_s0 + %s9223_s22]]  }
  0x53   :  { %10339 = sst [smem:[#allocation62_spill]] %s9454_s27 }
  0x54   :  { %88 = vsyncpa [#allocation4], 0 }
  0x55   :  { %89 = vsyncpa [#allocation7], 0 }
  0x56   :  { %90 = vsyncpa [#allocation10], 0 }
  0x57   :  { %91 = vsyncpa [#allocation13], 0 }
  0x58   :  { %92 = vsyncpa [#allocation16], 0 }
  0x59   :  { %93 = vsyncpa [#allocation19], 0 }
  0x5a   :  { %94 = vsyncpa [#allocation5], 0 }
  0x5b   :  { %96 = vsyncpa [#allocation5 + $0x1], 0  ;;  %s9461_s7 = smov 0   ;;  %s9463_s10 = smov 0  }
  0x5c   :  { %s9465_s11 = smov 0   ;;  %s9467_s15 = smov 0  }
  0x5d LB: > { %s10341_s17 = sld [smem:[#allocation32_spill]]  ;;  %s9482_s0 = sadd.s32 4294967295, %s9182_s15   ;;  %s9182_s15 = sphi %s9467_s15, %s10410_s15   ;;  %s9178_s11 = sphi %s9465_s11, %s10412_s11   ;;  %s9174_s10 = sphi %s9463_s10, %s10414_s10   ;;  %s9170_s7 = sphi %s9461_s7, %s10413_s7  }
  0x5e   : > { %s10342_s14 = sld [smem:[#allocation36_spill]]  ;;  %s6606_s16 = sadd.s32 4294967294, %s9182_s15  }
  0x5f   : > { %s10343_s12 = sld [smem:[#allocation48_spill]]  ;;  %s9486_s18 = sadd.s32 1, %s9182_s15  }
  0x60   : > { %s10344_s9 = sld [smem:[#allocation50_spill]]  ;;  %s980_s22 = sadd.s32 1, %s9178_s11 }
  0x61   : > { %s10345_s8 = sld [smem:[#allocation61_spill]]  ;;  %s977_s23 = ssub.s32 %s9182_s15, %s9486_s18 }
  0x62   : > { %s10346_s6 = sld [smem:[#allocation52_spill]]  ;;  %p990_p0 = scmp.ne.s32.totalorder %s9178_s11, %s9174_s10 }
  0x63   : > { %s10347_s4 = sld [smem:[#allocation43_spill]]  ;;  %p978_p1 = scmp.eq.s32.totalorder %s977_s23, 0 }
  0x64   : > { %s10348_s25 = sld [smem:[#allocation33_spill]]  ;;  %p991_p2 = scmp.eq.s32.totalorder %s9482_s0, 1 }
  0x65   : > { %10349 = sst [smem:[#allocation64_spill]] %s9170_s7  ;;  %p996_p3 = scmp.ne.s32.totalorder %s9174_s10, %s9170_s7 }
  0x66   : > { %10350 = sst [smem:[#allocation65_spill]] %s9178_s11  ;;  %p997_p4 = scmp.eq.s32.totalorder %s6606_s16, 1 }
  0x67   : > { %10351 = sst [smem:[#allocation66_spill]] %s9182_s15  ;;  %p9499_p5 = por %p991_p2, %p990_p0 }
  0x68   : > { %10352 = sst [smem:[#allocation67_spill]] %s9486_s18  ;;  %p9503_p6 = por %p997_p4, %p996_p3 }
  0x69   : > { %s9497_s26 = scalar_select %p978_p1, %s9178_s11, %s980_s22  }
  0x6a   : > { %s10354_s28 = scalar_select %p9499_p5, 1, 0 }
  0x6b   : > { %10353 = sst [smem:[#allocation68_spill]] %s9497_s26  ;;  %p6607_p7 = scmp.ge.s32.totalorder %s9182_s15, 1 }
  0x6c   : > { %10355 = sst [smem:[#allocation69_spill]] %s10354_s28  ;;  %p1004_p8 = scmp.lt.s32.totalorder %s9182_s15, 3 }
  0x6d   : > { %s10356_s1 = scalar_select %p9503_p6, 1, 0 }
  0x6e   : > { %p8490_p9 = scmp.eq.s32.totalorder %s9482_s0, 0  ;;  %p9510_p10 = pnand %p6607_p7, %p1004_p8 }
  0x6f   : > { %10357 = sst [smem:[#allocation70_spill]] %s10356_s1  ;;  %s1035_s16 = sshll.u32 %s10348_s25, 4  ;;  %s1036_s16 = int_to_ptr.hbm [resolvable:$true] %s1035_s16 }
  0x70   : > { %p8452_p11 = pneg %p9510_p10  ;;  %s9225_s22 = smov [#allocation6]  }
  0x71   : > { %s1037_s23 = sshll.u32 %s9225_s22, 4  ;;  %s1093_s11 = sshll.u32 %s10347_s4, 4  ;;  %s1038_s23 = int_to_ptr.vmem [resolvable:$true] %s1037_s23  ;;  %s1094_s11 = int_to_ptr.hbm [resolvable:$true] %s1093_s11 }
  0x72   : > { %p9519_p12 = pnand %p8490_p9, %p8452_p11  ;;  %s8766_s18 = sshra.s32 %s1036_s16, 4  ;;  %s8767_s18 = int_to_ptr.hbm [resolvable:$true] %s8766_s18 }
  0x73   : > { %s8768_s1 = scalar_lea.hbm %s8767_s18, 128  ;;  %s8773_s22 = scalar_lea.hbm %s10348_s25, 128 }
  0x74   : > { %p8769_p13 = scmp.ne.s32.totalorder %s8767_s18, %s8768_s1  ;;  %p9526_p0 = pneg %p9519_p12 }
  0x75   : > { %p8774_p3 = scmp.lt.s32.totalorder %s8767_s18, %s10348_s25  ;;  %p8775_p4 = scmp.lt.s32.totalorder %s8773_s22, %s8768_s1 }
  0x76   : > { %p8771_p1 = pnand %p9526_p0, %p8769_p13 }
  0x77   : > { %p8776_p7 = por %p8775_p4, %p8774_p3 }
  0x78   : > { %p8772_p2 = pneg %p8771_p1 }
  0x7a   : > { %p8777_p8 = pnand %p8776_p7, %p8772_p2 }
  0x7c   : > { %8780 = shalt.err (!%p8777_p8)
}
  0x7d   : > { %s10277_s15 = smov 64   ;;  %s10279_s28 = smov 4  }
  0x7e   : > { %8458 = dma.hbm_to_vmem [thread:$0]  (!%p9519_p12), %s1036_s16, 2048, %s1038_s23, [#allocation7], %s10277_s15, %s10277_s15, %s10279_s28  }
  0x7f   : > { %s9228_s3 = smov [#allocation9]   ;;  %s1133_s18 = sshll.u32 %s10343_s12, 4  ;;  %s9540_s18 = int_to_ptr.hbm [resolvable:$true] %s1133_s18 }
  0x80   : > { %s1095_s27 = sshll.u32 %s9228_s3, 4  ;;  %s8796_s1 = sshra.s32 %s1094_s11, 4  ;;  %s1096_s27 = int_to_ptr.vmem [resolvable:$true] %s1095_s27  ;;  %s8797_s1 = int_to_ptr.hbm [resolvable:$true] %s8796_s1 }
  0x81   : > { %s8798_s22 = scalar_lea.hbm %s8797_s1, 384  ;;  %s8803_s25 = scalar_lea.hbm %s10347_s4, 384 }
  0x82   : > { %p8799_p11 = scmp.ne.s32.totalorder %s8797_s1, %s8798_s22  ;;  %p8804_p2 = scmp.lt.s32.totalorder %s8797_s1, %s10347_s4 }
  0x83   : > { %p8805_p3 = scmp.lt.s32.totalorder %s8803_s25, %s8798_s22 }
  0x84   : > { %p8801_p13 = pnand %p8799_p11, %p9526_p0 }
  0x85   : > { %p8806_p4 = por %p8805_p3, %p8804_p2 }
  0x86   : > { %p8802_p1 = pneg %p8801_p13 }
  0x88   : > { %p8807_p7 = pnand %p8806_p4, %p8802_p1 }
  0x8a   : > { %8810 = shalt.err (!%p8807_p7)
}
  0x8b   : > { %s10281_s16 = smov 192   ;;  %s10282_s3 = smov 12  }
  0x8c   : > { %8464 = dma.hbm_to_vmem [thread:$0]  (!%p9519_p12), %s1094_s11, 6144, %s1096_s27, [#allocation10], %s10281_s16, %s10281_s16, %s10282_s3  }
  0x8d   : > { %s1167_s23 = sshll.u32 %s10346_s6, 4  ;;  %s9231_s15 = smov [#allocation12]   ;;  %s9552_s23 = int_to_ptr.hbm [resolvable:$true] %s1167_s23 }
  0x8e   : > { %s1135_s1 = sshll.u32 %s9231_s15, 4  ;;  %s8826_s25 = sshra.s32 %s9540_s18, 4  ;;  %s1136_s1 = int_to_ptr.vmem [resolvable:$true] %s1135_s1  ;;  %s8827_s25 = int_to_ptr.hbm [resolvable:$true] %s8826_s25 }
  0x8f   : > { %s8828_s22 = scalar_lea.hbm %s8827_s25, 128  ;;  %s8833_s28 = scalar_lea.hbm %s10343_s12, 128 }
  0x90   : > { %p8829_p8 = scmp.ne.s32.totalorder %s8827_s25, %s8828_s22  ;;  %p8834_p1 = scmp.lt.s32.totalorder %s8827_s25, %s10343_s12 }
  0x91   : > { %p8835_p2 = scmp.lt.s32.totalorder %s8833_s28, %s8828_s22 }
  0x92   : > { %p8831_p11 = pnand %p8829_p8, %p9526_p0 }
  0x93   : > { %p8836_p3 = por %p8835_p2, %p8834_p1 }
  0x94   : > { %p8832_p13 = pneg %p8831_p11 }
  0x96   : > { %p8837_p4 = pnand %p8836_p3, %p8832_p13 }
  0x98   : > { %8840 = shalt.err (!%p8837_p4)
}
  0x99   : > { %s10361_s27 = smov 4   ;;  %s10362_s11 = smov 64  }
  0x9a   : > { %8470 = dma.hbm_to_vmem [thread:$0]  (!%p9519_p12), %s9540_s18, 2048, %s1136_s1, [#allocation13], %s10362_s11, %s10362_s11, %s10361_s27  }
  0x9b   : > { %s9232_s15 = smov [#allocation15]   ;;  %s1207_s3 = sshll.u32 %s9419_s30, 4  ;;  %s9566_s3 = int_to_ptr.hbm [resolvable:$true] %s1207_s3 }
  0x9c   : > { %s1169_s16 = sshll.u32 %s9232_s15, 4  ;;  %s8856_s28 = sshra.s32 %s9552_s23, 4  ;;  %s1170_s16 = int_to_ptr.vmem [resolvable:$true] %s1169_s16  ;;  %s8857_s28 = int_to_ptr.hbm [resolvable:$true] %s8856_s28 }
  0x9d   : > { %s8858_s25 = scalar_lea.hbm %s8857_s28, 128  ;;  %s8863_s22 = scalar_lea.hbm %s10346_s6, 128 }
  0x9e   : > { %p8859_p7 = scmp.ne.s32.totalorder %s8857_s28, %s8858_s25  ;;  %p8864_p13 = scmp.lt.s32.totalorder %s8857_s28, %s10346_s6 }
  0x9f   : > { %p8865_p1 = scmp.lt.s32.totalorder %s8863_s22, %s8858_s25 }
  0xa0   : > { %p8861_p8 = pnand %p8859_p7, %p9526_p0 }
  0xa1   : > { %p8866_p2 = por %p8865_p1, %p8864_p13 }
  0xa2   : > { %p8862_p11 = pneg %p8861_p8 }
  0xa4   : > { %p8867_p3 = pnand %p8866_p2, %p8862_p11 }
  0xa6   : > { %8870 = shalt.err (!%p8867_p3)
}
  0xa7   : > { %8476 = dma.hbm_to_vmem [thread:$0]  (!%p9519_p12), %s9552_s23, 2048, %s1170_s16, [#allocation16], %s10362_s11, %s10362_s11, %s10361_s27  }
  0xa8   : > { %s1018_s18 = sshll.u32 %s10341_s17, 4  ;;  %s9233_s1 = smov [#allocation18]   ;;  %s9580_s18 = int_to_ptr.hbm [resolvable:$true] %s1018_s18 }
  0xa9   : > { %s1209_s15 = sshll.u32 %s9233_s1, 4  ;;  %s8886_s28 = sshra.s32 %s9566_s3, 4  ;;  %s1210_s15 = int_to_ptr.vmem [resolvable:$true] %s1209_s15  ;;  %s8887_s28 = int_to_ptr.hbm [resolvable:$true] %s8886_s28 }
  0xaa   : > { %s8888_s25 = scalar_lea.hbm %s8887_s28, 256  ;;  %s8893_s22 = scalar_lea.hbm %s9419_s30, 256 }
  0xab   : > { %p8889_p4 = scmp.ne.s32.totalorder %s8887_s28, %s8888_s25  ;;  %p8894_p11 = scmp.lt.s32.totalorder %s8887_s28, %s9419_s30 }
  0xac   : > { %p8895_p13 = scmp.lt.s32.totalorder %s8893_s22, %s8888_s25 }
  0xad   : > { %p8891_p7 = pnand %p8889_p4, %p9526_p0 }
  0xae   : > { %p8896_p1 = por %p8895_p13, %p8894_p11 }
  0xaf   : > { %p8892_p8 = pneg %p8891_p7 }
  0xb1   : > { %p8897_p2 = pnand %p8896_p1, %p8892_p8 }
  0xb3   : > { %8900 = shalt.err (!%p8897_p2)
}
  0xb4   : > { %8482 = dma.hbm_to_vmem [thread:$0]  (!%p9519_p12), %s9566_s3, 4096, %s1210_s15, [#allocation19], %s10362_s11, %s10362_s11, %s10361_s27  }
  0xb5   : > { %s9234_s16 = smov [#allocation3]   ;;  %s1064_s1 = sshll.u32 %s9309_s24, 4  ;;  %s9594_s1 = int_to_ptr.hbm [resolvable:$true] %s1064_s1 }
  0xb6   : > { %s1020_s23 = sshll.u32 %s9234_s16, 4  ;;  %s8916_s28 = sshra.s32 %s9580_s18, 4  ;;  %s1021_s23 = int_to_ptr.vmem [resolvable:$true] %s1020_s23  ;;  %s8917_s28 = int_to_ptr.hbm [resolvable:$true] %s8916_s28 }
  0xb7   : > { %s8918_s25 = scalar_lea.hbm %s8917_s28, 384  ;;  %s8923_s22 = scalar_lea.hbm %s10341_s17, 384 }
  0xb8   : > { %p8919_p3 = scmp.ne.s32.totalorder %s8917_s28, %s8918_s25  ;;  %p8924_p8 = scmp.lt.s32.totalorder %s8917_s28, %s10341_s17 }
  0xb9   : > { %p8925_p11 = scmp.lt.s32.totalorder %s8923_s22, %s8918_s25 }
  0xba   : > { %p8921_p4 = pnand %p8919_p3, %p9526_p0 }
  0xbb   : > { %p8926_p13 = por %p8925_p11, %p8924_p8 }
  0xbc   : > { %p8922_p7 = pneg %p8921_p4 }
  0xbe   : > { %p8927_p1 = pnand %p8926_p13, %p8922_p7 }
  0xc0   : > { %8930 = shalt.err (!%p8927_p1)
}
  0xc1   : > { %s10363_s3 = smov 12   ;;  %s10364_s15 = smov 192  }
  0xc2   : > { %8455 = dma.hbm_to_vmem [thread:$0]  (!%p9519_p12), %s9580_s18, 6144, %s1021_s23, [#allocation4], %s10364_s15, %s10364_s15, %s10363_s3  }
  0xc3   : > { %s1110_s16 = sshll.u32 %s9349_s20, 4  ;;  %s9235_s4 = smov [#allocation8]   ;;  %s9608_s16 = int_to_ptr.hbm [resolvable:$true] %s1110_s16 }
  0xc4   : > { %s1066_s6 = sshll.u32 %s9235_s4, 4  ;;  %s8946_s28 = sshra.s32 %s9594_s1, 4  ;;  %s1067_s6 = int_to_ptr.vmem [resolvable:$true] %s1066_s6  ;;  %s8947_s28 = int_to_ptr.hbm [resolvable:$true] %s8946_s28 }
  0xc5   : > { %s8948_s25 = scalar_lea.hbm %s8947_s28, 256  ;;  %s8953_s22 = scalar_lea.hbm %s9309_s24, 256 }
  0xc6   : > { %p8949_p2 = scmp.ne.s32.totalorder %s8947_s28, %s8948_s25  ;;  %p8954_p7 = scmp.lt.s32.totalorder %s8947_s28, %s9309_s24 }
  0xc7   : > { %p8955_p8 = scmp.lt.s32.totalorder %s8953_s22, %s8948_s25 }
  0xc8   : > { %p8951_p3 = pnand %p8949_p2, %p9526_p0 }
  0xc9   : > { %p8956_p11 = por %p8955_p8, %p8954_p7 }
  0xca   : > { %p8952_p4 = pneg %p8951_p3 }
  0xcc   : > { %p8957_p13 = pnand %p8956_p11, %p8952_p4 }
  0xce   : > { %8960 = shalt.err (!%p8957_p13)
}
  0xcf   : > { %8461 = dma.hbm_to_vmem [thread:$0]  (!%p9519_p12), %s9594_s1, 4096, %s1067_s6, [#allocation7], %s10362_s11, %s10362_s11, %s10361_s27  }
  0xd0   : > { %s9236_s4 = smov [#allocation11]   ;;  %s1150_s23 = sshll.u32 %s10344_s9, 4  ;;  %s9622_s23 = int_to_ptr.hbm [resolvable:$true] %s1150_s23 }
  0xd1   : > { %s1112_s18 = sshll.u32 %s9236_s4, 4  ;;  %s8976_s3 = sshra.s32 %s9608_s16, 4  ;;  %s1113_s18 = int_to_ptr.vmem [resolvable:$true] %s1112_s18  ;;  %s8977_s3 = int_to_ptr.hbm [resolvable:$true] %s8976_s3 }
  0xd2   : > { %s8978_s15 = scalar_lea.hbm %s8977_s3, 128  ;;  %s8983_s28 = scalar_lea.hbm %s9349_s20, 128 }
  0xd3   : > { %p8979_p1 = scmp.ne.s32.totalorder %s8977_s3, %s8978_s15  ;;  %p8984_p4 = scmp.lt.s32.totalorder %s8977_s3, %s9349_s20 }
  0xd4   : > { %p8985_p7 = scmp.lt.s32.totalorder %s8983_s28, %s8978_s15 }
  0xd5   : > { %p8981_p2 = pnand %p8979_p1, %p9526_p0 }
  0xd6   : > { %p8986_p8 = por %p8985_p7, %p8984_p4 }
  0xd7   : > { %p8982_p3 = pneg %p8981_p2 }
  0xd9   : > { %p8987_p11 = pnand %p8986_p8, %p8982_p3 }
  0xdb   : > { %8990 = shalt.err (!%p8987_p11)
}
  0xdc   : > { %8467 = dma.hbm_to_vmem [thread:$0]  (!%p9519_p12), %s9608_s16, 2048, %s1113_s18, [#allocation10], %s10362_s11, %s10362_s11, %s10361_s27  }
  0xdd   : > { %s9237_s6 = smov [#allocation14]   ;;  %s1190_s25 = sshll.u32 %s9409_s19, 4  ;;  %s1191_s25 = int_to_ptr.hbm [resolvable:$true] %s1190_s25 }
  0xde   : > { %s1152_s1 = sshll.u32 %s9237_s6, 4  ;;  %s9006_s22 = sshra.s32 %s9622_s23, 4  ;;  %s1153_s1 = int_to_ptr.vmem [resolvable:$true] %s1152_s1  ;;  %s9007_s22 = int_to_ptr.hbm [resolvable:$true] %s9006_s22 }
  0xdf   : > { %s9008_s4 = scalar_lea.hbm %s9007_s22, 256  ;;  %s9013_s3 = scalar_lea.hbm %s10344_s9, 256 }
  0xe0   : > { %p9009_p13 = scmp.ne.s32.totalorder %s9007_s22, %s9008_s4  ;;  %p9014_p3 = scmp.lt.s32.totalorder %s9007_s22, %s10344_s9 }
  0xe1   : > { %p9015_p4 = scmp.lt.s32.totalorder %s9013_s3, %s9008_s4 }
  0xe2   : > { %p9011_p1 = pnand %p9009_p13, %p9526_p0 }
  0xe3   : > { %p9016_p7 = por %p9015_p4, %p9014_p3 }
  0xe4   : > { %p9012_p2 = pneg %p9011_p1 }
  0xe6   : > { %p9017_p8 = pnand %p9016_p7, %p9012_p2 }
  0xe8   : > { %9020 = shalt.err (!%p9017_p8)
}
  0xe9   : > { %s9238_s15 = smov 128   ;;  %s9239_s27 = smov 8  }
  0xea   : > { %8473 = dma.hbm_to_vmem [thread:$0]  (!%p9519_p12), %s9622_s23, 4096, %s1153_s1, [#allocation13], %s9238_s15, %s9238_s15, %s9239_s27  }
  0xeb   : > { %s9240_s11 = smov [#allocation17]   ;;  %s1236_s18 = sshll.u32 %s10345_s8, 4  ;;  %s1237_s18 = int_to_ptr.hbm [resolvable:$true] %s1236_s18 }
  0xec   : > { %s1192_s16 = sshll.u32 %s9240_s11, 4  ;;  %s9036_s28 = sshra.s32 %s1191_s25, 4  ;;  %s1193_s16 = int_to_ptr.vmem [resolvable:$true] %s1192_s16  ;;  %s9037_s28 = int_to_ptr.hbm [resolvable:$true] %s9036_s28 }
  0xed   : > { %s9038_s6 = scalar_lea.hbm %s9037_s28, 256  ;;  %s9043_s22 = scalar_lea.hbm %s9409_s19, 256 }
  0xee   : > { %p9039_p11 = scmp.ne.s32.totalorder %s9037_s28, %s9038_s6  ;;  %p9044_p2 = scmp.lt.s32.totalorder %s9037_s28, %s9409_s19 }
  0xef   : > { %p9045_p3 = scmp.lt.s32.totalorder %s9043_s22, %s9038_s6 }
  0xf0   : > { %p9041_p13 = pnand %p9039_p11, %p9526_p0 }
  0xf1   : > { %p9046_p4 = por %p9045_p3, %p9044_p2 }
  0xf2   : > { %p9042_p1 = pneg %p9041_p13 }
  0xf4   : > { %p9047_p7 = pnand %p9046_p4, %p9042_p1 }
  0xf6   : > { %9050 = shalt.err (!%p9047_p7)
}
  0xf7   : > { %8479 = dma.hbm_to_vmem [thread:$0]  (!%p9519_p12), %s1191_s25, 4096, %s1193_s16, [#allocation16], %s9238_s15, %s9238_s15, %s9239_s27  }
  0xf8   : > { %s9241_s23 = smov [#allocation20]   ;;  %s9066_s4 = sshra.s32 %s1237_s18, 4  ;;  %s9067_s4 = int_to_ptr.hbm [resolvable:$true] %s9066_s4 }
  0xf9   : > { %s1238_s1 = sshll.u32 %s9241_s23, 4  ;;  %s9068_s3 = scalar_lea.hbm %s9067_s4, 128  ;;  %s1239_s1 = int_to_ptr.vmem [resolvable:$true] %s1238_s1 }
  0xfa   : > { %p9069_p8 = scmp.ne.s32.totalorder %s9067_s4, %s9068_s3  ;;  %s9073_s11 = scalar_lea.hbm %s10345_s8, 128 }
  0xfb   : > { %p9074_p1 = scmp.lt.s32.totalorder %s9067_s4, %s10345_s8  ;;  %p9075_p2 = scmp.lt.s32.totalorder %s9073_s11, %s9068_s3 }
  0xfc   : > { %p9071_p11 = pnand %p9069_p8, %p9526_p0 }
  0xfd   : > { %p9076_p3 = por %p9075_p2, %p9074_p1 }
  0xfe   : > { %p9072_p13 = pneg %p9071_p11 }
 0x100   : > { %p9077_p4 = pnand %p9076_p3, %p9072_p13 }
 0x102   : > { %9080 = shalt.err (!%p9077_p4)
}
 0x103   : > { %8485 = dma.hbm_to_vmem [thread:$0]  (!%p9519_p12), %s1237_s18, 2048, %s1239_s1, [#allocation19], %s9238_s15, %s9238_s15, %s9239_s27  }
 0x104   : > { %1271 = sbr.rel (%p9510_p10) target bundleno = 9827 (0x2663), region = 184 }
 0x109   : > { %9141 = dma.done.wait (%p8490_p9), [#allocation4], 6144  }
 0x10a   : > { %9143 = vsyncadd (%p8490_p9), [#allocation4], 4294961152 }
 0x10b   : > { %9145 = dma.done.wait (%p8490_p9), [#allocation7], 6144  }
 0x10c   : > { %9147 = vsyncadd (%p8490_p9), [#allocation7], 4294961152 }
 0x10d   : > { %9149 = dma.done.wait (%p8490_p9), [#allocation10], 8192  }
 0x10e   : > { %9151 = vsyncadd (%p8490_p9), [#allocation10], 4294959104 }
 0x10f   : > { %9153 = dma.done.wait (%p8490_p9), [#allocation13], 6144  }
 0x110   : > { %9155 = vsyncadd (%p8490_p9), [#allocation13], 4294961152 }
 0x111   : > { %9157 = dma.done.wait (%p8490_p9), [#allocation16], 6144  }
 0x112   : > { %9159 = vsyncadd (%p8490_p9), [#allocation16], 4294961152 }
 0x113   : > { %9161 = dma.done.wait (%p8490_p9), [#allocation19], 6144  }
 0x114   : > { %9163 = vsyncadd (%p8490_p9), [#allocation19], 4294961152  ;;  %v6721_v0 = vld [vmem:[#allocation3 + $0xa8] sm:$0xf]  ;;  %v8091_v1 = vld [vmem:[#allocation3 + $0xb0] sm:$0xf0] }
 0x115   : > { %v8090_v2 = vld [vmem:[#allocation3 + $0xac] sm:$0xf]  ;;  %v6722_v3 = vor.u32 %v8091_v1, %v6721_v0  ;;  %v6723_v4 = vld [vmem:[#allocation3 + $0xb4] sm:$0xf0]  ;;  %v6709_v5 = vld [vmem:[#allocation3 + $0x90] sm:$0xf] }
 0x116   : > { %v8088_v6 = vld [vmem:[#allocation3 + $0x98] sm:$0xf0]  ;;  %v6726_v7 = vor.u32 %v8090_v2, %v6723_v4  ;;  %v8087_v8 = vld [vmem:[#allocation3 + $0x94] sm:$0xf]  ;;  %v6711_v9 = vld [vmem:[#allocation3 + $0x9c] sm:$0xf0] }
 0x117   : > { %p1425_p10 = scmp.lt.s32.totalorder %s9482_s0, 1  ;;  %1604 = vmatpush.bf16.msra.mxu0 %v6722_v3  ;;  %v6710_v10 = vor.u32 %v8088_v6, %v6709_v5  ;;  %v6714_v11 = vor.u32 %v8087_v8, %v6711_v9  ;;  %v6697_v12 = vld [vmem:[#allocation3 + $0x78] sm:$0xf]  ;;  %v8085_v13 = vld [vmem:[#allocation3 + $0x80] sm:$0xf0]  ;;  %s10365_s5 = sld [smem:[#allocation29_spill]] }
 0x118   : > { %1617 = vmatpush.bf16.msra.mxu1 %v6726_v7  ;;  %v8084_v14 = vld [vmem:[#allocation3 + $0x7c] sm:$0xf]  ;;  %v6699_v15 = vld [vmem:[#allocation3 + $0x84] sm:$0xf0]  ;;  %v6698_v16 = vor.u32 %v8085_v13, %v6697_v12  ;;  %v6685_v18 = vld [vmem:[#allocation3 + $0x60] sm:$0xf] }
 0x119   : > { %s9694_s7 = scalar_select %p1425_p10, %s9482_s0, 1  ;;  %v6702_v17 = vor.u32 %v8084_v14, %v6699_v15  ;;  %v8082_v19 = vld [vmem:[#allocation3 + $0x68] sm:$0xf0]  ;;  %v8081_v20 = vld [vmem:[#allocation3 + $0x64] sm:$0xf]  ;;  %vm1646_vm0 = vcmask 261120  }
 0x11a   : > { %v6687_v21 = vld [vmem:[#allocation3 + $0x6c] sm:$0xf0]  ;;  %v6673_v22 = vld [vmem:[#allocation3 + $0x48] sm:$0xf]  ;;  %v8079_v23 = vld [vmem:[#allocation3 + $0x50] sm:$0xf0]  ;;  %v6686_v24 = vor.u32 %v8082_v19, %v6685_v18 }
 0x11b   : > { %1605 = vmatpush.bf16.msra.mxu0 %v6710_v10  ;;  %s6633_s26 = sshll.u32 %s9694_s7, 3  ;;  %v8078_v25 = vld [vmem:[#allocation3 + $0x4c] sm:$0xf]  ;;  %v6690_v26 = vor.u32 %v8081_v20, %v6687_v21  ;;  %v6675_v27 = vld [vmem:[#allocation3 + $0x54] sm:$0xf0]  ;;  %v6674_v30 = vor.u32 %v8079_v23, %v6673_v22  ;;  %s10285_s25 = smov 96  }
 0x11c   : > { %1618 = vmatpush.bf16.msra.mxu1 %v6714_v11  ;;  %v6661_v28 = vld [vmem:[#allocation3 + $0x30] sm:$0xf]  ;;  %v8076_v29 = vld [vmem:[#allocation3 + $0x38] sm:$0xf0]  ;;  %v8075_v31 = vld [vmem:[#allocation3 + $0x34] sm:$0xf]  ;;  %v6678_v33 = vor.u32 %v8078_v25, %v6675_v27 }
 0x11d   : > { %v6663_v32 = vld [vmem:[#allocation3 + $0x3c] sm:$0xf0]  ;;  %v6649_v34 = vld [vmem:[#allocation3 + $0x18] sm:$0xf]  ;;  %v8073_v35 = vld [vmem:[#allocation3 + $0x20] sm:$0xf0]  ;;  %v6662_v36 = vor.u32 %v8076_v29, %v6661_v28  ;;  %s1428_s2 = scalar_lea.vmem %s10365_s5, %s6633_s26 }
 0x11e   : > { %v8072_v37 = vld [vmem:[#allocation3 + $0x1c] sm:$0xf]  ;;  %v6651_v38 = vld [vmem:[#allocation3 + $0x24] sm:$0xf0]  ;;  %v6666_v39 = vor.u32 %v8075_v31, %v6663_v32  ;;  %v6650_v40 = vor.u32 %v8073_v35, %v6649_v34  ;;  %v6637_v42 = vld [vmem:[#allocation3] sm:$0xf] }
 0x11f   : > { %1606 = vmatpush.bf16.msra.mxu0 %v6698_v16  ;;  %v6654_v41 = vor.u32 %v8072_v37, %v6651_v38  ;;  %v8070_v43 = vld [vmem:[#allocation3 + $0x8] sm:$0xf0]  ;;  %v8069_v44 = vld [vmem:[#allocation3 + $0x4] sm:$0xf]  ;;  %v6639_v45 = vld [vmem:[#allocation3 + $0xc] sm:$0xf0] }
 0x120   : > { %1619 = vmatpush.bf16.msra.mxu1 %v6702_v17  ;;  %v6638_v46 = vor.u32 %v8070_v43, %v6637_v42  ;;  %v9700_v47 = vld [vmem:[%s1428_s2] sm:$0xff]  ;;  %v6642_v48 = vor.u32 %v8069_v44, %v6639_v45  ;;  %v6729_v50 = vld [vmem:[#allocation3 + $0xb0] sm:$0xf]  ;;  %s10289_s15 = smov 32   ;;  %s10287_s27 = smov 64   ;;  %vm1667_vm1 = vcmask 64512  }
 0x121   : > { %v1467_v49 = vpack.c.bf16 %v9700_v47, %v9700_v47  ;;  %v8092_v51 = vld [vmem:[#allocation3 + $0xb8] sm:$0xf0]  ;;  %v9705_v53 = vld [vmem:[%s9274_s21] sm:$0x7]  ;;  %v8089_v2 = vld [vmem:[#allocation3 + $0xa0] sm:$0xf0] }
 0x122   : > { %v6730_v52 = vor.u32 %v8092_v51, %v6729_v50  ;;  %v1470_v54 = vperm.slane %v9705_v53, 0  ;;  %v1471_v55 = vperm.slane %v9705_v53, 1  ;;  %v6717_v1 = vld [vmem:[#allocation3 + $0x98] sm:$0xf]  ;;  %v6705_v4 = vld [vmem:[#allocation3 + $0x80] sm:$0xf] }
 0x123   : > { %1607 = vmatpush.bf16.msra.mxu0 %v6686_v24  ;;  %v6718_v3 = vor.u32 %v8089_v2, %v6717_v1  ;;  %v8086_v5 = vld [vmem:[#allocation3 + $0x88] sm:$0xf0]  ;;  %v6693_v7 = vld [vmem:[#allocation3 + $0x68] sm:$0xf]  ;;  %v8083_v8 = vld [vmem:[#allocation3 + $0x70] sm:$0xf0] }
 0x124   : > { %1620 = vmatpush.bf16.msra.mxu1 %v6690_v26  ;;  %1630 = vmatpush.bf16.msra.mxu2 %v6730_v52  ;;  %v6706_v6 = vor.u32 %v8086_v5, %v6705_v4  ;;  %v6694_v9 = vor.u32 %v8083_v8, %v6693_v7  ;;  %v6681_v10 = vld [vmem:[#allocation3 + $0x50] sm:$0xf]  ;;  %v8080_v11 = vld [vmem:[#allocation3 + $0x58] sm:$0xf0]  ;;  %v6669_v13 = vld [vmem:[#allocation3 + $0x38] sm:$0xf] }
 0x125   : > { %v6682_v12 = vor.u32 %v8080_v11, %v6681_v10  ;;  %v8077_v14 = vld [vmem:[#allocation3 + $0x40] sm:$0xf0]  ;;  %v6657_v16 = vld [vmem:[#allocation3 + $0x20] sm:$0xf]  ;;  %v8074_v17 = vld [vmem:[#allocation3 + $0x28] sm:$0xf0] }
 0x126   : > { %v6670_v15 = vor.u32 %v8077_v14, %v6669_v13  ;;  %v6658_v18 = vor.u32 %v8074_v17, %v6657_v16  ;;  %v6645_v19 = vld [vmem:[#allocation3 + $0x8] sm:$0xf]  ;;  %v8071_v20 = vld [vmem:[#allocation3 + $0x10] sm:$0xf0]  ;;  %v1472_v31 = vperm.slane %v9705_v53, 2  ;;  %vm1681_vm2 = vcmask 1043456  }
 0x127   : > { %1608 = vmatpush.bf16.msra.mxu0 %v6674_v30  ;;  %v6646_v21 = vor.u32 %v8071_v20, %v6645_v19  ;;  %vm1765_vm3 = vcmask 523520   ;;  %vm1828_vm4 = vcmask 785920   ;;  %vm1891_vm5 = vcmask 1048320   ;;  %s10366_s16 = sld [smem:[#allocation34_spill]] }
 0x128   : > { %1621 = vmatpush.bf16.msra.mxu1 %v6678_v33  ;;  %1631 = vmatpush.bf16.msra.mxu2 %v6718_v3  ;;  %s10367_s18 = sld [smem:[#allocation35_spill]] }
 0x129   : > { %s10368_s28 = sld [smem:[#allocation37_spill]] }
 0x12a   : > { %s10369_s6 = sld [smem:[#allocation38_spill]] }
 0x12b   : > { %1609 = vmatpush.bf16.msra.mxu0 %v6662_v36  ;;  %s10370_s22 = sld [smem:[#allocation39_spill]] }
 0x12c   : > { %1622 = vmatpush.bf16.msra.mxu1 %v6666_v39  ;;  %1632 = vmatpush.bf16.msra.mxu2 %v6706_v6  ;;  %s10371_s23 = sld [smem:[#allocation40_spill]] }
 0x12d   : > { %s10372_s1 = sld [smem:[#allocation30_spill]] }
 0x12e   : > { %s10373_s3 = sld [smem:[#allocation44_spill]] }
 0x12f   : > { %1610 = vmatpush.bf16.msra.mxu0 %v6650_v40  ;;  %s10374_s11 = sld [smem:[#allocation31_spill]] }
 0x130   : > { %1623 = vmatpush.bf16.msra.mxu1 %v6654_v41  ;;  %1633 = vmatpush.bf16.msra.mxu2 %v6694_v9  ;;  %s10376_s7 = sld [smem:[#allocation45_spill]] }
 0x133   : > { %1611 = vmatpush.bf16.msra.mxu0 %v6638_v46  ;;  %s1432_s4 = scalar_lea.vmem %s10372_s1, %s6633_s26  ;;  %s10378_s1 = sld [smem:[#allocation41_spill]] }
 0x134   : > { %1624 = vmatpush.bf16.msra.mxu1 %v6642_v48  ;;  %1634 = vmatpush.bf16.msra.mxu2 %v6682_v12 }
 0x135   : > { %s10375_s26 = smov %s10374_s11 }
 0x136   : > { %1612 = vmatmul.bf16.vlgmr.msra.gmra.mxu0 %v1467_v49  ;;  %s10377_s2 = smov %s10376_s7 }
 0x137   : > { %1625 = vmatmul.bf16.vlgmr.msra.gmra.mxu1 %v1467_v49 }
 0x138   : > { %1635 = vmatpush.bf16.msra.mxu2 %v6670_v15 }
 0x13c   : > { %1636 = vmatpush.bf16.msra.mxu2 %v6658_v18 }
 0x140   : > { %1637 = vmatpush.bf16.msra.mxu2 %v6646_v21 }
 0x143   : > { %1638 = vmatmul.bf16.vlgmr.msra.gmra.mxu2 %v1467_v49 }
 0x1b3   : > { %v1613_v56 = vpop.f32.mrf.mxu0 }
 0x1b4   : > { %v1614_v57 = vadd.f32 %v1613_v56, %v1470_v54  ;;  %v1626_v58 = vpop.f32.mrf.mxu1 }
 0x1b5   : > { %v1627_v59 = vadd.f32 %v1626_v58, %v1471_v55 }
 0x1b6   : > { %v1643_v60 = vpack.c.bf16 %v1614_v57, %v1614_v57 }
 0x1b7   : > { %v1644_v61 = vpack.c.bf16 %v1627_v59, %v1627_v59 }
 0x1b8   : > { %1702 = vrot.lane.b32.xlu1 %v1643_v60, %s10285_s25 }
 0x1b9   : > { %1832 = vrot.lane.b32.xlu2 %v1644_v61, %s10289_s15  ;;  %v1651_v62 = vsel %vm1646_vm0, %v1644_v61, 0 }
 0x1ba   : > { %1660 = vmatpush.bf16.xpose.msrb.mxu0 %v1651_v62 }
 0x1bb   : > { %v1615_v63 = vpop.f32.mrf.mxu0 }
 0x1bc   : > { %v1628_v0 = vpop.f32.mrf.mxu1 }
 0x1c0   : > { %1769 = vrot.lane.b32.xlu1 %v1644_v61, %s10287_s27 }
 0x1c1   : > { %1767 = vrot.lane.b32.xlu2 %v1643_v60, %s10287_s27  ;;  %6731 = vmatmul.msk.bf16.vlgmr.msrb.gmra.mxu0 %vm1646_vm0, %v1643_v60 }
 0x1c6   : > { %v1639_v32 = vpop.f32.mrf.mxu2 }
 0x1c7   : > { %v1640_v33 = vadd.f32 %v1639_v32, %v1472_v31 }
 0x1c8   : > { %1830 = vrot.lane.b32.xlu1 %v1643_v60, %s10289_s15 }
 0x1c9   : > { %v1645_v34 = vpack.c.bf16 %v1640_v33, %v1640_v33 }
 0x1cb   : > { %v1683_v36 = vsel %vm1681_vm2, %v1645_v34, 0 }
 0x1cc   : > { %1692 = vmatpush.bf16.msra.mxu3 %v1683_v36 }
 0x1ce   : > { %v1641_v35 = vpop.f32.mrf.mxu2 }
 0x1cf   : > { %v8099_v35 = vld [vmem:[#allocation6 + $0x30] sm:$0xff] }
 0x213   : > { %v1833_v23 = vpop.permute.xlu2 %1832 }
 0x214   : > { %v1838_v49 = vsel %vm1646_vm0, %v1833_v23, 0 }
 0x21b   : > { %v1768_v26 = vpop.permute.xlu2 %1767 }
 0x22a   : > { %v1703_v22 = vpop.permute.xlu1 %1702 }
 0x232   : > { %v1770_v24 = vpop.permute.xlu1 %1769 }
 0x233   : > { %v1775_v25 = vsel %vm1646_vm0, %v1770_v24, 0 }
 0x234   : > { %1784 = vmatpush.bf16.xpose.msrb.mxu1 %v1775_v25 }
 0x23a   : > { %v1831_v50 = vpop.permute.xlu1 %1830 }
 0x23b   : > { %6735 = vmatmul.msk.bf16.vlgmr.msrb.gmra.mxu1 %vm1646_vm0, %v1768_v26 }
 0x23e   : > { %v1662_v27 = vpop.f32.mrf.mxu0 }
 0x23f   : > { %v1666_v28 = vmul.f32 0.17677669, %v1662_v27 }
 0x241   : > { %v1668_v29 = vsel %vm1667_vm1, %v1666_v28, -inf }
 0x242   : > { %1669 = vmax.xlane.f32.xlu0 %v1668_v29 }
 0x246   : > { %v1664_v30 = vpop.f32.mrf.mxu0 }
 0x256   : > { %1705 = vrot.lane.b32.xlu0 %v1644_v61, %s10285_s25 }
 0x25e   : > { %1738 = vrot.lane.b32.xlu0 %v1645_v34, %s10285_s25 }
 0x2b5   : > { %v1670_v37 = vpop.xlane.xlu0 %1669 }
 0x2b6   : > { %v1671_v38 = vsub.f32 %v1666_v28, %v1670_v37  ;;  %v8098_v37 = vld [vmem:[#allocation6 + $0x28] sm:$0xff] }
 0x2b8   : > { %v1672_v39 = vmul.f32 1.442695, %v1671_v38  ;;  %v1786_v40 = vpop.f32.mrf.mxu1  ;;  %v8097_v38 = vld [vmem:[#allocation6 + $0x20] sm:$0xff] }
 0x2b9   : > { %v1790_v41 = vmul.f32 0.17677669, %v1786_v40 }
 0x2ba   : > { %8643 = vpow2.f32 %v1672_v39 }
 0x2bb   : > { %v1791_v42 = vsel %vm1667_vm1, %v1790_v41, -inf }
 0x2bc   : > { %1792 = vmax.xlane.f32.xlu1 %v1791_v42 }
 0x2c0   : > { %v8644_v43 = vpop.eup %8643  ;;  %v1788_v44 = vpop.f32.mrf.mxu1 }
 0x2c1   : > { %v1677_v45 = vpack.c.bf16 %v8644_v43, %v8644_v43  ;;  %v1674_v51 = vsel %vm1667_vm1, %v8644_v43, 0.0 }
 0x2c3   : > { %6732 = vmatmul.msk.bf16.vlgmr.msra.gmra.mxu3 %vm1667_vm1, %v1677_v45  ;;  %v8096_v45 = vld [vmem:[#allocation6 + $0x18] sm:$0xff] }
 0x2c8   : > { %v1706_v46 = vpop.permute.xlu0 %1705 }
 0x2c9   : > { %v1711_v48 = vsel %vm1646_vm0, %v1706_v46, 0  ;;  %v8095_v46 = vld [vmem:[#allocation6 + $0x10] sm:$0xff] }
 0x2ca   : > { %1720 = vmatpush.bf16.xpose.msrb.mxu3 %v1711_v48  ;;  %v8094_v48 = vld [vmem:[#allocation6 + $0x8] sm:$0xff] }
 0x2d0   : > { %v1739_v52 = vpop.permute.xlu0 %1738 }
 0x2d1   : > { %v1744_v53 = vsel %vm1681_vm2, %v1739_v52, 0 }
 0x2d2   : > { %1847 = vmatpush.bf16.xpose.msra.mxu3 %v1838_v49  ;;  %1753 = vmatpush.bf16.msra.mxu0 %v1744_v53  ;;  %v8093_v49 = vld [vmem:[#allocation6] sm:$0xff] }
 0x2d3   : > { %6733 = vmatmul.msk.bf16.vlgmr.msrb.gmra.mxu3 %vm1646_vm0, %v1703_v22 }
 0x2d5   : > { %1864 = vrot.lane.b32.xlu1 %v1645_v34, %s10289_s15 }
 0x2e3   : > { %6737 = vmatmul.msk.bf16.vlgmr.msra.gmra.mxu3 %vm1646_vm0, %v1831_v50 }
 0x2ff   : > { %1675 = vadd.xlane.f32.xlu1 %v1674_v51 }
 0x32f   : > { %v1793_v54 = vpop.xlane.xlu1 %1792 }
 0x330   : > { %v1794_v6 = vsub.f32 %v1790_v41, %v1793_v54  ;;  %v8607_v54 = vld [vmem:[%s9284_s29] ss:$0 sm:$0xff] }
 0x332   : > { %v1795_v7 = vmul.f32 1.442695, %v1794_v6 }
 0x346   : > { %v1694_v55 = vpop.f32.mrf.mxu3 }
 0x347   : > { %v1865_v56 = vpop.permute.xlu1 %1864 }
 0x348   : > { %v1870_v57 = vsel %vm1681_vm2, %v1865_v56, 0 }
 0x349   : > { %1879 = vmatpush.bf16.msrb.mxu0 %v1870_v57 }
 0x34e   : > { %v1696_v58 = vpop.f32.mrf.mxu3 }
 0x356   : > { %v1722_v59 = vpop.f32.mrf.mxu3 }
 0x357   : > { %v1726_v60 = vmul.f32 0.17677669, %v1722_v59  ;;  %v9245_v59 = vmov 128.0  }
 0x359   : > { %v1727_v61 = vsel %vm1667_vm1, %v1726_v60, -inf }
 0x35a   : > { %1728 = vmax.xlane.f32.xlu2 %v1727_v61  ;;  %v8116_v61 = vld [vmem:[%s10342_s14 + $0x74] sm:$0xf0] }
 0x35e   : > { %v1724_v62 = vpop.f32.mrf.mxu3 }
 0x35f   : > { %v8115_v62 = vld [vmem:[%s10342_s14 + $0x74] sm:$0xf] }
 0x366   : > { %v1849_v63 = vpop.f32.mrf.mxu3 }
 0x367   : > { %v1853_v0 = vmul.f32 0.17677669, %v1849_v63 }
 0x369   : > { %v1854_v1 = vsel %vm1667_vm1, %v1853_v0, -inf }
 0x36a   : > { %1855 = vmax.xlane.f32.xlu0 %v1854_v1 }
 0x36e   : > { %v1851_v2 = vpop.f32.mrf.mxu3 }
 0x372   : > { %1801 = vrot.lane.b32.xlu2 %v1645_v34, %s10287_s27  ;;  %v1676_v3 = vpop.xlane.xlu1 %1675  ;;  %v8100_v34 = vld [vmem:[#allocation6 + $0x38] sm:$0xff] }
 0x373   : > { %8645 = vrcp.f32 %v1676_v3  ;;  %1963 = vmatpush.bf16.msra.mxu1 %v8100_v34 }
 0x374   : > { %8647 = vpow2.f32 %v1795_v7 }
 0x377   : > { %1964 = vmatpush.bf16.msra.mxu1 %v8099_v35  ;;  %v6789_v35 = vld [vmem:[%s10342_s14 + $0x20] sm:$0xf] }
 0x379   : > { %v8646_v4 = vpop.eup %8645 }
 0x37a   : > { %v1699_v5 = vmul.f32 %v8646_v4, %v1694_v55  ;;  %v8648_v8 = vpop.eup %8647 }
 0x37b   : > { %v1797_v9 = vsel %vm1667_vm1, %v8648_v8, 0.0  ;;  %v1800_v16 = vpack.c.bf16 %v8648_v8, %v8648_v8  ;;  %1965 = vmatpush.bf16.msra.mxu1 %v8098_v37  ;;  %v8105_v37 = vld [vmem:[%s10342_s14 + $0x24] sm:$0xf] }
 0x37c   : > { %1700 = vst.msk [vmem:[#allocation2] sm:$0xff] %vm1646_vm0, %v1699_v5 }
 0x37f   : > { %1966 = vmatpush.bf16.msra.mxu1 %v8097_v38 }
 0x383   : > { %1967 = vmatpush.bf16.msra.mxu1 %v8096_v45  ;;  %v6783_v45 = vld [vmem:[%s10342_s14 + $0x18] sm:$0xf0] }
 0x387   : > { %1968 = vmatpush.bf16.msra.mxu1 %v8095_v46 }
 0x38b   : > { %1969 = vmatpush.bf16.msra.mxu1 %v8094_v48  ;;  %v6773_v48 = vld [vmem:[%s10342_s14] sm:$0xf] }
 0x38f   : > { %1970 = vmatpush.bf16.msra.mxu1 %v8093_v49  ;;  %v8102_v49 = vld [vmem:[%s10342_s14 + $0x4] sm:$0xf0] }
 0x39b   : > { %1798 = vadd.xlane.f32.xlu2 %v1797_v9 }
 0x3cd   : > { %v1729_v10 = vpop.xlane.xlu2 %1728 }
 0x3ce   : > { %v1730_v11 = vsub.f32 %v1726_v60, %v1729_v10  ;;  %v6829_v60 = vld [vmem:[%s10342_s14 + $0x70] sm:$0xf] }
 0x3cf   : > { %v6830_v63 = vor.u32 %v8116_v61, %v6829_v60  ;;  %v8122_v61 = vld [vmem:[#allocation8 + $0x28] sm:$0xff] }
 0x3d0   : > { %v1731_v12 = vmul.f32 1.442695, %v1730_v11  ;;  %v6821_v11 = vld [vmem:[%s10342_s14 + $0x60] sm:$0xf] }
 0x3d2   : > { %8649 = vpow2.f32 %v1731_v12  ;;  %v8114_v12 = vld [vmem:[%s10342_s14 + $0x64] sm:$0xf0] }
 0x3d5   : > { %v1802_v13 = vpop.permute.xlu2 %1801 }
 0x3d6   : > { %v1807_v14 = vsel %vm1681_vm2, %v1802_v13, 0  ;;  %v8113_v13 = vld [vmem:[%s10342_s14 + $0x64] sm:$0xf] }
 0x3d7   : > { %1816 = vmatpush.bf16.msrb.mxu2 %v1807_v14  ;;  %v6822_v14 = vor.u32 %v8114_v12, %v6821_v11  ;;  %v8608_v12 = vld [vmem:[%s10366_s16] ss:$0 sm:$0xff] }
 0x3d8   : > { %v8650_v15 = vpop.eup %8649 }
 0x3d9   : > { %v1736_v17 = vpack.c.bf16 %v8650_v15, %v8650_v15  ;;  %v1733_v32 = vsel %vm1667_vm1, %v8650_v15, 0.0  ;;  %v6823_v15 = vld [vmem:[%s10342_s14 + $0x68] sm:$0xf0] }
 0x3da   : > { %6736 = vmatmul.msk.bf16.vlgmr.msrb.gmra.mxu2 %vm1667_vm1, %v1800_v16  ;;  %v6826_v16 = vor.u32 %v8113_v13, %v6823_v15  ;;  %v8609_v15 = vld [vmem:[%s10367_s18] ss:$0 sm:$0xff] }
 0x3db   : > { %6734 = vmatmul.msk.bf16.vlgmr.msra.gmra.mxu0 %vm1667_vm1, %v1736_v17  ;;  %2117 = vmatpush.bf16.msra.mxu2 %v6830_v63  ;;  %v6813_v17 = vld [vmem:[%s10342_s14 + $0x50] sm:$0xf]  ;;  %v8121_v63 = vld [vmem:[#allocation8 + $0x20] sm:$0xff] }
 0x3dd   : > { %v1856_v18 = vpop.xlane.xlu0 %1855 }
 0x3de   : > { %v1857_v19 = vsub.f32 %v1853_v0, %v1856_v18  ;;  %v6831_v0 = vld [vmem:[%s10342_s14 + $0x78] sm:$0xf0]  ;;  %v8112_v18 = vld [vmem:[%s10342_s14 + $0x54] sm:$0xf0] }
 0x3df   : > { %v6834_v1 = vor.u32 %v8115_v62, %v6831_v0  ;;  %2118 = vmatpush.bf16.msra.mxu2 %v6822_v14  ;;  %v8130_v62 = vld [vmem:[#allocation8 + $0x68] sm:$0xff]  ;;  %v8129_v0 = vld [vmem:[#allocation8 + $0x60] sm:$0xff] }
 0x3e0   : > { %v1858_v20 = vmul.f32 1.442695, %v1857_v19  ;;  %v8111_v19 = vld [vmem:[%s10342_s14 + $0x54] sm:$0xf] }
 0x3e1   : > { %2130 = vmatpush.bf16.msrb.mxu3 %v6834_v1 }
 0x3e2   : > { %8651 = vpow2.f32 %v1858_v20  ;;  %v6814_v20 = vor.u32 %v8112_v18, %v6813_v17 }
 0x3e4   : > { %2119 = vmatpush.bf16.msra.mxu2 %v6814_v20  ;;  %v8126_v20 = vld [vmem:[#allocation8 + $0x48] sm:$0xff] }
 0x3e5   : > { %2131 = vmatpush.bf16.msrb.mxu3 %v6826_v16 }
 0x3e8   : > { %v8652_v21 = vpop.eup %8651 }
 0x3e9   : > { %v1863_v22 = vpack.c.bf16 %v8652_v21, %v8652_v21  ;;  %v1860_v33 = vsel %vm1667_vm1, %v8652_v21, 0.0  ;;  %v6815_v21 = vld [vmem:[%s10342_s14 + $0x58] sm:$0xf0] }
 0x3eb   : > { %6738 = vmatmul.msk.bf16.vlgmr.msrb.gmra.mxu0 %vm1667_vm1, %v1863_v22  ;;  %v6818_v22 = vor.u32 %v8111_v19, %v6815_v21  ;;  %v8118_v19 = vld [vmem:[#allocation8 + $0x8] sm:$0xff]  ;;  %v8117_v21 = vld [vmem:[#allocation8] sm:$0xff] }
 0x3ed   : > { %2132 = vmatpush.bf16.msrb.mxu3 %v6818_v22  ;;  %v8125_v22 = vld [vmem:[#allocation8 + $0x40] sm:$0xff] }
 0x40e   : > { %v1799_v23 = vpop.xlane.xlu2 %1798 }
 0x40f   : > { %8653 = vrcp.f32 %v1799_v23  ;;  %v6805_v23 = vld [vmem:[%s10342_s14 + $0x40] sm:$0xf] }
 0x415   : > { %v8654_v25 = vpop.eup %8653 }
 0x458   : > { %v1755_v24 = vpop.f32.mrf.mxu0 }
 0x45d   : > { %v1818_v26 = vpop.f32.mrf.mxu2 }
 0x45e   : > { %v1823_v27 = vmul.f32 %v8654_v25, %v1818_v26  ;;  %v8109_v25 = vld [vmem:[%s10342_s14 + $0x44] sm:$0xf] }
 0x460   : > { %1825 = vrot.lane.b32.xlu0 %v1823_v27, %s10287_s27  ;;  %v1757_v28 = vpop.f32.mrf.mxu0  ;;  %v6807_v27 = vld [vmem:[%s10342_s14 + $0x48] sm:$0xf0] }
 0x461   : > { %v6810_v28 = vor.u32 %v8109_v25, %v6807_v27 }
 0x463   : > { %2133 = vmatpush.bf16.msrb.mxu3 %v6810_v28 }
 0x465   : > { %v1820_v29 = vpop.f32.mrf.mxu2 }
 0x466   : > { %v6797_v29 = vld [vmem:[%s10342_s14 + $0x30] sm:$0xf] }
 0x468   : > { %v1881_v30 = vpop.f32.mrf.mxu0 }
 0x470   : > { %v1883_v31 = vpop.f32.mrf.mxu0 }
 0x471   : > { %v8107_v31 = vld [vmem:[%s10342_s14 + $0x34] sm:$0xf] }
 0x48a   : > { %1734 = vadd.xlane.f32.xlu0 %v1733_v32 }
 0x492   : > { %1861 = vadd.xlane.f32.xlu0 %v1860_v33  ;;  %v6799_v33 = vld [vmem:[%s10342_s14 + $0x38] sm:$0xf0] }
 0x493   : > { %v6802_v34 = vor.u32 %v8107_v31, %v6799_v33 }
 0x495   : > { %2134 = vmatpush.bf16.msrb.mxu3 %v6802_v34 }
 0x4d2   : > { %v1826_v36 = vpop.permute.xlu0 %1825 }
 0x4fd   : > { %v1735_v39 = vpop.xlane.xlu0 %1734 }
 0x4fe   : > { %8655 = vrcp.f32 %v1735_v39  ;;  %v6791_v39 = vld [vmem:[%s10342_s14 + $0x28] sm:$0xf0] }
 0x504   : > { %v8656_v40 = vpop.eup %8655 }
 0x505   : > { %v1862_v41 = vpop.xlane.xlu0 %1861  ;;  %v1760_v42 = vmul.f32 %v8656_v40, %v1755_v24  ;;  %v8110_v24 = vld [vmem:[%s10342_s14 + $0x44] sm:$0xf0]  ;;  %v6794_v40 = vor.u32 %v8105_v37, %v6791_v39 }
 0x506   : > { %8657 = vrcp.f32 %v1862_v41  ;;  %v6806_v26 = vor.u32 %v8110_v24, %v6805_v23  ;;  %v6781_v41 = vld [vmem:[%s10342_s14 + $0x10] sm:$0xf]  ;;  %v2031_v23 = vld [vmem:[%s10368_s28] sm:$0x3] }
 0x507   : > { %1762 = vrot.lane.b32.xlu0 %v1760_v42, %s10289_s15  ;;  %8659 = vrcp.f32 %v9245_v59  ;;  %2135 = vmatpush.bf16.msrb.mxu3 %v6794_v40  ;;  %v8104_v42 = vld [vmem:[%s10342_s14 + $0x14] sm:$0xf0]  ;;  %v2033_v24 = vperm.slane %v2031_v23, 0  ;;  %v2034_v25 = vperm.slane %v2031_v23, 1  ;;  %v8142_v23 = vld [vmem:[#allocation3 + $0x10c] sm:$0xf] }
 0x508   : > { %2120 = vmatpush.bf16.msra.mxu2 %v6806_v26  ;;  %v8131_v59 = vld [vmem:[#allocation8 + $0x70] sm:$0xff] }
 0x50c   : > { %v8658_v43 = vpop.eup %8657 }
 0x50d   : > { %v1886_v44 = vmul.f32 %v8658_v43, %v1881_v30  ;;  %v8660_v2 = vpop.eup %8659  ;;  %v8108_v30 = vld [vmem:[%s10342_s14 + $0x34] sm:$0xf0]  ;;  %v8103_v43 = vld [vmem:[%s10342_s14 + $0x14] sm:$0xf] }
 0x50e   : > { %v1982_v3 = vmul.f32 128.0, %v8660_v2  ;;  %vm1986_vm6 = vweird.f32 %v8660_v2  ;;  %v6798_v32 = vor.u32 %v8108_v30, %v6797_v29  ;;  %v6786_v46 = vor.u32 %v8103_v43, %v6783_v45  ;;  %v6986_v43 = vld [vmem:[#allocation3 + $0x168] sm:$0xf]  ;;  %v8154_v45 = vld [vmem:[#allocation3 + $0x16c] sm:$0xf] }
 0x50f   : > { %1888 = vrot.lane.b32.xlu0 %v1886_v44, %s10285_s25  ;;  %v6782_v44 = vor.u32 %v8104_v42, %v6781_v41 }
 0x510   : > { %v1983_v4 = vsub.f32 1.0, %v1982_v3  ;;  %2121 = vmatpush.bf16.msra.mxu2 %v6798_v32  ;;  %2136 = vmatpush.bf16.msrb.mxu3 %v6786_v46  ;;  %v8120_v3 = vld [vmem:[#allocation8 + $0x18] sm:$0xff] }
 0x579   : > { %v1763_v50 = vpop.permute.xlu0 %1762 }
 0x57a   : > { %1766 = vst.msk [vmem:[#allocation2] sm:$0xff] %vm1765_vm3, %v1763_v50  ;;  %v8101_v50 = vld [vmem:[%s10342_s14 + $0x4] sm:$0xf] }
 0x57b   : > { %1829 = vst.msk [vmem:[#allocation2] sm:$0xff] %vm1828_vm4, %v1826_v36  ;;  %v8106_v36 = vld [vmem:[%s10342_s14 + $0x24] sm:$0xf0] }
 0x57c   : > { %v6790_v38 = vor.u32 %v8106_v36, %v6789_v35  ;;  %v8610_v35 = vld [vmem:[%s10369_s6] ss:$0 sm:$0xff] }
 0x57e   : > { %2122 = vmatpush.bf16.msra.mxu2 %v6790_v38 }
 0x581   : > { %v1889_v51 = vpop.permute.xlu0 %1888 }
 0x582   : > { %1892 = vst.msk [vmem:[#allocation2] sm:$0xff] %vm1891_vm5, %v1889_v51  ;;  %2123 = vmatpush.bf16.msra.mxu2 %v6782_v44  ;;  %v6774_v51 = vor.u32 %v8102_v49, %v6773_v48  ;;  %v8155_v44 = vld [vmem:[#allocation3 + $0x170] sm:$0xf0]  ;;  %v6988_v48 = vld [vmem:[#allocation3 + $0x174] sm:$0xf0] }
 0x583   : > { %v6987_v46 = vor.u32 %v8155_v44, %v6986_v43  ;;  %v6994_v49 = vld [vmem:[#allocation3 + $0x170] sm:$0xf]  ;;  %v6922_v43 = vld [vmem:[#allocation3 + $0xe0] sm:$0xf]  ;;  %v8138_v44 = vld [vmem:[#allocation3 + $0xe8] sm:$0xf0] }
 0x586   : > { %2124 = vmatpush.bf16.msra.mxu2 %v6774_v51  ;;  %v6991_v51 = vor.u32 %v8154_v45, %v6988_v48  ;;  %v6902_v48 = vld [vmem:[#allocation3 + $0xc0] sm:$0xf] }
 0x589   : > { %v1893_v52 = vld [vmem:[#allocation2] sm:$0xff] }
 0x58a   : > { %v1910_v53 = vpack.c.bf16 %v1893_v52, %v1893_v52  ;;  %v6775_v52 = vld [vmem:[%s10342_s14 + $0x8] sm:$0xf0]  ;;  %2507 = vmatpush.bf16.msrb.mxu2 %v6987_v46  ;;  %v6923_v46 = vor.u32 %v8138_v44, %v6922_v43 }
 0x58c   : > { %1971 = vmatmul.bf16.vlgmr.msra.gmra.mxu1 %v1910_v53  ;;  %v6778_v53 = vor.u32 %v8101_v50, %v6775_v52  ;;  %v8156_v50 = vld [vmem:[#allocation3 + $0x178] sm:$0xf0] }
 0x58d   : > { %v6995_v52 = vor.u32 %v8156_v50, %v6994_v49  ;;  %v8134_v49 = vld [vmem:[#allocation3 + $0xc8] sm:$0xf0]  ;;  %v8133_v50 = vld [vmem:[#allocation3 + $0xc4] sm:$0xf] }
 0x58e   : > { %2137 = vmatpush.bf16.msrb.mxu3 %v6778_v53 }
 0x592   : > { %2520 = vmatpush.bf16.msra.mxu3 %v6991_v51  ;;  %v6903_v51 = vor.u32 %v8134_v49, %v6902_v48 }
 0x609   : > { %v1972_v55 = vpop.f32.mrf.mxu1 }
 0x60a   : > { %v1973_v56 = vadd.f32 %v8607_v54, %v1972_v55  ;;  %v8124_v54 = vld [vmem:[#allocation8 + $0x38] sm:$0xff] }
 0x60b   : > { %v8132_v55 = vld [vmem:[#allocation8 + $0x78] sm:$0xff]  ;;  %2279 = vmatpush.bf16.msra.mxu0 %v8124_v54 }
 0x60c   : > { %v1976_v57 = vadd.f32 %v1973_v56, %v9700_v47  ;;  %v1984_v47 = vmul.f32 %v8660_v2, %v1983_v4  ;;  %2292 = vmatpush.bf16.msrb.mxu1 %v8132_v55  ;;  %v8128_v4 = vld [vmem:[#allocation8 + $0x58] sm:$0xff] }
 0x60e   : > { %1979 = vadd.xlane.f32.xlu2 %v1976_v57  ;;  %v1985_v5 = vadd.f32 %v8660_v2, %v1984_v47 }
 0x610   : > { %v9756_v6 = vsel %vm1986_vm6, %v8660_v2, %v1985_v5  ;;  %2293 = vmatpush.bf16.msrb.mxu1 %v8131_v59  ;;  %v8151_v59 = vld [vmem:[#allocation3 + $0x154] sm:$0xf] }
 0x611   : > { %v1974_v58 = vpop.f32.mrf.mxu1 }
 0x612   : > { %v8123_v58 = vld [vmem:[#allocation8 + $0x30] sm:$0xff] }
 0x613   : > { %2280 = vmatpush.bf16.msra.mxu0 %v8123_v58  ;;  %v8152_v58 = vld [vmem:[#allocation3 + $0x158] sm:$0xf0] }
 0x614   : > { %2294 = vmatpush.bf16.msrb.mxu1 %v8130_v62  ;;  %v6982_v62 = vld [vmem:[#allocation3 + $0x158] sm:$0xf] }
 0x617   : > { %2281 = vmatpush.bf16.msra.mxu0 %v8122_v61  ;;  %v6976_v61 = vld [vmem:[#allocation3 + $0x15c] sm:$0xf0] }
 0x618   : > { %2295 = vmatpush.bf16.msrb.mxu1 %v8129_v0  ;;  %v6979_v0 = vor.u32 %v8151_v59, %v6976_v61 }
 0x61a   : > { %2521 = vmatpush.bf16.msra.mxu3 %v6979_v0 }
 0x61b   : > { %2282 = vmatpush.bf16.msra.mxu0 %v8121_v63  ;;  %v8153_v63 = vld [vmem:[#allocation3 + $0x160] sm:$0xf0] }
 0x61c   : > { %2296 = vmatpush.bf16.msrb.mxu1 %v8128_v4  ;;  %v8148_v4 = vld [vmem:[#allocation3 + $0x13c] sm:$0xf] }
 0x61f   : > { %2283 = vmatpush.bf16.msra.mxu0 %v8120_v3  ;;  %v8149_v3 = vld [vmem:[#allocation3 + $0x140] sm:$0xf0] }
 0x681   : > { %v1980_v7 = vpop.xlane.xlu2 %1979 }
 0x682   : > { %v1988_v8 = vmul.f32 %v9756_v6, %v1980_v7  ;;  %v8119_v7 = vld [vmem:[#allocation8 + $0x10] sm:$0xff] }
 0x683   : > { %2284 = vmatpush.bf16.msra.mxu0 %v8119_v7  ;;  %v6970_v7 = vld [vmem:[#allocation3 + $0x140] sm:$0xf] }
 0x684   : > { %v9759_v9 = vsub.f32 %v1976_v57, %v1988_v8  ;;  %v8127_v8 = vld [vmem:[#allocation8 + $0x50] sm:$0xff] }
 0x685   : > { %2297 = vmatpush.bf16.msrb.mxu1 %v8127_v8  ;;  %v8150_v8 = vld [vmem:[#allocation3 + $0x148] sm:$0xf0] }
 0x686   : > { %v1990_v10 = vmul.f32 %v9759_v9, %v9759_v9 }
 0x687   : > { %2285 = vmatpush.bf16.msra.mxu0 %v8118_v19 }
 0x688   : > { %1991 = vadd.xlane.f32.xlu0 %v1990_v10 }
 0x689   : > { %2298 = vmatpush.bf16.msrb.mxu1 %v8126_v20 }
 0x68b   : > { %2286 = vmatpush.bf16.msra.mxu0 %v8117_v21  ;;  %v6938_v21 = vld [vmem:[#allocation3 + $0x108] sm:$0xf] }
 0x68d   : > { %2299 = vmatpush.bf16.msrb.mxu1 %v8125_v22  ;;  %v8143_v22 = vld [vmem:[#allocation3 + $0x110] sm:$0xf0] }
 0x68f   : > { %2533 = vmatpush.bf16.msrb.mxu0 %v6995_v52  ;;  %v6904_v52 = vld [vmem:[#allocation3 + $0xcc] sm:$0xf0] }
 0x6fb   : > { %v1992_v56 = vpop.xlane.xlu0 %1991 }
 0x6fc   : > { %v1993_v57 = vmul.f32 %v1992_v56, %v9756_v6 }
 0x6fe   : > { %v1994_v60 = vadd.f32 1e-05, %v1993_v57  ;;  %v6974_v57 = vld [vmem:[#allocation3 + $0x150] sm:$0xf] }
 0x700   : > { %8661 = vrsqrt.f32 %v1994_v60  ;;  %vm2001_vm8 = vweird.f32 %v1994_v60 }
 0x706   : > { %v8662_v1 = vpop.eup %8661 }
 0x707   : > { %v1996_v2 = vmul.f32 %v8662_v1, %v1994_v60  ;;  %vm2002_vm7 = vweird.f32 %v8662_v1  ;;  %v6975_v60 = vor.u32 %v8152_v58, %v6974_v57 }
 0x708   : > { %vm2003_vm9 = vmor %vm2001_vm8, %vm2002_vm7 }
 0x709   : > { %v1997_v47 = vmul.f32 %v8662_v1, %v1996_v2  ;;  %2508 = vmatpush.bf16.msrb.mxu2 %v6975_v60  ;;  %v6962_v2 = vld [vmem:[#allocation3 + $0x138] sm:$0xf] }
 0x70b   : > { %v1998_v5 = vmul.f32 0.5, %v1997_v47  ;;  %v6963_v47 = vor.u32 %v8149_v3, %v6962_v2  ;;  %v8611_v3 = vld [vmem:[%s10370_s22] ss:$0 sm:$0xff] }
 0x70d   : > { %v1999_v10 = vsub.f32 1.5, %v1998_v5  ;;  %v6964_v5 = vld [vmem:[#allocation3 + $0x144] sm:$0xf0]  ;;  %2509 = vmatpush.bf16.msrb.mxu2 %v6963_v47 }
 0x70f   : > { %v2000_v11 = vmul.f32 %v8662_v1, %v1999_v10  ;;  %v6967_v10 = vor.u32 %v8148_v4, %v6964_v5  ;;  %v8612_v5 = vld [vmem:[%s10371_s23] ss:$0 sm:$0xff] }
 0x711   : > { %v2004_v13 = vsel %vm2003_vm9, %v8662_v1, %v2000_v11  ;;  %v6983_v1 = vor.u32 %v8153_v63, %v6982_v62  ;;  %v6971_v11 = vor.u32 %v8150_v8, %v6970_v7  ;;  %2522 = vmatpush.bf16.msra.mxu3 %v6967_v10 }
 0x712   : > { %v2005_v14 = vmul.f32 %v2004_v13, %v9759_v9  ;;  %v8146_v13 = vld [vmem:[#allocation3 + $0x128] sm:$0xf0] }
 0x713   : > { %2534 = vmatpush.bf16.msrb.mxu0 %v6983_v1 }
 0x714   : > { %v2009_v16 = vmul.f32 %v8608_v12, %v2005_v14  ;;  %v6950_v12 = vld [vmem:[#allocation3 + $0x120] sm:$0xf]  ;;  %v8145_v14 = vld [vmem:[#allocation3 + $0x124] sm:$0xf] }
 0x716   : > { %v2013_v17 = vadd.f32 %v8609_v15, %v2009_v16  ;;  %v6951_v15 = vor.u32 %v8146_v13, %v6950_v12  ;;  %v6952_v16 = vld [vmem:[#allocation3 + $0x12c] sm:$0xf0] }
 0x717   : > { %2535 = vmatpush.bf16.msrb.mxu0 %v6971_v11  ;;  %v6955_v19 = vor.u32 %v8145_v14, %v6952_v16  ;;  %v6899_v11 = vld [vmem:[%s9274_s21 + $0x3] sm:$0x7] }
 0x718   : > { %v2030_v18 = vpack.c.bf16 %v2013_v17, %v2013_v17  ;;  %2510 = vmatpush.bf16.msrb.mxu2 %v6951_v15  ;;  %v2375_v12 = vperm.slane %v6899_v11, 2  ;;  %v2373_v15 = vperm.slane %v6899_v11, 0  ;;  %v2374_v16 = vperm.slane %v6899_v11, 1 }
 0x719   : > { %2523 = vmatpush.bf16.msra.mxu3 %v6955_v19 }
 0x71a   : > { %2125 = vmatmul.bf16.vlgmr.msra.gmra.mxu2 %v2030_v18  ;;  %2138 = vmatmul.bf16.vlgmr.msrb.gmra.mxu3 %v2030_v18  ;;  %v8147_v18 = vld [vmem:[#allocation3 + $0x130] sm:$0xf0] }
 0x79d   : > { %v2126_v26 = vpop.f32.mrf.mxu2  ;;  %v2139_v9 = vpop.f32.mrf.mxu3 }
 0x79e   : > { %v2127_v27 = vadd.f32 %v2126_v26, %v2033_v24  ;;  %v2140_v28 = vadd.f32 %v2139_v9, %v2034_v25  ;;  %v6939_v24 = vor.u32 %v8143_v22, %v6938_v21  ;;  %v6940_v25 = vld [vmem:[#allocation3 + $0x114] sm:$0xf0]  ;;  %v6946_v26 = vld [vmem:[#allocation3 + $0x110] sm:$0xf]  ;;  %v8144_v9 = vld [vmem:[#allocation3 + $0x118] sm:$0xf0] }
 0x7a0   : > { %v2143_v29 = vmax.f32 %v2127_v27, 0.0  ;;  %v2144_v30 = vmax.f32 %v2140_v28, 0.0  ;;  %v6943_v27 = vor.u32 %v8142_v23, %v6940_v25  ;;  %v6947_v28 = vor.u32 %v8144_v9, %v6946_v26  ;;  %2511 = vmatpush.bf16.msrb.mxu2 %v6939_v24 }
 0x7a2   : > { %v2177_v31 = vpack.c.bf16 %v2143_v29, %v2143_v29  ;;  %v2178_v32 = vpack.c.bf16 %v2144_v30, %v2144_v30  ;;  %2524 = vmatpush.bf16.msra.mxu3 %v6943_v27  ;;  %v6926_v29 = vld [vmem:[#allocation3 + $0xf0] sm:$0xf]  ;;  %v8140_v30 = vld [vmem:[#allocation3 + $0xf8] sm:$0xf0] }
 0x7a4   : > { %2287 = vmatmul.bf16.vlgmr.msra.gmra.mxu0 %v2177_v31  ;;  %2300 = vmatmul.bf16.vlgmr.msrb.gmra.mxu1 %v2178_v32  ;;  %v8139_v31 = vld [vmem:[#allocation3 + $0xf4] sm:$0xf]  ;;  %v6927_v32 = vor.u32 %v8140_v30, %v6926_v29 }
 0x7a5   : > { %v2128_v33 = vpop.f32.mrf.mxu2  ;;  %v2141_v34 = vpop.f32.mrf.mxu3 }
 0x7a6   : > { %v6928_v33 = vld [vmem:[#allocation3 + $0xfc] sm:$0xf0]  ;;  %v6934_v34 = vld [vmem:[#allocation3 + $0xf8] sm:$0xf]  ;;  %2512 = vmatpush.bf16.msrb.mxu2 %v6927_v32 }
 0x821   : > { %v2288_v36 = vpop.f32.mrf.mxu0  ;;  %v2301_v37 = vpop.f32.mrf.mxu1 }
 0x822   : > { %v2289_v38 = vadd.f32 %v8610_v35, %v2288_v36  ;;  %v8141_v35 = vld [vmem:[#allocation3 + $0x100] sm:$0xf0]  ;;  %v6931_v36 = vor.u32 %v8139_v31, %v6928_v33 }
 0x824   : > { %v2302_v39 = vadd.f32 %v2301_v37, %v2289_v38  ;;  %v6935_v37 = vor.u32 %v8141_v35, %v6934_v34  ;;  %2525 = vmatpush.bf16.msra.mxu3 %v6931_v36  ;;  %v6914_v38 = vld [vmem:[#allocation3 + $0xd8] sm:$0xf] }
 0x826   : > { %v2305_v40 = vadd.f32 %v2302_v39, %v2013_v17  ;;  %v6958_v17 = vld [vmem:[#allocation3 + $0x128] sm:$0xf]  ;;  %v8137_v39 = vld [vmem:[#allocation3 + $0xe0] sm:$0xf0] }
 0x827   : > { %v6959_v20 = vor.u32 %v8147_v18, %v6958_v17 }
 0x828   : > { %2308 = vadd.xlane.f32.xlu2 %v2305_v40 }
 0x829   : > { %v2290_v41 = vpop.f32.mrf.mxu0  ;;  %v2303_v42 = vpop.f32.mrf.mxu1  ;;  %2536 = vmatpush.bf16.msrb.mxu0 %v6959_v20 }
 0x82a   : > { %v6915_v41 = vor.u32 %v8137_v39, %v6914_v38  ;;  %v6916_v42 = vld [vmem:[#allocation3 + $0xe4] sm:$0xf0] }
 0x82c   : > { %2513 = vmatpush.bf16.msrb.mxu2 %v6915_v41 }
 0x82d   : > { %2537 = vmatpush.bf16.msrb.mxu0 %v6947_v28 }
 0x830   : > { %2514 = vmatpush.bf16.msrb.mxu2 %v6903_v51 }
 0x831   : > { %2538 = vmatpush.bf16.msrb.mxu0 %v6935_v37 }
 0x835   : > { %2539 = vmatpush.bf16.msrb.mxu0 %v6923_v46 }
 0x89b   : > { %v2309_v53 = vpop.xlane.xlu2 %2308 }
 0x89c   : > { %v2310_v54 = vmul.f32 %v2309_v53, %v9756_v6  ;;  %v6910_v53 = vld [vmem:[#allocation3 + $0xc8] sm:$0xf] }
 0x89e   : > { %v9798_v55 = vsub.f32 %v2305_v40, %v2310_v54  ;;  %v8136_v40 = vld [vmem:[#allocation3 + $0xdc] sm:$0xf]  ;;  %v8135_v54 = vld [vmem:[#allocation3 + $0xd0] sm:$0xf0] }
 0x89f   : > { %v6919_v45 = vor.u32 %v8136_v40, %v6916_v42  ;;  %v6911_v57 = vor.u32 %v8135_v54, %v6910_v53 }
 0x8a0   : > { %v2312_v56 = vmul.f32 %v9798_v55, %v9798_v55 }
 0x8a1   : > { %2526 = vmatpush.bf16.msra.mxu3 %v6919_v45  ;;  %2540 = vmatpush.bf16.msrb.mxu0 %v6911_v57 }
 0x8a2   : > { %2313 = vadd.xlane.f32.xlu1 %v2312_v56  ;;  %v6907_v56 = vor.u32 %v8133_v50, %v6904_v52 }
 0x8a5   : > { %2527 = vmatpush.bf16.msra.mxu3 %v6907_v56 }
 0x915   : > { %v2314_v58 = vpop.xlane.xlu1 %2313 }
 0x916   : > { %v2315_v59 = vmul.f32 %v2314_v58, %v9756_v6 }
 0x918   : > { %v2316_v60 = vadd.f32 1e-05, %v2315_v59 }
 0x91a   : > { %8663 = vrsqrt.f32 %v2316_v60  ;;  %vm2323_vm11 = vweird.f32 %v2316_v60 }
 0x920   : > { %v8664_v61 = vpop.eup %8663 }
 0x921   : > { %v2318_v62 = vmul.f32 %v8664_v61, %v2316_v60  ;;  %vm2324_vm10 = vweird.f32 %v8664_v61 }
 0x922   : > { %vm2325_vm12 = vmor %vm2323_vm11, %vm2324_vm10 }
 0x923   : > { %v2319_v63 = vmul.f32 %v8664_v61, %v2318_v62 }
 0x925   : > { %v2320_v0 = vmul.f32 0.5, %v2319_v63 }
 0x927   : > { %v2321_v1 = vsub.f32 1.5, %v2320_v0 }
 0x929   : > { %v2322_v2 = vmul.f32 %v8664_v61, %v2321_v1 }
 0x92b   : > { %v2326_v4 = vsel %vm2325_vm12, %v8664_v61, %v2322_v2 }
 0x92c   : > { %v2327_v47 = vmul.f32 %v2326_v4, %v9798_v55 }
 0x92e   : > { %v2331_v7 = vmul.f32 %v8611_v3, %v2327_v47 }
 0x930   : > { %v9806_v8 = vadd.f32 %v8612_v5, %v2331_v7 }
 0x932   : > { %v2369_v10 = vpack.c.bf16 %v9806_v8, %v9806_v8 }
 0x934   : > { %2515 = vmatmul.bf16.vlgmr.msrb.gmra.mxu2 %v2369_v10  ;;  %2528 = vmatmul.bf16.vlgmr.msra.gmra.mxu3 %v2369_v10 }
 0x935   : > { %2541 = vmatmul.bf16.vlgmr.msrb.gmra.mxu0 %v2369_v10 }
 0x9b2   : > { %v2542_v13 = vpop.f32.mrf.mxu0 }
 0x9b3   : > { %v2543_v14 = vadd.f32 %v2542_v13, %v2375_v12 }
 0x9b5   : > { %v9811_v17 = vpack.c.bf16 %v2543_v14, %v2543_v14 }
 0x9b7   : > { %v2516_v18 = vpop.f32.mrf.mxu2  ;;  %v2529_v55 = vpop.f32.mrf.mxu3  ;;  %v2583_v19 = vsel %vm1681_vm2, %v9811_v17, 0 }
 0x9b8   : > { %v2517_v20 = vadd.f32 %v2516_v18, %v2373_v15  ;;  %v2530_v21 = vadd.f32 %v2529_v55, %v2374_v16  ;;  %2592 = vmatpush.bf16.msra.mxu2 %v2583_v19 }
 0x9ba   : > { %v2546_v22 = vpack.c.bf16 %v2517_v20, %v2517_v20  ;;  %v2547_v23 = vpack.c.bf16 %v2530_v21, %v2530_v21  ;;  %v2544_v24 = vpop.f32.mrf.mxu0 }
 0x9bc   : > { %2605 = vrot.lane.b32.xlu2 %v2547_v23, %s10285_s25  ;;  %2728 = vrot.lane.b32.xlu0 %v2546_v22, %s10289_s15  ;;  %v2553_v25 = vsel %vm1646_vm0, %v2547_v23, 0 }
 0x9bd   : > { %2602 = vrot.lane.b32.xlu1 %v2546_v22, %s10285_s25  ;;  %2562 = vmatpush.bf16.xpose.msra.mxu1 %v2553_v25  ;;  %v8164_v25 = vld [vmem:[#allocation6 + $0x78] sm:$0xff] }
 0x9bf   : > { %v2518_v26 = vpop.f32.mrf.mxu2  ;;  %v2531_v9 = vpop.f32.mrf.mxu3 }
 0x9c4   : > { %2668 = vrot.lane.b32.xlu2 %v2547_v23, %s10287_s27  ;;  %6996 = vmatmul.msk.bf16.vlgmr.msra.gmra.mxu1 %vm1646_vm0, %v2546_v22 }
 0x9c5   : > { %2730 = vrot.lane.b32.xlu1 %v2547_v23, %s10289_s15 }
 0x9cc   : > { %2666 = vrot.lane.b32.xlu2 %v2546_v22, %s10287_s27 }
 0xa16   : > { %v2606_v27 = vpop.permute.xlu2 %2605 }
 0xa17   : > { %v2611_v28 = vsel %vm1646_vm0, %v2606_v27, 0 }
 0xa18   : > { %2620 = vmatpush.bf16.xpose.msrb.mxu3 %v2611_v28 }
 0xa1e   : > { %v2669_v29 = vpop.permute.xlu2 %2668 }
 0xa1f   : > { %v2674_v30 = vsel %vm1646_vm0, %v2669_v29, 0 }
 0xa20   : > { %2683 = vmatpush.bf16.xpose.msrb.mxu1 %v2674_v30 }
 0xa26   : > { %v2667_v31 = vpop.permute.xlu2 %2666 }
 0xa27   : > { %7000 = vmatmul.msk.bf16.vlgmr.msrb.gmra.mxu1 %vm1646_vm0, %v2667_v31 }
 0xa28   : > { %2862 = vmatpush.bf16.msra.mxu1 %v8164_v25  ;;  %v8172_v25 = vld [vmem:[%s10342_s14 + $0xb4] sm:$0xf0] }
 0xa2e   : > { %v2729_v35 = vpop.permute.xlu0 %2728 }
 0xa2f   : > { %v2603_v32 = vpop.permute.xlu1 %2602 }
 0xa30   : > { %6998 = vmatmul.msk.bf16.vlgmr.msrb.gmra.mxu3 %vm1646_vm0, %v2603_v32 }
 0xa37   : > { %v2731_v33 = vpop.permute.xlu1 %2730 }
 0xa38   : > { %v2736_v34 = vsel %vm1646_vm0, %v2731_v33, 0 }
 0xa39   : > { %2745 = vmatpush.bf16.xpose.msra.mxu3 %v2736_v34 }
 0xa40   : > { %7002 = vmatmul.msk.bf16.vlgmr.msra.gmra.mxu3 %vm1646_vm0, %v2729_v35 }
 0xa41   : > { %v2564_v36 = vpop.f32.mrf.mxu1 }
 0xa42   : > { %v2568_v37 = vmul.f32 0.17677669, %v2564_v36 }
 0xa44   : > { %v2569_v38 = vsel %vm1667_vm1, %v2568_v37, -inf }
 0xa45   : > { %2570 = vmax.xlane.f32.xlu1 %v2569_v38 }
 0xa49   : > { %v2566_v39 = vpop.f32.mrf.mxu1 }
 0xa5e   : > { %2638 = vrot.lane.b32.xlu1 %v9811_v17, %s10285_s25 }
 0xaa4   : > { %v2685_v40 = vpop.f32.mrf.mxu1 }
 0xaa5   : > { %v2689_v41 = vmul.f32 0.17677669, %v2685_v40 }
 0xaa7   : > { %v2690_v42 = vsel %vm1667_vm1, %v2689_v41, -inf }
 0xaa8   : > { %2691 = vmax.xlane.f32.xlu0 %v2690_v42  ;;  %v8162_v42 = vld [vmem:[#allocation6 + $0x68] sm:$0xff] }
 0xaac   : > { %v2687_v43 = vpop.f32.mrf.mxu1 }
 0xaad   : > { %v8161_v43 = vld [vmem:[#allocation6 + $0x60] sm:$0xff] }
 0xab3   : > { %v2622_v44 = vpop.f32.mrf.mxu3 }
 0xab4   : > { %v2626_v45 = vmul.f32 0.17677669, %v2622_v44  ;;  %v8160_v44 = vld [vmem:[#allocation6 + $0x58] sm:$0xff] }
 0xab6   : > { %v2627_v46 = vsel %vm1667_vm1, %v2626_v45, -inf }
 0xab7   : > { %2628 = vmax.xlane.f32.xlu2 %v2627_v46  ;;  %v8158_v46 = vld [vmem:[#allocation6 + $0x48] sm:$0xff] }
 0xab8   : > { %v2571_v48 = vpop.xlane.xlu1 %2570 }
 0xab9   : > { %v2572_v49 = vsub.f32 %v2568_v37, %v2571_v48  ;;  %v8157_v48 = vld [vmem:[#allocation6 + $0x40] sm:$0xff] }
 0xabb   : > { %v2573_v50 = vmul.f32 1.442695, %v2572_v49  ;;  %v2624_v51 = vpop.f32.mrf.mxu3 }
 0xabc   : > { %2762 = vrot.lane.b32.xlu0 %v9811_v17, %s10289_s15 }
 0xabd   : > { %8665 = vpow2.f32 %v2573_v50 }
 0xac3   : > { %v8666_v52 = vpop.eup %8665  ;;  %v2747_v53 = vpop.f32.mrf.mxu3 }
 0xac4   : > { %v2578_v54 = vpack.c.bf16 %v8666_v52, %v8666_v52  ;;  %v2751_v56 = vmul.f32 0.17677669, %v2747_v53  ;;  %v2575_v15 = vsel %vm1667_vm1, %v8666_v52, 0.0 }
 0xac6   : > { %v2752_v57 = vsel %vm1667_vm1, %v2751_v56, -inf  ;;  %6997 = vmatmul.msk.bf16.vlgmr.msra.gmra.mxu2 %vm1667_vm1, %v2578_v54  ;;  %v8613_v54 = vld [vmem:[%s9284_s29 + $0x1] ss:$0 sm:$0xff] }
 0xac7   : > { %2753 = vmax.xlane.f32.xlu2 %v2752_v57 }
 0xacb   : > { %v2749_v58 = vpop.f32.mrf.mxu3 }
 0xad0   : > { %v2639_v59 = vpop.permute.xlu1 %2638 }
 0xad1   : > { %v2644_v60 = vsel %vm1681_vm2, %v2639_v59, 0 }
 0xad2   : > { %2653 = vmatpush.bf16.msra.mxu0 %v2644_v60  ;;  %v7114_v60 = vld [vmem:[%s10342_s14 + $0xf0] sm:$0xf] }
 0xadf   : > { %2700 = vrot.lane.b32.xlu2 %v9811_v17, %s10287_s27 }
 0xb1b   : > { %v2692_v61 = vpop.xlane.xlu0 %2691 }
 0xb1c   : > { %v2693_v62 = vsub.f32 %v2689_v41, %v2692_v61  ;;  %v8163_v41 = vld [vmem:[#allocation6 + $0x70] sm:$0xff] }
 0xb1d   : > { %2863 = vmatpush.bf16.msra.mxu1 %v8163_v41  ;;  %v8180_v61 = vld [vmem:[%s10342_s14 + $0xf4] sm:$0xf0]  ;;  %v7058_v41 = vld [vmem:[%s10342_s14 + $0x80] sm:$0xf] }
 0xb1e   : > { %v2694_v63 = vmul.f32 1.442695, %v2693_v62  ;;  %v8179_v62 = vld [vmem:[%s10342_s14 + $0xf4] sm:$0xf] }
 0xb20   : > { %8667 = vpow2.f32 %v2694_v63  ;;  %v7115_v63 = vor.u32 %v8180_v61, %v7114_v60  ;;  %v7249_v61 = vld [vmem:[#allocation9 + $0x78] sm:$0xf] }
 0xb21   : > { %2864 = vmatpush.bf16.msra.mxu1 %v8162_v42  ;;  %v8166_v42 = vld [vmem:[%s10342_s14 + $0x84] sm:$0xf0] }
 0xb25   : > { %2865 = vmatpush.bf16.msra.mxu1 %v8161_v43  ;;  %v8165_v43 = vld [vmem:[%s10342_s14 + $0x84] sm:$0xf] }
 0xb26   : > { %v8668_v0 = vpop.eup %8667 }
 0xb27   : > { %v2696_v1 = vsel %vm1667_vm1, %v8668_v0, 0.0  ;;  %v2699_v55 = vpack.c.bf16 %v8668_v0, %v8668_v0  ;;  %v7116_v0 = vld [vmem:[%s10342_s14 + $0xf8] sm:$0xf0] }
 0xb28   : > { %2697 = vadd.xlane.f32.xlu2 %v2696_v1  ;;  %v7106_v1 = vld [vmem:[%s10342_s14 + $0xe0] sm:$0xf] }
 0xb29   : > { %2866 = vmatpush.bf16.msra.mxu1 %v8160_v44  ;;  %v7059_v44 = vor.u32 %v8166_v42, %v7058_v41  ;;  %v8187_v42 = vld [vmem:[#allocation8 + $0xb0] sm:$0xff] }
 0xb2a   : > { %v2629_v2 = vpop.xlane.xlu2 %2628 }
 0xb2b   : > { %v2630_v3 = vsub.f32 %v2626_v45, %v2629_v2  ;;  %v8159_v45 = vld [vmem:[#allocation6 + $0x50] sm:$0xff]  ;;  %v8178_v2 = vld [vmem:[%s10342_s14 + $0xe4] sm:$0xf0] }
 0xb2d   : > { %v2631_v4 = vmul.f32 1.442695, %v2630_v3  ;;  %2867 = vmatpush.bf16.msra.mxu1 %v8159_v45  ;;  %v7119_v3 = vor.u32 %v8179_v62, %v7116_v0  ;;  %v7060_v45 = vld [vmem:[%s10342_s14 + $0x88] sm:$0xf0] }
 0xb2e   : > { %v2763_v47 = vpop.permute.xlu0 %2762  ;;  %v8213_v62 = vld [vmem:[#allocation9 + $0x80] sm:$0xf0] }
 0xb2f   : > { %8669 = vpow2.f32 %v2631_v4  ;;  %v2768_v5 = vsel %vm1681_vm2, %v2763_v47, 0  ;;  %v8177_v4 = vld [vmem:[%s10342_s14 + $0xe4] sm:$0xf]  ;;  %v7108_v47 = vld [vmem:[%s10342_s14 + $0xe8] sm:$0xf0]  ;;  %3026 = vmatpush.bf16.msrb.mxu3 %v7119_v3  ;;  %v7250_v0 = vor.u32 %v8213_v62, %v7249_v61  ;;  %v8191_v61 = vld [vmem:[#allocation8 + $0xd0] sm:$0xff] }
 0xb30   : > { %2777 = vmatpush.bf16.msrb.mxu0 %v2768_v5  ;;  %v7111_v5 = vor.u32 %v8177_v4, %v7108_v47  ;;  %v7237_v3 = vld [vmem:[#allocation9 + $0x60] sm:$0xf]  ;;  %v8210_v4 = vld [vmem:[#allocation9 + $0x68] sm:$0xf0]  ;;  %v8209_v47 = vld [vmem:[#allocation9 + $0x64] sm:$0xf] }
 0xb31   : > { %2868 = vmatpush.bf16.msra.mxu1 %v8158_v46  ;;  %v7273_v46 = vld [vmem:[#allocation9 + $0xa8] sm:$0xf]  ;;  %v9907_v62 = vld [vmem:[%s1432_s4] sm:$0xff]  ;;  %s10379_s4 = sld [smem:[#allocation42_spill]] }
 0xb33   : > { %3027 = vmatpush.bf16.msrb.mxu3 %v7111_v5  ;;  %v7239_v5 = vld [vmem:[#allocation9 + $0x6c] sm:$0xf0] }
 0xb35   : > { %v8670_v7 = vpop.eup %8669  ;;  %2869 = vmatpush.bf16.msra.mxu1 %v8157_v48  ;;  %v8219_v48 = vld [vmem:[#allocation9 + $0xb0] sm:$0xf0] }
 0xb36   : > { %v2636_v10 = vpack.c.bf16 %v8670_v7, %v8670_v7  ;;  %v2633_v11 = vsel %vm1667_vm1, %v8670_v7, 0.0  ;;  %v7098_v7 = vld [vmem:[%s10342_s14 + $0xd0] sm:$0xf] }
 0xb37   : > { %2634 = vadd.xlane.f32.xlu1 %v2633_v11  ;;  %v8175_v11 = vld [vmem:[%s10342_s14 + $0xd4] sm:$0xf] }
 0xb38   : > { %6999 = vmatmul.msk.bf16.vlgmr.msra.gmra.mxu0 %vm1667_vm1, %v2636_v10  ;;  %v8176_v10 = vld [vmem:[%s10342_s14 + $0xd4] sm:$0xf0] }
 0xb3a   : > { %v2754_v12 = vpop.xlane.xlu2 %2753 }
 0xb3b   : > { %v2755_v13 = vsub.f32 %v2751_v56, %v2754_v12  ;;  %v7100_v12 = vld [vmem:[%s10342_s14 + $0xd8] sm:$0xf0] }
 0xb3d   : > { %v2756_v14 = vmul.f32 1.442695, %v2755_v13  ;;  %v7099_v13 = vor.u32 %v8176_v10, %v7098_v7  ;;  %v7242_v7 = vor.u32 %v8209_v47, %v7239_v5  ;;  %v7225_v10 = vld [vmem:[#allocation9 + $0x48] sm:$0xf] }
 0xb3f   : > { %8671 = vpow2.f32 %v2756_v14  ;;  %2576 = vadd.xlane.f32.xlu1 %v2575_v15  ;;  %v7103_v14 = vor.u32 %v8175_v11, %v7100_v12  ;;  %v7090_v15 = vld [vmem:[%s10342_s14 + $0xc0] sm:$0xf]  ;;  %v8207_v11 = vld [vmem:[#allocation9 + $0x50] sm:$0xf0]  ;;  %v8206_v12 = vld [vmem:[#allocation9 + $0x4c] sm:$0xf] }
 0xb41   : > { %3028 = vmatpush.bf16.msrb.mxu3 %v7103_v14  ;;  %v7227_v14 = vld [vmem:[#allocation9 + $0x54] sm:$0xf0] }
 0xb42   : > { %v2701_v16 = vpop.permute.xlu2 %2700 }
 0xb43   : > { %v2706_v17 = vsel %vm1681_vm2, %v2701_v16, 0  ;;  %v8174_v16 = vld [vmem:[%s10342_s14 + $0xc4] sm:$0xf0] }
 0xb44   : > { %2715 = vmatpush.bf16.msrb.mxu2 %v2706_v17  ;;  %v8173_v17 = vld [vmem:[%s10342_s14 + $0xc4] sm:$0xf] }
 0xb45   : > { %v8672_v18 = vpop.eup %8671 }
 0xb46   : > { %v2761_v19 = vpack.c.bf16 %v8672_v18, %v8672_v18  ;;  %v2758_v20 = vsel %vm1667_vm1, %v8672_v18, 0.0  ;;  %v7092_v18 = vld [vmem:[%s10342_s14 + $0xc8] sm:$0xf0] }
 0xb47   : > { %2759 = vadd.xlane.f32.xlu0 %v2758_v20  ;;  %7001 = vmatmul.msk.bf16.vlgmr.msrb.gmra.mxu2 %vm1667_vm1, %v2699_v55  ;;  %v7091_v55 = vor.u32 %v8174_v16, %v7090_v15  ;;  %v7230_v15 = vor.u32 %v8206_v12, %v7227_v14  ;;  %v7213_v16 = vld [vmem:[#allocation9 + $0x30] sm:$0xf] }
 0xb48   : > { %7003 = vmatmul.msk.bf16.vlgmr.msrb.gmra.mxu0 %vm1667_vm1, %v2761_v19  ;;  %3013 = vmatpush.bf16.msra.mxu2 %v7115_v63  ;;  %v7095_v19 = vor.u32 %v8173_v17, %v7092_v18  ;;  %v8212_v63 = vld [vmem:[#allocation9 + $0x7c] sm:$0xf]  ;;  %v8203_v18 = vld [vmem:[#allocation9 + $0x34] sm:$0xf] }
 0xb49   : > { %v2594_v21 = vpop.f32.mrf.mxu2  ;;  %v8204_v17 = vld [vmem:[#allocation9 + $0x38] sm:$0xf0] }
 0xb4a   : > { %3029 = vmatpush.bf16.msrb.mxu3 %v7095_v19  ;;  %v7214_v19 = vor.u32 %v8204_v17, %v7213_v16 }
 0xb51   : > { %v2596_v22 = vpop.f32.mrf.mxu2 }
 0xb9b   : > { %v2698_v32 = vpop.xlane.xlu2 %2697 }
 0xbaa   : > { %v2635_v23 = vpop.xlane.xlu1 %2634 }
 0xbab   : > { %8673 = vrcp.f32 %v2635_v23 }
 0xbb1   : > { %v8674_v26 = vpop.eup %8673 }
 0xbb2   : > { %v2577_v24 = vpop.xlane.xlu1 %2576 }
 0xbb3   : > { %8675 = vrcp.f32 %v2577_v24  ;;  %v7082_v24 = vld [vmem:[%s10342_s14 + $0xb0] sm:$0xf] }
 0xbb5   : > { %v2655_v9 = vpop.f32.mrf.mxu0 }
 0xbb6   : > { %v2660_v27 = vmul.f32 %v8674_v26, %v2655_v9  ;;  %v8171_v26 = vld [vmem:[%s10342_s14 + $0xb4] sm:$0xf]  ;;  %v7083_v9 = vor.u32 %v8172_v25, %v7082_v24  ;;  %v7201_v24 = vld [vmem:[#allocation9 + $0x18] sm:$0xf]  ;;  %v8201_v25 = vld [vmem:[#allocation9 + $0x20] sm:$0xf0] }
 0xbb8   : > { %2662 = vrot.lane.b32.xlu1 %v2660_v27, %s10289_s15  ;;  %v7084_v27 = vld [vmem:[%s10342_s14 + $0xb8] sm:$0xf0] }
 0xbb9   : > { %v8676_v28 = vpop.eup %8675 }
 0xbba   : > { %v2599_v29 = vmul.f32 %v8676_v28, %v2594_v21  ;;  %v2760_v30 = vpop.xlane.xlu0 %2759  ;;  %v7087_v28 = vor.u32 %v8171_v26, %v7084_v27  ;;  %v8200_v26 = vld [vmem:[#allocation9 + $0x1c] sm:$0xf] }
 0xbbb   : > { %8677 = vrcp.f32 %v2760_v30  ;;  %v8170_v30 = vld [vmem:[%s10342_s14 + $0xa4] sm:$0xf0] }
 0xbbc   : > { %2600 = vst.msk [vmem:[#allocation2] sm:$0xff] %vm1646_vm0, %v2599_v29  ;;  %8679 = vrcp.f32 %v2698_v32  ;;  %3030 = vmatpush.bf16.msrb.mxu3 %v7087_v28  ;;  %v7074_v29 = vld [vmem:[%s10342_s14 + $0xa0] sm:$0xf]  ;;  %v7202_v28 = vor.u32 %v8201_v25, %v7201_v24 }
 0xbbd   : > { %v2657_v31 = vpop.f32.mrf.mxu0  ;;  %v7075_v32 = vor.u32 %v8170_v30, %v7074_v29  ;;  %v7189_v30 = vld [vmem:[#allocation9] sm:$0xf] }
 0xbbe   : > { %v8169_v31 = vld [vmem:[%s10342_s14 + $0xa4] sm:$0xf] }
 0xbc1   : > { %v8678_v33 = vpop.eup %8677 }
 0xbc2   : > { %v8680_v36 = vpop.eup %8679 }
 0xbc5   : > { %v2779_v34 = vpop.f32.mrf.mxu0 }
 0xbc6   : > { %v2784_v35 = vmul.f32 %v8678_v33, %v2779_v34  ;;  %v7076_v33 = vld [vmem:[%s10342_s14 + $0xa8] sm:$0xf0] }
 0xbc7   : > { %v7079_v34 = vor.u32 %v8169_v31, %v7076_v33  ;;  %v8198_v31 = vld [vmem:[#allocation9 + $0x8] sm:$0xf0]  ;;  %v7191_v33 = vld [vmem:[#allocation9 + $0xc] sm:$0xf0] }
 0xbc8   : > { %2786 = vrot.lane.b32.xlu0 %v2784_v35, %s10285_s25  ;;  %v7066_v35 = vld [vmem:[%s10342_s14 + $0x90] sm:$0xf] }
 0xbc9   : > { %3031 = vmatpush.bf16.msrb.mxu3 %v7079_v34  ;;  %v7190_v34 = vor.u32 %v8198_v31, %v7189_v30  ;;  %v8220_v30 = vld [vmem:[#allocation9 + $0xb8] sm:$0xf0]  ;;  %v7269_v31 = vld [vmem:[#allocation9 + $0x98] sm:$0xf] }
 0xbca   : > { %v2717_v37 = vpop.f32.mrf.mxu2 }
 0xbcb   : > { %v2722_v38 = vmul.f32 %v8680_v36, %v2717_v37  ;;  %v8168_v36 = vld [vmem:[%s10342_s14 + $0x94] sm:$0xf0]  ;;  %v8167_v37 = vld [vmem:[%s10342_s14 + $0x94] sm:$0xf] }
 0xbcd   : > { %2724 = vrot.lane.b32.xlu2 %v2722_v38, %s10287_s27  ;;  %v2781_v39 = vpop.f32.mrf.mxu0  ;;  %v7067_v38 = vor.u32 %v8168_v36, %v7066_v35 }
 0xbce   : > { %v7068_v39 = vld [vmem:[%s10342_s14 + $0x98] sm:$0xf0]  ;;  %s10396_s14 = sld [smem:[#allocation56_spill]] }
 0xbd2   : > { %v2719_v40 = vpop.f32.mrf.mxu2 }
 0xbd3   : > { %v7071_v40 = vor.u32 %v8167_v37, %v7068_v39  ;;  %v8188_v39 = vld [vmem:[#allocation8 + $0xb8] sm:$0xff] }
 0xbd4   : > { %3177 = vmatpush.bf16.msra.mxu0 %v8188_v39  ;;  %v8211_v39 = vld [vmem:[#allocation9 + $0x70] sm:$0xf0] }
 0xbd5   : > { %3032 = vmatpush.bf16.msrb.mxu3 %v7071_v40  ;;  %v8196_v40 = vld [vmem:[#allocation8 + $0xf8] sm:$0xff] }
 0xbd6   : > { %3190 = vmatpush.bf16.msrb.mxu1 %v8196_v40 }
 0xbd8   : > { %3178 = vmatpush.bf16.msra.mxu0 %v8187_v42  ;;  %v8208_v42 = vld [vmem:[#allocation9 + $0x58] sm:$0xf0] }
 0xc27   : > { %v2725_v50 = vpop.permute.xlu2 %2724 }
 0xc2a   : > { %v2663_v49 = vpop.permute.xlu1 %2662 }
 0xc2b   : > { %2665 = vst.msk [vmem:[#allocation2] sm:$0xff] %vm1765_vm3, %v2663_v49  ;;  %v7063_v49 = vor.u32 %v8165_v43, %v7060_v45  ;;  %v8195_v43 = vld [vmem:[#allocation8 + $0xf0] sm:$0xff] }
 0xc2c   : > { %2727 = vst.msk [vmem:[#allocation2] sm:$0xff] %vm1828_vm4, %v2725_v50  ;;  %v7274_v50 = vor.u32 %v8219_v48, %v7273_v46  ;;  %v8614_v46 = vld [vmem:[%s10366_s16 + $0x1] ss:$0 sm:$0xff]  ;;  %3191 = vmatpush.bf16.msrb.mxu1 %v8195_v43  ;;  %v8186_v48 = vld [vmem:[#allocation8 + $0xa8] sm:$0xff] }
 0xc2d   : > { %3033 = vmatpush.bf16.msrb.mxu3 %v7063_v49  ;;  %v8194_v49 = vld [vmem:[#allocation8 + $0xe8] sm:$0xff]  ;;  %3179 = vmatpush.bf16.msra.mxu0 %v8186_v48  ;;  %v7209_v48 = vld [vmem:[#allocation9 + $0x20] sm:$0xf] }
 0xc30   : > { %3192 = vmatpush.bf16.msrb.mxu1 %v8194_v49  ;;  %v8202_v49 = vld [vmem:[#allocation9 + $0x28] sm:$0xf0] }
 0xc3a   : > { %v2787_v51 = vpop.permute.xlu0 %2786 }
 0xc3b   : > { %2789 = vst.msk [vmem:[#allocation2] sm:$0xff] %vm1891_vm5, %v2787_v51  ;;  %v8218_v51 = vld [vmem:[#allocation9 + $0xac] sm:$0xf] }
 0xc42   : > { %v2790_v52 = vld [vmem:[#allocation2] sm:$0xff] }
 0xc43   : > { %v2808_v53 = vpack.c.bf16 %v2790_v52, %v2790_v52  ;;  %v7275_v52 = vld [vmem:[#allocation9 + $0xb4] sm:$0xf0] }
 0xc45   : > { %2870 = vmatmul.bf16.vlgmr.msra.gmra.mxu1 %v2808_v53  ;;  %v7278_v53 = vor.u32 %v8218_v51, %v7275_v52  ;;  %v8615_v52 = vld [vmem:[%s10367_s18 + $0x1] ss:$0 sm:$0xff] }
 0xc47   : > { %3450 = vmatpush.bf16.msra.mxu3 %v7278_v53 }
 0xcc2   : > { %v2871_v56 = vpop.f32.mrf.mxu1 }
 0xcc3   : > { %v2872_v57 = vadd.f32 %v8613_v54, %v2871_v56  ;;  %v7261_v54 = vld [vmem:[#allocation9 + $0x90] sm:$0xf]  ;;  %v8216_v56 = vld [vmem:[#allocation9 + $0x98] sm:$0xf0] }
 0xcc5   : > { %v2875_v58 = vadd.f32 %v2872_v57, %v9806_v8  ;;  %v7107_v8 = vor.u32 %v8178_v2, %v7106_v1  ;;  %v8215_v57 = vld [vmem:[#allocation9 + $0x94] sm:$0xf]  ;;  %v7251_v1 = vld [vmem:[#allocation9 + $0x84] sm:$0xf0] }
 0xcc6   : > { %v7254_v2 = vor.u32 %v8212_v63, %v7251_v1  ;;  %v9911_v63 = vpack.c.bf16 %v9907_v62, %v9907_v62  ;;  %v8190_v1 = vld [vmem:[#allocation8 + $0xc8] sm:$0xff] }
 0xcc7   : > { %2880 = vadd.xlane.f32.xlu0 %v2875_v58  ;;  %3014 = vmatpush.bf16.msra.mxu2 %v7107_v8  ;;  %v7238_v8 = vor.u32 %v8210_v4, %v7237_v3  ;;  %v8189_v3 = vld [vmem:[#allocation8 + $0xc0] sm:$0xff]  ;;  %v7055_v4 = vld [vmem:[%s10368_s28 + $0x2] sm:$0x3] }
 0xcc8   : > { %v2929_v47 = vperm.slane %v7055_v4, 0 }
 0xcca   : > { %v2873_v59 = vpop.f32.mrf.mxu1 }
 0xccb   : > { %3015 = vmatpush.bf16.msra.mxu2 %v7099_v13  ;;  %v7263_v59 = vld [vmem:[#allocation9 + $0x9c] sm:$0xf0]  ;;  %v7226_v13 = vor.u32 %v8207_v11, %v7225_v10 }
 0xccc   : > { %v7266_v60 = vor.u32 %v8215_v57, %v7263_v59  ;;  %v8184_v59 = vld [vmem:[#allocation8 + $0x98] sm:$0xff] }
 0xcce   : > { %3451 = vmatpush.bf16.msra.mxu3 %v7266_v60  ;;  %v8192_v60 = vld [vmem:[#allocation8 + $0xd8] sm:$0xff] }
 0xccf   : > { %3016 = vmatpush.bf16.msra.mxu2 %v7091_v55 }
 0xcd2   : > { %3452 = vmatpush.bf16.msra.mxu3 %v7254_v2  ;;  %v8181_v2 = vld [vmem:[#allocation8 + $0x80] sm:$0xff] }
 0xcd3   : > { %3017 = vmatpush.bf16.msra.mxu2 %v7083_v9  ;;  %v7203_v9 = vld [vmem:[#allocation9 + $0x24] sm:$0xf0] }
 0xcd4   : > { %v7206_v29 = vor.u32 %v8200_v26, %v7203_v9 }
 0xcd6   : > { %3453 = vmatpush.bf16.msra.mxu3 %v7242_v7 }
 0xcd7   : > { %3018 = vmatpush.bf16.msra.mxu2 %v7075_v32  ;;  %v8197_v32 = vld [vmem:[#allocation9 + $0x4] sm:$0xf] }
 0xcd8   : > { %v7194_v35 = vor.u32 %v8197_v32, %v7191_v33  ;;  %v8217_v33 = vld [vmem:[#allocation9 + $0xa0] sm:$0xf0] }
 0xcda   : > { %3454 = vmatpush.bf16.msra.mxu3 %v7230_v15 }
 0xcdb   : > { %3019 = vmatpush.bf16.msra.mxu2 %v7067_v38 }
 0xcdf   : > { %3020 = vmatpush.bf16.msra.mxu2 %v7059_v44 }
 0xce3   : > { %3437 = vmatpush.bf16.msrb.mxu2 %v7274_v50 }
 0xd3a   : > { %v2881_v20 = vpop.xlane.xlu0 %2880 }
 0xd3b   : > { %v2882_v21 = vmul.f32 %v2881_v20, %v9756_v6  ;;  %v7215_v20 = vld [vmem:[#allocation9 + $0x3c] sm:$0xf0] }
 0xd3d   : > { %v9876_v22 = vsub.f32 %v2875_v58, %v2882_v21  ;;  %v7262_v58 = vor.u32 %v8216_v56, %v7261_v54  ;;  %v8185_v54 = vld [vmem:[#allocation8 + $0xa0] sm:$0xff] }
 0xd3e   : > { %v8193_v56 = vld [vmem:[#allocation8 + $0xe0] sm:$0xff]  ;;  %3180 = vmatpush.bf16.msra.mxu0 %v8185_v54 }
 0xd3f   : > { %v2884_v23 = vmul.f32 %v9876_v22, %v9876_v22  ;;  %3438 = vmatpush.bf16.msrb.mxu2 %v7262_v58  ;;  %3193 = vmatpush.bf16.msrb.mxu1 %v8193_v56 }
 0xd41   : > { %2885 = vadd.xlane.f32.xlu1 %v2884_v23  ;;  %v7218_v23 = vor.u32 %v8203_v18, %v7215_v20  ;;  %v9917_v18 = vld [vmem:[%s10373_s3] sm:$0x7] }
 0xd42   : > { %3181 = vmatpush.bf16.msra.mxu0 %v8184_v59 }
 0xd43   : > { %3439 = vmatpush.bf16.msrb.mxu2 %v7250_v0  ;;  %3455 = vmatpush.bf16.msra.mxu3 %v7218_v23  ;;  %v8182_v0 = vld [vmem:[#allocation8 + $0x88] sm:$0xff] }
 0xd44   : > { %3194 = vmatpush.bf16.msrb.mxu1 %v8192_v60 }
 0xd47   : > { %3440 = vmatpush.bf16.msrb.mxu2 %v7238_v8  ;;  %3456 = vmatpush.bf16.msra.mxu3 %v7206_v29  ;;  %v2930_v8 = vperm.slane %v7055_v4, 1  ;;  %v7281_v29 = vld [vmem:[#allocation9 + $0xb0] sm:$0xf] }
 0xd48   : > { %3195 = vmatpush.bf16.msrb.mxu1 %v8191_v61  ;;  %v7282_v32 = vor.u32 %v8220_v30, %v7281_v29 }
 0xd4b   : > { %3441 = vmatpush.bf16.msrb.mxu2 %v7226_v13  ;;  %3457 = vmatpush.bf16.msra.mxu3 %v7194_v35  ;;  %v7257_v35 = vld [vmem:[#allocation9 + $0x80] sm:$0xf] }
 0xd4c   : > { %3196 = vmatpush.bf16.msrb.mxu1 %v8190_v1 }
 0xd4f   : > { %3442 = vmatpush.bf16.msrb.mxu2 %v7214_v19 }
 0xd50   : > { %3197 = vmatpush.bf16.msrb.mxu1 %v8189_v3 }
 0xd53   : > { %3443 = vmatpush.bf16.msrb.mxu2 %v7202_v28 }
 0xd57   : > { %3444 = vmatpush.bf16.msrb.mxu2 %v7190_v34  ;;  %v7270_v34 = vor.u32 %v8217_v33, %v7269_v31 }
 0xdb4   : > { %v2886_v55 = vpop.xlane.xlu1 %2885 }
 0xdb5   : > { %v2887_v21 = vmul.f32 %v2886_v55, %v9756_v6  ;;  %v3304_v55 = vperm.slane %v9917_v18, 1 }
 0xdb7   : > { %v2888_v27 = vadd.f32 1e-05, %v2887_v21  ;;  %v3303_v21 = vperm.slane %v9917_v18, 0 }
 0xdb9   : > { %8681 = vrsqrt.f32 %v2888_v27  ;;  %vm2895_vm14 = vweird.f32 %v2888_v27 }
 0xdbf   : > { %v8682_v36 = vpop.eup %8681 }
 0xdc0   : > { %v2890_v37 = vmul.f32 %v8682_v36, %v2888_v27  ;;  %vm2896_vm13 = vweird.f32 %v8682_v36 }
 0xdc1   : > { %vm2897_vm15 = vmor %vm2895_vm14, %vm2896_vm13 }
 0xdc2   : > { %v2891_v38 = vmul.f32 %v8682_v36, %v2890_v37 }
 0xdc4   : > { %v2892_v41 = vmul.f32 0.5, %v2891_v38  ;;  %v7245_v38 = vld [vmem:[#allocation9 + $0x68] sm:$0xf] }
 0xdc5   : > { %v7246_v40 = vor.u32 %v8211_v39, %v7245_v38 }
 0xdc6   : > { %v2893_v44 = vsub.f32 1.5, %v2892_v41  ;;  %v7233_v41 = vld [vmem:[#allocation9 + $0x50] sm:$0xf] }
 0xdc7   : > { %v7234_v43 = vor.u32 %v8208_v42, %v7233_v41 }
 0xdc8   : > { %v2894_v45 = vmul.f32 %v8682_v36, %v2893_v44  ;;  %v7221_v44 = vld [vmem:[#allocation9 + $0x38] sm:$0xf] }
 0xdca   : > { %v2898_v50 = vsel %vm2897_vm15, %v8682_v36, %v2894_v45  ;;  %v8214_v36 = vld [vmem:[#allocation9 + $0x88] sm:$0xf0]  ;;  %v8205_v45 = vld [vmem:[#allocation9 + $0x40] sm:$0xf0] }
 0xdcb   : > { %v2899_v51 = vmul.f32 %v2898_v50, %v9876_v22  ;;  %v8183_v22 = vld [vmem:[#allocation8 + $0x90] sm:$0xff]  ;;  %v7258_v37 = vor.u32 %v8214_v36, %v7257_v35  ;;  %v7210_v50 = vor.u32 %v8202_v49, %v7209_v48 }
 0xdcc   : > { %3182 = vmatpush.bf16.msra.mxu0 %v8183_v22  ;;  %v8616_v22 = vld [vmem:[%s10369_s6 + $0x1] ss:$0 sm:$0xff]  ;;  %s10386_s6 = sld [smem:[#allocation49_spill]] }
 0xdcd   : > { %v2903_v53 = vmul.f32 %v8614_v46, %v2899_v51  ;;  %v7222_v46 = vor.u32 %v8205_v45, %v7221_v44  ;;  %v7197_v51 = vld [vmem:[#allocation9 + $0x8] sm:$0xf] }
 0xdcf   : > { %v9900_v57 = vadd.f32 %v8615_v52, %v2903_v53  ;;  %v8199_v52 = vld [vmem:[#allocation9 + $0x10] sm:$0xf0] }
 0xdd0   : > { %3183 = vmatpush.bf16.msra.mxu0 %v8182_v0  ;;  %v7198_v53 = vor.u32 %v8199_v52, %v7197_v51 }
 0xdd1   : > { %v2925_v58 = vpack.c.bf16 %v9900_v57, %v9900_v57 }
 0xdd3   : > { %3021 = vmatmul.bf16.vlgmr.msra.gmra.mxu2 %v2925_v58  ;;  %3034 = vmatmul.bf16.vlgmr.msrb.gmra.mxu3 %v2925_v58 }
 0xdd4   : > { %3184 = vmatpush.bf16.msra.mxu0 %v8181_v2 }
 0xdd8   : > { %3463 = vmatpush.bf16.msrb.mxu0 %v7282_v32 }
 0xddc   : > { %3464 = vmatpush.bf16.msrb.mxu0 %v7270_v34 }
 0xde0   : > { %3465 = vmatpush.bf16.msrb.mxu0 %v7258_v37 }
 0xde3   : > { %3445 = vmatmul.bf16.vlgmr.msrb.gmra.mxu2 %v9911_v63  ;;  %3458 = vmatmul.bf16.vlgmr.msra.gmra.mxu3 %v9911_v63 }
 0xde4   : > { %3466 = vmatpush.bf16.msrb.mxu0 %v7246_v40 }
 0xde8   : > { %3467 = vmatpush.bf16.msrb.mxu0 %v7234_v43 }
 0xdec   : > { %3468 = vmatpush.bf16.msrb.mxu0 %v7222_v46 }
 0xdf0   : > { %3469 = vmatpush.bf16.msrb.mxu0 %v7210_v50 }
 0xdf4   : > { %3470 = vmatpush.bf16.msrb.mxu0 %v7198_v53 }
 0xe56   : > { %v3022_v5 = vpop.f32.mrf.mxu2  ;;  %v3035_v7 = vpop.f32.mrf.mxu3 }
 0xe57   : > { %v3023_v10 = vadd.f32 %v3022_v5, %v2929_v47  ;;  %v3036_v11 = vadd.f32 %v3035_v7, %v2930_v8 }
 0xe59   : > { %v3039_v12 = vmax.f32 %v3023_v10, 0.0  ;;  %v3040_v13 = vmax.f32 %v3036_v11, 0.0  ;;  %v3266_v10 = vld [vmem:[%s10374_s11] sm:$0xff]  ;;  %s10380_s11 = sld [smem:[#allocation46_spill]] }
 0xe5b   : > { %v3074_v14 = vpack.c.bf16 %v3039_v12, %v3039_v12  ;;  %v3075_v15 = vpack.c.bf16 %v3040_v13, %v3040_v13 }
 0xe5d   : > { %3185 = vmatmul.bf16.vlgmr.msra.gmra.mxu0 %v3074_v14  ;;  %3198 = vmatmul.bf16.vlgmr.msrb.gmra.mxu1 %v3075_v15  ;;  %v3305_v15 = vperm.slane %v9917_v18, 2 }
 0xe5e   : > { %v3024_v16 = vpop.f32.mrf.mxu2  ;;  %v3037_v17 = vpop.f32.mrf.mxu3 }
 0xe66   : > { %v3446_v19 = vpop.f32.mrf.mxu2  ;;  %v3459_v20 = vpop.f32.mrf.mxu3 }
 0xe67   : > { %v3460_v23 = vadd.f32 %v3459_v20, %v3304_v55  ;;  %v3447_v25 = vadd.f32 %v3446_v19, %v3303_v21 }
 0xe69   : > { %v3477_v24 = vpack.c.bf16 %v3460_v23, %v3460_v23  ;;  %v3476_v28 = vpack.c.bf16 %v3447_v25, %v3447_v25 }
 0xe6b   : > { %3536 = vrot.lane.b32.xlu2 %v3477_v24, %s10285_s25  ;;  %v3483_v26 = vsel %vm1646_vm0, %v3477_v24, 0 }
 0xe6c   : > { %3492 = vmatpush.bf16.xpose.msra.mxu1 %v3483_v26 }
 0xe6d   : > { %3471 = vmatmul.bf16.vlgmr.msrb.gmra.mxu0 %v9911_v63 }
 0xe6e   : > { %v3448_v9 = vpop.f32.mrf.mxu2  ;;  %v3461_v27 = vpop.f32.mrf.mxu3 }
 0xe73   : > { %3533 = vrot.lane.b32.xlu2 %v3476_v28, %s10285_s25  ;;  %7283 = vmatmul.msk.bf16.vlgmr.msra.gmra.mxu1 %vm1646_vm0, %v3476_v28 }
 0xe7b   : > { %3600 = vrot.lane.b32.xlu2 %v3477_v24, %s10287_s27 }
 0xe83   : > { %3663 = vrot.lane.b32.xlu2 %v3477_v24, %s10289_s15 }
 0xe8b   : > { %3598 = vrot.lane.b32.xlu2 %v3476_v28, %s10287_s27 }
 0xe93   : > { %3661 = vrot.lane.b32.xlu2 %v3476_v28, %s10289_s15 }
 0xec5   : > { %v3537_v54 = vpop.permute.xlu2 %3536 }
 0xec6   : > { %v3542_v56 = vsel %vm1646_vm0, %v3537_v54, 0 }
 0xec7   : > { %3551 = vmatpush.bf16.xpose.msrb.mxu3 %v3542_v56 }
 0xecd   : > { %v3534_v58 = vpop.permute.xlu2 %3533 }
 0xece   : > { %7285 = vmatmul.msk.bf16.vlgmr.msrb.gmra.mxu3 %vm1646_vm0, %v3534_v58 }
 0xed5   : > { %v3601_v59 = vpop.permute.xlu2 %3600 }
 0xed6   : > { %v3606_v60 = vsel %vm1646_vm0, %v3601_v59, 0 }
 0xed7   : > { %3615 = vmatpush.bf16.xpose.msrb.mxu1 %v3606_v60 }
 0xeda   : > { %v3186_v61 = vpop.f32.mrf.mxu0  ;;  %v3199_v0 = vpop.f32.mrf.mxu1 }
 0xedb   : > { %v3187_v1 = vadd.f32 %v8616_v22, %v3186_v61 }
 0xedd   : > { %v9934_v2 = vadd.f32 %v3199_v0, %v3187_v1  ;;  %v3664_v3 = vpop.permute.xlu2 %3663 }
 0xede   : > { %v3669_v63 = vsel %vm1646_vm0, %v3664_v3, 0 }
 0xedf   : > { %3678 = vmatpush.bf16.xpose.msra.mxu3 %v3669_v63 }
 0xee2   : > { %v3188_v4 = vpop.f32.mrf.mxu0  ;;  %v3201_v47 = vpop.f32.mrf.mxu1 }
 0xee5   : > { %v3599_v8 = vpop.permute.xlu2 %3598 }
 0xee6   : > { %7287 = vmatmul.msk.bf16.vlgmr.msrb.gmra.mxu1 %vm1646_vm0, %v3599_v8 }
 0xeea   : > { %v3472_v16 = vpop.f32.mrf.mxu0 }
 0xeeb   : > { %v3473_v17 = vadd.f32 %v3472_v16, %v3305_v15 }
 0xeed   : > { %v3662_v5 = vpop.permute.xlu2 %3661  ;;  %v3478_v55 = vpack.c.bf16 %v3473_v17, %v3473_v17 }
 0xeee   : > { %7289 = vmatmul.msk.bf16.vlgmr.msra.gmra.mxu3 %vm1646_vm0, %v3662_v5 }
 0xeef   : > { %v3514_v20 = vsel %vm1681_vm2, %v3478_v55, 0 }
 0xef0   : > { %v3494_v7 = vpop.f32.mrf.mxu1  ;;  %3523 = vmatpush.bf16.msra.mxu2 %v3514_v20 }
 0xef1   : > { %v3498_v11 = vmul.f32 0.17677669, %v3494_v7 }
 0xef2   : > { %v3474_v19 = vpop.f32.mrf.mxu0 }
 0xef3   : > { %v3499_v12 = vadd.f32 %v3498_v11, %v3266_v10 }
 0xef5   : > { %v3500_v13 = vsel %vm1667_vm1, %v3499_v12, -inf }
 0xef6   : > { %3501 = vmax.xlane.f32.xlu0 %v3500_v13 }
 0xef8   : > { %v3496_v14 = vpop.f32.mrf.mxu1 }
 0xf0a   : > { %3570 = vrot.lane.b32.xlu0 %v3478_v55, %s10285_s25 }
 0xf12   : > { %3696 = vrot.lane.b32.xlu0 %v3478_v55, %s10289_s15 }
 0xf51   : > { %v3553_v21 = vpop.f32.mrf.mxu3 }
 0xf52   : > { %v3557_v23 = vmul.f32 0.17677669, %v3553_v21  ;;  %v3203_v21 = vadd.f32 %v9934_v2, %v9900_v57  ;;  %v8224_v57 = vld [vmem:[#allocation11 + $0x18] sm:$0xff]  ;;  %v8223_v2 = vld [vmem:[#allocation11 + $0x10] sm:$0xff] }
 0xf54   : > { %v3558_v24 = vadd.f32 %v3557_v23, %v3266_v10 }
 0xf56   : > { %v3559_v25 = vsel %vm1667_vm1, %v3558_v24, -inf }
 0xf57   : > { %3560 = vmax.xlane.f32.xlu1 %v3559_v25 }
 0xf59   : > { %v3555_v26 = vpop.f32.mrf.mxu3 }
 0xf63   : > { %v3617_v9 = vpop.f32.mrf.mxu1 }
 0xf64   : > { %v3621_v18 = vmul.f32 0.17677669, %v3617_v9 }
 0xf66   : > { %v3622_v27 = vadd.f32 %v3621_v18, %v3266_v10 }
 0xf68   : > { %v3623_v28 = vsel %vm1667_vm1, %v3622_v27, -inf }
 0xf69   : > { %v3502_v29 = vpop.xlane.xlu0 %3501  ;;  %3624 = vmax.xlane.f32.xlu2 %v3623_v28  ;;  %v8227_v28 = vld [vmem:[#allocation11 + $0x30] sm:$0xff] }
 0xf6a   : > { %v3503_v30 = vsub.f32 %v3499_v12, %v3502_v29  ;;  %v8226_v29 = vld [vmem:[#allocation11 + $0x28] sm:$0xff] }
 0xf6b   : > { %v3619_v31 = vpop.f32.mrf.mxu1 }
 0xf6c   : > { %v3504_v32 = vmul.f32 1.442695, %v3503_v30  ;;  %v8225_v30 = vld [vmem:[#allocation11 + $0x20] sm:$0xff]  ;;  %v8222_v31 = vld [vmem:[#allocation11 + $0x8] sm:$0xff] }
 0xf6e   : > { %8683 = vpow2.f32 %v3504_v32  ;;  %v8221_v32 = vld [vmem:[#allocation11] sm:$0xff] }
 0xf71   : > { %v3680_v33 = vpop.f32.mrf.mxu3 }
 0xf72   : > { %v3684_v34 = vmul.f32 0.17677669, %v3680_v33 }
 0xf74   : > { %v8684_v35 = vpop.eup %8683  ;;  %v3685_v36 = vadd.f32 %v3684_v34, %v3266_v10 }
 0xf75   : > { %v3509_v37 = vpack.c.bf16 %v8684_v35, %v8684_v35  ;;  %v3506_v3 = vsel %vm1667_vm1, %v8684_v35, 0.0 }
 0xf76   : > { %v3686_v38 = vsel %vm1667_vm1, %v3685_v36, -inf }
 0xf77   : > { %3687 = vmax.xlane.f32.xlu1 %v3686_v38  ;;  %7284 = vmatmul.msk.bf16.vlgmr.msra.gmra.mxu2 %vm1667_vm1, %v3509_v37 }
 0xf79   : > { %v3682_v39 = vpop.f32.mrf.mxu3 }
 0xf7c   : > { %v3571_v40 = vpop.permute.xlu0 %3570 }
 0xf7d   : > { %v3576_v41 = vsel %vm1681_vm2, %v3571_v40, 0 }
 0xf7e   : > { %3585 = vmatpush.bf16.msra.mxu0 %v3576_v41 }
 0xf84   : > { %v3697_v42 = vpop.permute.xlu0 %3696 }
 0xf85   : > { %v3702_v43 = vsel %vm1681_vm2, %v3697_v42, 0 }
 0xf86   : > { %3711 = vmatpush.bf16.msrb.mxu0 %v3702_v43 }
 0xf90   : > { %3633 = vrot.lane.b32.xlu1 %v3478_v55, %s10287_s27 }
 0xfca   : > { %v3561_v44 = vpop.xlane.xlu1 %3560 }
 0xfcb   : > { %v3562_v45 = vsub.f32 %v3558_v24, %v3561_v44 }
 0xfcd   : > { %v3563_v46 = vmul.f32 1.442695, %v3562_v45 }
 0xfcf   : > { %8685 = vpow2.f32 %v3563_v46 }
 0xfd5   : > { %v8686_v48 = vpop.eup %8685 }
 0xfd6   : > { %v3568_v49 = vpack.c.bf16 %v8686_v48, %v8686_v48  ;;  %v3565_v50 = vsel %vm1667_vm1, %v8686_v48, 0.0 }
 0xfd7   : > { %3566 = vadd.xlane.f32.xlu0 %v3565_v50 }
 0xfd8   : > { %7286 = vmatmul.msk.bf16.vlgmr.msra.gmra.mxu0 %vm1667_vm1, %v3568_v49 }
 0xfdc   : > { %v3625_v51 = vpop.xlane.xlu2 %3624 }
 0xfdd   : > { %v3626_v52 = vsub.f32 %v3622_v27, %v3625_v51  ;;  %v8228_v27 = vld [vmem:[#allocation11 + $0x38] sm:$0xff] }
 0xfde   : > { %3794 = vmatpush.bf16.msra.mxu1 %v8228_v27  ;;  %v8618_v51 = vld [vmem:[%s10370_s22 + $0x1] ss:$0 sm:$0xff] }
 0xfdf   : > { %v3627_v53 = vmul.f32 1.442695, %v3626_v52 }
 0xfe1   : > { %8687 = vpow2.f32 %v3627_v53  ;;  %v8617_v53 = vld [vmem:[%s10376_s7] ss:$0 sm:$0xff]  ;;  %s10382_s7 = sld [smem:[#allocation47_spill]] }
 0xfe2   : > { %3795 = vmatpush.bf16.msra.mxu1 %v8227_v28  ;;  %v8234_v28 = vld [vmem:[#allocation12 + $0x28] sm:$0xff] }
 0xfe6   : > { %3796 = vmatpush.bf16.msra.mxu1 %v8226_v29  ;;  %v7389_v29 = vld [vmem:[#allocation14 + $0x40] sm:$0xf] }
 0xfe7   : > { %v8688_v54 = vpop.eup %8687 }
 0xfe8   : > { %v3629_v56 = vsel %vm1667_vm1, %v8688_v54, 0.0  ;;  %v3632_v8 = vpack.c.bf16 %v8688_v54, %v8688_v54 }
 0xfe9   : > { %3630 = vadd.xlane.f32.xlu1 %v3629_v56  ;;  %v8619_v56 = vld [vmem:[%s10371_s23 + $0x1] ss:$0 sm:$0xff] }
 0xfea   : > { %v3688_v58 = vpop.xlane.xlu1 %3687  ;;  %3797 = vmatpush.bf16.msra.mxu1 %v8225_v30  ;;  %v8246_v30 = vld [vmem:[#allocation14 + $0x44] sm:$0xf0] }
 0xfeb   : > { %v3689_v59 = vsub.f32 %v3685_v36, %v3688_v58 }
 0xfed   : > { %v3690_v60 = vmul.f32 1.442695, %v3689_v59 }
 0xfee   : > { %3798 = vmatpush.bf16.msra.mxu1 %v8224_v57  ;;  %v8245_v57 = vld [vmem:[#allocation14 + $0x44] sm:$0xf] }
 0xfef   : > { %8689 = vpow2.f32 %v3690_v60 }
 0xff2   : > { %3799 = vmatpush.bf16.msra.mxu1 %v8223_v2  ;;  %v7390_v2 = vor.u32 %v8246_v30, %v7389_v29  ;;  %v8623_v29 = vld [vmem:[%s10382_s7] ss:$0 sm:$0xff] }
 0xff5   : > { %v8690_v22 = vpop.eup %8689 }
 0xff6   : > { %v3695_v61 = vpack.c.bf16 %v8690_v22, %v8690_v22  ;;  %v3692_v0 = vsel %vm1667_vm1, %v8690_v22, 0.0  ;;  %3800 = vmatpush.bf16.msra.mxu1 %v8222_v31  ;;  %v7391_v31 = vld [vmem:[#allocation14 + $0x48] sm:$0xf0] }
 0xff7   : > { %3693 = vadd.xlane.f32.xlu2 %v3692_v0 }
 0xff8   : > { %7290 = vmatmul.msk.bf16.vlgmr.msrb.gmra.mxu0 %vm1667_vm1, %v3695_v61 }
 0xffa   : > { %v3525_v1 = vpop.f32.mrf.mxu2  ;;  %3801 = vmatpush.bf16.msra.mxu1 %v8221_v32  ;;  %v7394_v32 = vor.u32 %v8245_v57, %v7391_v31 }
 0xfff   : > { %3507 = vadd.xlane.f32.xlu2 %v3506_v3  ;;  %v8252_v3 = vld [vmem:[#allocation14 + $0x74] sm:$0xf0] }
0x1002   : > { %v3634_v63 = vpop.permute.xlu1 %3633  ;;  %v3527_v4 = vpop.f32.mrf.mxu2 }
0x1003   : > { %v3639_v47 = vsel %vm1681_vm2, %v3634_v63, 0  ;;  %v8251_v63 = vld [vmem:[#allocation14 + $0x74] sm:$0xf] }
0x1004   : > { %3648 = vmatpush.bf16.msrb.mxu2 %v3639_v47  ;;  %v7415_v47 = vld [vmem:[#allocation14 + $0x78] sm:$0xf0] }
0x1007   : > { %7288 = vmatmul.msk.bf16.vlgmr.msrb.gmra.mxu2 %vm1667_vm1, %v3632_v8  ;;  %v7418_v8 = vor.u32 %v8251_v63, %v7415_v47 }
0x1009   : > { %4036 = vmatpush.bf16.msra.mxu0 %v7418_v8 }
0x104a   : > { %v3567_v5 = vpop.xlane.xlu0 %3566 }
0x104b   : > { %8691 = vrcp.f32 %v3567_v5 }
0x1051   : > { %v8692_v7 = vpop.eup %8691 }
0x1055   : > { %v3587_v10 = vpop.f32.mrf.mxu0 }
0x1056   : > { %v3592_v11 = vmul.f32 %v8692_v7, %v3587_v10 }
0x1058   : > { %3594 = vrot.lane.b32.xlu2 %v3592_v11, %s10289_s15  ;;  %s10384_s15 = sld [smem:[#allocation51_spill]] }
0x105c   : > { %v3631_v23 = vpop.xlane.xlu1 %3630 }
0x105d   : > { %v3589_v12 = vpop.f32.mrf.mxu0 }
0x105e   : > { %s10385_s5 = smov %s10384_s15 }
0x106a   : > { %v3694_v13 = vpop.xlane.xlu2 %3693 }
0x106b   : > { %8693 = vrcp.f32 %v3694_v13 }
0x1071   : > { %v8694_v15 = vpop.eup %8693 }
0x1072   : > { %v3508_v14 = vpop.xlane.xlu2 %3507 }
0x1073   : > { %8695 = vrcp.f32 %v3508_v14 }
0x1074   : > { %8697 = vrcp.f32 %v3631_v23  ;;  %v8235_v23 = vld [vmem:[#allocation12 + $0x30] sm:$0xff] }
0x1075   : > { %v3713_v16 = vpop.f32.mrf.mxu0 }
0x1076   : > { %v3718_v17 = vmul.f32 %v8694_v15, %v3713_v16  ;;  %v8236_v15 = vld [vmem:[#allocation12 + $0x38] sm:$0xff]  ;;  %v7405_v16 = vld [vmem:[#allocation14 + $0x60] sm:$0xf] }
0x1077   : > { %3907 = vmatpush.bf16.msra.mxu2 %v8236_v15 }
0x1078   : > { %3720 = vrot.lane.b32.xlu1 %v3718_v17, %s10285_s25  ;;  %v8250_v17 = vld [vmem:[#allocation14 + $0x64] sm:$0xf0]  ;;  %s10381_s25 = smov %s10380_s11 }
0x1079   : > { %v8696_v55 = vpop.eup %8695 }
0x107a   : > { %v3530_v19 = vmul.f32 %v8696_v55, %v3525_v1  ;;  %v8698_v24 = vpop.eup %8697  ;;  %v7413_v1 = vld [vmem:[#allocation14 + $0x70] sm:$0xf]  ;;  %v8249_v55 = vld [vmem:[#allocation14 + $0x64] sm:$0xf] }
0x107b   : > { %v7414_v4 = vor.u32 %v8252_v3, %v7413_v1  ;;  %3908 = vmatpush.bf16.msra.mxu2 %v8235_v23 }
0x107c   : > { %3531 = vst.msk [vmem:[#allocation2] sm:$0xff] %vm1646_vm0, %v3530_v19  ;;  %v7406_v19 = vor.u32 %v8250_v17, %v7405_v16 }
0x107d   : > { %v3715_v20 = vpop.f32.mrf.mxu0  ;;  %4023 = vmatpush.bf16.msrb.mxu3 %v7414_v4 }
0x107e   : > { %v7407_v20 = vld [vmem:[#allocation14 + $0x68] sm:$0xf0] }
0x107f   : > { %3909 = vmatpush.bf16.msra.mxu2 %v8234_v28 }
0x1081   : > { %3208 = vadd.xlane.f32.xlu2 %v3203_v21  ;;  %4024 = vmatpush.bf16.msrb.mxu3 %v7406_v19 }
0x108a   : > { %v3650_v25 = vpop.f32.mrf.mxu2 }
0x108b   : > { %v3655_v26 = vmul.f32 %v8698_v24, %v3650_v25  ;;  %v7397_v24 = vld [vmem:[#allocation14 + $0x50] sm:$0xf]  ;;  %v8248_v25 = vld [vmem:[#allocation14 + $0x54] sm:$0xf0] }
0x108d   : > { %3657 = vrot.lane.b32.xlu0 %v3655_v26, %s10287_s27  ;;  %v8247_v26 = vld [vmem:[#allocation14 + $0x54] sm:$0xf]  ;;  %s10383_s27 = smov %s10382_s7  ;;  %s10392_s7 = sld [smem:[#allocation54_spill]] }
0x1092   : > { %v3652_v9 = vpop.f32.mrf.mxu2 }
0x1093   : > { %v7398_v9 = vor.u32 %v8248_v25, %v7397_v24  ;;  %s10393_s9 = smov %s10392_s7 }
0x1095   : > { %4025 = vmatpush.bf16.msrb.mxu3 %v7398_v9  ;;  %v8622_v9 = vld [vmem:[%s10380_s11] ss:$0 sm:$0xff]  ;;  %s10390_s11 = sld [smem:[#allocation53_spill]] }
0x1099   : > { %4026 = vmatpush.bf16.msrb.mxu3 %v7390_v2 }
0x109b   : > { %s10391_s8 = smov %s10390_s11 }
0x10b2   : > { %v3595_v18 = vpop.permute.xlu2 %3594 }
0x10b3   : > { %3597 = vst.msk [vmem:[#allocation2] sm:$0xff] %vm1765_vm3, %v3595_v18  ;;  %v7399_v18 = vld [vmem:[#allocation14 + $0x58] sm:$0xf0] }
0x10b4   : > { %v7402_v27 = vor.u32 %v8247_v26, %v7399_v18  ;;  %v8621_v26 = vld [vmem:[%s10379_s4] ss:$0 sm:$0xff]  ;;  %s10389_s4 = smov 32  }
0x10ea   : > { %v3721_v38 = vpop.permute.xlu1 %3720 }
0x10f4   : > { %v3209_v33 = vpop.xlane.xlu2 %3208 }
0x10f5   : > { %v3210_v34 = vmul.f32 %v3209_v33, %v9756_v6  ;;  %v8233_v33 = vld [vmem:[#allocation12 + $0x20] sm:$0xff] }
0x10f6   : > { %3910 = vmatpush.bf16.msra.mxu2 %v8233_v33 }
0x10f7   : > { %v3211_v35 = vsub.f32 %v3203_v21, %v3210_v34  ;;  %v7410_v21 = vor.u32 %v8249_v55, %v7407_v20  ;;  %v7381_v34 = vld [vmem:[#allocation14 + $0x30] sm:$0xf] }
0x10f9   : > { %v3212_v36 = vmul.f32 %v3211_v35, %v3211_v35  ;;  %4037 = vmatpush.bf16.msra.mxu0 %v7410_v21  ;;  %v8620_v21 = vld [vmem:[%s10378_s1] ss:$0 sm:$0xff]  ;;  %s10387_s1 = smov 64  }
0x10fb   : > { %3213 = vadd.xlane.f32.xlu0 %v3212_v36  ;;  %v8243_v36 = vld [vmem:[#allocation14 + $0x34] sm:$0xf] }
0x10fd   : > { %4038 = vmatpush.bf16.msra.mxu0 %v7402_v27 }
0x10ff   : > { %v3658_v37 = vpop.permute.xlu0 %3657 }
0x1100   : > { %3660 = vst.msk [vmem:[#allocation2] sm:$0xff] %vm1828_vm4, %v3658_v37 }
0x1101   : > { %3723 = vst.msk [vmem:[#allocation2] sm:$0xff] %vm1891_vm5, %v3721_v38  ;;  %4039 = vmatpush.bf16.msra.mxu0 %v7394_v32  ;;  %v7383_v38 = vld [vmem:[#allocation14 + $0x38] sm:$0xf0]  ;;  %v3937_v32 = vld [vmem:[%s10384_s15] sm:$0x3]  ;;  %s10388_s15 = smov 96  }
0x1102   : > { %v3940_v33 = vperm.slane %v3937_v32, 1 }
0x1108   : > { %v3724_v39 = vld [vmem:[#allocation2] sm:$0xff] }
0x1109   : > { %v3741_v40 = vpack.c.bf16 %v3724_v39, %v3724_v39  ;;  %v7386_v39 = vor.u32 %v8243_v36, %v7383_v38  ;;  %v3939_v36 = vperm.slane %v3937_v32, 0  ;;  %v8624_v38 = vld [vmem:[%s10386_s6] ss:$0 sm:$0xff] }
0x110b   : > { %3802 = vmatmul.bf16.vlgmr.msra.gmra.mxu1 %v3741_v40  ;;  %v8232_v40 = vld [vmem:[#allocation12 + $0x18] sm:$0xff]  ;;  %4040 = vmatpush.bf16.msra.mxu0 %v7386_v39 }
0x110c   : > { %3911 = vmatpush.bf16.msra.mxu2 %v8232_v40 }
0x116e   : > { %v3214_v41 = vpop.xlane.xlu0 %3213 }
0x116f   : > { %v3215_v42 = vmul.f32 %v3214_v41, %v9756_v6  ;;  %v7373_v41 = vld [vmem:[#allocation14 + $0x20] sm:$0xf] }
0x1171   : > { %v3216_v43 = vadd.f32 1e-05, %v3215_v42  ;;  %v8242_v42 = vld [vmem:[#allocation14 + $0x24] sm:$0xf0] }
0x1173   : > { %8699 = vrsqrt.f32 %v3216_v43  ;;  %vm3223_vm7 = vweird.f32 %v3216_v43 }
0x1179   : > { %v8700_v44 = vpop.eup %8699 }
0x117a   : > { %v3218_v45 = vmul.f32 %v8700_v44, %v3216_v43  ;;  %vm3224_vm6 = vweird.f32 %v8700_v44  ;;  %v8241_v43 = vld [vmem:[#allocation14 + $0x24] sm:$0xf] }
0x117b   : > { %vm3225_vm8 = vmor %vm3223_vm7, %vm3224_vm6 }
0x117c   : > { %v3219_v46 = vmul.f32 %v8700_v44, %v3218_v45  ;;  %v7375_v45 = vld [vmem:[#allocation14 + $0x28] sm:$0xf0] }
0x117e   : > { %v3220_v48 = vmul.f32 0.5, %v3219_v46  ;;  %v7378_v46 = vor.u32 %v8241_v43, %v7375_v45 }
0x1180   : > { %v3221_v49 = vsub.f32 1.5, %v3220_v48  ;;  %v8231_v48 = vld [vmem:[#allocation12 + $0x10] sm:$0xff]  ;;  %4041 = vmatpush.bf16.msra.mxu0 %v7378_v46 }
0x1181   : > { %3912 = vmatpush.bf16.msra.mxu2 %v8231_v48 }
0x1182   : > { %v3222_v50 = vmul.f32 %v8700_v44, %v3221_v49  ;;  %v7365_v49 = vld [vmem:[#allocation14 + $0x10] sm:$0xf] }
0x1184   : > { %v3226_v52 = vsel %vm3225_vm8, %v8700_v44, %v3222_v50  ;;  %v7374_v44 = vor.u32 %v8242_v42, %v7373_v41  ;;  %v8240_v50 = vld [vmem:[#allocation14 + $0x14] sm:$0xf0] }
0x1185   : > { %v3227_v54 = vmul.f32 %v3226_v52, %v3211_v35  ;;  %v8244_v35 = vld [vmem:[#allocation14 + $0x34] sm:$0xf0]  ;;  %v7366_v52 = vor.u32 %v8240_v50, %v7365_v49 }
0x1186   : > { %v7382_v37 = vor.u32 %v8244_v35, %v7381_v34 }
0x1187   : > { %v3231_v58 = vmul.f32 %v8618_v51, %v3227_v54  ;;  %v8239_v51 = vld [vmem:[#allocation14 + $0x14] sm:$0xf] }
0x1188   : > { %v3803_v59 = vpop.f32.mrf.mxu1  ;;  %4027 = vmatpush.bf16.msrb.mxu3 %v7382_v37 }
0x1189   : > { %v3804_v60 = vadd.f32 %v8617_v53, %v3803_v59  ;;  %v3235_v22 = vadd.f32 %v8619_v56, %v3231_v58  ;;  %v7367_v53 = vld [vmem:[#allocation14 + $0x18] sm:$0xf0]  ;;  %v8230_v56 = vld [vmem:[#allocation12 + $0x8] sm:$0xff]  ;;  %v7357_v58 = vld [vmem:[#allocation14] sm:$0xf] }
0x118a   : > { %v7370_v54 = vor.u32 %v8239_v51, %v7367_v53  ;;  %v8238_v59 = vld [vmem:[#allocation14 + $0x4] sm:$0xf0]  ;;  %3913 = vmatpush.bf16.msra.mxu2 %v8230_v56 }
0x118b   : > { %3238 = vadd.xlane.f32.xlu1 %v3235_v22  ;;  %v3807_v61 = vadd.f32 %v3804_v60, %v9907_v62  ;;  %v8237_v60 = vld [vmem:[#allocation14 + $0x4] sm:$0xf] }
0x118c   : > { %4028 = vmatpush.bf16.msrb.mxu3 %v7374_v44  ;;  %4042 = vmatpush.bf16.msra.mxu0 %v7370_v54 }
0x118d   : > { %3810 = vadd.xlane.f32.xlu2 %v3807_v61 }
0x1190   : > { %v3805_v0 = vpop.f32.mrf.mxu1  ;;  %4029 = vmatpush.bf16.msrb.mxu3 %v7366_v52 }
0x1191   : > { %v8229_v0 = vld [vmem:[#allocation12] sm:$0xff] }
0x1192   : > { %3914 = vmatpush.bf16.msra.mxu2 %v8229_v0 }
0x11fe   : > { %v3239_v5 = vpop.xlane.xlu1 %3238 }
0x11ff   : > { %v3240_v7 = vmul.f32 %v3239_v5, %v9756_v6 }
0x1200   : > { %v3811_v10 = vpop.xlane.xlu2 %3810 }
0x1201   : > { %v9976_v11 = vsub.f32 %v3235_v22, %v3240_v7  ;;  %v3812_v12 = vmul.f32 %v3811_v10, %v9756_v6  ;;  %v7358_v22 = vor.u32 %v8238_v59, %v7357_v58 }
0x1203   : > { %v9979_v13 = vsub.f32 %v3807_v61, %v3812_v12  ;;  %v3242_v62 = vmul.f32 %v9976_v11, %v9976_v11  ;;  %v7359_v61 = vld [vmem:[#allocation14 + $0x8] sm:$0xf0]  ;;  %4030 = vmatpush.bf16.msrb.mxu3 %v7358_v22 }
0x1204   : > { %v7362_v1 = vor.u32 %v8237_v60, %v7359_v61 }
0x1205   : > { %3243 = vadd.xlane.f32.xlu2 %v3242_v62  ;;  %v3814_v14 = vmul.f32 %v9979_v13, %v9979_v13 }
0x1206   : > { %4043 = vmatpush.bf16.msra.mxu0 %v7362_v1 }
0x1207   : > { %3815 = vadd.xlane.f32.xlu0 %v3814_v14 }
0x1278   : > { %v3244_v3 = vpop.xlane.xlu2 %3243 }
0x1279   : > { %v3245_v63 = vmul.f32 %v3244_v3, %v9756_v6 }
0x127a   : > { %v3816_v4 = vpop.xlane.xlu0 %3815 }
0x127b   : > { %v3246_v47 = vadd.f32 1e-05, %v3245_v63  ;;  %v3817_v8 = vmul.f32 %v3816_v4, %v9756_v6 }
0x127d   : > { %8701 = vrsqrt.f32 %v3246_v47  ;;  %v3818_v5 = vadd.f32 1e-05, %v3817_v8  ;;  %vm3253_vm10 = vweird.f32 %v3246_v47 }
0x127f   : > { %8703 = vrsqrt.f32 %v3818_v5  ;;  %vm3825_vm13 = vweird.f32 %v3818_v5 }
0x1283   : > { %v8702_v7 = vpop.eup %8701 }
0x1284   : > { %v3248_v10 = vmul.f32 %v8702_v7, %v3246_v47  ;;  %vm3254_vm9 = vweird.f32 %v8702_v7 }
0x1285   : > { %v8704_v12 = vpop.eup %8703  ;;  %vm3255_vm12 = vmor %vm3253_vm10, %vm3254_vm9 }
0x1286   : > { %v3249_v62 = vmul.f32 %v8702_v7, %v3248_v10  ;;  %v3820_v14 = vmul.f32 %v8704_v12, %v3818_v5  ;;  %vm3826_vm11 = vweird.f32 %v8704_v12 }
0x1287   : > { %vm3827_vm14 = vmor %vm3825_vm13, %vm3826_vm11 }
0x1288   : > { %v3250_v15 = vmul.f32 0.5, %v3249_v62  ;;  %v3821_v16 = vmul.f32 %v8704_v12, %v3820_v14 }
0x128a   : > { %v3251_v17 = vsub.f32 1.5, %v3250_v15  ;;  %v3822_v55 = vmul.f32 0.5, %v3821_v16 }
0x128c   : > { %v3252_v19 = vmul.f32 %v8702_v7, %v3251_v17  ;;  %v3823_v20 = vsub.f32 1.5, %v3822_v55 }
0x128e   : > { %v3256_v23 = vsel %vm3255_vm12, %v8702_v7, %v3252_v19  ;;  %v3824_v24 = vmul.f32 %v8704_v12, %v3823_v20 }
0x128f   : > { %v3257_v25 = vmul.f32 %v3256_v23, %v9976_v11 }
0x1290   : > { %v3828_v18 = vsel %vm3827_vm14, %v8704_v12, %v3824_v24 }
0x1291   : > { %v3829_v27 = vmul.f32 %v3828_v18, %v9979_v13  ;;  %v3261_v28 = vmul.f32 %v8620_v21, %v3257_v25 }
0x1293   : > { %v3265_v30 = vadd.f32 %v8621_v26, %v3261_v28  ;;  %v3833_v57 = vmul.f32 %v8622_v9, %v3829_v27 }
0x1295   : > { %v9993_v2 = vpack.c.bf16 %v3265_v30, %v3265_v30  ;;  %v9995_v31 = vadd.f32 %v8623_v29, %v3833_v57 }
0x1297   : > { %4031 = vmatmul.bf16.vlgmr.msrb.gmra.mxu3 %v9993_v2  ;;  %4044 = vmatmul.bf16.vlgmr.msra.gmra.mxu0 %v9993_v2  ;;  %v3854_v11 = vpack.c.bf16 %v9995_v31, %v9995_v31 }
0x1299   : > { %3915 = vmatmul.bf16.vlgmr.msra.gmra.mxu2 %v3854_v11 }
0x1314   : > { %v4045_v13 = vpop.f32.mrf.mxu0 }
0x1315   : > { %v4046_v34 = vadd.f32 %v4045_v13, %v3940_v33 }
0x1317   : > { %v10002_v35 = vpack.c.bf16 %v4046_v34, %v4046_v34 }
0x1319   : > { %v4086_v37 = vsel %vm1681_vm2, %v10002_v35, 0 }
0x131a   : > { %v4032_v39 = vpop.f32.mrf.mxu3  ;;  %4095 = vmatpush.bf16.msrb.mxu2 %v4086_v37 }
0x131b   : > { %v4033_v40 = vadd.f32 %v4032_v39, %v3939_v36 }
0x131c   : > { %v3916_v41 = vpop.f32.mrf.mxu2  ;;  %v4047_v42 = vpop.f32.mrf.mxu0 }
0x131d   : > { %v4050_v43 = vpack.c.bf16 %v4033_v40, %v4033_v40  ;;  %v3917_v44 = vadd.f32 %v8624_v38, %v3916_v41 }
0x131f   : > { %v4049_v45 = vpack.c.bf16 %v3917_v44, %v3917_v44  ;;  %4171 = vrot.lane.b32.xlu1 %v4050_v43, %s10387_s1  ;;  %4108 = vrot.lane.b32.xlu2 %v4050_v43, %s10388_s15  ;;  %v4056_v46 = vsel %vm1646_vm0, %v4050_v43, 0 }
0x1320   : > { %4065 = vmatpush.bf16.xpose.msrb.mxu1 %v4056_v46 }
0x1321   : > { %4105 = vrot.lane.b32.xlu0 %v4049_v45, %s10388_s15 }
0x1322   : > { %v4034_v48 = vpop.f32.mrf.mxu3 }
0x1324   : > { %v3918_v49 = vpop.f32.mrf.mxu2 }
0x1327   : > { %4231 = vrot.lane.b32.xlu1 %v4049_v45, %s10389_s4  ;;  %4169 = vrot.lane.b32.xlu2 %v4049_v45, %s10387_s1 }
0x1328   : > { %7419 = vmatmul.msk.bf16.vlgmr.msrb.gmra.mxu1 %vm1646_vm0, %v4049_v45 }
0x1329   : > { %4233 = vrot.lane.b32.xlu0 %v4050_v43, %s10389_s4 }
0x1379   : > { %v4109_v50 = vpop.permute.xlu2 %4108 }
0x137a   : > { %v4114_v51 = vsel %vm1646_vm0, %v4109_v50, 0 }
0x137b   : > { %4123 = vmatpush.bf16.xpose.msra.mxu3 %v4114_v51 }
0x1381   : > { %v4170_v56 = vpop.permute.xlu2 %4169 }
0x1391   : > { %v4172_v52 = vpop.permute.xlu1 %4171 }
0x1392   : > { %v4177_v53 = vsel %vm1646_vm0, %v4172_v52, 0 }
0x1393   : > { %v4106_v54 = vpop.permute.xlu0 %4105  ;;  %4186 = vmatpush.bf16.xpose.msra.mxu1 %v4177_v53 }
0x1394   : > { %7421 = vmatmul.msk.bf16.vlgmr.msra.gmra.mxu3 %vm1646_vm0, %v4106_v54 }
0x1399   : > { %v4232_v60 = vpop.permute.xlu1 %4231 }
0x139a   : > { %7423 = vmatmul.msk.bf16.vlgmr.msra.gmra.mxu1 %vm1646_vm0, %v4170_v56 }
0x139b   : > { %v4234_v58 = vpop.permute.xlu0 %4233 }
0x139c   : > { %v4239_v59 = vsel %vm1646_vm0, %v4234_v58, 0 }
0x139d   : > { %4248 = vmatpush.bf16.xpose.msrb.mxu3 %v4239_v59 }
0x13a4   : > { %7425 = vmatmul.msk.bf16.vlgmr.msrb.gmra.mxu3 %vm1646_vm0, %v4232_v60 }
0x13a5   : > { %v4067_v22 = vpop.f32.mrf.mxu1 }
0x13a6   : > { %v4071_v61 = vmul.f32 0.17677669, %v4067_v22 }
0x13a8   : > { %v4072_v0 = vsel %vm1667_vm1, %v4071_v61, -inf }
0x13a9   : > { %4073 = vmax.xlane.f32.xlu0 %v4072_v0 }
0x13ad   : > { %v4069_v1 = vpop.f32.mrf.mxu1 }
0x1417   : > { %v4125_v3 = vpop.f32.mrf.mxu3  ;;  %v4188_v63 = vpop.f32.mrf.mxu1 }
0x1418   : > { %v4129_v4 = vmul.f32 0.17677669, %v4125_v3  ;;  %v4192_v47 = vmul.f32 0.17677669, %v4188_v63  ;;  %v8260_v63 = vld [vmem:[#allocation15 + $0x38] sm:$0xff] }
0x1419   : > { %4363 = vmatpush.bf16.msrb.mxu1 %v8260_v63  ;;  %v7471_v63 = vld [vmem:[#allocation17 + $0x18] sm:$0xf0] }
0x141a   : > { %v4130_v8 = vsel %vm1667_vm1, %v4129_v4, -inf  ;;  %v4193_v5 = vsel %vm1667_vm1, %v4192_v47, -inf }
0x141b   : > { %4131 = vmax.xlane.f32.xlu2 %v4130_v8  ;;  %4194 = vmax.xlane.f32.xlu1 %v4193_v5  ;;  %v8257_v8 = vld [vmem:[#allocation15 + $0x20] sm:$0xff]  ;;  %v8256_v5 = vld [vmem:[#allocation15 + $0x18] sm:$0xff] }
0x141c   : > { %v4074_v7 = vpop.xlane.xlu0 %4073 }
0x141d   : > { %v4075_v10 = vsub.f32 %v4071_v61, %v4074_v7  ;;  %v8255_v7 = vld [vmem:[#allocation15 + $0x10] sm:$0xff] }
0x141f   : > { %v4076_v12 = vmul.f32 1.442695, %v4075_v10  ;;  %v4127_v62 = vpop.f32.mrf.mxu3  ;;  %v4190_v14 = vpop.f32.mrf.mxu1  ;;  %v8254_v10 = vld [vmem:[#allocation15 + $0x8] sm:$0xff] }
0x1421   : > { %8705 = vpow2.f32 %v4076_v12  ;;  %v8253_v12 = vld [vmem:[#allocation15] sm:$0xff] }
0x1427   : > { %v8706_v15 = vpop.eup %8705  ;;  %v4250_v16 = vpop.f32.mrf.mxu3 }
0x1428   : > { %v4081_v17 = vpack.c.bf16 %v8706_v15, %v8706_v15  ;;  %v4254_v55 = vmul.f32 0.17677669, %v4250_v16  ;;  %v4078_v34 = vsel %vm1667_vm1, %v8706_v15, 0.0 }
0x142a   : > { %7420 = vmatmul.msk.bf16.vlgmr.msrb.gmra.mxu2 %vm1667_vm1, %v4081_v17  ;;  %v4255_v19 = vsel %vm1667_vm1, %v4254_v55, -inf }
0x142b   : > { %4256 = vmax.xlane.f32.xlu0 %v4255_v19 }
0x142f   : > { %v4252_v20 = vpop.f32.mrf.mxu3 }
0x1433   : > { %4141 = vrot.lane.b32.xlu2 %v10002_v35, %s10388_s15 }
0x1434   : > { %4203 = vrot.lane.b32.xlu1 %v10002_v35, %s10387_s1 }
0x143f   : > { %4265 = vrot.lane.b32.xlu0 %v10002_v35, %s10389_s4 }
0x148e   : > { %v4132_v21 = vpop.xlane.xlu2 %4131  ;;  %v4195_v23 = vpop.xlane.xlu1 %4194 }
0x148f   : > { %v4133_v24 = vsub.f32 %v4129_v4, %v4132_v21  ;;  %v4196_v25 = vsub.f32 %v4192_v47, %v4195_v23  ;;  %v8259_v4 = vld [vmem:[#allocation15 + $0x30] sm:$0xff]  ;;  %v8258_v47 = vld [vmem:[#allocation15 + $0x28] sm:$0xff] }
0x1490   : > { %4364 = vmatpush.bf16.msrb.mxu1 %v8259_v4 }
0x1491   : > { %v4134_v26 = vmul.f32 1.442695, %v4133_v24  ;;  %v4197_v9 = vmul.f32 1.442695, %v4196_v25  ;;  %v7517_v24 = vld [vmem:[#allocation17 + $0x70] sm:$0xf] }
0x1492   : > { %v8276_v25 = vld [vmem:[#allocation17 + $0x74] sm:$0xf0] }
0x1493   : > { %8707 = vpow2.f32 %v4134_v26  ;;  %v8275_v26 = vld [vmem:[#allocation17 + $0x74] sm:$0xf] }
0x1494   : > { %8709 = vpow2.f32 %v4197_v9  ;;  %4365 = vmatpush.bf16.msrb.mxu1 %v8258_v47  ;;  %v7518_v9 = vor.u32 %v8276_v25, %v7517_v24  ;;  %v7461_v47 = vld [vmem:[#allocation17] sm:$0xf] }
0x1495   : > { %v8289_v24 = vld [vmem:[#allocation18 + $0x60] sm:$0xff] }
0x1496   : > { %v4142_v18 = vpop.permute.xlu2 %4141 }
0x1497   : > { %v4147_v27 = vsel %vm1681_vm2, %v4142_v18, 0  ;;  %v7519_v18 = vld [vmem:[#allocation17 + $0x78] sm:$0xf0] }
0x1498   : > { %4156 = vmatpush.bf16.msrb.mxu0 %v4147_v27  ;;  %4366 = vmatpush.bf16.msrb.mxu1 %v8257_v8  ;;  %v7522_v27 = vor.u32 %v8275_v26, %v7519_v18  ;;  %v8262_v8 = vld [vmem:[#allocation17 + $0x4] sm:$0xf0]  ;;  %v8288_v18 = vld [vmem:[#allocation18 + $0x58] sm:$0xff] }
0x1499   : > { %v8708_v28 = vpop.eup %8707 }
0x149a   : > { %v8710_v29 = vpop.eup %8709  ;;  %v4139_v30 = vpack.c.bf16 %v8708_v28, %v8708_v28  ;;  %v4136_v57 = vsel %vm1667_vm1, %v8708_v28, 0.0  ;;  %4523 = vmatpush.bf16.msra.mxu3 %v7522_v27 }
0x149b   : > { %4137 = vadd.xlane.f32.xlu2 %v4136_v57  ;;  %v4199_v11 = vsel %vm1667_vm1, %v8710_v29, 0.0  ;;  %v4202_v38 = vpack.c.bf16 %v8710_v29, %v8710_v29 }
0x149c   : > { %4200 = vadd.xlane.f32.xlu0 %v4199_v11  ;;  %7422 = vmatmul.msk.bf16.vlgmr.msrb.gmra.mxu0 %vm1667_vm1, %v4139_v30  ;;  %v8274_v11 = vld [vmem:[#allocation17 + $0x64] sm:$0xf0] }
0x149d   : > { %4367 = vmatpush.bf16.msrb.mxu1 %v8256_v5  ;;  %v8261_v5 = vld [vmem:[#allocation17 + $0x4] sm:$0xf] }
0x149e   : > { %v4257_v32 = vpop.xlane.xlu0 %4256 }
0x149f   : > { %v4258_v33 = vsub.f32 %v4254_v55, %v4257_v32  ;;  %v8625_v55 = vld [vmem:[%s10390_s11] ss:$0 sm:$0xff]  ;;  %v8273_v32 = vld [vmem:[#allocation17 + $0x64] sm:$0xf]  ;;  %s10394_s11 = sld [smem:[#allocation55_spill]] }
0x14a1   : > { %v4259_v13 = vmul.f32 1.442695, %v4258_v33  ;;  %4368 = vmatpush.bf16.msrb.mxu1 %v8255_v7  ;;  %v7462_v7 = vor.u32 %v8262_v8, %v7461_v47  ;;  %v7676_v8 = vld [vmem:[#allocation9 + $0x174] sm:$0xf0] }
0x14a3   : > { %8711 = vpow2.f32 %v4259_v13  ;;  %4079 = vadd.xlane.f32.xlu2 %v4078_v34  ;;  %v7511_v13 = vld [vmem:[#allocation17 + $0x68] sm:$0xf0] }
0x14a4   : > { %v7514_v34 = vor.u32 %v8273_v32, %v7511_v13  ;;  %v8626_v32 = vld [vmem:[%s10392_s7] ss:$0 sm:$0xff]  ;;  %s10397_s7 = sld [smem:[#allocation57_spill]] }
0x14a5   : > { %4369 = vmatpush.bf16.msrb.mxu1 %v8254_v10  ;;  %v7463_v10 = vld [vmem:[#allocation17 + $0x8] sm:$0xf0]  ;;  %s10395_s12 = smov %s10394_s11  ;;  %v8627_v13 = vld [vmem:[%s10394_s11] ss:$0 sm:$0xff]  ;;  %s10399_s11 = sld [smem:[#allocation58_spill]] }
0x14a6   : > { %v4204_v35 = vpop.permute.xlu1 %4203  ;;  %4524 = vmatpush.bf16.msra.mxu3 %v7514_v34 }
0x14a7   : > { %v4209_v36 = vsel %vm1681_vm2, %v4204_v35, 0  ;;  %v7501_v35 = vld [vmem:[#allocation17 + $0x50] sm:$0xf] }
0x14a8   : > { %4218 = vmatpush.bf16.msra.mxu2 %v4209_v36  ;;  %v8272_v36 = vld [vmem:[#allocation17 + $0x54] sm:$0xf0] }
0x14a9   : > { %v8712_v37 = vpop.eup %8711  ;;  %4370 = vmatpush.bf16.msrb.mxu1 %v8253_v12  ;;  %v7466_v12 = vor.u32 %v8261_v5, %v7463_v10  ;;  %v7682_v5 = vld [vmem:[#allocation9 + $0x170] sm:$0xf] }
0x14aa   : > { %v4261_v39 = vsel %vm1667_vm1, %v8712_v37, 0.0  ;;  %v4264_v43 = vpack.c.bf16 %v8712_v37, %v8712_v37  ;;  %v8271_v37 = vld [vmem:[#allocation17 + $0x54] sm:$0xf]  ;;  %s10398_s16 = smov %s10397_s7 }
0x14ab   : > { %4262 = vadd.xlane.f32.xlu1 %v4261_v39  ;;  %7424 = vmatmul.msk.bf16.vlgmr.msra.gmra.mxu2 %vm1667_vm1, %v4202_v38  ;;  %v7502_v38 = vor.u32 %v8272_v36, %v7501_v35  ;;  %v7503_v39 = vld [vmem:[#allocation17 + $0x58] sm:$0xf0]  ;;  %s10400_s17 = smov %s10399_s11 }
0x14ac   : > { %4510 = vmatpush.bf16.msrb.mxu2 %v7518_v9  ;;  %v8280_v9 = vld [vmem:[#allocation18 + $0x18] sm:$0xff] }
0x14ad   : > { %v4097_v40 = vpop.f32.mrf.mxu2 }
0x14b1   : > { %v4266_v41 = vpop.permute.xlu0 %4265 }
0x14b2   : > { %v4271_v42 = vsel %vm1681_vm2, %v4266_v41, 0  ;;  %v7493_v41 = vld [vmem:[#allocation17 + $0x40] sm:$0xf] }
0x14b3   : > { %4280 = vmatpush.bf16.msra.mxu0 %v4271_v42  ;;  %v8270_v42 = vld [vmem:[#allocation17 + $0x44] sm:$0xf0] }
0x14b5   : > { %v4099_v44 = vpop.f32.mrf.mxu2 }
0x14b6   : > { %7426 = vmatmul.msk.bf16.vlgmr.msra.gmra.mxu0 %vm1667_vm1, %v4264_v43  ;;  %v8269_v43 = vld [vmem:[#allocation17 + $0x44] sm:$0xf]  ;;  %v7494_v44 = vor.u32 %v8270_v42, %v7493_v41  ;;  %v4424_v42 = vld [vmem:[%s10396_s14] sm:$0x3] }
0x14b7   : > { %v8285_v41 = vld [vmem:[#allocation18 + $0x40] sm:$0xff] }
0x150e   : > { %v4138_v45 = vpop.xlane.xlu2 %4137 }
0x150f   : > { %8713 = vrcp.f32 %v4138_v45  ;;  %v4201_v54 = vpop.xlane.xlu0 %4200  ;;  %v7495_v45 = vld [vmem:[#allocation17 + $0x48] sm:$0xf0] }
0x1515   : > { %v8714_v48 = vpop.eup %8713 }
0x1516   : > { %v4080_v46 = vpop.xlane.xlu2 %4079 }
0x1517   : > { %8715 = vrcp.f32 %v4080_v46  ;;  %v7498_v46 = vor.u32 %v8269_v43, %v7495_v45  ;;  %v4426_v43 = vperm.slane %v4424_v42, 0 }
0x1518   : > { %8717 = vrcp.f32 %v4201_v54  ;;  %v7477_v54 = vld [vmem:[#allocation17 + $0x20] sm:$0xf] }
0x1519   : > { %v4158_v49 = vpop.f32.mrf.mxu0 }
0x151a   : > { %v4163_v50 = vmul.f32 %v8714_v48, %v4158_v49  ;;  %v7485_v48 = vld [vmem:[#allocation17 + $0x30] sm:$0xf]  ;;  %v8268_v49 = vld [vmem:[#allocation17 + $0x34] sm:$0xf0] }
0x151c   : > { %4165 = vrot.lane.b32.xlu0 %v4163_v50, %s10389_s4  ;;  %v8267_v50 = vld [vmem:[#allocation17 + $0x34] sm:$0xf] }
0x151d   : > { %v8716_v51 = vpop.eup %8715 }
0x151e   : > { %v4102_v52 = vmul.f32 %v8716_v51, %v4097_v40  ;;  %v4263_v56 = vpop.xlane.xlu1 %4262  ;;  %v8718_v58 = vpop.eup %8717  ;;  %v7506_v40 = vor.u32 %v8271_v37, %v7503_v39  ;;  %v7486_v51 = vor.u32 %v8268_v49, %v7485_v48  ;;  %v8286_v39 = vld [vmem:[#allocation18 + $0x48] sm:$0xff] }
0x151f   : > { %8719 = vrcp.f32 %v4263_v56  ;;  %v8266_v56 = vld [vmem:[#allocation17 + $0x24] sm:$0xf0] }
0x1520   : > { %4103 = vst.msk [vmem:[#allocation2] sm:$0xff] %vm1646_vm0, %v4102_v52  ;;  %4525 = vmatpush.bf16.msra.mxu3 %v7506_v40  ;;  %v7487_v52 = vld [vmem:[#allocation17 + $0x38] sm:$0xf0]  ;;  %v8277_v40 = vld [vmem:[#allocation18] sm:$0xff] }
0x1521   : > { %v4160_v53 = vpop.f32.mrf.mxu0 }
0x1522   : > { %v7490_v53 = vor.u32 %v8267_v50, %v7487_v52 }
0x1524   : > { %4526 = vmatpush.bf16.msra.mxu3 %v7498_v46 }
0x1525   : > { %v8720_v22 = vpop.eup %8719 }
0x1528   : > { %4527 = vmatpush.bf16.msra.mxu3 %v7490_v53 }
0x152e   : > { %v4220_v59 = vpop.f32.mrf.mxu2 }
0x152f   : > { %v4225_v60 = vmul.f32 %v8718_v58, %v4220_v59  ;;  %v8265_v58 = vld [vmem:[#allocation17 + $0x24] sm:$0xf]  ;;  %v7478_v59 = vor.u32 %v8266_v56, %v7477_v54  ;;  %v8628_v56 = vld [vmem:[%s10397_s7] ss:$0 sm:$0xff]  ;;  %s10401_s7 = sld [smem:[#allocation59_spill]] }
0x1531   : > { %4227 = vrot.lane.b32.xlu2 %v4225_v60, %s10387_s1  ;;  %v7479_v60 = vld [vmem:[#allocation17 + $0x28] sm:$0xf0] }
0x1533   : > { %v4282_v61 = vpop.f32.mrf.mxu0 }
0x1534   : > { %v4287_v0 = vmul.f32 %v8720_v22, %v4282_v61  ;;  %v7482_v22 = vor.u32 %v8265_v58, %v7479_v60  ;;  %v7469_v61 = vld [vmem:[#allocation17 + $0x10] sm:$0xf] }
0x1535   : > { %s10402_s18 = smov %s10401_s7 }
0x1536   : > { %v4222_v1 = vpop.f32.mrf.mxu2  ;;  %4289 = vrot.lane.b32.xlu1 %v4287_v0, %s10388_s15  ;;  %4528 = vmatpush.bf16.msra.mxu3 %v7482_v22  ;;  %v8264_v0 = vld [vmem:[#allocation17 + $0x14] sm:$0xf0] }
0x1537   : > { %v8263_v1 = vld [vmem:[#allocation17 + $0x14] sm:$0xf] }
0x1538   : > { %v7474_v4 = vor.u32 %v8263_v1, %v7471_v63  ;;  %v8315_v63 = vld [vmem:[#allocation9 + $0x170] sm:$0xf0] }
0x153a   : > { %4529 = vmatpush.bf16.msra.mxu3 %v7474_v4  ;;  %v8314_v4 = vld [vmem:[#allocation9 + $0x16c] sm:$0xf] }
0x153b   : > { %v4284_v3 = vpop.f32.mrf.mxu0  ;;  %v7679_v10 = vor.u32 %v8314_v4, %v7676_v8  ;;  %v8298_v4 = vld [vmem:[#allocation9 + $0xe8] sm:$0xf0] }
0x153c   : > { %v7470_v3 = vor.u32 %v8264_v0, %v7469_v61 }
0x153e   : > { %4530 = vmatpush.bf16.msra.mxu3 %v7466_v12 }
0x1542   : > { %4913 = vmatpush.bf16.msrb.mxu3 %v7679_v10  ;;  %v8293_v10 = vld [vmem:[#allocation9 + $0xc4] sm:$0xf] }
0x158b   : > { %v4228_v14 = vpop.permute.xlu2 %4227 }
0x158e   : > { %v4166_v62 = vpop.permute.xlu0 %4165 }
0x158f   : > { %4168 = vst.msk [vmem:[#allocation2] sm:$0xff] %vm1765_vm3, %v4166_v62  ;;  %v8284_v62 = vld [vmem:[#allocation18 + $0x38] sm:$0xff] }
0x1590   : > { %4230 = vst.msk [vmem:[#allocation2] sm:$0xff] %vm1828_vm4, %v4228_v14  ;;  %v8292_v14 = vld [vmem:[#allocation18 + $0x78] sm:$0xff]  ;;  %4672 = vmatpush.bf16.msrb.mxu0 %v8284_v62 }
0x1591   : > { %4685 = vmatpush.bf16.msra.mxu1 %v8292_v14 }
0x15a8   : > { %v4290_v15 = vpop.permute.xlu1 %4289 }
0x15a9   : > { %4292 = vst.msk [vmem:[#allocation2] sm:$0xff] %vm1891_vm5, %v4290_v15 }
0x15b0   : > { %v4293_v16 = vld [vmem:[#allocation2] sm:$0xff] }
0x15b1   : > { %v4310_v17 = vpack.c.bf16 %v4293_v16, %v4293_v16 }
0x15b3   : > { %4371 = vmatmul.bf16.vlgmr.msrb.gmra.mxu1 %v4310_v17  ;;  %v8283_v17 = vld [vmem:[#allocation18 + $0x30] sm:$0xff] }
0x15b4   : > { %4673 = vmatpush.bf16.msrb.mxu0 %v8283_v17  ;;  %v7662_v17 = vld [vmem:[#allocation9 + $0x150] sm:$0xf] }
0x1630   : > { %v4372_v19 = vpop.f32.mrf.mxu1 }
0x1631   : > { %v4373_v20 = vadd.f32 %v8625_v55, %v4372_v19  ;;  %v8291_v55 = vld [vmem:[#allocation18 + $0x70] sm:$0xff] }
0x1632   : > { %4686 = vmatpush.bf16.msra.mxu1 %v8291_v55  ;;  %v8312_v55 = vld [vmem:[#allocation9 + $0x158] sm:$0xf0] }
0x1633   : > { %v4376_v21 = vadd.f32 %v4373_v20, %v9995_v31  ;;  %v7509_v31 = vld [vmem:[#allocation17 + $0x60] sm:$0xf]  ;;  %v8282_v20 = vld [vmem:[#allocation18 + $0x28] sm:$0xff] }
0x1634   : > { %v7510_v33 = vor.u32 %v8274_v11, %v7509_v31  ;;  %4674 = vmatpush.bf16.msrb.mxu0 %v8282_v20  ;;  %v7663_v20 = vor.u32 %v8312_v55, %v7662_v17 }
0x1635   : > { %4379 = vadd.xlane.f32.xlu0 %v4376_v21 }
0x1636   : > { %4511 = vmatpush.bf16.msrb.mxu2 %v7510_v33 }
0x1638   : > { %v4374_v23 = vpop.f32.mrf.mxu1 }
0x1639   : > { %v8281_v23 = vld [vmem:[#allocation18 + $0x20] sm:$0xff] }
0x163a   : > { %4512 = vmatpush.bf16.msrb.mxu2 %v7502_v38  ;;  %4675 = vmatpush.bf16.msrb.mxu0 %v8281_v23  ;;  %v8278_v38 = vld [vmem:[#allocation18 + $0x8] sm:$0xff]  ;;  %v7670_v23 = vld [vmem:[#allocation9 + $0x158] sm:$0xf] }
0x163e   : > { %4513 = vmatpush.bf16.msrb.mxu2 %v7494_v44  ;;  %4676 = vmatpush.bf16.msrb.mxu0 %v8280_v9  ;;  %v4427_v44 = vperm.slane %v4424_v42, 1  ;;  %v7650_v9 = vld [vmem:[#allocation9 + $0x138] sm:$0xf]  ;;  %v8303_v42 = vld [vmem:[#allocation9 + $0x110] sm:$0xf0] }
0x1642   : > { %4514 = vmatpush.bf16.msrb.mxu2 %v7486_v51 }
0x1646   : > { %4515 = vmatpush.bf16.msrb.mxu2 %v7478_v59 }
0x164a   : > { %4516 = vmatpush.bf16.msrb.mxu2 %v7470_v3  ;;  %v7674_v3 = vld [vmem:[#allocation9 + $0x168] sm:$0xf] }
0x164b   : > { %v7675_v47 = vor.u32 %v8315_v63, %v7674_v3  ;;  %v7604_v3 = vld [vmem:[#allocation9 + $0xe4] sm:$0xf0]  ;;  %v7610_v63 = vld [vmem:[#allocation9 + $0xe0] sm:$0xf] }
0x164c   : > { %v7611_v8 = vor.u32 %v8298_v4, %v7610_v63  ;;  %v8344_v63 = vld [vmem:[#allocation14 + $0xd4] sm:$0xf0] }
0x164e   : > { %4517 = vmatpush.bf16.msrb.mxu2 %v7462_v7  ;;  %v8316_v7 = vld [vmem:[#allocation9 + $0x178] sm:$0xf0] }
0x164f   : > { %v7683_v12 = vor.u32 %v8316_v7, %v7682_v5  ;;  %v7590_v5 = vld [vmem:[#allocation9 + $0xc0] sm:$0xf]  ;;  %v8294_v7 = vld [vmem:[#allocation9 + $0xc8] sm:$0xf0] }
0x1652   : > { %4900 = vmatpush.bf16.msra.mxu2 %v7675_v47 }
0x1656   : > { %4901 = vmatpush.bf16.msra.mxu2 %v7663_v20 }
0x16a8   : > { %v4380_v28 = vpop.xlane.xlu0 %4379 }
0x16a9   : > { %v4381_v29 = vmul.f32 %v4380_v28, %v9756_v6 }
0x16ab   : > { %v10052_v30 = vsub.f32 %v4376_v21, %v4381_v29  ;;  %v8290_v21 = vld [vmem:[#allocation18 + $0x68] sm:$0xff]  ;;  %v8279_v29 = vld [vmem:[#allocation18 + $0x10] sm:$0xff] }
0x16ac   : > { %4687 = vmatpush.bf16.msra.mxu1 %v8290_v21  ;;  %4677 = vmatpush.bf16.msrb.mxu0 %v8279_v29  ;;  %v7664_v21 = vld [vmem:[#allocation9 + $0x15c] sm:$0xf0]  ;;  %v7652_v29 = vld [vmem:[#allocation9 + $0x144] sm:$0xf0] }
0x16ad   : > { %v4383_v57 = vmul.f32 %v10052_v30, %v10052_v30 }
0x16af   : > { %4384 = vadd.xlane.f32.xlu2 %v4383_v57  ;;  %v8287_v57 = vld [vmem:[#allocation18 + $0x50] sm:$0xff] }
0x16b0   : > { %4688 = vmatpush.bf16.msra.mxu1 %v8289_v24  ;;  %4678 = vmatpush.bf16.msrb.mxu0 %v8278_v38  ;;  %v8313_v24 = vld [vmem:[#allocation9 + $0x160] sm:$0xf0]  ;;  %v8307_v38 = vld [vmem:[#allocation9 + $0x130] sm:$0xf0] }
0x16b4   : > { %4689 = vmatpush.bf16.msra.mxu1 %v8288_v18  ;;  %4679 = vmatpush.bf16.msrb.mxu0 %v8277_v40  ;;  %v8309_v18 = vld [vmem:[#allocation9 + $0x140] sm:$0xf0] }
0x16b8   : > { %4690 = vmatpush.bf16.msra.mxu1 %v8287_v57  ;;  %4926 = vmatpush.bf16.msra.mxu0 %v7683_v12  ;;  %v7658_v57 = vld [vmem:[#allocation9 + $0x140] sm:$0xf]  ;;  %v7591_v12 = vor.u32 %v8294_v7, %v7590_v5  ;;  %v8342_v5 = vld [vmem:[#allocation14 + $0xc4] sm:$0xf0] }
0x16bc   : > { %4691 = vmatpush.bf16.msra.mxu1 %v8286_v39 }
0x16c0   : > { %4692 = vmatpush.bf16.msra.mxu1 %v8285_v41  ;;  %v7626_v41 = vld [vmem:[#allocation9 + $0x108] sm:$0xf] }
0x1722   : > { %v4385_v15 = vpop.xlane.xlu2 %4384 }
0x1723   : > { %v4386_v16 = vmul.f32 %v4385_v15, %v9756_v6 }
0x1725   : > { %v4387_v19 = vadd.f32 1e-05, %v4386_v16 }
0x1727   : > { %8721 = vrsqrt.f32 %v4387_v19  ;;  %vm4394_vm6 = vweird.f32 %v4387_v19 }
0x172d   : > { %v8722_v25 = vpop.eup %8721 }
0x172e   : > { %v4389_v26 = vmul.f32 %v8722_v25, %v4387_v19  ;;  %vm4395_vm15 = vweird.f32 %v8722_v25  ;;  %v8311_v19 = vld [vmem:[#allocation9 + $0x154] sm:$0xf] }
0x172f   : > { %vm4396_vm7 = vmor %vm4394_vm6, %vm4395_vm15 }
0x1730   : > { %v4390_v27 = vmul.f32 %v8722_v25, %v4389_v26  ;;  %v7671_v26 = vor.u32 %v8313_v24, %v7670_v23 }
0x1732   : > { %v4391_v28 = vmul.f32 0.5, %v4390_v27  ;;  %4927 = vmatpush.bf16.msra.mxu0 %v7671_v26  ;;  %v8308_v27 = vld [vmem:[#allocation9 + $0x13c] sm:$0xf] }
0x1734   : > { %v4392_v31 = vsub.f32 1.5, %v4391_v28  ;;  %v7651_v28 = vor.u32 %v8309_v18, %v7650_v9 }
0x1736   : > { %v4393_v11 = vmul.f32 %v8722_v25, %v4392_v31  ;;  %v8310_v31 = vld [vmem:[#allocation9 + $0x148] sm:$0xf0]  ;;  %4902 = vmatpush.bf16.msra.mxu2 %v7651_v28 }
0x1738   : > { %v4397_v33 = vsel %vm4396_vm7, %v8722_v25, %v4393_v11  ;;  %v7667_v25 = vor.u32 %v8311_v19, %v7664_v21  ;;  %v7655_v11 = vor.u32 %v8308_v27, %v7652_v29  ;;  %v8629_v27 = vld [vmem:[%s10399_s11] ss:$0 sm:$0xff]  ;;  %s1422_s11 = sand.u32 1, %s9174_s10  }
0x1739   : > { %v4398_v34 = vmul.f32 %v4397_v33, %v10052_v30  ;;  %v7638_v33 = vld [vmem:[#allocation9 + $0x120] sm:$0xf]  ;;  %v8630_v29 = vld [vmem:[%s10401_s7] ss:$0 sm:$0xff]  ;;  %s8405_s7 = sshll.u32 %s9482_s0, 4  ;;  %s6371_s0 = scalar_lea.sflag [#allocation5], %s1422_s11 }
0x173a   : > { %4914 = vmatpush.bf16.msrb.mxu3 %v7667_v25 }
0x173b   : > { %v4402_v35 = vmul.f32 %v8626_v32, %v4398_v34  ;;  %v7659_v32 = vor.u32 %v8310_v31, %v7658_v57  ;;  %v8305_v34 = vld [vmem:[#allocation9 + $0x124] sm:$0xf] }
0x173d   : > { %v4406_v36 = vadd.f32 %v8627_v13, %v4402_v35  ;;  %4928 = vmatpush.bf16.msra.mxu0 %v7659_v32  ;;  %v8306_v13 = vld [vmem:[#allocation9 + $0x128] sm:$0xf0] }
0x173e   : > { %4915 = vmatpush.bf16.msrb.mxu3 %v7655_v11  ;;  %v7639_v35 = vor.u32 %v8306_v13, %v7638_v33  ;;  %v7587_v33 = vld [vmem:[%s10373_s3 + $0x3] sm:$0x7] }
0x173f   : > { %v4423_v37 = vpack.c.bf16 %v4406_v36, %v4406_v36  ;;  %v4768_v13 = vperm.slane %v7587_v33, 2 }
0x1740   : > { %4903 = vmatpush.bf16.msra.mxu2 %v7639_v35 }
0x1741   : > { %4518 = vmatmul.bf16.vlgmr.msrb.gmra.mxu2 %v4423_v37  ;;  %4531 = vmatmul.bf16.vlgmr.msra.gmra.mxu3 %v4423_v37  ;;  %v7646_v37 = vld [vmem:[#allocation9 + $0x128] sm:$0xf] }
0x1742   : > { %v7647_v40 = vor.u32 %v8307_v38, %v7646_v37  ;;  %v4767_v37 = vperm.slane %v7587_v33, 1 }
0x1744   : > { %4929 = vmatpush.bf16.msra.mxu0 %v7647_v40 }
0x17c4   : > { %v4519_v45 = vpop.f32.mrf.mxu2  ;;  %v4532_v46 = vpop.f32.mrf.mxu3 }
0x17c5   : > { %v4520_v30 = vadd.f32 %v4519_v45, %v4426_v43  ;;  %v4533_v48 = vadd.f32 %v4532_v46, %v4427_v44  ;;  %v8302_v43 = vld [vmem:[#allocation9 + $0x10c] sm:$0xf]  ;;  %v7627_v44 = vor.u32 %v8303_v42, %v7626_v41  ;;  %v7628_v45 = vld [vmem:[#allocation9 + $0x114] sm:$0xf0]  ;;  %v7634_v46 = vld [vmem:[#allocation9 + $0x110] sm:$0xf] }
0x17c7   : > { %v4536_v49 = vmax.f32 %v4520_v30, 0.0  ;;  %v4537_v50 = vmax.f32 %v4533_v48, 0.0  ;;  %v8304_v30 = vld [vmem:[#allocation9 + $0x118] sm:$0xf0]  ;;  %v7631_v48 = vor.u32 %v8302_v43, %v7628_v45  ;;  %4904 = vmatpush.bf16.msra.mxu2 %v7627_v44 }
0x17c9   : > { %v4570_v51 = vpack.c.bf16 %v4536_v49, %v4536_v49  ;;  %v4571_v52 = vpack.c.bf16 %v4537_v50, %v4537_v50  ;;  %v7635_v49 = vor.u32 %v8304_v30, %v7634_v46  ;;  %v7614_v50 = vld [vmem:[#allocation9 + $0xf0] sm:$0xf] }
0x17cb   : > { %4680 = vmatmul.bf16.vlgmr.msrb.gmra.mxu0 %v4570_v51  ;;  %4693 = vmatmul.bf16.vlgmr.msra.gmra.mxu1 %v4571_v52  ;;  %v8300_v51 = vld [vmem:[#allocation9 + $0xf8] sm:$0xf0]  ;;  %v8299_v52 = vld [vmem:[#allocation9 + $0xf4] sm:$0xf] }
0x17cc   : > { %v4521_v53 = vpop.f32.mrf.mxu2  ;;  %v4534_v54 = vpop.f32.mrf.mxu3  ;;  %4930 = vmatpush.bf16.msra.mxu0 %v7635_v49 }
0x17cd   : > { %v7615_v53 = vor.u32 %v8300_v51, %v7614_v50  ;;  %v7616_v54 = vld [vmem:[#allocation9 + $0xfc] sm:$0xf0] }
0x17cf   : > { %4905 = vmatpush.bf16.msra.mxu2 %v7615_v53 }
0x1848   : > { %v4681_v58 = vpop.f32.mrf.mxu0  ;;  %v4694_v59 = vpop.f32.mrf.mxu1 }
0x1849   : > { %v4682_v60 = vadd.f32 %v8628_v56, %v4681_v58  ;;  %v7622_v56 = vld [vmem:[#allocation9 + $0xf8] sm:$0xf]  ;;  %v8301_v58 = vld [vmem:[#allocation9 + $0x100] sm:$0xf0] }
0x184b   : > { %v4695_v22 = vadd.f32 %v4694_v59, %v4682_v60  ;;  %v7619_v59 = vor.u32 %v8299_v52, %v7616_v54  ;;  %v7623_v60 = vor.u32 %v8301_v58, %v7622_v56  ;;  %v7819_v54 = vld [vmem:[#allocation14 + $0xf0] sm:$0xf]  ;;  %v8348_v56 = vld [vmem:[#allocation14 + $0xf4] sm:$0xf0] }
0x184d   : > { %v4698_v61 = vadd.f32 %v4695_v22, %v4406_v36  ;;  %v7640_v36 = vld [vmem:[#allocation9 + $0x12c] sm:$0xf0]  ;;  %4931 = vmatpush.bf16.msra.mxu0 %v7623_v60  ;;  %v7602_v22 = vld [vmem:[#allocation9 + $0xd8] sm:$0xf] }
0x184e   : > { %v7643_v39 = vor.u32 %v8305_v34, %v7640_v36  ;;  %v4766_v36 = vperm.slane %v7587_v33, 0 }
0x184f   : > { %4701 = vadd.xlane.f32.xlu1 %v4698_v61 }
0x1850   : > { %v4683_v0 = vpop.f32.mrf.mxu0  ;;  %v4696_v1 = vpop.f32.mrf.mxu1  ;;  %4916 = vmatpush.bf16.msrb.mxu3 %v7643_v39 }
0x1851   : > { %v8296_v0 = vld [vmem:[#allocation9 + $0xdc] sm:$0xf]  ;;  %4932 = vmatpush.bf16.msra.mxu0 %v7611_v8  ;;  %v7795_v8 = vld [vmem:[#allocation14 + $0xc0] sm:$0xf] }
0x1852   : > { %v7607_v47 = vor.u32 %v8296_v0, %v7604_v3  ;;  %v7803_v3 = vld [vmem:[#allocation14 + $0xd0] sm:$0xf] }
0x1853   : > { %v7804_v4 = vor.u32 %v8344_v63, %v7803_v3 }
0x1854   : > { %4917 = vmatpush.bf16.msrb.mxu3 %v7631_v48 }
0x1858   : > { %4918 = vmatpush.bf16.msrb.mxu3 %v7619_v59  ;;  %v7820_v59 = vor.u32 %v8348_v56, %v7819_v54 }
0x185c   : > { %4919 = vmatpush.bf16.msrb.mxu3 %v7607_v47 }
0x18c2   : > { %v4702_v62 = vpop.xlane.xlu1 %4701 }
0x18c3   : > { %v4703_v14 = vmul.f32 %v4702_v62, %v9756_v6  ;;  %v7592_v62 = vld [vmem:[#allocation9 + $0xcc] sm:$0xf0] }
0x18c4   : > { %v7595_v17 = vor.u32 %v8293_v10, %v7592_v62  ;;  %v7796_v10 = vor.u32 %v8342_v5, %v7795_v8  ;;  %v7787_v62 = vld [vmem:[#allocation14 + $0xb0] sm:$0xf] }
0x18c5   : > { %v10063_v15 = vsub.f32 %v4698_v61, %v4703_v14  ;;  %v8297_v61 = vld [vmem:[#allocation9 + $0xe0] sm:$0xf0]  ;;  %v7598_v14 = vld [vmem:[#allocation9 + $0xc8] sm:$0xf] }
0x18c6   : > { %v7603_v1 = vor.u32 %v8297_v61, %v7602_v22  ;;  %4920 = vmatpush.bf16.msrb.mxu3 %v7595_v17  ;;  %v7811_v22 = vld [vmem:[#allocation14 + $0xe0] sm:$0xf]  ;;  %v8346_v61 = vld [vmem:[#allocation14 + $0xe4] sm:$0xf0] }
0x18c7   : > { %v4705_v16 = vmul.f32 %v10063_v15, %v10063_v15 }
0x18c8   : > { %4906 = vmatpush.bf16.msra.mxu2 %v7603_v1  ;;  %v7812_v1 = vor.u32 %v8346_v61, %v7811_v22 }
0x18c9   : > { %4706 = vadd.xlane.f32.xlu0 %v4705_v16  ;;  %v8295_v16 = vld [vmem:[#allocation9 + $0xd0] sm:$0xf0] }
0x18ca   : > { %v7599_v55 = vor.u32 %v8295_v16, %v7598_v14  ;;  %v8340_v14 = vld [vmem:[#allocation14 + $0xb4] sm:$0xf0] }
0x18cb   : > { %v8765_v16 = vld [vmem:[%s10375_s26] sm:$0xff] }
0x18cc   : > { %4907 = vmatpush.bf16.msra.mxu2 %v7591_v12  ;;  %4933 = vmatpush.bf16.msra.mxu0 %v7599_v55  ;;  %v7788_v55 = vor.u32 %v8340_v14, %v7787_v62 }
0x193c   : > { %v4707_v19 = vpop.xlane.xlu0 %4706 }
0x193d   : > { %v4708_v20 = vmul.f32 %v4707_v19, %v9756_v6 }
0x193f   : > { %v4709_v21 = vadd.f32 1e-05, %v4708_v20  ;;  %v7779_v20 = vld [vmem:[#allocation14 + $0xa0] sm:$0xf] }
0x1941   : > { %8723 = vrsqrt.f32 %v4709_v21  ;;  %vm4716_vm9 = vweird.f32 %v4709_v21 }
0x1947   : > { %v8724_v23 = vpop.eup %8723 }
0x1948   : > { %v4711_v24 = vmul.f32 %v8724_v23, %v4709_v21  ;;  %vm4717_vm8 = vweird.f32 %v8724_v23  ;;  %v8338_v21 = vld [vmem:[#allocation14 + $0xa4] sm:$0xf0] }
0x1949   : > { %vm4718_vm10 = vmor %vm4716_vm9, %vm4717_vm8 }
0x194a   : > { %v4712_v25 = vmul.f32 %v8724_v23, %v4711_v24  ;;  %v7780_v24 = vor.u32 %v8338_v21, %v7779_v20  ;;  %v8347_v21 = vld [vmem:[#allocation14 + $0xf4] sm:$0xf] }
0x194c   : > { %v4713_v26 = vmul.f32 0.5, %v4712_v25  ;;  %v7771_v25 = vld [vmem:[#allocation14 + $0x90] sm:$0xf] }
0x194e   : > { %v4714_v9 = vsub.f32 1.5, %v4713_v26  ;;  %v8336_v26 = vld [vmem:[#allocation14 + $0x94] sm:$0xf0] }
0x1950   : > { %v4715_v18 = vmul.f32 %v8724_v23, %v4714_v9  ;;  %v7772_v9 = vor.u32 %v8336_v26, %v7771_v25  ;;  %v8345_v26 = vld [vmem:[#allocation14 + $0xe4] sm:$0xf] }
0x1952   : > { %v4719_v28 = vsel %vm4718_vm10, %v8724_v23, %v4715_v18  ;;  %v7763_v18 = vld [vmem:[#allocation14 + $0x80] sm:$0xf] }
0x1953   : > { %v4720_v57 = vmul.f32 %v4719_v28, %v10063_v15 }
0x1955   : > { %v4724_v31 = vmul.f32 %v8629_v27, %v4720_v57  ;;  %v8334_v27 = vld [vmem:[#allocation14 + $0x84] sm:$0xf0]  ;;  %v8323_v57 = vld [vmem:[#allocation11 + $0x70] sm:$0xff] }
0x1956   : > { %v7764_v28 = vor.u32 %v8334_v27, %v7763_v18 }
0x1957   : > { %v10071_v11 = vadd.f32 %v8630_v29, %v4724_v31  ;;  %v8324_v29 = vld [vmem:[#allocation11 + $0x78] sm:$0xff]  ;;  %v8322_v31 = vld [vmem:[#allocation11 + $0x68] sm:$0xff] }
0x1959   : > { %v4762_v32 = vpack.c.bf16 %v10071_v11, %v10071_v11 }
0x195b   : > { %4908 = vmatmul.bf16.vlgmr.msra.gmra.mxu2 %v4762_v32  ;;  %4921 = vmatmul.bf16.vlgmr.msrb.gmra.mxu3 %v4762_v32 }
0x195c   : > { %4934 = vmatmul.bf16.vlgmr.msra.gmra.mxu0 %v4762_v32  ;;  %v8321_v32 = vld [vmem:[#allocation11 + $0x60] sm:$0xff] }
0x19d9   : > { %v4935_v34 = vpop.f32.mrf.mxu0 }
0x19da   : > { %v4936_v35 = vadd.f32 %v4935_v34, %v4768_v13  ;;  %v8320_v13 = vld [vmem:[#allocation11 + $0x58] sm:$0xff] }
0x19dc   : > { %v10076_v38 = vpack.c.bf16 %v4936_v35, %v4936_v35 }
0x19de   : > { %v4909_v39 = vpop.f32.mrf.mxu2  ;;  %v4922_v40 = vpop.f32.mrf.mxu3  ;;  %v4977_v15 = vsel %vm1681_vm2, %v10076_v38, 0 }
0x19df   : > { %v4910_v41 = vadd.f32 %v4909_v39, %v4766_v36  ;;  %v4923_v42 = vadd.f32 %v4922_v40, %v4767_v37  ;;  %4986 = vmatpush.bf16.msrb.mxu2 %v4977_v15  ;;  %v8319_v37 = vld [vmem:[#allocation11 + $0x50] sm:$0xff] }
0x19e1   : > { %v4939_v43 = vpack.c.bf16 %v4910_v41, %v4910_v41  ;;  %v4940_v44 = vpack.c.bf16 %v4923_v42, %v4923_v42  ;;  %v4937_v45 = vpop.f32.mrf.mxu0 }
0x19e3   : > { %5063 = vrot.lane.b32.xlu1 %v4940_v44, %s10387_s1  ;;  %4999 = vrot.lane.b32.xlu2 %v4940_v44, %s10388_s15  ;;  %v4946_v46 = vsel %vm1646_vm0, %v4940_v44, 0 }
0x19e4   : > { %4996 = vrot.lane.b32.xlu0 %v4939_v43, %s10388_s15  ;;  %4955 = vmatpush.bf16.xpose.msrb.mxu1 %v4946_v46 }
0x19e6   : > { %v4911_v30 = vpop.f32.mrf.mxu2  ;;  %v4924_v48 = vpop.f32.mrf.mxu3 }
0x19e7   : > { %v8317_v48 = vld [vmem:[#allocation11 + $0x40] sm:$0xff] }
0x19eb   : > { %5124 = vrot.lane.b32.xlu1 %v4939_v43, %s10389_s4  ;;  %5061 = vrot.lane.b32.xlu2 %v4939_v43, %s10387_s1 }
0x19ec   : > { %5126 = vrot.lane.b32.xlu0 %v4940_v44, %s10389_s4  ;;  %7684 = vmatmul.msk.bf16.vlgmr.msrb.gmra.mxu1 %vm1646_vm0, %v4939_v43  ;;  %v8318_v44 = vld [vmem:[#allocation11 + $0x48] sm:$0xff] }
0x1a3d   : > { %v5000_v49 = vpop.permute.xlu2 %4999 }
0x1a3e   : > { %v5005_v50 = vsel %vm1646_vm0, %v5000_v49, 0 }
0x1a3f   : > { %5014 = vmatpush.bf16.xpose.msra.mxu3 %v5005_v50 }
0x1a45   : > { %v5062_v58 = vpop.permute.xlu2 %5061 }
0x1a55   : > { %v5064_v51 = vpop.permute.xlu1 %5063 }
0x1a56   : > { %v5069_v52 = vsel %vm1646_vm0, %v5064_v51, 0  ;;  %v4997_v53 = vpop.permute.xlu0 %4996 }
0x1a57   : > { %7686 = vmatmul.msk.bf16.vlgmr.msra.gmra.mxu3 %vm1646_vm0, %v4997_v53  ;;  %5078 = vmatpush.bf16.xpose.msra.mxu1 %v5069_v52 }
0x1a5d   : > { %v5125_v47 = vpop.permute.xlu1 %5124 }
0x1a5e   : > { %v5127_v60 = vpop.permute.xlu0 %5126  ;;  %7688 = vmatmul.msk.bf16.vlgmr.msra.gmra.mxu1 %vm1646_vm0, %v5062_v58 }
0x1a5f   : > { %v5132_v0 = vsel %vm1646_vm0, %v5127_v60, 0  ;;  %5259 = vmatpush.bf16.msrb.mxu1 %v8324_v29  ;;  %v10107_v60 = vld [vmem:[%s10385_s5 + $0x2] sm:$0x3] }
0x1a60   : > { %5141 = vmatpush.bf16.xpose.msrb.mxu3 %v5132_v0  ;;  %v5409_v22 = vperm.slane %v10107_v60, 0 }
0x1a63   : > { %5260 = vmatpush.bf16.msrb.mxu1 %v8323_v57 }
0x1a67   : > { %7690 = vmatmul.msk.bf16.vlgmr.msrb.gmra.mxu3 %vm1646_vm0, %v5125_v47  ;;  %5261 = vmatpush.bf16.msrb.mxu1 %v8322_v31 }
0x1a68   : > { %5493 = vmatpush.bf16.msra.mxu3 %v7820_v59 }
0x1a69   : > { %v4957_v7 = vpop.f32.mrf.mxu1 }
0x1a6a   : > { %v4961_v12 = vmul.f32 0.17677669, %v4957_v7 }
0x1a6b   : > { %5262 = vmatpush.bf16.msrb.mxu1 %v8321_v32 }
0x1a6c   : > { %5494 = vmatpush.bf16.msra.mxu3 %v7812_v1  ;;  %v4962_v17 = vadd.f32 %v8765_v16, %v4961_v12 }
0x1a6e   : > { %v4963_v19 = vsel %vm1667_vm1, %v4962_v17, -inf }
0x1a6f   : > { %4964 = vmax.xlane.f32.xlu0 %v4963_v19  ;;  %5263 = vmatpush.bf16.msrb.mxu1 %v8320_v13  ;;  %v8343_v13 = vld [vmem:[#allocation14 + $0xd4] sm:$0xf] }
0x1a70   : > { %5495 = vmatpush.bf16.msra.mxu3 %v7804_v4 }
0x1a71   : > { %v4959_v23 = vpop.f32.mrf.mxu1 }
0x1a72   : > { %v7821_v23 = vld [vmem:[#allocation14 + $0xf8] sm:$0xf0] }
0x1a73   : > { %5264 = vmatpush.bf16.msrb.mxu1 %v8319_v37  ;;  %v8341_v37 = vld [vmem:[#allocation14 + $0xc4] sm:$0xf] }
0x1a74   : > { %5496 = vmatpush.bf16.msra.mxu3 %v7796_v10 }
0x1a77   : > { %5265 = vmatpush.bf16.msrb.mxu1 %v8318_v44  ;;  %v8337_v44 = vld [vmem:[#allocation14 + $0xa4] sm:$0xf] }
0x1a78   : > { %5497 = vmatpush.bf16.msra.mxu3 %v7788_v55 }
0x1a7b   : > { %5266 = vmatpush.bf16.msrb.mxu1 %v8317_v48  ;;  %v7773_v48 = vld [vmem:[#allocation14 + $0x98] sm:$0xf0] }
0x1a7c   : > { %5498 = vmatpush.bf16.msra.mxu3 %v7780_v24  ;;  %v7824_v24 = vor.u32 %v8347_v21, %v7821_v23  ;;  %v5410_v21 = vperm.slane %v10107_v60, 1 }
0x1a80   : > { %5499 = vmatpush.bf16.msra.mxu3 %v7772_v9  ;;  %v7813_v9 = vld [vmem:[#allocation14 + $0xe8] sm:$0xf0] }
0x1a81   : > { %v7816_v57 = vor.u32 %v8345_v26, %v7813_v9 }
0x1a83   : > { %5033 = vrot.lane.b32.xlu0 %v10076_v38, %s10388_s15 }
0x1a84   : > { %5500 = vmatpush.bf16.msra.mxu3 %v7764_v28 }
0x1a87   : > { %5501 = vmatmul.bf16.vlgmr.msra.gmra.mxu3 %v9993_v2 }
0x1ada   : > { %v5016_v33 = vpop.f32.mrf.mxu3 }
0x1adb   : > { %v5020_v34 = vmul.f32 0.17677669, %v5016_v33  ;;  %v5080_v35 = vpop.f32.mrf.mxu1 }
0x1adc   : > { %v5084_v36 = vmul.f32 0.17677669, %v5080_v35 }
0x1add   : > { %v5021_v39 = vadd.f32 %v8765_v16, %v5020_v34  ;;  %v7805_v34 = vld [vmem:[#allocation14 + $0xd8] sm:$0xf0] }
0x1ade   : > { %v5085_v40 = vadd.f32 %v8765_v16, %v5084_v36  ;;  %v7808_v35 = vor.u32 %v8343_v13, %v7805_v34  ;;  %v8631_v13 = vld [vmem:[%s10377_s2 + $0x1] ss:$0 sm:$0xff]  ;;  %s6632_s2 = sshll.u32 %s1422_s11, 4 }
0x1adf   : > { %v5022_v15 = vsel %vm1667_vm1, %v5021_v39, -inf  ;;  %s1424_s5 = scalar_lea.vmem [#allocation21], %s6632_s2 }
0x1ae0   : > { %5023 = vmax.xlane.f32.xlu2 %v5022_v15  ;;  %v5086_v41 = vsel %vm1667_vm1, %v5085_v40, -inf  ;;  %v8339_v15 = vld [vmem:[#allocation14 + $0xb4] sm:$0xf] }
0x1ae1   : > { %5087 = vmax.xlane.f32.xlu1 %v5086_v41  ;;  %v7789_v41 = vld [vmem:[#allocation14 + $0xb8] sm:$0xf0] }
0x1ae2   : > { %v5018_v42 = vpop.f32.mrf.mxu3  ;;  %v4965_v43 = vpop.xlane.xlu0 %4964 }
0x1ae3   : > { %v4966_v45 = vsub.f32 %v4962_v17, %v4965_v43  ;;  %v5082_v46 = vpop.f32.mrf.mxu1  ;;  %v7792_v42 = vor.u32 %v8339_v15, %v7789_v41 }
0x1ae5   : > { %v4967_v30 = vmul.f32 1.442695, %v4966_v45  ;;  %v7781_v45 = vld [vmem:[#allocation14 + $0xa8] sm:$0xf0] }
0x1ae6   : > { %v7784_v46 = vor.u32 %v8337_v44, %v7781_v45 }
0x1ae7   : > { %8725 = vpow2.f32 %v4967_v30  ;;  %v8335_v30 = vld [vmem:[#allocation14 + $0x94] sm:$0xf] }
0x1aea   : > { %v5143_v49 = vpop.f32.mrf.mxu3 }
0x1aeb   : > { %v5147_v50 = vmul.f32 0.17677669, %v5143_v49  ;;  %v7776_v49 = vor.u32 %v8335_v30, %v7773_v48 }
0x1aed   : > { %v8726_v51 = vpop.eup %8725  ;;  %v5148_v52 = vadd.f32 %v8765_v16, %v5147_v50  ;;  %v8333_v50 = vld [vmem:[#allocation14 + $0x84] sm:$0xf] }
0x1aee   : > { %v4972_v53 = vpack.c.bf16 %v8726_v51, %v8726_v51  ;;  %v4969_v20 = vsel %vm1667_vm1, %v8726_v51, 0.0  ;;  %v7765_v51 = vld [vmem:[#allocation14 + $0x88] sm:$0xf0] }
0x1aef   : > { %v5149_v54 = vsel %vm1667_vm1, %v5148_v52, -inf }
0x1af0   : > { %5150 = vmax.xlane.f32.xlu2 %v5149_v54  ;;  %7685 = vmatmul.msk.bf16.vlgmr.msrb.gmra.mxu2 %vm1667_vm1, %v4972_v53  ;;  %v8332_v53 = vld [vmem:[#allocation12 + $0x78] sm:$0xff] }
0x1af2   : > { %v5145_v56 = vpop.f32.mrf.mxu3 }
0x1af3   : > { %v8331_v56 = vld [vmem:[#allocation12 + $0x70] sm:$0xff] }
0x1af5   : > { %v5034_v58 = vpop.permute.xlu0 %5033 }
0x1af6   : > { %v5039_v59 = vsel %vm1681_vm2, %v5034_v58, 0  ;;  %v8330_v58 = vld [vmem:[#allocation12 + $0x68] sm:$0xff] }
0x1af7   : > { %5048 = vmatpush.bf16.msrb.mxu0 %v5039_v59 }
0x1afa   : > { %5096 = vrot.lane.b32.xlu1 %v10076_v38, %s10387_s1 }
0x1b08   : > { %5159 = vrot.lane.b32.xlu2 %v10076_v38, %s10389_s4 }
0x1b0a   : > { %v5502_v61 = vpop.f32.mrf.mxu3 }
0x1b0b   : > { %v5503_v0 = vadd.f32 %v5502_v61, %v5409_v22  ;;  %v8329_v22 = vld [vmem:[#allocation12 + $0x60] sm:$0xff] }
0x1b0d   : > { %v10110_v1 = vpack.c.bf16 %v5503_v0, %v5503_v0 }
0x1b0f   : > { %v5526_v3 = vsel %vm1646_vm0, %v10110_v1, 0 }
0x1b10   : > { %5535 = vmatpush.bf16.xpose.msra.mxu1 %v5526_v3 }
0x1b12   : > { %v5504_v63 = vpop.f32.mrf.mxu3 }
0x1b13   : > { %v8328_v63 = vld [vmem:[#allocation12 + $0x58] sm:$0xff] }
0x1b53   : > { %v5024_v4 = vpop.xlane.xlu2 %5023 }
0x1b54   : > { %v5025_v47 = vsub.f32 %v5021_v39, %v5024_v4  ;;  %v5088_v8 = vpop.xlane.xlu1 %5087  ;;  %v7797_v39 = vld [vmem:[#allocation14 + $0xc8] sm:$0xf0] }
0x1b55   : > { %v5089_v5 = vsub.f32 %v5085_v40, %v5088_v8  ;;  %v7800_v40 = vor.u32 %v8341_v37, %v7797_v39 }
0x1b56   : > { %v5026_v7 = vmul.f32 1.442695, %v5025_v47  ;;  %v8327_v47 = vld [vmem:[#allocation12 + $0x50] sm:$0xff] }
0x1b57   : > { %v5090_v10 = vmul.f32 1.442695, %v5089_v5 }
0x1b58   : > { %8727 = vpow2.f32 %v5026_v7  ;;  %v8326_v7 = vld [vmem:[#allocation12 + $0x48] sm:$0xff] }
0x1b59   : > { %8729 = vpow2.f32 %v5090_v10 }
0x1b5e   : > { %v8728_v12 = vpop.eup %8727 }
0x1b5f   : > { %v8730_v62 = vpop.eup %8729  ;;  %v5031_v14 = vpack.c.bf16 %v8728_v12, %v8728_v12  ;;  %v5028_v16 = vsel %vm1667_vm1, %v8728_v12, 0.0  ;;  %v8325_v12 = vld [vmem:[#allocation12 + $0x40] sm:$0xff] }
0x1b60   : > { %5029 = vadd.xlane.f32.xlu0 %v5028_v16  ;;  %v5092_v38 = vsel %vm1667_vm1, %v8730_v62, 0.0  ;;  %v5095_v31 = vpack.c.bf16 %v8730_v62, %v8730_v62 }
0x1b61   : > { %7687 = vmatmul.msk.bf16.vlgmr.msrb.gmra.mxu0 %vm1667_vm1, %v5031_v14  ;;  %5093 = vadd.xlane.f32.xlu1 %v5092_v38 }
0x1b63   : > { %v5151_v17 = vpop.xlane.xlu2 %5150 }
0x1b64   : > { %v5152_v55 = vsub.f32 %v5148_v52, %v5151_v17  ;;  %v7768_v52 = vor.u32 %v8333_v50, %v7765_v51  ;;  %v8632_v50 = vld [vmem:[%s10381_s25 + $0x1] ss:$0 sm:$0xff] }
0x1b66   : > { %v5153_v19 = vmul.f32 1.442695, %v5152_v55 }
0x1b68   : > { %8731 = vpow2.f32 %v5153_v19  ;;  %4970 = vadd.xlane.f32.xlu0 %v4969_v20 }
0x1b6b   : > { %v5160_v25 = vpop.permute.xlu2 %5159 }
0x1b6c   : > { %v5165_v18 = vsel %vm1681_vm2, %v5160_v25, 0  ;;  %v5097_v27 = vpop.permute.xlu1 %5096 }
0x1b6d   : > { %5174 = vmatpush.bf16.msra.mxu0 %v5165_v18  ;;  %v5102_v28 = vsel %vm1681_vm2, %v5097_v27, 0 }
0x1b6e   : > { %v8732_v29 = vpop.eup %8731  ;;  %5111 = vmatpush.bf16.msra.mxu2 %v5102_v28 }
0x1b6f   : > { %v5158_v32 = vpack.c.bf16 %v8732_v29, %v8732_v29  ;;  %v5155_v33 = vsel %vm1667_vm1, %v8732_v29, 0.0 }
0x1b70   : > { %5156 = vadd.xlane.f32.xlu2 %v5155_v33 }
0x1b71   : > { %5506 = vmatpush.bf16.msrb.mxu0 %v7824_v24  ;;  %7689 = vmatmul.msk.bf16.vlgmr.msra.gmra.mxu2 %vm1667_vm1, %v5095_v31 }
0x1b72   : > { %7691 = vmatmul.msk.bf16.vlgmr.msra.gmra.mxu0 %vm1667_vm1, %v5158_v32  ;;  %5376 = vmatpush.bf16.msrb.mxu2 %v8332_v53 }
0x1b73   : > { %v4988_v36 = vpop.f32.mrf.mxu2 }
0x1b75   : > { %5507 = vmatpush.bf16.msrb.mxu0 %v7816_v57 }
0x1b76   : > { %5377 = vmatpush.bf16.msrb.mxu2 %v8331_v56 }
0x1b79   : > { %5508 = vmatpush.bf16.msrb.mxu0 %v7808_v35 }
0x1b7a   : > { %5378 = vmatpush.bf16.msrb.mxu2 %v8330_v58 }
0x1b7b   : > { %v4990_v43 = vpop.f32.mrf.mxu2 }
0x1b7d   : > { %5509 = vmatpush.bf16.msrb.mxu0 %v7800_v40 }
0x1b7e   : > { %5379 = vmatpush.bf16.msrb.mxu2 %v8329_v22 }
0x1b81   : > { %5510 = vmatpush.bf16.msrb.mxu0 %v7792_v42 }
0x1b82   : > { %5380 = vmatpush.bf16.msrb.mxu2 %v8328_v63 }
0x1b85   : > { %5511 = vmatpush.bf16.msrb.mxu0 %v7784_v46 }
0x1b86   : > { %5381 = vmatpush.bf16.msrb.mxu2 %v8327_v47 }
0x1b89   : > { %5512 = vmatpush.bf16.msrb.mxu0 %v7776_v49 }
0x1b8a   : > { %5382 = vmatpush.bf16.msrb.mxu2 %v8326_v7 }
0x1b8d   : > { %5513 = vmatpush.bf16.msrb.mxu0 %v7768_v52  ;;  %v8633_v52 = vld [vmem:[%s10383_s27 + $0x1] ss:$0 sm:$0xff] }
0x1b8e   : > { %5383 = vmatpush.bf16.msrb.mxu2 %v8325_v12 }
0x1b90   : > { %5514 = vmatmul.bf16.vlgmr.msrb.gmra.mxu0 %v9993_v2 }
0x1bd3   : > { %v5030_v54 = vpop.xlane.xlu0 %5029 }
0x1bd4   : > { %8733 = vrcp.f32 %v5030_v54  ;;  %v5094_v10 = vpop.xlane.xlu1 %5093 }
0x1bda   : > { %v8734_v61 = vpop.eup %8733 }
0x1bdb   : > { %v4971_v59 = vpop.xlane.xlu0 %4970 }
0x1bdc   : > { %8735 = vrcp.f32 %v4971_v59  ;;  %v8634_v59 = vld [vmem:[%s10386_s6 + $0x1] ss:$0 sm:$0xff] }
0x1bde   : > { %v5050_v0 = vpop.f32.mrf.mxu0 }
0x1bdf   : > { %v5055_v3 = vmul.f32 %v8734_v61, %v5050_v0 }
0x1be1   : > { %5057 = vrot.lane.b32.xlu0 %v5055_v3, %s10389_s4 }
0x1be2   : > { %v8736_v4 = vpop.eup %8735 }
0x1be3   : > { %v4993_v2 = vmul.f32 %v8736_v4, %v4988_v36  ;;  %v5157_v8 = vpop.xlane.xlu2 %5156 }
0x1be4   : > { %8737 = vrcp.f32 %v5157_v8 }
0x1be5   : > { %4994 = vst.msk [vmem:[#allocation2] sm:$0xff] %vm1646_vm0, %v4993_v2  ;;  %8739 = vrcp.f32 %v5094_v10 }
0x1be6   : > { %v5052_v5 = vpop.f32.mrf.mxu0 }
0x1bea   : > { %v8738_v62 = vpop.eup %8737 }
0x1beb   : > { %v8740_v38 = vpop.eup %8739 }
0x1bef   : > { %v5176_v14 = vpop.f32.mrf.mxu0 }
0x1bf0   : > { %v5181_v16 = vmul.f32 %v8738_v62, %v5176_v14 }
0x1bf2   : > { %5183 = vrot.lane.b32.xlu2 %v5181_v16, %s10388_s15 }
0x1bf4   : > { %v5113_v17 = vpop.f32.mrf.mxu2 }
0x1bf5   : > { %v5118_v55 = vmul.f32 %v8740_v38, %v5113_v17 }
0x1bf7   : > { %v5178_v19 = vpop.f32.mrf.mxu0  ;;  %5120 = vrot.lane.b32.xlu1 %v5118_v55, %s10387_s1 }
0x1bfc   : > { %v5115_v20 = vpop.f32.mrf.mxu2 }
0x1bff   : > { %5578 = vrot.lane.b32.xlu1 %v10110_v1, %s10388_s15 }
0x1c07   : > { %5641 = vrot.lane.b32.xlu1 %v10110_v1, %s10387_s1 }
0x1c0d   : > { %v5515_v23 = vpop.f32.mrf.mxu0 }
0x1c0e   : > { %v5516_v24 = vadd.f32 %v5515_v23, %v5410_v21 }
0x1c10   : > { %v10135_v25 = vpack.c.bf16 %v5516_v24, %v5516_v24 }
0x1c12   : > { %v5556_v26 = vsel %vm1681_vm2, %v10135_v25, 0 }
0x1c13   : > { %5565 = vmatpush.bf16.msra.mxu2 %v5556_v26 }
0x1c15   : > { %v5517_v9 = vpop.f32.mrf.mxu0 }
0x1c4c   : > { %v5184_v28 = vpop.permute.xlu2 %5183 }
0x1c53   : > { %v5058_v18 = vpop.permute.xlu0 %5057 }
0x1c54   : > { %5060 = vst.msk [vmem:[#allocation2] sm:$0xff] %vm1765_vm3, %v5058_v18 }
0x1c69   : > { %v5121_v27 = vpop.permute.xlu1 %5120 }
0x1c6a   : > { %5123 = vst.msk [vmem:[#allocation2] sm:$0xff] %vm1828_vm4, %v5121_v27 }
0x1c6b   : > { %5186 = vst.msk [vmem:[#allocation2] sm:$0xff] %vm1891_vm5, %v5184_v28 }
0x1c71   : > { %v5579_v60 = vpop.permute.xlu1 %5578 }
0x1c72   : > { %v5584_v29 = vsel %vm1646_vm0, %v5579_v60, 0  ;;  %v5187_v57 = vld [vmem:[#allocation2] sm:$0xff] }
0x1c73   : > { %5593 = vmatpush.bf16.xpose.msrb.mxu3 %v5584_v29  ;;  %v5205_v31 = vpack.c.bf16 %v5187_v57, %v5187_v57 }
0x1c75   : > { %5267 = vmatmul.bf16.vlgmr.msrb.gmra.mxu1 %v5205_v31 }
0x1c79   : > { %v5642_v32 = vpop.permute.xlu1 %5641 }
0x1c7a   : > { %v5647_v33 = vsel %vm1646_vm0, %v5642_v32, 0 }
0x1c7b   : > { %5656 = vmatpush.bf16.xpose.msrb.mxu1 %v5647_v33 }
0x1cf2   : > { %v5268_v34 = vpop.f32.mrf.mxu1 }
0x1cf3   : > { %v5269_v35 = vadd.f32 %v8631_v13, %v5268_v34 }
0x1cf5   : > { %v5272_v36 = vadd.f32 %v5269_v35, %v10071_v11 }
0x1cf7   : > { %5277 = vadd.xlane.f32.xlu0 %v5272_v36 }
0x1cfa   : > { %v5270_v37 = vpop.f32.mrf.mxu1 }
0x1d6a   : > { %v5278_v39 = vpop.xlane.xlu0 %5277 }
0x1d6b   : > { %v5279_v40 = vmul.f32 %v5278_v39, %v9756_v6 }
0x1d6d   : > { %v5280_v15 = vsub.f32 %v5272_v36, %v5279_v40 }
0x1d6f   : > { %v5281_v41 = vmul.f32 %v5280_v15, %v5280_v15 }
0x1d71   : > { %5282 = vadd.xlane.f32.xlu2 %v5281_v41 }
0x1de4   : > { %v5283_v42 = vpop.xlane.xlu2 %5282 }
0x1de5   : > { %v5284_v43 = vmul.f32 %v5283_v42, %v9756_v6 }
0x1de7   : > { %v5285_v44 = vadd.f32 1e-05, %v5284_v43 }
0x1de9   : > { %8741 = vrsqrt.f32 %v5285_v44  ;;  %vm5292_vm12 = vweird.f32 %v5285_v44 }
0x1def   : > { %v8742_v45 = vpop.eup %8741 }
0x1df0   : > { %v5287_v46 = vmul.f32 %v8742_v45, %v5285_v44  ;;  %vm5293_vm11 = vweird.f32 %v8742_v45 }
0x1df1   : > { %vm5294_vm13 = vmor %vm5292_vm12, %vm5293_vm11 }
0x1df2   : > { %v5288_v30 = vmul.f32 %v8742_v45, %v5287_v46 }
0x1df4   : > { %v5289_v11 = vmul.f32 0.5, %v5288_v30 }
0x1df6   : > { %v5290_v48 = vsub.f32 1.5, %v5289_v11 }
0x1df8   : > { %v5291_v49 = vmul.f32 %v8742_v45, %v5290_v48 }
0x1dfa   : > { %v5295_v51 = vsel %vm5294_vm13, %v8742_v45, %v5291_v49 }
0x1dfb   : > { %v5296_v53 = vmul.f32 %v5295_v51, %v5280_v15 }
0x1dfd   : > { %v5300_v54 = vmul.f32 %v8632_v50, %v5296_v53 }
0x1dff   : > { %v10150_v56 = vadd.f32 %v8633_v52, %v5300_v54 }
0x1e01   : > { %v5322_v58 = vpack.c.bf16 %v10150_v56, %v10150_v56 }
0x1e03   : > { %5384 = vmatmul.bf16.vlgmr.msrb.gmra.mxu2 %v5322_v58  ;;  %v8356_v58 = vld [vmem:[#allocation15 + $0x78] sm:$0xff] }
0x1e86   : > { %v5385_v22 = vpop.f32.mrf.mxu2 }
0x1e87   : > { %v5386_v61 = vadd.f32 %v8634_v59, %v5385_v22 }
0x1e89   : > { %v5519_v0 = vpack.c.bf16 %v5386_v61, %v5386_v61 }
0x1e8b   : > { %5701 = vrot.lane.b32.xlu0 %v5519_v0, %s10389_s4  ;;  %5575 = vrot.lane.b32.xlu1 %v5519_v0, %s10388_s15 }
0x1e8c   : > { %7825 = vmatmul.msk.bf16.vlgmr.msra.gmra.mxu1 %vm1646_vm0, %v5519_v0 }
0x1e8d   : > { %5835 = vmatpush.bf16.msra.mxu1 %v8356_v58  ;;  %v8363_v58 = vld [vmem:[#allocation17 + $0xb4] sm:$0xf] }
0x1e8e   : > { %v5387_v3 = vpop.f32.mrf.mxu2 }
0x1e93   : > { %5611 = vrot.lane.b32.xlu0 %v10135_v25, %s10388_s15  ;;  %5703 = vrot.lane.b32.xlu1 %v10110_v1, %s10389_s4 }
0x1e9b   : > { %5673 = vrot.lane.b32.xlu0 %v10135_v25, %s10387_s1  ;;  %5639 = vrot.lane.b32.xlu1 %v5519_v0, %s10387_s1 }
0x1efd   : > { %v5702_v63 = vpop.permute.xlu0 %5701  ;;  %v5576_v4 = vpop.permute.xlu1 %5575 }
0x1efe   : > { %7827 = vmatmul.msk.bf16.vlgmr.msrb.gmra.mxu3 %vm1646_vm0, %v5576_v4 }
0x1f05   : > { %v5612_v2 = vpop.permute.xlu0 %5611  ;;  %v5704_v47 = vpop.permute.xlu1 %5703 }
0x1f06   : > { %v5617_v8 = vsel %vm1681_vm2, %v5612_v2, 0  ;;  %v5709_v5 = vsel %vm1646_vm0, %v5704_v47, 0 }
0x1f07   : > { %5626 = vmatpush.bf16.msra.mxu0 %v5617_v8  ;;  %5718 = vmatpush.bf16.xpose.msra.mxu3 %v5709_v5 }
0x1f09   : > { %v5537_v7 = vpop.f32.mrf.mxu1 }
0x1f0a   : > { %v5541_v10 = vmul.f32 0.17677669, %v5537_v7 }
0x1f0c   : > { %v5542_v1 = vsel %vm1667_vm1, %v5541_v10, -inf }
0x1f0d   : > { %5543 = vmax.xlane.f32.xlu1 %v5542_v1  ;;  %v5674_v12 = vpop.permute.xlu0 %5673  ;;  %v5640_v62 = vpop.permute.xlu1 %5639 }
0x1f0e   : > { %v5679_v14 = vsel %vm1681_vm2, %v5674_v12, 0  ;;  %7829 = vmatmul.msk.bf16.vlgmr.msrb.gmra.mxu1 %vm1646_vm0, %v5640_v62  ;;  %7831 = vmatmul.msk.bf16.vlgmr.msra.gmra.mxu3 %vm1646_vm0, %v5702_v63  ;;  %v8355_v62 = vld [vmem:[#allocation15 + $0x70] sm:$0xff] }
0x1f0f   : > { %5688 = vmatpush.bf16.msrb.mxu2 %v5679_v14  ;;  %5836 = vmatpush.bf16.msra.mxu1 %v8355_v62  ;;  %v8354_v14 = vld [vmem:[#allocation15 + $0x68] sm:$0xff]  ;;  %v7871_v62 = vld [vmem:[#allocation17 + $0x80] sm:$0xf] }
0x1f11   : > { %v5539_v16 = vpop.f32.mrf.mxu1 }
0x1f12   : > { %v8353_v16 = vld [vmem:[#allocation15 + $0x60] sm:$0xff] }
0x1f13   : > { %5837 = vmatpush.bf16.msra.mxu1 %v8354_v14  ;;  %v8358_v14 = vld [vmem:[#allocation17 + $0x84] sm:$0xf0] }
0x1f17   : > { %5838 = vmatpush.bf16.msra.mxu1 %v8353_v16  ;;  %v8357_v16 = vld [vmem:[#allocation17 + $0x84] sm:$0xf] }
0x1f80   : > { %v5544_v38 = vpop.xlane.xlu1 %5543 }
0x1f81   : > { %v5545_v17 = vsub.f32 %v5541_v10, %v5544_v38  ;;  %v5595_v55 = vpop.f32.mrf.mxu3  ;;  %v8352_v38 = vld [vmem:[#allocation15 + $0x58] sm:$0xff] }
0x1f82   : > { %v5599_v27 = vmul.f32 0.17677669, %v5595_v55  ;;  %5839 = vmatpush.bf16.msra.mxu1 %v8352_v38  ;;  %v8350_v55 = vld [vmem:[#allocation15 + $0x48] sm:$0xff]  ;;  %v7872_v38 = vor.u32 %v8358_v14, %v7871_v62 }
0x1f83   : > { %v5546_v19 = vmul.f32 1.442695, %v5545_v17  ;;  %v8351_v17 = vld [vmem:[#allocation15 + $0x50] sm:$0xff] }
0x1f84   : > { %v5600_v60 = vsel %vm1667_vm1, %v5599_v27, -inf }
0x1f85   : > { %8743 = vpow2.f32 %v5546_v19  ;;  %v8349_v19 = vld [vmem:[#allocation15 + $0x40] sm:$0xff] }
0x1f86   : > { %5840 = vmatpush.bf16.msra.mxu1 %v8351_v17  ;;  %v7873_v17 = vld [vmem:[#allocation17 + $0x88] sm:$0xf0] }
0x1f89   : > { %v5597_v20 = vpop.f32.mrf.mxu3 }
0x1f8a   : > { %5841 = vmatpush.bf16.msra.mxu1 %v8350_v55  ;;  %v7876_v55 = vor.u32 %v8357_v16, %v7873_v17 }
0x1f8b   : > { %v8744_v21 = vpop.eup %8743  ;;  %v5658_v23 = vpop.f32.mrf.mxu1 }
0x1f8c   : > { %v5551_v24 = vpack.c.bf16 %v8744_v21, %v8744_v21  ;;  %v5662_v26 = vmul.f32 0.17677669, %v5658_v23  ;;  %v5548_v45 = vsel %vm1667_vm1, %v8744_v21, 0.0 }
0x1f8e   : > { %7826 = vmatmul.msk.bf16.vlgmr.msra.gmra.mxu2 %vm1667_vm1, %v5551_v24  ;;  %v5663_v9 = vsel %vm1667_vm1, %v5662_v26, -inf  ;;  %5842 = vmatpush.bf16.msra.mxu1 %v8349_v19  ;;  %v8380_v19 = vld [vmem:[#allocation18 + $0xb8] sm:$0xff] }
0x1f8f   : > { %5664 = vmax.xlane.f32.xlu2 %v5663_v9  ;;  %v8635_v9 = vld [vmem:[%s10391_s8 + $0x1] ss:$0 sm:$0xff] }
0x1f91   : > { %v5720_v18 = vpop.f32.mrf.mxu3 }
0x1f92   : > { %v5724_v57 = vmul.f32 0.17677669, %v5720_v18 }
0x1f93   : > { %v5660_v28 = vpop.f32.mrf.mxu1 }
0x1f94   : > { %v5725_v31 = vsel %vm1667_vm1, %v5724_v57, -inf }
0x1f97   : > { %5601 = vmax.xlane.f32.xlu2 %v5600_v60 }
0x1f99   : > { %v5722_v29 = vpop.f32.mrf.mxu3 }
0x1f9a   : > { %v7927_v29 = vld [vmem:[#allocation17 + $0xf0] sm:$0xf] }
0x1f9f   : > { %5726 = vmax.xlane.f32.xlu2 %v5725_v31  ;;  %v8371_v31 = vld [vmem:[#allocation17 + $0xf4] sm:$0xf] }
0x1fb7   : > { %5735 = vrot.lane.b32.xlu2 %v10135_v25, %s10389_s4 }
0x2002   : > { %v5665_v32 = vpop.xlane.xlu2 %5664 }
0x2003   : > { %v5666_v33 = vsub.f32 %v5662_v26, %v5665_v32 }
0x2005   : > { %v5667_v13 = vmul.f32 1.442695, %v5666_v33  ;;  %v7929_v33 = vld [vmem:[#allocation17 + $0xf8] sm:$0xf0] }
0x2007   : > { %8745 = vpow2.f32 %v5667_v13  ;;  %v7932_v13 = vor.u32 %v8371_v31, %v7929_v33  ;;  %v8376_v31 = vld [vmem:[#allocation18 + $0x98] sm:$0xff] }
0x2009   : > { %5999 = vmatpush.bf16.msrb.mxu3 %v7932_v13 }
0x200a   : > { %v5602_v34 = vpop.xlane.xlu2 %5601 }
0x200b   : > { %v5603_v35 = vsub.f32 %v5599_v27, %v5602_v34 }
0x200d   : > { %v8746_v36 = vpop.eup %8745  ;;  %v5604_v37 = vmul.f32 1.442695, %v5603_v35 }
0x200e   : > { %v5672_v39 = vpack.c.bf16 %v8746_v36, %v8746_v36  ;;  %v5669_v40 = vsel %vm1667_vm1, %v8746_v36, 0.0 }
0x200f   : > { %8747 = vpow2.f32 %v5604_v37  ;;  %5670 = vadd.xlane.f32.xlu1 %v5669_v40  ;;  %v8369_v40 = vld [vmem:[#allocation17 + $0xe4] sm:$0xf] }
0x2010   : > { %7830 = vmatmul.msk.bf16.vlgmr.msrb.gmra.mxu2 %vm1667_vm1, %v5672_v39  ;;  %v8370_v39 = vld [vmem:[#allocation17 + $0xe4] sm:$0xf0] }
0x2011   : > { %v5567_v15 = vpop.f32.mrf.mxu2 }
0x2012   : > { %v5727_v41 = vpop.xlane.xlu2 %5726 }
0x2013   : > { %v5728_v42 = vsub.f32 %v5724_v57, %v5727_v41  ;;  %v8372_v57 = vld [vmem:[#allocation17 + $0xf4] sm:$0xf0]  ;;  %v7921_v41 = vld [vmem:[#allocation17 + $0xe8] sm:$0xf0] }
0x2014   : > { %v7928_v32 = vor.u32 %v8372_v57, %v7927_v29 }
0x2015   : > { %v8748_v43 = vpop.eup %8747  ;;  %v5729_v25 = vmul.f32 1.442695, %v5728_v42  ;;  %v7924_v42 = vor.u32 %v8369_v40, %v7921_v41 }
0x2016   : > { %v5609_v44 = vpack.c.bf16 %v8748_v43, %v8748_v43  ;;  %v5606_v46 = vsel %vm1667_vm1, %v8748_v43, 0.0  ;;  %5986 = vmatpush.bf16.msra.mxu2 %v7928_v32  ;;  %v7911_v43 = vld [vmem:[#allocation17 + $0xd0] sm:$0xf]  ;;  %v8384_v32 = vld [vmem:[#allocation18 + $0xd8] sm:$0xff] }
0x2017   : > { %8749 = vpow2.f32 %v5729_v25  ;;  %5549 = vadd.xlane.f32.xlu1 %v5548_v45  ;;  %5607 = vadd.xlane.f32.xlu0 %v5606_v46  ;;  %v8368_v25 = vld [vmem:[#allocation17 + $0xd4] sm:$0xf0]  ;;  %v7913_v46 = vld [vmem:[#allocation17 + $0xd8] sm:$0xf0] }
0x2018   : > { %7828 = vmatmul.msk.bf16.vlgmr.msra.gmra.mxu0 %vm1667_vm1, %v5609_v44  ;;  %6000 = vmatpush.bf16.msrb.mxu3 %v7924_v42  ;;  %v8367_v44 = vld [vmem:[#allocation17 + $0xd4] sm:$0xf]  ;;  %v7912_v45 = vor.u32 %v8368_v25, %v7911_v43 }
0x2019   : > { %v5569_v30 = vpop.f32.mrf.mxu2 }
0x201a   : > { %v5736_v11 = vpop.permute.xlu2 %5735  ;;  %v7916_v30 = vor.u32 %v8367_v44, %v7913_v46  ;;  %v8374_v44 = vld [vmem:[#allocation18 + $0x88] sm:$0xff]  ;;  %v8373_v46 = vld [vmem:[#allocation18 + $0x80] sm:$0xff] }
0x201b   : > { %v5741_v48 = vsel %vm1681_vm2, %v5736_v11, 0  ;;  %v7903_v11 = vld [vmem:[#allocation17 + $0xc0] sm:$0xf] }
0x201c   : > { %5750 = vmatpush.bf16.msrb.mxu0 %v5741_v48  ;;  %6001 = vmatpush.bf16.msrb.mxu3 %v7916_v30  ;;  %v8366_v48 = vld [vmem:[#allocation17 + $0xc4] sm:$0xf0]  ;;  %v8381_v30 = vld [vmem:[#allocation18 + $0xc0] sm:$0xff] }
0x201d   : > { %v8750_v49 = vpop.eup %8749 }
0x201e   : > { %v5731_v50 = vsel %vm1667_vm1, %v8750_v49, 0.0  ;;  %v5734_v51 = vpack.c.bf16 %v8750_v49, %v8750_v49  ;;  %v8365_v49 = vld [vmem:[#allocation17 + $0xc4] sm:$0xf] }
0x201f   : > { %5732 = vadd.xlane.f32.xlu2 %v5731_v50  ;;  %v7904_v50 = vor.u32 %v8366_v48, %v7903_v11  ;;  %v7868_v11 = vld [vmem:[%s10396_s14 + $0x2] sm:$0x3] }
0x2020   : > { %6150 = vmatpush.bf16.msra.mxu0 %v8380_v19  ;;  %v5902_v48 = vperm.slane %v7868_v11, 0 }
0x2028   : > { %7832 = vmatmul.msk.bf16.vlgmr.msrb.gmra.mxu0 %vm1667_vm1, %v5734_v51  ;;  %v7905_v51 = vld [vmem:[#allocation17 + $0xc8] sm:$0xf0] }
0x2082   : > { %v5671_v52 = vpop.xlane.xlu1 %5670 }
0x208a   : > { %v5550_v53 = vpop.xlane.xlu1 %5549  ;;  %v5608_v54 = vpop.xlane.xlu0 %5607 }
0x208b   : > { %8751 = vrcp.f32 %v5550_v53  ;;  %v7895_v53 = vld [vmem:[#allocation17 + $0xb0] sm:$0xf] }
0x208c   : > { %8753 = vrcp.f32 %v5671_v52  ;;  %v7908_v52 = vor.u32 %v8365_v49, %v7905_v51  ;;  %v5903_v49 = vperm.slane %v7868_v11, 1  ;;  %v8398_v11 = vld [vmem:[#allocation20 + $0x44] sm:$0xf0] }
0x208d   : > { %8755 = vrcp.f32 %v5608_v54  ;;  %v8364_v54 = vld [vmem:[#allocation17 + $0xb4] sm:$0xf0] }
0x208e   : > { %6002 = vmatpush.bf16.msrb.mxu3 %v7908_v52 }
0x2091   : > { %v8752_v59 = vpop.eup %8751 }
0x2092   : > { %v5572_v22 = vmul.f32 %v8752_v59, %v5567_v15  ;;  %v8754_v61 = vpop.eup %8753  ;;  %v5733_v8 = vpop.xlane.xlu2 %5732  ;;  %v7896_v59 = vor.u32 %v8364_v54, %v7895_v53 }
0x2093   : > { %v5690_v0 = vpop.f32.mrf.mxu2  ;;  %v8756_v63 = vpop.eup %8755  ;;  %8757 = vrcp.f32 %v5733_v8  ;;  %v7879_v8 = vld [vmem:[#allocation17 + $0x90] sm:$0xf] }
0x2094   : > { %5573 = vst.msk [vmem:[#allocation2] sm:$0xff] %vm1646_vm0, %v5572_v22  ;;  %v5695_v3 = vmul.f32 %v8754_v61, %v5690_v0  ;;  %v7897_v22 = vld [vmem:[#allocation17 + $0xb8] sm:$0xf0]  ;;  %v7887_v0 = vld [vmem:[#allocation17 + $0xa0] sm:$0xf] }
0x2095   : > { %v5628_v4 = vpop.f32.mrf.mxu0  ;;  %v7900_v61 = vor.u32 %v8363_v58, %v7897_v22 }
0x2096   : > { %v5633_v2 = vmul.f32 %v8756_v63, %v5628_v4  ;;  %5697 = vrot.lane.b32.xlu0 %v5695_v3, %s10387_s1  ;;  %v8362_v3 = vld [vmem:[#allocation17 + $0xa4] sm:$0xf0]  ;;  %v8361_v63 = vld [vmem:[#allocation17 + $0xa4] sm:$0xf]  ;;  %s10403_s1 = sld [smem:[#allocation60_spill]] }
0x2097   : > { %6003 = vmatpush.bf16.msrb.mxu3 %v7900_v61  ;;  %v7888_v4 = vor.u32 %v8362_v3, %v7887_v0  ;;  %v8638_v0 = vld [vmem:[%s10398_s16 + $0x1] ss:$0 sm:$0xff] }
0x2098   : > { %5635 = vrot.lane.b32.xlu1 %v5633_v2, %s10389_s4  ;;  %v7889_v2 = vld [vmem:[#allocation17 + $0xa8] sm:$0xf0]  ;;  %s10405_s4 = sld [smem:[#allocation63_spill]] }
0x2099   : > { %v8758_v7 = vpop.eup %8757 }
0x209b   : > { %v5692_v47 = vpop.f32.mrf.mxu2 }
0x209c   : > { %v7892_v47 = vor.u32 %v8361_v63, %v7889_v2 }
0x209d   : > { %v5630_v5 = vpop.f32.mrf.mxu0 }
0x209e   : > { %6004 = vmatpush.bf16.msrb.mxu3 %v7892_v47  ;;  %v8360_v5 = vld [vmem:[#allocation17 + $0x94] sm:$0xf0]  ;;  %s6382_s3 = scalar_lea.hbm %s10405_s4, %s8405_s7  ;;  %s9116_s2 = scalar_lea.hbm %s10405_s4, 32 }
0x209f   : > { %s6386_s8 = sshll.u32 %s6382_s3, 4  ;;  %s6387_s8 = int_to_ptr.hbm [resolvable:$true] %s6386_s8 }
0x20a5   : > { %v5752_v10 = vpop.f32.mrf.mxu0 }
0x20a6   : > { %v5757_v1 = vmul.f32 %v8758_v7, %v5752_v10  ;;  %v8359_v7 = vld [vmem:[#allocation17 + $0x94] sm:$0xf]  ;;  %v7880_v10 = vor.u32 %v8360_v5, %v7879_v8 }
0x20a8   : > { %5759 = vrot.lane.b32.xlu1 %v5757_v1, %s10388_s15  ;;  %v7881_v1 = vld [vmem:[#allocation17 + $0x98] sm:$0xf0]  ;;  %s10404_s15 = sld [smem:[#allocation62_spill]] }
0x20ad   : > { %v5754_v12 = vpop.f32.mrf.mxu0 }
0x20ae   : > { %v7884_v12 = vor.u32 %v8359_v7, %v7881_v1 }
0x20b0   : > { %6005 = vmatpush.bf16.msrb.mxu3 %v7884_v12 }
0x20b4   : > { %6006 = vmatpush.bf16.msrb.mxu3 %v7876_v55 }
0x2108   : > { %v5698_v21 = vpop.permute.xlu0 %5697 }
0x210a   : > { %v5636_v20 = vpop.permute.xlu1 %5635 }
0x210b   : > { %5638 = vst.msk [vmem:[#allocation2] sm:$0xff] %vm1765_vm3, %v5636_v20  ;;  %v8388_v20 = vld [vmem:[#allocation18 + $0xf8] sm:$0xff] }
0x210c   : > { %5700 = vst.msk [vmem:[#allocation2] sm:$0xff] %vm1828_vm4, %v5698_v21  ;;  %6163 = vmatpush.bf16.msrb.mxu1 %v8388_v20 }
0x211a   : > { %v5760_v23 = vpop.permute.xlu1 %5759 }
0x211b   : > { %5762 = vst.msk [vmem:[#allocation2] sm:$0xff] %vm1891_vm5, %v5760_v23 }
0x2122   : > { %v5763_v24 = vld [vmem:[#allocation2] sm:$0xff] }
0x2123   : > { %v5781_v26 = vpack.c.bf16 %v5763_v24, %v5763_v24  ;;  %v8379_v24 = vld [vmem:[#allocation18 + $0xb0] sm:$0xff] }
0x2124   : > { %6151 = vmatpush.bf16.msra.mxu0 %v8379_v24 }
0x2125   : > { %5843 = vmatmul.bf16.vlgmr.msra.gmra.mxu1 %v5781_v26  ;;  %v8387_v26 = vld [vmem:[#allocation18 + $0xf0] sm:$0xff] }
0x2126   : > { %6164 = vmatpush.bf16.msrb.mxu1 %v8387_v26 }
0x21a2   : > { %v5844_v18 = vpop.f32.mrf.mxu1 }
0x21a3   : > { %v5845_v27 = vadd.f32 %v8635_v9, %v5844_v18  ;;  %v8378_v18 = vld [vmem:[#allocation18 + $0xa8] sm:$0xff] }
0x21a4   : > { %6152 = vmatpush.bf16.msra.mxu0 %v8378_v18 }
0x21a5   : > { %v5848_v28 = vadd.f32 %v5845_v27, %v10150_v56  ;;  %v7919_v56 = vld [vmem:[#allocation17 + $0xe0] sm:$0xf]  ;;  %v8386_v27 = vld [vmem:[#allocation18 + $0xe8] sm:$0xff] }
0x21a6   : > { %v7920_v15 = vor.u32 %v8370_v39, %v7919_v56  ;;  %6165 = vmatpush.bf16.msrb.mxu1 %v8386_v27  ;;  %v8636_v39 = vld [vmem:[%s10393_s9 + $0x1] ss:$0 sm:$0xff] }
0x21a7   : > { %5853 = vadd.xlane.f32.xlu2 %v5848_v28 }
0x21a8   : > { %5987 = vmatpush.bf16.msra.mxu2 %v7920_v15  ;;  %v8637_v15 = vld [vmem:[%s10395_s12 + $0x1] ss:$0 sm:$0xff] }
0x21aa   : > { %v5846_v60 = vpop.f32.mrf.mxu1 }
0x21ab   : > { %v8385_v60 = vld [vmem:[#allocation18 + $0xe0] sm:$0xff] }
0x21ac   : > { %5988 = vmatpush.bf16.msra.mxu2 %v7912_v45  ;;  %6166 = vmatpush.bf16.msrb.mxu1 %v8385_v60  ;;  %v8382_v45 = vld [vmem:[#allocation18 + $0xc8] sm:$0xff]  ;;  %v8404_v60 = vld [vmem:[#allocation20 + $0x74] sm:$0xf0] }
0x21b0   : > { %5989 = vmatpush.bf16.msra.mxu2 %v7904_v50  ;;  %6167 = vmatpush.bf16.msrb.mxu1 %v8384_v32 }
0x21b4   : > { %5990 = vmatpush.bf16.msra.mxu2 %v7896_v59 }
0x21b8   : > { %5991 = vmatpush.bf16.msra.mxu2 %v7888_v4 }
0x21bc   : > { %5992 = vmatpush.bf16.msra.mxu2 %v7880_v10 }
0x21c0   : > { %5993 = vmatpush.bf16.msra.mxu2 %v7872_v38 }
0x221a   : > { %v5854_v34 = vpop.xlane.xlu2 %5853 }
0x221b   : > { %v5855_v35 = vmul.f32 %v5854_v34, %v9756_v6  ;;  %v8375_v34 = vld [vmem:[#allocation18 + $0x90] sm:$0xff] }
0x221d   : > { %v10196_v36 = vsub.f32 %v5848_v28, %v5855_v35  ;;  %v8377_v28 = vld [vmem:[#allocation18 + $0xa0] sm:$0xff]  ;;  %v8383_v35 = vld [vmem:[#allocation18 + $0xd0] sm:$0xff] }
0x221e   : > { %6153 = vmatpush.bf16.msra.mxu0 %v8377_v28  ;;  %6168 = vmatpush.bf16.msrb.mxu1 %v8383_v35  ;;  %v8058_v28 = vld [vmem:[#allocation20 + $0x70] sm:$0xf] }
0x221f   : > { %v5857_v37 = vmul.f32 %v10196_v36, %v10196_v36 }
0x2221   : > { %5858 = vadd.xlane.f32.xlu1 %v5857_v37 }
0x2222   : > { %6154 = vmatpush.bf16.msra.mxu0 %v8376_v31  ;;  %6169 = vmatpush.bf16.msrb.mxu1 %v8382_v45  ;;  %v8060_v31 = vld [vmem:[#allocation20 + $0x78] sm:$0xf0] }
0x2223   : > { %v8044_v45 = vld [vmem:[#allocation20 + $0x58] sm:$0xf0] }
0x2226   : > { %6155 = vmatpush.bf16.msra.mxu0 %v8375_v34  ;;  %6170 = vmatpush.bf16.msrb.mxu1 %v8381_v30  ;;  %v8034_v30 = vld [vmem:[#allocation20 + $0x40] sm:$0xf] }
0x222a   : > { %6156 = vmatpush.bf16.msra.mxu0 %v8374_v44 }
0x222e   : > { %6157 = vmatpush.bf16.msra.mxu0 %v8373_v46 }
0x2294   : > { %v5859_v21 = vpop.xlane.xlu1 %5858 }
0x2295   : > { %v5860_v23 = vmul.f32 %v5859_v21, %v9756_v6 }
0x2297   : > { %v5861_v9 = vadd.f32 1e-05, %v5860_v23  ;;  %v8639_v23 = vld [vmem:[%s10400_s17 + $0x1] ss:$0 sm:$0xff] }
0x2299   : > { %8759 = vrsqrt.f32 %v5861_v9  ;;  %vm5868_vm1 = vweird.f32 %v5861_v9 }
0x229f   : > { %v8760_v29 = vpop.eup %8759 }
0x22a0   : > { %v5863_v57 = vmul.f32 %v8760_v29, %v5861_v9  ;;  %vm5869_vm0 = vweird.f32 %v8760_v29  ;;  %v8640_v9 = vld [vmem:[%s10402_s18 + $0x1] ss:$0 sm:$0xff] }
0x22a1   : > { %vm5870_vm2 = vmor %vm5868_vm1, %vm5869_vm0 }
0x22a2   : > { %v5864_v33 = vmul.f32 %v8760_v29, %v5863_v57  ;;  %v8059_v57 = vor.u32 %v8404_v60, %v8058_v28 }
0x22a4   : > { %v5865_v13 = vmul.f32 0.5, %v5864_v33  ;;  %6342 = vmatpush.bf16.msrb.mxu2 %v8059_v57 }
0x22a6   : > { %v5866_v37 = vsub.f32 1.5, %v5865_v13 }
0x22a8   : > { %v5867_v56 = vmul.f32 %v8760_v29, %v5866_v37  ;;  %v8050_v37 = vld [vmem:[#allocation20 + $0x60] sm:$0xf] }
0x22aa   : > { %v5871_v40 = vsel %vm5870_vm2, %v8760_v29, %v5867_v56  ;;  %v8403_v29 = vld [vmem:[#allocation20 + $0x74] sm:$0xf]  ;;  %v8402_v56 = vld [vmem:[#allocation20 + $0x64] sm:$0xf0] }
0x22ab   : > { %v5872_v41 = vmul.f32 %v5871_v40, %v10196_v36  ;;  %v8063_v32 = vor.u32 %v8403_v29, %v8060_v31  ;;  %v8051_v40 = vor.u32 %v8402_v56, %v8050_v37  ;;  %v6256_v31 = vld [vmem:[%s10404_s15] sm:$0x3]  ;;  %s9110_s15 = sshra.s32 %s6387_s8, 4  ;;  %s9111_s15 = int_to_ptr.hbm [resolvable:$true] %s9110_s15 }
0x22ac   : > { %s9112_s7 = scalar_lea.hbm %s9111_s15, 16  ;;  %p9117_p7 = scmp.lt.s32.totalorder %s9111_s15, %s10405_s4 }
0x22ad   : > { %v5876_v42 = vmul.f32 %v8636_v39, %v5872_v41  ;;  %6355 = vmatpush.bf16.msra.mxu3 %v8063_v32  ;;  %v8401_v39 = vld [vmem:[#allocation20 + $0x64] sm:$0xf]  ;;  %6343 = vmatpush.bf16.msrb.mxu2 %v8051_v40  ;;  %v6258_v32 = vperm.slane %v6256_v31, 0  ;;  %p9113_p9 = scmp.ne.s32.totalorder %s9111_s15, %s9112_s7  ;;  %p9118_p8 = scmp.lt.s32.totalorder %s9116_s2, %s9112_s7 }
0x22af   : > { %v5880_v43 = vadd.f32 %v8637_v15, %v5876_v42  ;;  %v8052_v15 = vld [vmem:[#allocation20 + $0x68] sm:$0xf0]  ;;  %v8042_v42 = vld [vmem:[#allocation20 + $0x50] sm:$0xf]  ;;  %p9114_p12 = pnand %p9113_p9, %p9499_p5  ;;  %p9119_p11 = por %p9118_p8, %p9117_p7 }
0x22b0   : > { %v8055_v41 = vor.u32 %v8401_v39, %v8052_v15 }
0x22b1   : > { %v5898_v25 = vpack.c.bf16 %v5880_v43, %v5880_v43  ;;  %p9115_p0 = pneg %p9114_p12 }
0x22b2   : > { %6356 = vmatpush.bf16.msra.mxu3 %v8055_v41 }
0x22b3   : > { %5994 = vmatmul.bf16.vlgmr.msra.gmra.mxu2 %v5898_v25  ;;  %6007 = vmatmul.bf16.vlgmr.msrb.gmra.mxu3 %v5898_v25  ;;  %v8399_v25 = vld [vmem:[#allocation20 + $0x54] sm:$0xf]  ;;  %p9120_p13 = pnand %p9119_p11, %p9115_p0 }
0x22b4   : > { %v8047_v46 = vor.u32 %v8399_v25, %v8044_v45 }
0x22b6   : > { %6357 = vmatpush.bf16.msra.mxu3 %v8047_v46 }
0x2336   : > { %v5995_v50 = vpop.f32.mrf.mxu2  ;;  %v6008_v51 = vpop.f32.mrf.mxu3 }
0x2337   : > { %v5996_v36 = vadd.f32 %v5995_v50, %v5902_v48  ;;  %v6009_v52 = vadd.f32 %v6008_v51, %v5903_v49  ;;  %v8397_v48 = vld [vmem:[#allocation20 + $0x44] sm:$0xf]  ;;  %v8035_v49 = vor.u32 %v8398_v11, %v8034_v30  ;;  %v8036_v50 = vld [vmem:[#allocation20 + $0x48] sm:$0xf0] }
0x2338   : > { %v8039_v51 = vor.u32 %v8397_v48, %v8036_v50 }
0x2339   : > { %v6012_v53 = vmax.f32 %v5996_v36, 0.0  ;;  %v6013_v54 = vmax.f32 %v6009_v52, 0.0  ;;  %v8026_v36 = vld [vmem:[#allocation20 + $0x30] sm:$0xf]  ;;  %v8396_v52 = vld [vmem:[#allocation20 + $0x34] sm:$0xf0] }
0x233a   : > { %6358 = vmatpush.bf16.msra.mxu3 %v8039_v51 }
0x233b   : > { %v6047_v58 = vpack.c.bf16 %v6012_v53, %v6012_v53  ;;  %v6048_v59 = vpack.c.bf16 %v6013_v54, %v6013_v54  ;;  %v8395_v53 = vld [vmem:[#allocation20 + $0x34] sm:$0xf]  ;;  %v8027_v54 = vor.u32 %v8396_v52, %v8026_v36 }
0x233d   : > { %6158 = vmatmul.bf16.vlgmr.msra.gmra.mxu0 %v6047_v58  ;;  %6171 = vmatmul.bf16.vlgmr.msrb.gmra.mxu1 %v6048_v59  ;;  %v8028_v58 = vld [vmem:[#allocation20 + $0x38] sm:$0xf0] }
0x233e   : > { %v5997_v22 = vpop.f32.mrf.mxu2  ;;  %v6010_v61 = vpop.f32.mrf.mxu3  ;;  %v8031_v59 = vor.u32 %v8395_v53, %v8028_v58 }
0x233f   : > { %v8018_v22 = vld [vmem:[#allocation20 + $0x20] sm:$0xf]  ;;  %v8394_v61 = vld [vmem:[#allocation20 + $0x24] sm:$0xf0] }
0x2340   : > { %6359 = vmatpush.bf16.msra.mxu3 %v8031_v59 }
0x23ba   : > { %v6159_v3 = vpop.f32.mrf.mxu0  ;;  %v6172_v63 = vpop.f32.mrf.mxu1 }
0x23bb   : > { %v6160_v4 = vadd.f32 %v8638_v0, %v6159_v3  ;;  %v8393_v0 = vld [vmem:[#allocation20 + $0x24] sm:$0xf]  ;;  %v8019_v3 = vor.u32 %v8394_v61, %v8018_v22 }
0x23bd   : > { %v6173_v2 = vadd.f32 %v6172_v63, %v6160_v4  ;;  %v8020_v63 = vld [vmem:[#allocation20 + $0x28] sm:$0xf0] }
0x23be   : > { %v8023_v4 = vor.u32 %v8393_v0, %v8020_v63 }
0x23bf   : > { %v6176_v47 = vadd.f32 %v6173_v2, %v5880_v43  ;;  %v8400_v43 = vld [vmem:[#allocation20 + $0x54] sm:$0xf0]  ;;  %v8010_v2 = vld [vmem:[#allocation20 + $0x10] sm:$0xf] }
0x23c0   : > { %v8043_v44 = vor.u32 %v8400_v43, %v8042_v42  ;;  %6360 = vmatpush.bf16.msra.mxu3 %v8023_v4 }
0x23c1   : > { %6181 = vadd.xlane.f32.xlu0 %v6176_v47 }
0x23c2   : > { %v6161_v8 = vpop.f32.mrf.mxu0  ;;  %v6174_v5 = vpop.f32.mrf.mxu1  ;;  %6344 = vmatpush.bf16.msrb.mxu2 %v8043_v44 }
0x23c3   : > { %v8391_v8 = vld [vmem:[#allocation20 + $0x14] sm:$0xf] }
0x23c6   : > { %6345 = vmatpush.bf16.msrb.mxu2 %v8035_v49 }
0x23ca   : > { %6346 = vmatpush.bf16.msrb.mxu2 %v8027_v54 }
0x23ce   : > { %6347 = vmatpush.bf16.msrb.mxu2 %v8019_v3 }
0x2434   : > { %v6182_v7 = vpop.xlane.xlu0 %6181 }
0x2435   : > { %v6183_v10 = vmul.f32 %v6182_v7, %v9756_v6  ;;  %v8012_v7 = vld [vmem:[#allocation20 + $0x18] sm:$0xf0] }
0x2437   : > { %v6184_v1 = vsub.f32 %v6176_v47, %v6183_v10  ;;  %v8392_v47 = vld [vmem:[#allocation20 + $0x14] sm:$0xf0]  ;;  %v8015_v10 = vor.u32 %v8391_v8, %v8012_v7 }
0x2438   : > { %v8011_v5 = vor.u32 %v8392_v47, %v8010_v2 }
0x2439   : > { %v6185_v12 = vmul.f32 %v6184_v1, %v6184_v1  ;;  %6361 = vmatpush.bf16.msra.mxu3 %v8015_v10 }
0x243a   : > { %6348 = vmatpush.bf16.msrb.mxu2 %v8011_v5 }
0x243b   : > { %6186 = vadd.xlane.f32.xlu2 %v6185_v12  ;;  %v8390_v12 = vld [vmem:[#allocation20 + $0x4] sm:$0xf0] }
0x24ae   : > { %v6187_v62 = vpop.xlane.xlu2 %6186 }
0x24af   : > { %v6188_v14 = vmul.f32 %v6187_v62, %v9756_v6  ;;  %v8389_v62 = vld [vmem:[#allocation20 + $0x4] sm:$0xf] }
0x24b1   : > { %v6189_v16 = vadd.f32 1e-05, %v6188_v14 }
0x24b3   : > { %8761 = vrsqrt.f32 %v6189_v16  ;;  %vm6196_vm4 = vweird.f32 %v6189_v16 }
0x24b9   : > { %v8762_v38 = vpop.eup %8761 }
0x24ba   : > { %v6191_v17 = vmul.f32 %v8762_v38, %v6189_v16  ;;  %vm6197_vm3 = vweird.f32 %v8762_v38  ;;  %v8004_v16 = vld [vmem:[#allocation20 + $0x8] sm:$0xf0] }
0x24bb   : > { %vm6198_vm5 = vmor %vm6196_vm4, %vm6197_vm3 }
0x24bc   : > { %v6192_v55 = vmul.f32 %v8762_v38, %v6191_v17 }
0x24be   : > { %v6193_v19 = vmul.f32 0.5, %v6192_v55 }
0x24c0   : > { %v6194_v20 = vsub.f32 1.5, %v6193_v19 }
0x24c2   : > { %v6195_v21 = vmul.f32 %v8762_v38, %v6194_v20 }
0x24c4   : > { %v6199_v24 = vsel %vm6198_vm5, %v8762_v38, %v6195_v21  ;;  %v8007_v38 = vor.u32 %v8389_v62, %v8004_v16 }
0x24c5   : > { %v6200_v26 = vmul.f32 %v6199_v24, %v6184_v1  ;;  %v8002_v1 = vld [vmem:[#allocation20] sm:$0xf] }
0x24c6   : > { %v8003_v14 = vor.u32 %v8390_v12, %v8002_v1  ;;  %6362 = vmatpush.bf16.msra.mxu3 %v8007_v38 }
0x24c7   : > { %v6204_v18 = vmul.f32 %v8639_v23, %v6200_v26 }
0x24c8   : > { %6349 = vmatpush.bf16.msrb.mxu2 %v8003_v14 }
0x24c9   : > { %v6208_v27 = vadd.f32 %v8640_v9, %v6204_v18  ;;  %v8641_v18 = vld [vmem:[%s10403_s1] ss:$0 sm:$0xff]  ;;  %s6384_s1 = sshll.u32 %s1424_s5, 4  ;;  %s6385_s1 = int_to_ptr.vmem [resolvable:$true] %s6384_s1 }
0x24cb   : > { %6211 = vadd.xlane.f32.xlu2 %v6208_v27 }
0x253e   : > { %v6212_v33 = vpop.xlane.xlu2 %6211 }
0x253f   : > { %v6213_v13 = vmul.f32 %v6212_v33, %v9756_v6  ;;  %v6259_v33 = vperm.slane %v6256_v31, 1 }
0x2541   : > { %v10211_v34 = vsub.f32 %v6208_v27, %v6213_v13 }
0x2543   : > { %v6215_v35 = vmul.f32 %v10211_v34, %v10211_v34 }
0x2545   : > { %6216 = vadd.xlane.f32.xlu2 %v6215_v35 }
0x25b8   : > { %v6217_v17 = vpop.xlane.xlu2 %6216 }
0x25b9   : > { %v6218_v55 = vmul.f32 %v6217_v17, %v9756_v6  ;;  %v8642_v6 = vld [vmem:[%s9444_s13] ss:$0 sm:$0xff] }
0x25bb   : > { %v6219_v19 = vadd.f32 1e-05, %v6218_v55 }
0x25bd   : > { %8763 = vrsqrt.f32 %v6219_v19  ;;  %vm6226_vm15 = vweird.f32 %v6219_v19 }
0x25c3   : > { %v8764_v20 = vpop.eup %8763 }
0x25c4   : > { %v6221_v21 = vmul.f32 %v8764_v20, %v6219_v19  ;;  %vm6227_vm14 = vweird.f32 %v8764_v20 }
0x25c5   : > { %vm6228_vm6 = vmor %vm6226_vm15, %vm6227_vm14 }
0x25c6   : > { %v6222_v23 = vmul.f32 %v8764_v20, %v6221_v21 }
0x25c8   : > { %v6223_v24 = vmul.f32 0.5, %v6222_v23 }
0x25ca   : > { %v6224_v26 = vsub.f32 1.5, %v6223_v24 }
0x25cc   : > { %v6225_v9 = vmul.f32 %v8764_v20, %v6224_v26 }
0x25ce   : > { %v6229_v27 = vsel %vm6228_vm6, %v8764_v20, %v6225_v9 }
0x25cf   : > { %v6230_v28 = vmul.f32 %v6229_v27, %v10211_v34 }
0x25d1   : > { %v6234_v60 = vmul.f32 %v8641_v18, %v6230_v28 }
0x25d3   : > { %v6238_v29 = vadd.f32 %v8642_v6, %v6234_v60 }
0x25d5   : > { %v6255_v57 = vpack.c.bf16 %v6238_v29, %v6238_v29 }
0x25d7   : > { %6350 = vmatmul.bf16.vlgmr.msrb.gmra.mxu2 %v6255_v57  ;;  %6363 = vmatmul.bf16.vlgmr.msra.gmra.mxu3 %v6255_v57 }
0x265a   : > { %v6351_v13 = vpop.f32.mrf.mxu2  ;;  %v6364_v34 = vpop.f32.mrf.mxu3 }
0x265b   : > { %v6352_v35 = vadd.f32 %v6351_v13, %v6258_v32  ;;  %v6365_v37 = vadd.f32 %v6364_v34, %v6259_v33 }
0x265d   : > { %6368 = vst [vmem:[%s1424_s5] sm:$0xff] %v6352_v35 }
0x265e   : > { %6369 = vst [vmem:[%s1424_s5 + $0x8] sm:$0xff] %v6365_v37 }
0x265f   : > { %9123 = shalt.err (!%p9120_p13)
}
0x2660   : > { %8450 = dma.vmem_to_hbm [thread:$0]  (%p9499_p5), %s6385_s1, 256, %s6387_s8, %s6371_s0  }
0x2662   : > { %v6353_v56 = vpop.f32.mrf.mxu2  ;;  %v6366_v39 = vpop.f32.mrf.mxu3 }
0x2663 PF: > { %s10407_s5 = sld [smem:[#allocation66_spill]] }
0x2664   : > { %s10408_s3 = sld [smem:[#allocation64_spill]] }
0x2669   : > { %p8512_p1 = scmp.ge.s32.totalorder %s10407_s5, 2 }
0x266a   : > { %s6398_s9 = sand.u32 1, %s10408_s3  }
0x266b   : > { %p8487_p2 = pnand %p8512_p1, %p9503_p6  ;;  %s6399_s12 = scalar_lea.sflag [#allocation5], %s6398_s9 }
0x266d   : > { %p8488_p3 = pneg %p8487_p2 }
0x266f   : > { %9165 = dma.done.wait (%p8488_p3), %s6399_s12, 256  }
0x2670   : > { %9167 = vsyncadd (%p8488_p3), %s6399_s12, 4294967040  ;;  %s10410_s15 = sld [smem:[#allocation67_spill]]  ;;  %s10413_s7 = smov %s9174_s10 }
0x2671   : > { %s10411_s2 = sld [smem:[#allocation65_spill]] }
0x2672   : > { %s10412_s11 = sld [smem:[#allocation68_spill]] }
0x2676   : > { %p99_p5 = scmp.ge.s32.totalorder %s10410_s15, 4  }
0x2677   : > { %s10414_s10 = smov %s10411_s2 }
0x2678   :  { %101 = sbr.rel (!%p99_p5) target bundleno = 93 (0x5d), region = 340 }
0x267d   :  { %6405 = vsyncpa [#allocation4], 1 }
0x267e   :  { %6407 = vsyncpa [#allocation4 + $0x1], 1 }
0x267f   :  { %6408 = vsyncpa [#allocation7], 1 }
0x2680   :  { %6409 = vsyncpa [#allocation10], 1 }
0x2681   :  { %6410 = vsyncpa [#allocation13], 1 }
0x2682   :  { %6411 = vsyncpa [#allocation16], 1 }
0x2683   :  { %6412 = vsyncpa [#allocation19], 1 }
0x2684   :  { %6413 = vsyncpa [#allocation5], 1 }
0x2685   :  { %6415 = vsyncpa [#allocation5 + $0x1], 1 }

</bundles_post_ra>
